<compile_context>
chip_gen: v7x
topology: tpu7x:2x2x1
jax: 0.10.0
libtpu: 0.0.40
codegen_flags: <defaults>
</compile_context>

<pallas_src>
import jax
import jax.numpy as jnp
from jax.experimental import pallas as pl
from jax.experimental.pallas import tpu as pltpu

# ----------------------------- model configuration ---------------------------
Z_DIM = 32
D_LIST = [40, 24]              # per-view input dims (d_list)
NUM_VIEWS = len(D_LIST)
BATCH = 8
CLASS_NUM = 4                  # unused by forward(step=2), kept for fidelity

HID_INF = 1024                 # inference_mlp / header hidden dim
HID_GEN = 512                  # Px_generation_mlp hidden dim
XR_PAD = 128                   # generation layer-2 minor dim, padded lane-dense

BN_EPS = 1e-5                  # PyTorch BatchNorm1d default eps (training-mode batch stats)
POE_EPS = 1e-5
COS_EPS = 1e-6

# output-slab layout (units of Z_DIM-wide column blocks, then 128-wide xr blocks)
_N_HEAD = NUM_VIEWS + 1                        # experts fed to the header (2 views + map_fea)
_SLAB_Z_BLOCKS = 4 + 2 * _N_HEAD + NUM_VIEWS   # fusion_mu|fusion_sca|z_sample|cos + z_mu*3 + z_sca*3 + fea_p*2
_XR_OFF = _SLAB_Z_BLOCKS * Z_DIM               # 12 * 32 = 384
_OUT_W = _XR_OFF + 2 * NUM_VIEWS * XR_PAD      # 384 + 4*128 = 896 lanes (7 full vreg tiles)


# ------------------------------ in-kernel math --------------------------------
def _gelu(x):
    # TODO(synk): torch.nn.GELU defaults to exact erf form; tanh approximation used (≈1e-3 abs).
    c = 0.7978845608028654  # sqrt(2/pi)
    return 0.5 * x * (1.0 + jnp.tanh(c * (x + 0.044715 * x * x * x)))


def _softplus(x):
    # numerically-stable softplus; matches torch.nn.Softplus(beta=1, threshold=20)
    stable = jnp.maximum(x, 0.0) + jnp.log(1.0 + jnp.exp(-jnp.abs(x)))
    return jnp.where(x > 20.0, x, stable)


def _bn_cols(h):
    # training-mode BatchNorm1d with identity affine; centered two-pass variance (stable).
    mean = jnp.mean(h, axis=0, keepdims=True)
    c = h - mean
    var = jnp.mean(c * c, axis=0, keepdims=True)
    return c * jax.lax.rsqrt(var + BN_EPS)


def _group_bn(h, groups, rows):
    # BN applied independently per group of `rows` consecutive rows (== per PyTorch call).
    parts = []
    for g in range(groups):
        parts.append(_bn_cols(h[g * rows:(g + 1) * rows, :]))
    return jnp.concatenate(parts, axis=0)


# ------------------------------- fused Pallas kernel ---------------------------
def _vae_kernel(x0_ref, x1_ref, map_ref, e10_ref, e5_ref,
                w1v0_ref, b1v0_ref, w1v1_ref, b1v1_ref,
                w2cat_ref, b2cat_ref,
                wh1_ref, bh1_ref, bh2_ref,
                wls_ref, bls_ref,
                bg1z_ref, bg1p_ref, bg2_ref,
                wh2_hbm, wg1z_hbm, wg1p_hbm, wg2_hbm,     # memory_space=pl.ANY (raw HBM refs)
                out_ref,
                wh2_v, wg1z_v, wg1p_v, wg2_v, dma_sems):  # scratch
    B = x0_ref.shape[0]
    bf = jnp.bfloat16

    # ---- stream late-used weights (header L2 + generation) under early compute --------
    cp_wh2 = pltpu.make_async_copy(wh2_hbm, wh2_v, dma_sems.at[0])
    cp_wg1z = pltpu.make_async_copy(wg1z_hbm, wg1z_v, dma_sems.at[1])
    cp_wg1p = pltpu.make_async_copy(wg1p_hbm, wg1p_v, dma_sems.at[2])
    cp_wg2 = pltpu.make_async_copy(wg2_hbm, wg2_v, dma_sems.at[3])
    cp_wh2.start(); cp_wg1z.start(); cp_wg1p.start(); cp_wg2.start()

    # ---- stage 1: per-view inference MLPs (qz_s & qz_p) -------------------------------
    # layer 1: per-view matmul producing [s | p] hidden halves (1024-aligned slices).
    h_a = jnp.dot(x0_ref[...].astype(bf), w1v0_ref[...],
                  preferred_element_type=jnp.float32) + b1v0_ref[...]
    h_a = _gelu(_bn_cols(h_a))                                       # (B, 2048): [s0 | p0]
    h_b = jnp.dot(x1_ref[...].astype(bf), w1v1_ref[...],
                  preferred_element_type=jnp.float32) + b1v1_ref[...]
    h_b = _gelu(_bn_cols(h_b))                                       # (B, 2048): [s1 | p1]

    # layer 2: lane-dense (1024, 128) weight, 32-lane block k = branch k in [s0,p0,s1,p1].
    w2 = w2cat_ref[...]
    b2 = b2cat_ref[...]
    h_parts = (h_a[:, :HID_INF], h_a[:, HID_INF:], h_b[:, :HID_INF], h_b[:, HID_INF:])
    fea = []
    for k in range(2 * NUM_VIEWS):
        f = jnp.dot(h_parts[k].astype(bf), w2[:, k * Z_DIM:(k + 1) * Z_DIM],
                    preferred_element_type=jnp.float32) + b2[:, k * Z_DIM:(k + 1) * Z_DIM]
        fea.append(_gelu(_bn_cols(f)))                               # (B, Z)
    fea_s0, fea_p0, fea_s1, fea_p1 = fea

    # ---- stage 2: shared qz header on [fea_s0 ; fea_s1 ; map_fea] (M = 3B) -------------
    hs = jnp.concatenate([fea_s0, fea_s1, map_ref[...]], axis=0)     # (3B, Z)
    hh = jnp.dot(hs.astype(bf), wh1_ref[...],
                 preferred_element_type=jnp.float32) + bh1_ref[...]
    hh = _gelu(_group_bn(hh, _N_HEAD, B))                            # (3B, HID_INF)
    cp_wh2.wait()
    hh = jnp.dot(hh.astype(bf), wh2_v[...],
                 preferred_element_type=jnp.float32) + bh2_ref[...]
    hh = _gelu(_group_bn(hh, _N_HEAD, B))                            # (3B, Z)
    zl = jnp.dot(hh.astype(bf), wls_ref[...],
                 preferred_element_type=jnp.float32) + bls_ref[...]  # (3B, 2Z)
    z_mu = zl[:, :Z_DIM]                                             # (3B, Z)
    z_var = _softplus(zl[:, Z_DIM:])                                 # variance (see PyTorch ref)

    # ---- stage 3: PoE aggregation (with N(0,1) prior expert) + reparameterization ------
    mu_v = [z_mu[v * B:(v + 1) * B] for v in range(_N_HEAD)]
    var_v = [z_var[v * B:(v + 1) * B] for v in range(_N_HEAD)]
    T_v = [1.0 / (vv + POE_EPS) for vv in var_v]
    agg_T = 1.0 / (1.0 + POE_EPS)                                    # prior expert: mu=0, var=1
    for t in T_v:
        agg_T = agg_T + t
    inv_T = 1.0 / (agg_T + POE_EPS)
    fusion_var = inv_T
    num = mu_v[0] * T_v[0]
    for v in range(1, _N_HEAD):
        num = num + mu_v[v] * T_v[v]
    fusion_mu = num * inv_T                                          # prior mean 0 contributes 0
    z_sample = fusion_mu + jnp.sqrt(fusion_var) * e10_ref[...]       # times=10 reparam

    # ---- stage 4: per-view shared reparam (times=5) + cosine-similarity loss -----------
    z_s = z_mu[:NUM_VIEWS * B] + jnp.sqrt(z_var[:NUM_VIEWS * B]) * e5_ref[...]   # (2B, Z)
    p = jnp.concatenate([fea_p0, fea_p1], axis=0)                                # (2B, Z)
    d = jnp.sum(z_s * p, axis=1, keepdims=True)
    nz = jnp.sqrt(jnp.sum(z_s * z_s, axis=1, keepdims=True))
    np_ = jnp.sqrt(jnp.sum(p * p, axis=1, keepdims=True))
    cos = d / (jnp.maximum(nz, COS_EPS) * jnp.maximum(np_, COS_EPS))
    loss = 1.0 - (cos + 1.0) * 0.5
    cos_loss = jnp.sum(loss, keepdims=True) / (NUM_VIEWS * B)        # (1,1): mean/batch, mean/views

    # ---- stage 5: generation MLPs: px[v](z_sample), px_p[v](fea_p[v]) -------------------
    cp_wg1z.wait(); cp_wg1p.wait(); cp_wg2.wait()
    # fused px0+px1 layer-1 (shared z_sample input); per-column BN == per-branch BN.
    hz = jnp.dot(z_sample.astype(bf), wg1z_v[...],
                 preferred_element_type=jnp.float32) + bg1z_ref[...]
    hz = _gelu(_bn_cols(hz))                                         # (B, 2*HID_GEN): [px0 | px1]
    xr0 = jnp.dot(hz[:, :HID_GEN].astype(bf), wg2_v[0],
                  preferred_element_type=jnp.float32) + bg2_ref[0]   # (B, 128), cols>=D0 are zero
    xr1 = jnp.dot(hz[:, HID_GEN:].astype(bf), wg2_v[1],
                  preferred_element_type=jnp.float32) + bg2_ref[1]
    fps = (fea_p0, fea_p1)
    xrp = []
    for v in range(NUM_VIEWS):
        hp = jnp.dot(fps[v].astype(bf), wg1p_v[v],
                     preferred_element_type=jnp.float32) + bg1p_ref[v]
        hp = _gelu(_bn_cols(hp))                                     # (B, HID_GEN)
        xrp.append(jnp.dot(hp.astype(bf), wg2_v[NUM_VIEWS + v],
                           preferred_element_type=jnp.float32) + bg2_ref[NUM_VIEWS + v])

    # ---- single lane-dense output slab (B, 896) ------------------------------------------
    cos_blk = jnp.zeros((B, Z_DIM), jnp.float32) + cos_loss
    out_ref[...] = jnp.concatenate(
        [fusion_mu, fusion_var, z_sample, cos_blk,
         mu_v[0], mu_v[1], mu_v[2], var_v[0], var_v[1], var_v[2],
         fea_p0, fea_p1, xr0, xr1] + xrp, axis=1)


# ------------------------------ pallas_call wrapper ----------------------------
def _full_spec(shape):
    nd = len(shape)
    return pl.BlockSpec(shape, lambda i, _nd=nd: (0,) * _nd)


@jax.jit
def vae_forward(packed, x_list, map_fea, key):
    """Reproduces VAE.forward(x_list, step=2, map_fea, mask=None) with one fused kernel."""
    B = x_list[0].shape[0]
    x0 = x_list[0].astype(jnp.float32)
    x1 = x_list[1].astype(jnp.float32)

    k10, k5 = jax.random.split(key)
    # gaussian_reparameterization_var(times=T) == mu + std * mean(T iid N(0,1) draws)
    eps10 = jnp.mean(jax.random.normal(k10, (10, B, Z_DIM), jnp.float32), axis=0)
    eps5 = jnp.mean(jax.random.normal(k5, (NUM_VIEWS, 5, B, Z_DIM), jnp.float32), axis=1)
    eps5 = eps5.reshape(NUM_VIEWS * B, Z_DIM)

    dense_args = (x0, x1, map_fea.astype(jnp.float32), eps10, eps5,
                  packed["w1v0"], packed["b1v0"], packed["w1v1"], packed["b1v1"],
                  packed["w2cat"], packed["b2cat"],
                  packed["whdr1"], packed["bhdr1"], packed["bhdr2"],
                  packed["wls"], packed["bls"],
                  packed["bg1z"], packed["bg1p"], packed["bg2"])
    hbm_args = (packed["whdr2"], packed["wg1z"], packed["wg1p"], packed["wg2"])

    in_specs = ([_full_spec(a.shape) for a in dense_args]
                + [pl.BlockSpec(memory_space=pl.ANY)] * len(hbm_args))

    out = pl.pallas_call(
        _vae_kernel,
        grid=(1,),
        in_specs=in_specs,
        out_specs=_full_spec((B, _OUT_W)),
        out_shape=jax.ShapeDtypeStruct((B, _OUT_W), jnp.float32),
        scratch_shapes=[
            pltpu.VMEM(packed["whdr2"].shape, jnp.bfloat16),
            pltpu.VMEM(packed["wg1z"].shape, jnp.bfloat16),
            pltpu.VMEM(packed["wg1p"].shape, jnp.bfloat16),
            pltpu.VMEM(packed["wg2"].shape, jnp.bfloat16),
            pltpu.SemaphoreType.DMA((4,)),
        ],
        compiler_params=pltpu.CompilerParams(dimension_semantics=("arbitrary",)),
    )(*dense_args, *hbm_args)

    zcol = lambda i: out[:, i * Z_DIM:(i + 1) * Z_DIM]
    fusion_mu, fusion_sca, z_sample = zcol(0), zcol(1), zcol(2)
    cos_loss = out[0, 3 * Z_DIM]
    mu_s_list = [zcol(4 + v) for v in range(_N_HEAD)]
    sca_s_list = [zcol(4 + _N_HEAD + v) for v in range(_N_HEAD)]
    fea_p_list = [zcol(4 + 2 * _N_HEAD + v) for v in range(NUM_VIEWS)]

    xr_list = [out[:, _XR_OFF + v * XR_PAD: _XR_OFF + v * XR_PAD + D_LIST[v]]
               for v in range(NUM_VIEWS)]
    xr_p_list = [out[:, _XR_OFF + (NUM_VIEWS + v) * XR_PAD:
                     _XR_OFF + (NUM_VIEWS + v) * XR_PAD + D_LIST[v]]
                 for v in range(NUM_VIEWS)]

    return {
        "z_sample": z_sample,
        "mu_s_list": mu_s_list,
        "sca_s_list": sca_s_list,
        "fusion_mu": fusion_mu,
        "fusion_sca": fusion_sca,
        "xr_list": xr_list,
        "xr_p_list": xr_p_list,
        "cos_loss": cos_loss,
        "fea_p_list": fea_p_list,
        "z_mu": jnp.stack(mu_s_list, axis=0),
        "z_sca": jnp.stack(sca_s_list, axis=0),
    }


# ------------------------------- parameter setup -------------------------------
def _linear_params(key, in_dim, out_dim):
    kw, kb = jax.random.split(key)
    scale = 1.0 / jnp.sqrt(float(in_dim))
    w = jax.random.uniform(kw, (in_dim, out_dim), jnp.float32, -scale, scale)
    b = jax.random.uniform(kb, (out_dim,), jnp.float32, -scale, scale)
    return {"w": w, "b": b}


def _mlp2_params(key, in_dim, hid, out_dim):
    k1, k2 = jax.random.split(key)
    return {"l1": _linear_params(k1, in_dim, hid), "l2": _linear_params(k2, hid, out_dim)}


def init_vae_params(key):
    params = {"qz_s": [], "qz_p": [], "px": [], "px_p": []}
    for v in range(NUM_VIEWS):
        kv = jax.random.fold_in(key, v)
        ks, kp, kg, kgp = jax.random.split(kv, 4)
        params["qz_s"].append(_mlp2_params(ks, D_LIST[v], HID_INF, Z_DIM))
        params["qz_p"].append(_mlp2_params(kp, D_LIST[v], HID_INF, Z_DIM))
        params["px"].append(_mlp2_params(kg, Z_DIM, HID_GEN, D_LIST[v]))
        params["px_p"].append(_mlp2_params(kgp, Z_DIM, HID_GEN, D_LIST[v]))
    kh = jax.random.fold_in(key, 1000)
    kh1, kh2, kh3 = jax.random.split(kh, 3)
    params["header_mlp"] = _mlp2_params(kh1, Z_DIM, HID_INF, Z_DIM)
    params["z_loc"] = _linear_params(kh2, Z_DIM, Z_DIM)
    params["z_sca"] = _linear_params(kh3, Z_DIM, Z_DIM)
    # NOTE: mlp_2view / mapinference / qz_inference / px_generation_s / prior2 are unused in
    # forward(step=2) and therefore not materialized.
    return params


def pack_vae_params(p):
    """One-time packing of per-layer PyTorch-style params into fused kernel operands.

    All weight matrices are cast to bfloat16 (halves DMA bytes; MXU-native); biases stay f32.
    """
    bf = jnp.bfloat16

    # inference layer-1: per view concat [s | p] along the out dim (NO block-diag zeros).
    w1, b1 = [], []
    for v in range(NUM_VIEWS):
        w1.append(jnp.concatenate([p["qz_s"][v]["l1"]["w"], p["qz_p"][v]["l1"]["w"]],
                                  axis=1).astype(bf))                 # (d_v, 2*HID_INF)
        b1.append(jnp.concatenate([p["qz_s"][v]["l1"]["b"],
                                   p["qz_p"][v]["l1"]["b"]]).reshape(1, -1))

    # inference layer-2: lane-dense concat of the four (HID_INF, Z) blocks: [s0|p0|s1|p1].
    w2_blocks, b2_blocks = [], []
    for v in range(NUM_VIEWS):
        for nm in ("qz_s", "qz_p"):
            w2_blocks.append(p[nm][v]["l2"]["w"])
            b2_blocks.append(p[nm][v]["l2"]["b"])
    w2cat = jnp.concatenate(w2_blocks, axis=1).astype(bf)             # (HID_INF, 4*Z)
    b2cat = jnp.concatenate(b2_blocks).reshape(1, -1)

    packed = {
        "w1v0": w1[0], "b1v0": b1[0], "w1v1": w1[1], "b1v1": b1[1],
        "w2cat": w2cat, "b2cat": b2cat,
        "whdr1": p["header_mlp"]["l1"]["w"].astype(bf),
        "bhdr1": p["header_mlp"]["l1"]["b"].reshape(1, -1),
        "whdr2": p["header_mlp"]["l2"]["w"].astype(bf),
        "bhdr2": p["header_mlp"]["l2"]["b"].reshape(1, -1),
        "wls": jnp.concatenate([p["z_loc"]["w"], p["z_sca"]["w"]], axis=1).astype(bf),
        "bls": jnp.concatenate([p["z_loc"]["b"], p["z_sca"]["b"]]).reshape(1, -1),
    }

    # generation: fused px0+px1 layer-1 (shared z_sample input), per-view px_p layer-1,
    # and layer-2 stacked [px0, px1, px_p0, px_p1] with the minor dim padded to 128 lanes.
    packed["wg1z"] = jnp.concatenate([p["px"][0]["l1"]["w"], p["px"][1]["l1"]["w"]],
                                     axis=1).astype(bf)               # (Z, 2*HID_GEN)
    packed["bg1z"] = jnp.concatenate([p["px"][0]["l1"]["b"],
                                      p["px"][1]["l1"]["b"]]).reshape(1, -1)
    packed["wg1p"] = jnp.stack([p["px_p"][v]["l1"]["w"] for v in range(NUM_VIEWS)]).astype(bf)
    packed["bg1p"] = jnp.stack([p["px_p"][v]["l1"]["b"].reshape(1, -1)
                                for v in range(NUM_VIEWS)])
    g2w, g2b = [], []
    for nm in ("px", "px_p"):
        for v in range(NUM_VIEWS):
            w = p[nm][v]["l2"]["w"]
            b = p[nm][v]["l2"]["b"]
            g2w.append(jnp.pad(w, ((0, 0), (0, XR_PAD - w.shape[1]))))
            g2b.append(jnp.pad(b, (0, XR_PAD - b.shape[0])).reshape(1, -1))
    packed["wg2"] = jnp.stack(g2w).astype(bf)                          # (4, HID_GEN, 128)
    packed["bg2"] = jnp.stack(g2b)                                     # (4, 1, 128)
    return packed


# ------------------------------------- main -------------------------------------
if __name__ == "__main__":
    root = jax.random.PRNGKey(0)
    k_param, k_data, k_noise = jax.random.split(root, 3)

    params = init_vae_params(k_param)
    packed = pack_vae_params(params)

    data_keys = jax.random.split(k_data, NUM_VIEWS + 1)
    x_list = [jax.random.normal(data_keys[v], (BATCH, D_LIST[v]), jnp.float32)
              for v in range(NUM_VIEWS)]
    map_fea = jax.random.normal(data_keys[-1], (BATCH, Z_DIM), jnp.float32)

    outputs = vae_forward(packed, x_list, map_fea, k_noise)
    outputs = jax.block_until_ready(outputs)

    # basic sanity on shapes / finiteness
    assert outputs["z_sample"].shape == (BATCH, Z_DIM)
    assert outputs["z_mu"].shape == (NUM_VIEWS + 1, BATCH, Z_DIM)
    assert outputs["z_sca"].shape == (NUM_VIEWS + 1, BATCH, Z_DIM)
    assert outputs["xr_list"][0].shape == (BATCH, D_LIST[0])
    assert outputs["xr_list"][1].shape == (BATCH, D_LIST[1])
    assert outputs["xr_p_list"][1].shape == (BATCH, D_LIST[1])
    assert bool(jnp.isfinite(outputs["cos_loss"]))
    assert bool(jnp.all(jnp.isfinite(outputs["z_mu"])))
    assert bool(jnp.all(jnp.isfinite(outputs["fusion_sca"])))
    assert bool(jnp.all(jnp.isfinite(outputs["xr_list"][0])))

    print("KERNEL_OK")
</pallas_src>

<mosaic_0001>
module attributes {stable_mosaic.version = 11 : i64} {
  func.func @_vae_kernel(%arg0: i32, %arg1: memref<8x40xf32, #tpu.memory_space<vmem>>, %arg2: memref<8x24xf32, #tpu.memory_space<vmem>>, %arg3: memref<8x32xf32, #tpu.memory_space<vmem>>, %arg4: memref<8x32xf32, #tpu.memory_space<vmem>>, %arg5: memref<16x32xf32, #tpu.memory_space<vmem>>, %arg6: memref<40x2048xbf16, #tpu.memory_space<vmem>>, %arg7: memref<1x2048xf32, #tpu.memory_space<vmem>>, %arg8: memref<24x2048xbf16, #tpu.memory_space<vmem>>, %arg9: memref<1x2048xf32, #tpu.memory_space<vmem>>, %arg10: memref<1024x128xbf16, #tpu.memory_space<vmem>>, %arg11: memref<1x128xf32, #tpu.memory_space<vmem>>, %arg12: memref<32x1024xbf16, #tpu.memory_space<vmem>>, %arg13: memref<1x1024xf32, #tpu.memory_space<vmem>>, %arg14: memref<1x32xf32, #tpu.memory_space<vmem>>, %arg15: memref<32x64xbf16, #tpu.memory_space<vmem>>, %arg16: memref<1x64xf32, #tpu.memory_space<vmem>>, %arg17: memref<1x1024xf32, #tpu.memory_space<vmem>>, %arg18: memref<2x1x512xf32, #tpu.memory_space<vmem>>, %arg19: memref<4x1x128xf32, #tpu.memory_space<vmem>>, %arg20: memref<1024x32xbf16, #tpu.memory_space<any>>, %arg21: memref<32x1024xbf16, #tpu.memory_space<any>>, %arg22: memref<2x32x512xbf16, #tpu.memory_space<any>>, %arg23: memref<4x512x128xbf16, #tpu.memory_space<any>>, %arg24: memref<8x896xf32, #tpu.memory_space<vmem>>, %arg25: memref<1024x32xbf16, #tpu.memory_space<vmem>>, %arg26: memref<32x1024xbf16, #tpu.memory_space<vmem>>, %arg27: memref<2x32x512xbf16, #tpu.memory_space<vmem>>, %arg28: memref<4x512x128xbf16, #tpu.memory_space<vmem>>, %arg29: memref<4x!tpu.dma_semaphore, #tpu.memory_space<semaphore_mem>>) attributes {dimension_semantics = [#tpu.dimension_semantics<arbitrary>], iteration_bounds = array<i64: 1>, scalar_prefetch = 0 : i64, scratch_operands = 5 : i64, tpu.core_type = #tpu.core_type<tc>, window_params = [{pipeline_mode = #tpu.pipeline_mode<synchronous>, transform_indices = @transform_0, window_bounds = array<i64: 8, 40>}, {pipeline_mode = #tpu.pipeline_mode<synchronous>, transform_indices = @transform_1, window_bounds = array<i64: 8, 24>}, {pipeline_mode = #tpu.pipeline_mode<synchronous>, transform_indices = @transform_2, window_bounds = array<i64: 8, 32>}, {pipeline_mode = #tpu.pipeline_mode<synchronous>, transform_indices = @transform_3, window_bounds = array<i64: 8, 32>}, {pipeline_mode = #tpu.pipeline_mode<synchronous>, transform_indices = @transform_4, window_bounds = array<i64: 16, 32>}, {pipeline_mode = #tpu.pipeline_mode<synchronous>, transform_indices = @transform_5, window_bounds = array<i64: 40, 2048>}, {pipeline_mode = #tpu.pipeline_mode<synchronous>, transform_indices = @transform_6, window_bounds = array<i64: 1, 2048>}, {pipeline_mode = #tpu.pipeline_mode<synchronous>, transform_indices = @transform_7, window_bounds = array<i64: 24, 2048>}, {pipeline_mode = #tpu.pipeline_mode<synchronous>, transform_indices = @transform_8, window_bounds = array<i64: 1, 2048>}, {pipeline_mode = #tpu.pipeline_mode<synchronous>, transform_indices = @transform_9, window_bounds = array<i64: 1024, 128>}, {pipeline_mode = #tpu.pipeline_mode<synchronous>, transform_indices = @transform_10, window_bounds = array<i64: 1, 128>}, {pipeline_mode = #tpu.pipeline_mode<synchronous>, transform_indices = @transform_11, window_bounds = array<i64: 32, 1024>}, {pipeline_mode = #tpu.pipeline_mode<synchronous>, transform_indices = @transform_12, window_bounds = array<i64: 1, 1024>}, {pipeline_mode = #tpu.pipeline_mode<synchronous>, transform_indices = @transform_13, window_bounds = array<i64: 1, 32>}, {pipeline_mode = #tpu.pipeline_mode<synchronous>, transform_indices = @transform_14, window_bounds = array<i64: 32, 64>}, {pipeline_mode = #tpu.pipeline_mode<synchronous>, transform_indices = @transform_15, window_bounds = array<i64: 1, 64>}, {pipeline_mode = #tpu.pipeline_mode<synchronous>, transform_indices = @transform_16, window_bounds = array<i64: 1, 1024>}, {pipeline_mode = #tpu.pipeline_mode<synchronous>, transform_indices = @transform_17, window_bounds = array<i64: 2, 1, 512>}, {pipeline_mode = #tpu.pipeline_mode<synchronous>, transform_indices = @transform_18, window_bounds = array<i64: 4, 1, 128>}, {}, {}, {}, {}, {pipeline_mode = #tpu.pipeline_mode<synchronous>, transform_indices = @transform_23, window_bounds = array<i64: 8, 896>}]} {
    %c0_i32 = arith.constant 0 : i32
    %0 = tpu.memref_slice %arg29[%c0_i32] : memref<4x!tpu.dma_semaphore, #tpu.memory_space<semaphore_mem>> -> memref<1x!tpu.dma_semaphore, #tpu.memory_space<semaphore_mem>>
    %1 = tpu.memref_squeeze %0 : memref<1x!tpu.dma_semaphore, #tpu.memory_space<semaphore_mem>> -> memref<!tpu.dma_semaphore, #tpu.memory_space<semaphore_mem>>
    tpu.enqueue_dma source(%arg20 : memref<1024x32xbf16, #tpu.memory_space<any>>) target(%arg25 : memref<1024x32xbf16, #tpu.memory_space<vmem>>) target_semaphore(%1 : memref<!tpu.dma_semaphore, #tpu.memory_space<semaphore_mem>>)
    %c1_i32 = arith.constant 1 : i32
    %2 = tpu.memref_slice %arg29[%c1_i32] : memref<4x!tpu.dma_semaphore, #tpu.memory_space<semaphore_mem>> -> memref<1x!tpu.dma_semaphore, #tpu.memory_space<semaphore_mem>>
    %3 = tpu.memref_squeeze %2 : memref<1x!tpu.dma_semaphore, #tpu.memory_space<semaphore_mem>> -> memref<!tpu.dma_semaphore, #tpu.memory_space<semaphore_mem>>
    tpu.enqueue_dma source(%arg21 : memref<32x1024xbf16, #tpu.memory_space<any>>) target(%arg26 : memref<32x1024xbf16, #tpu.memory_space<vmem>>) target_semaphore(%3 : memref<!tpu.dma_semaphore, #tpu.memory_space<semaphore_mem>>)
    %c2_i32 = arith.constant 2 : i32
    %4 = tpu.memref_slice %arg29[%c2_i32] : memref<4x!tpu.dma_semaphore, #tpu.memory_space<semaphore_mem>> -> memref<1x!tpu.dma_semaphore, #tpu.memory_space<semaphore_mem>>
    %5 = tpu.memref_squeeze %4 : memref<1x!tpu.dma_semaphore, #tpu.memory_space<semaphore_mem>> -> memref<!tpu.dma_semaphore, #tpu.memory_space<semaphore_mem>>
    tpu.enqueue_dma source(%arg22 : memref<2x32x512xbf16, #tpu.memory_space<any>>) target(%arg27 : memref<2x32x512xbf16, #tpu.memory_space<vmem>>) target_semaphore(%5 : memref<!tpu.dma_semaphore, #tpu.memory_space<semaphore_mem>>)
    %c3_i32 = arith.constant 3 : i32
    %6 = tpu.memref_slice %arg29[%c3_i32] : memref<4x!tpu.dma_semaphore, #tpu.memory_space<semaphore_mem>> -> memref<1x!tpu.dma_semaphore, #tpu.memory_space<semaphore_mem>>
    %7 = tpu.memref_squeeze %6 : memref<1x!tpu.dma_semaphore, #tpu.memory_space<semaphore_mem>> -> memref<!tpu.dma_semaphore, #tpu.memory_space<semaphore_mem>>
    tpu.enqueue_dma source(%arg23 : memref<4x512x128xbf16, #tpu.memory_space<any>>) target(%arg28 : memref<4x512x128xbf16, #tpu.memory_space<vmem>>) target_semaphore(%7 : memref<!tpu.dma_semaphore, #tpu.memory_space<semaphore_mem>>)
    %c0 = arith.constant 0 : index
    %c0_0 = arith.constant 0 : index
    %8 = vector.load %arg1[%c0, %c0_0] : memref<8x40xf32, #tpu.memory_space<vmem>>, vector<8x40xf32>
    %9 = arith.truncf %8 : vector<8x40xf32> to vector<8x40xbf16>
    %c0_1 = arith.constant 0 : index
    %c0_2 = arith.constant 0 : index
    %10 = vector.load %arg6[%c0_1, %c0_2] : memref<40x2048xbf16, #tpu.memory_space<vmem>>, vector<40x2048xbf16>
    %cst = arith.constant dense<0.000000e+00> : vector<8x2048xf32>
    %11 = tpu.matmul %9, %10, %cst {dimension_numbers = #tpu.dot_dimension_numbers<[1], [0], [0], [1], [0, 0, 1, 1], [], []>} : vector<8x40xbf16>, vector<40x2048xbf16>, vector<8x2048xf32> -> vector<8x2048xf32>
    %c0_3 = arith.constant 0 : index
    %c0_4 = arith.constant 0 : index
    %12 = vector.load %arg7[%c0_3, %c0_4] : memref<1x2048xf32, #tpu.memory_space<vmem>>, vector<1x2048xf32>
    %13 = vector.broadcast %12 : vector<1x2048xf32> to vector<8x2048xf32>
    %14 = arith.addf %11, %13 : vector<8x2048xf32>
    %cst_5 = arith.constant dense<0.000000e+00> : vector<2048xf32>
    %15 = vector.multi_reduction <add>, %14, %cst_5 [0] : vector<8x2048xf32> to vector<2048xf32>
    %16 = vector.shape_cast %15 : vector<2048xf32> to vector<1x2048xf32>
    %cst_6 = arith.constant 8.000000e+00 : f32
    %17 = vector.broadcast %cst_6 : f32 to vector<1x2048xf32>
    %18 = arith.divf %16, %17 : vector<1x2048xf32>
    %19 = vector.broadcast %18 : vector<1x2048xf32> to vector<8x2048xf32>
    %20 = arith.subf %14, %19 : vector<8x2048xf32>
    %21 = arith.mulf %20, %20 : vector<8x2048xf32>
    %cst_7 = arith.constant dense<0.000000e+00> : vector<2048xf32>
    %22 = vector.multi_reduction <add>, %21, %cst_7 [0] : vector<8x2048xf32> to vector<2048xf32>
    %23 = vector.shape_cast %22 : vector<2048xf32> to vector<1x2048xf32>
    %cst_8 = arith.constant 8.000000e+00 : f32
    %24 = vector.broadcast %cst_8 : f32 to vector<1x2048xf32>
    %25 = arith.divf %23, %24 : vector<1x2048xf32>
    %cst_9 = arith.constant 9.99999974E-6 : f32
    %26 = vector.broadcast %cst_9 : f32 to vector<1x2048xf32>
    %27 = arith.addf %25, %26 : vector<1x2048xf32>
    %28 = math.rsqrt %27 : vector<1x2048xf32>
    %29 = vector.broadcast %28 : vector<1x2048xf32> to vector<8x2048xf32>
    %30 = arith.mulf %20, %29 : vector<8x2048xf32>
    %cst_10 = arith.constant 5.000000e-01 : f32
    %31 = vector.broadcast %cst_10 : f32 to vector<8x2048xf32>
    %32 = arith.mulf %31, %30 : vector<8x2048xf32>
    %cst_11 = arith.constant 4.471500e-02 : f32
    %33 = vector.broadcast %cst_11 : f32 to vector<8x2048xf32>
    %34 = arith.mulf %33, %30 : vector<8x2048xf32>
    %35 = arith.mulf %34, %30 : vector<8x2048xf32>
    %36 = arith.mulf %35, %30 : vector<8x2048xf32>
    %37 = arith.addf %30, %36 : vector<8x2048xf32>
    %cst_12 = arith.constant 0.797884583 : f32
    %38 = vector.broadcast %cst_12 : f32 to vector<8x2048xf32>
    %39 = arith.mulf %38, %37 : vector<8x2048xf32>
    %40 = math.tanh %39 : vector<8x2048xf32>
    %cst_13 = arith.constant 1.000000e+00 : f32
    %41 = vector.broadcast %cst_13 : f32 to vector<8x2048xf32>
    %42 = arith.addf %41, %40 : vector<8x2048xf32>
    %43 = arith.mulf %32, %42 : vector<8x2048xf32>
    %c0_14 = arith.constant 0 : index
    %c0_15 = arith.constant 0 : index
    %44 = vector.load %arg2[%c0_14, %c0_15] : memref<8x24xf32, #tpu.memory_space<vmem>>, vector<8x24xf32>
    %45 = arith.truncf %44 : vector<8x24xf32> to vector<8x24xbf16>
    %c0_16 = arith.constant 0 : index
    %c0_17 = arith.constant 0 : index
    %46 = vector.load %arg8[%c0_16, %c0_17] : memref<24x2048xbf16, #tpu.memory_space<vmem>>, vector<24x2048xbf16>
    %cst_18 = arith.constant dense<0.000000e+00> : vector<8x2048xf32>
    %47 = tpu.matmul %45, %46, %cst_18 {dimension_numbers = #tpu.dot_dimension_numbers<[1], [0], [0], [1], [0, 0, 1, 1], [], []>} : vector<8x24xbf16>, vector<24x2048xbf16>, vector<8x2048xf32> -> vector<8x2048xf32>
    %c0_19 = arith.constant 0 : index
    %c0_20 = arith.constant 0 : index
    %48 = vector.load %arg9[%c0_19, %c0_20] : memref<1x2048xf32, #tpu.memory_space<vmem>>, vector<1x2048xf32>
    %49 = vector.broadcast %48 : vector<1x2048xf32> to vector<8x2048xf32>
    %50 = arith.addf %47, %49 : vector<8x2048xf32>
    %cst_21 = arith.constant dense<0.000000e+00> : vector<2048xf32>
    %51 = vector.multi_reduction <add>, %50, %cst_21 [0] : vector<8x2048xf32> to vector<2048xf32>
    %52 = vector.shape_cast %51 : vector<2048xf32> to vector<1x2048xf32>
    %cst_22 = arith.constant 8.000000e+00 : f32
    %53 = vector.broadcast %cst_22 : f32 to vector<1x2048xf32>
    %54 = arith.divf %52, %53 : vector<1x2048xf32>
    %55 = vector.broadcast %54 : vector<1x2048xf32> to vector<8x2048xf32>
    %56 = arith.subf %50, %55 : vector<8x2048xf32>
    %57 = arith.mulf %56, %56 : vector<8x2048xf32>
    %cst_23 = arith.constant dense<0.000000e+00> : vector<2048xf32>
    %58 = vector.multi_reduction <add>, %57, %cst_23 [0] : vector<8x2048xf32> to vector<2048xf32>
    %59 = vector.shape_cast %58 : vector<2048xf32> to vector<1x2048xf32>
    %cst_24 = arith.constant 8.000000e+00 : f32
    %60 = vector.broadcast %cst_24 : f32 to vector<1x2048xf32>
    %61 = arith.divf %59, %60 : vector<1x2048xf32>
    %cst_25 = arith.constant 9.99999974E-6 : f32
    %62 = vector.broadcast %cst_25 : f32 to vector<1x2048xf32>
    %63 = arith.addf %61, %62 : vector<1x2048xf32>
    %64 = math.rsqrt %63 : vector<1x2048xf32>
    %65 = vector.broadcast %64 : vector<1x2048xf32> to vector<8x2048xf32>
    %66 = arith.mulf %56, %65 : vector<8x2048xf32>
    %cst_26 = arith.constant 5.000000e-01 : f32
    %67 = vector.broadcast %cst_26 : f32 to vector<8x2048xf32>
    %68 = arith.mulf %67, %66 : vector<8x2048xf32>
    %cst_27 = arith.constant 4.471500e-02 : f32
    %69 = vector.broadcast %cst_27 : f32 to vector<8x2048xf32>
    %70 = arith.mulf %69, %66 : vector<8x2048xf32>
    %71 = arith.mulf %70, %66 : vector<8x2048xf32>
    %72 = arith.mulf %71, %66 : vector<8x2048xf32>
    %73 = arith.addf %66, %72 : vector<8x2048xf32>
    %cst_28 = arith.constant 0.797884583 : f32
    %74 = vector.broadcast %cst_28 : f32 to vector<8x2048xf32>
    %75 = arith.mulf %74, %73 : vector<8x2048xf32>
    %76 = math.tanh %75 : vector<8x2048xf32>
    %cst_29 = arith.constant 1.000000e+00 : f32
    %77 = vector.broadcast %cst_29 : f32 to vector<8x2048xf32>
    %78 = arith.addf %77, %76 : vector<8x2048xf32>
    %79 = arith.mulf %68, %78 : vector<8x2048xf32>
    %c0_30 = arith.constant 0 : index
    %c0_31 = arith.constant 0 : index
    %80 = vector.load %arg10[%c0_30, %c0_31] : memref<1024x128xbf16, #tpu.memory_space<vmem>>, vector<1024x128xbf16>
    %c0_32 = arith.constant 0 : index
    %c0_33 = arith.constant 0 : index
    %81 = vector.load %arg11[%c0_32, %c0_33] : memref<1x128xf32, #tpu.memory_space<vmem>>, vector<1x128xf32>
    %82 = vector.extract_strided_slice %43 {offsets = [0, 0], sizes = [8, 1024], strides = [1, 1]} : vector<8x2048xf32> to vector<8x1024xf32>
    %83 = vector.extract_strided_slice %43 {offsets = [0, 1024], sizes = [8, 1024], strides = [1, 1]} : vector<8x2048xf32> to vector<8x1024xf32>
    %84 = vector.extract_strided_slice %79 {offsets = [0, 0], sizes = [8, 1024], strides = [1, 1]} : vector<8x2048xf32> to vector<8x1024xf32>
    %85 = vector.extract_strided_slice %79 {offsets = [0, 1024], sizes = [8, 1024], strides = [1, 1]} : vector<8x2048xf32> to vector<8x1024xf32>
    %86 = arith.truncf %82 : vector<8x1024xf32> to vector<8x1024xbf16>
    %87 = vector.extract_strided_slice %80 {offsets = [0, 0], sizes = [1024, 32], strides = [1, 1]} : vector<1024x128xbf16> to vector<1024x32xbf16>
    %cst_34 = arith.constant dense<0.000000e+00> : vector<8x32xf32>
    %88 = tpu.matmul %86, %87, %cst_34 {dimension_numbers = #tpu.dot_dimension_numbers<[1], [0], [0], [1], [0, 0, 1, 1], [], []>} : vector<8x1024xbf16>, vector<1024x32xbf16>, vector<8x32xf32> -> vector<8x32xf32>
    %89 = vector.extract_strided_slice %81 {offsets = [0, 0], sizes = [1, 32], strides = [1, 1]} : vector<1x128xf32> to vector<1x32xf32>
    %90 = vector.broadcast %89 : vector<1x32xf32> to vector<8x32xf32>
    %91 = arith.addf %88, %90 : vector<8x32xf32>
    %cst_35 = arith.constant dense<0.000000e+00> : vector<32xf32>
    %92 = vector.multi_reduction <add>, %91, %cst_35 [0] : vector<8x32xf32> to vector<32xf32>
    %93 = vector.shape_cast %92 : vector<32xf32> to vector<1x32xf32>
    %cst_36 = arith.constant 8.000000e+00 : f32
    %94 = vector.broadcast %cst_36 : f32 to vector<1x32xf32>
    %95 = arith.divf %93, %94 : vector<1x32xf32>
    %96 = vector.broadcast %95 : vector<1x32xf32> to vector<8x32xf32>
    %97 = arith.subf %91, %96 : vector<8x32xf32>
    %98 = arith.mulf %97, %97 : vector<8x32xf32>
    %cst_37 = arith.constant dense<0.000000e+00> : vector<32xf32>
    %99 = vector.multi_reduction <add>, %98, %cst_37 [0] : vector<8x32xf32> to vector<32xf32>
    %100 = vector.shape_cast %99 : vector<32xf32> to vector<1x32xf32>
    %cst_38 = arith.constant 8.000000e+00 : f32
    %101 = vector.broadcast %cst_38 : f32 to vector<1x32xf32>
    %102 = arith.divf %100, %101 : vector<1x32xf32>
    %cst_39 = arith.constant 9.99999974E-6 : f32
    %103 = vector.broadcast %cst_39 : f32 to vector<1x32xf32>
    %104 = arith.addf %102, %103 : vector<1x32xf32>
    %105 = math.rsqrt %104 : vector<1x32xf32>
    %106 = vector.broadcast %105 : vector<1x32xf32> to vector<8x32xf32>
    %107 = arith.mulf %97, %106 : vector<8x32xf32>
    %cst_40 = arith.constant 5.000000e-01 : f32
    %108 = vector.broadcast %cst_40 : f32 to vector<8x32xf32>
    %109 = arith.mulf %108, %107 : vector<8x32xf32>
    %cst_41 = arith.constant 4.471500e-02 : f32
    %110 = vector.broadcast %cst_41 : f32 to vector<8x32xf32>
    %111 = arith.mulf %110, %107 : vector<8x32xf32>
    %112 = arith.mulf %111, %107 : vector<8x32xf32>
    %113 = arith.mulf %112, %107 : vector<8x32xf32>
    %114 = arith.addf %107, %113 : vector<8x32xf32>
    %cst_42 = arith.constant 0.797884583 : f32
    %115 = vector.broadcast %cst_42 : f32 to vector<8x32xf32>
    %116 = arith.mulf %115, %114 : vector<8x32xf32>
    %117 = math.tanh %116 : vector<8x32xf32>
    %cst_43 = arith.constant 1.000000e+00 : f32
    %118 = vector.broadcast %cst_43 : f32 to vector<8x32xf32>
    %119 = arith.addf %118, %117 : vector<8x32xf32>
    %120 = arith.mulf %109, %119 : vector<8x32xf32>
    %121 = arith.truncf %83 : vector<8x1024xf32> to vector<8x1024xbf16>
    %122 = vector.extract_strided_slice %80 {offsets = [0, 32], sizes = [1024, 32], strides = [1, 1]} : vector<1024x128xbf16> to vector<1024x32xbf16>
    %cst_44 = arith.constant dense<0.000000e+00> : vector<8x32xf32>
    %123 = tpu.matmul %121, %122, %cst_44 {dimension_numbers = #tpu.dot_dimension_numbers<[1], [0], [0], [1], [0, 0, 1, 1], [], []>} : vector<8x1024xbf16>, vector<1024x32xbf16>, vector<8x32xf32> -> vector<8x32xf32>
    %124 = vector.extract_strided_slice %81 {offsets = [0, 32], sizes = [1, 32], strides = [1, 1]} : vector<1x128xf32> to vector<1x32xf32>
    %125 = vector.broadcast %124 : vector<1x32xf32> to vector<8x32xf32>
    %126 = arith.addf %123, %125 : vector<8x32xf32>
    %cst_45 = arith.constant dense<0.000000e+00> : vector<32xf32>
    %127 = vector.multi_reduction <add>, %126, %cst_45 [0] : vector<8x32xf32> to vector<32xf32>
    %128 = vector.shape_cast %127 : vector<32xf32> to vector<1x32xf32>
    %cst_46 = arith.constant 8.000000e+00 : f32
    %129 = vector.broadcast %cst_46 : f32 to vector<1x32xf32>
    %130 = arith.divf %128, %129 : vector<1x32xf32>
    %131 = vector.broadcast %130 : vector<1x32xf32> to vector<8x32xf32>
    %132 = arith.subf %126, %131 : vector<8x32xf32>
    %133 = arith.mulf %132, %132 : vector<8x32xf32>
    %cst_47 = arith.constant dense<0.000000e+00> : vector<32xf32>
    %134 = vector.multi_reduction <add>, %133, %cst_47 [0] : vector<8x32xf32> to vector<32xf32>
    %135 = vector.shape_cast %134 : vector<32xf32> to vector<1x32xf32>
    %cst_48 = arith.constant 8.000000e+00 : f32
    %136 = vector.broadcast %cst_48 : f32 to vector<1x32xf32>
    %137 = arith.divf %135, %136 : vector<1x32xf32>
    %cst_49 = arith.constant 9.99999974E-6 : f32
    %138 = vector.broadcast %cst_49 : f32 to vector<1x32xf32>
    %139 = arith.addf %137, %138 : vector<1x32xf32>
    %140 = math.rsqrt %139 : vector<1x32xf32>
    %141 = vector.broadcast %140 : vector<1x32xf32> to vector<8x32xf32>
    %142 = arith.mulf %132, %141 : vector<8x32xf32>
    %cst_50 = arith.constant 5.000000e-01 : f32
    %143 = vector.broadcast %cst_50 : f32 to vector<8x32xf32>
    %144 = arith.mulf %143, %142 : vector<8x32xf32>
    %cst_51 = arith.constant 4.471500e-02 : f32
    %145 = vector.broadcast %cst_51 : f32 to vector<8x32xf32>
    %146 = arith.mulf %145, %142 : vector<8x32xf32>
    %147 = arith.mulf %146, %142 : vector<8x32xf32>
    %148 = arith.mulf %147, %142 : vector<8x32xf32>
    %149 = arith.addf %142, %148 : vector<8x32xf32>
    %cst_52 = arith.constant 0.797884583 : f32
    %150 = vector.broadcast %cst_52 : f32 to vector<8x32xf32>
    %151 = arith.mulf %150, %149 : vector<8x32xf32>
    %152 = math.tanh %151 : vector<8x32xf32>
    %cst_53 = arith.constant 1.000000e+00 : f32
    %153 = vector.broadcast %cst_53 : f32 to vector<8x32xf32>
    %154 = arith.addf %153, %152 : vector<8x32xf32>
    %155 = arith.mulf %144, %154 : vector<8x32xf32>
    %156 = arith.truncf %84 : vector<8x1024xf32> to vector<8x1024xbf16>
    %157 = vector.extract_strided_slice %80 {offsets = [0, 64], sizes = [1024, 32], strides = [1, 1]} : vector<1024x128xbf16> to vector<1024x32xbf16>
    %cst_54 = arith.constant dense<0.000000e+00> : vector<8x32xf32>
    %158 = tpu.matmul %156, %157, %cst_54 {dimension_numbers = #tpu.dot_dimension_numbers<[1], [0], [0], [1], [0, 0, 1, 1], [], []>} : vector<8x1024xbf16>, vector<1024x32xbf16>, vector<8x32xf32> -> vector<8x32xf32>
    %159 = vector.extract_strided_slice %81 {offsets = [0, 64], sizes = [1, 32], strides = [1, 1]} : vector<1x128xf32> to vector<1x32xf32>
    %160 = vector.broadcast %159 : vector<1x32xf32> to vector<8x32xf32>
    %161 = arith.addf %158, %160 : vector<8x32xf32>
    %cst_55 = arith.constant dense<0.000000e+00> : vector<32xf32>
    %162 = vector.multi_reduction <add>, %161, %cst_55 [0] : vector<8x32xf32> to vector<32xf32>
    %163 = vector.shape_cast %162 : vector<32xf32> to vector<1x32xf32>
    %cst_56 = arith.constant 8.000000e+00 : f32
    %164 = vector.broadcast %cst_56 : f32 to vector<1x32xf32>
    %165 = arith.divf %163, %164 : vector<1x32xf32>
    %166 = vector.broadcast %165 : vector<1x32xf32> to vector<8x32xf32>
    %167 = arith.subf %161, %166 : vector<8x32xf32>
    %168 = arith.mulf %167, %167 : vector<8x32xf32>
    %cst_57 = arith.constant dense<0.000000e+00> : vector<32xf32>
    %169 = vector.multi_reduction <add>, %168, %cst_57 [0] : vector<8x32xf32> to vector<32xf32>
    %170 = vector.shape_cast %169 : vector<32xf32> to vector<1x32xf32>
    %cst_58 = arith.constant 8.000000e+00 : f32
    %171 = vector.broadcast %cst_58 : f32 to vector<1x32xf32>
    %172 = arith.divf %170, %171 : vector<1x32xf32>
    %cst_59 = arith.constant 9.99999974E-6 : f32
    %173 = vector.broadcast %cst_59 : f32 to vector<1x32xf32>
    %174 = arith.addf %172, %173 : vector<1x32xf32>
    %175 = math.rsqrt %174 : vector<1x32xf32>
    %176 = vector.broadcast %175 : vector<1x32xf32> to vector<8x32xf32>
    %177 = arith.mulf %167, %176 : vector<8x32xf32>
    %cst_60 = arith.constant 5.000000e-01 : f32
    %178 = vector.broadcast %cst_60 : f32 to vector<8x32xf32>
    %179 = arith.mulf %178, %177 : vector<8x32xf32>
    %cst_61 = arith.constant 4.471500e-02 : f32
    %180 = vector.broadcast %cst_61 : f32 to vector<8x32xf32>
    %181 = arith.mulf %180, %177 : vector<8x32xf32>
    %182 = arith.mulf %181, %177 : vector<8x32xf32>
    %183 = arith.mulf %182, %177 : vector<8x32xf32>
    %184 = arith.addf %177, %183 : vector<8x32xf32>
    %cst_62 = arith.constant 0.797884583 : f32
    %185 = vector.broadcast %cst_62 : f32 to vector<8x32xf32>
    %186 = arith.mulf %185, %184 : vector<8x32xf32>
    %187 = math.tanh %186 : vector<8x32xf32>
    %cst_63 = arith.constant 1.000000e+00 : f32
    %188 = vector.broadcast %cst_63 : f32 to vector<8x32xf32>
    %189 = arith.addf %188, %187 : vector<8x32xf32>
    %190 = arith.mulf %179, %189 : vector<8x32xf32>
    %191 = arith.truncf %85 : vector<8x1024xf32> to vector<8x1024xbf16>
    %192 = vector.extract_strided_slice %80 {offsets = [0, 96], sizes = [1024, 32], strides = [1, 1]} : vector<1024x128xbf16> to vector<1024x32xbf16>
    %cst_64 = arith.constant dense<0.000000e+00> : vector<8x32xf32>
    %193 = tpu.matmul %191, %192, %cst_64 {dimension_numbers = #tpu.dot_dimension_numbers<[1], [0], [0], [1], [0, 0, 1, 1], [], []>} : vector<8x1024xbf16>, vector<1024x32xbf16>, vector<8x32xf32> -> vector<8x32xf32>
    %194 = vector.extract_strided_slice %81 {offsets = [0, 96], sizes = [1, 32], strides = [1, 1]} : vector<1x128xf32> to vector<1x32xf32>
    %195 = vector.broadcast %194 : vector<1x32xf32> to vector<8x32xf32>
    %196 = arith.addf %193, %195 : vector<8x32xf32>
    %cst_65 = arith.constant dense<0.000000e+00> : vector<32xf32>
    %197 = vector.multi_reduction <add>, %196, %cst_65 [0] : vector<8x32xf32> to vector<32xf32>
    %198 = vector.shape_cast %197 : vector<32xf32> to vector<1x32xf32>
    %cst_66 = arith.constant 8.000000e+00 : f32
    %199 = vector.broadcast %cst_66 : f32 to vector<1x32xf32>
    %200 = arith.divf %198, %199 : vector<1x32xf32>
    %201 = vector.broadcast %200 : vector<1x32xf32> to vector<8x32xf32>
    %202 = arith.subf %196, %201 : vector<8x32xf32>
    %203 = arith.mulf %202, %202 : vector<8x32xf32>
    %cst_67 = arith.constant dense<0.000000e+00> : vector<32xf32>
    %204 = vector.multi_reduction <add>, %203, %cst_67 [0] : vector<8x32xf32> to vector<32xf32>
    %205 = vector.shape_cast %204 : vector<32xf32> to vector<1x32xf32>
    %cst_68 = arith.constant 8.000000e+00 : f32
    %206 = vector.broadcast %cst_68 : f32 to vector<1x32xf32>
    %207 = arith.divf %205, %206 : vector<1x32xf32>
    %cst_69 = arith.constant 9.99999974E-6 : f32
    %208 = vector.broadcast %cst_69 : f32 to vector<1x32xf32>
    %209 = arith.addf %207, %208 : vector<1x32xf32>
    %210 = math.rsqrt %209 : vector<1x32xf32>
    %211 = vector.broadcast %210 : vector<1x32xf32> to vector<8x32xf32>
    %212 = arith.mulf %202, %211 : vector<8x32xf32>
    %cst_70 = arith.constant 5.000000e-01 : f32
    %213 = vector.broadcast %cst_70 : f32 to vector<8x32xf32>
    %214 = arith.mulf %213, %212 : vector<8x32xf32>
    %cst_71 = arith.constant 4.471500e-02 : f32
    %215 = vector.broadcast %cst_71 : f32 to vector<8x32xf32>
    %216 = arith.mulf %215, %212 : vector<8x32xf32>
    %217 = arith.mulf %216, %212 : vector<8x32xf32>
    %218 = arith.mulf %217, %212 : vector<8x32xf32>
    %219 = arith.addf %212, %218 : vector<8x32xf32>
    %cst_72 = arith.constant 0.797884583 : f32
    %220 = vector.broadcast %cst_72 : f32 to vector<8x32xf32>
    %221 = arith.mulf %220, %219 : vector<8x32xf32>
    %222 = math.tanh %221 : vector<8x32xf32>
    %cst_73 = arith.constant 1.000000e+00 : f32
    %223 = vector.broadcast %cst_73 : f32 to vector<8x32xf32>
    %224 = arith.addf %223, %222 : vector<8x32xf32>
    %225 = arith.mulf %214, %224 : vector<8x32xf32>
    %c0_74 = arith.constant 0 : index
    %c0_75 = arith.constant 0 : index
    %226 = vector.load %arg3[%c0_74, %c0_75] : memref<8x32xf32, #tpu.memory_space<vmem>>, vector<8x32xf32>
    %227 = tpu.concatenate %120, %190, %226 in 0 : vector<8x32xf32>, vector<8x32xf32>, vector<8x32xf32> -> vector<24x32xf32>
    %228 = arith.truncf %227 : vector<24x32xf32> to vector<24x32xbf16>
    %c0_76 = arith.constant 0 : index
    %c0_77 = arith.constant 0 : index
    %229 = vector.load %arg12[%c0_76, %c0_77] : memref<32x1024xbf16, #tpu.memory_space<vmem>>, vector<32x1024xbf16>
    %cst_78 = arith.constant dense<0.000000e+00> : vector<24x1024xf32>
    %230 = tpu.matmul %228, %229, %cst_78 {dimension_numbers = #tpu.dot_dimension_numbers<[1], [0], [0], [1], [0, 0, 1, 1], [], []>} : vector<24x32xbf16>, vector<32x1024xbf16>, vector<24x1024xf32> -> vector<24x1024xf32>
    %c0_79 = arith.constant 0 : index
    %c0_80 = arith.constant 0 : index
    %231 = vector.load %arg13[%c0_79, %c0_80] : memref<1x1024xf32, #tpu.memory_space<vmem>>, vector<1x1024xf32>
    %232 = vector.broadcast %231 : vector<1x1024xf32> to vector<24x1024xf32>
    %233 = arith.addf %230, %232 : vector<24x1024xf32>
    %234 = vector.extract_strided_slice %233 {offsets = [0, 0], sizes = [8, 1024], strides = [1, 1]} : vector<24x1024xf32> to vector<8x1024xf32>
    %cst_81 = arith.constant dense<0.000000e+00> : vector<1024xf32>
    %235 = vector.multi_reduction <add>, %234, %cst_81 [0] : vector<8x1024xf32> to vector<1024xf32>
    %236 = vector.shape_cast %235 : vector<1024xf32> to vector<1x1024xf32>
    %cst_82 = arith.constant 8.000000e+00 : f32
    %237 = vector.broadcast %cst_82 : f32 to vector<1x1024xf32>
    %238 = arith.divf %236, %237 : vector<1x1024xf32>
    %239 = vector.broadcast %238 : vector<1x1024xf32> to vector<8x1024xf32>
    %240 = arith.subf %234, %239 : vector<8x1024xf32>
    %241 = arith.mulf %240, %240 : vector<8x1024xf32>
    %cst_83 = arith.constant dense<0.000000e+00> : vector<1024xf32>
    %242 = vector.multi_reduction <add>, %241, %cst_83 [0] : vector<8x1024xf32> to vector<1024xf32>
    %243 = vector.shape_cast %242 : vector<1024xf32> to vector<1x1024xf32>
    %cst_84 = arith.constant 8.000000e+00 : f32
    %244 = vector.broadcast %cst_84 : f32 to vector<1x1024xf32>
    %245 = arith.divf %243, %244 : vector<1x1024xf32>
    %cst_85 = arith.constant 9.99999974E-6 : f32
    %246 = vector.broadcast %cst_85 : f32 to vector<1x1024xf32>
    %247 = arith.addf %245, %246 : vector<1x1024xf32>
    %248 = math.rsqrt %247 : vector<1x1024xf32>
    %249 = vector.broadcast %248 : vector<1x1024xf32> to vector<8x1024xf32>
    %250 = arith.mulf %240, %249 : vector<8x1024xf32>
    %251 = vector.extract_strided_slice %233 {offsets = [8, 0], sizes = [8, 1024], strides = [1, 1]} : vector<24x1024xf32> to vector<8x1024xf32>
    %cst_86 = arith.constant dense<0.000000e+00> : vector<1024xf32>
    %252 = vector.multi_reduction <add>, %251, %cst_86 [0] : vector<8x1024xf32> to vector<1024xf32>
    %253 = vector.shape_cast %252 : vector<1024xf32> to vector<1x1024xf32>
    %cst_87 = arith.constant 8.000000e+00 : f32
    %254 = vector.broadcast %cst_87 : f32 to vector<1x1024xf32>
    %255 = arith.divf %253, %254 : vector<1x1024xf32>
    %256 = vector.broadcast %255 : vector<1x1024xf32> to vector<8x1024xf32>
    %257 = arith.subf %251, %256 : vector<8x1024xf32>
    %258 = arith.mulf %257, %257 : vector<8x1024xf32>
    %cst_88 = arith.constant dense<0.000000e+00> : vector<1024xf32>
    %259 = vector.multi_reduction <add>, %258, %cst_88 [0] : vector<8x1024xf32> to vector<1024xf32>
    %260 = vector.shape_cast %259 : vector<1024xf32> to vector<1x1024xf32>
    %cst_89 = arith.constant 8.000000e+00 : f32
    %261 = vector.broadcast %cst_89 : f32 to vector<1x1024xf32>
    %262 = arith.divf %260, %261 : vector<1x1024xf32>
    %cst_90 = arith.constant 9.99999974E-6 : f32
    %263 = vector.broadcast %cst_90 : f32 to vector<1x1024xf32>
    %264 = arith.addf %262, %263 : vector<1x1024xf32>
    %265 = math.rsqrt %264 : vector<1x1024xf32>
    %266 = vector.broadcast %265 : vector<1x1024xf32> to vector<8x1024xf32>
    %267 = arith.mulf %257, %266 : vector<8x1024xf32>
    %268 = vector.extract_strided_slice %233 {offsets = [16, 0], sizes = [8, 1024], strides = [1, 1]} : vector<24x1024xf32> to vector<8x1024xf32>
    %cst_91 = arith.constant dense<0.000000e+00> : vector<1024xf32>
    %269 = vector.multi_reduction <add>, %268, %cst_91 [0] : vector<8x1024xf32> to vector<1024xf32>
    %270 = vector.shape_cast %269 : vector<1024xf32> to vector<1x1024xf32>
    %cst_92 = arith.constant 8.000000e+00 : f32
    %271 = vector.broadcast %cst_92 : f32 to vector<1x1024xf32>
    %272 = arith.divf %270, %271 : vector<1x1024xf32>
    %273 = vector.broadcast %272 : vector<1x1024xf32> to vector<8x1024xf32>
    %274 = arith.subf %268, %273 : vector<8x1024xf32>
    %275 = arith.mulf %274, %274 : vector<8x1024xf32>
    %cst_93 = arith.constant dense<0.000000e+00> : vector<1024xf32>
    %276 = vector.multi_reduction <add>, %275, %cst_93 [0] : vector<8x1024xf32> to vector<1024xf32>
    %277 = vector.shape_cast %276 : vector<1024xf32> to vector<1x1024xf32>
    %cst_94 = arith.constant 8.000000e+00 : f32
    %278 = vector.broadcast %cst_94 : f32 to vector<1x1024xf32>
    %279 = arith.divf %277, %278 : vector<1x1024xf32>
    %cst_95 = arith.constant 9.99999974E-6 : f32
    %280 = vector.broadcast %cst_95 : f32 to vector<1x1024xf32>
    %281 = arith.addf %279, %280 : vector<1x1024xf32>
    %282 = math.rsqrt %281 : vector<1x1024xf32>
    %283 = vector.broadcast %282 : vector<1x1024xf32> to vector<8x1024xf32>
    %284 = arith.mulf %274, %283 : vector<8x1024xf32>
    %285 = tpu.concatenate %250, %267, %284 in 0 : vector<8x1024xf32>, vector<8x1024xf32>, vector<8x1024xf32> -> vector<24x1024xf32>
    %cst_96 = arith.constant 5.000000e-01 : f32
    %286 = vector.broadcast %cst_96 : f32 to vector<24x1024xf32>
    %287 = arith.mulf %286, %285 : vector<24x1024xf32>
    %cst_97 = arith.constant 4.471500e-02 : f32
    %288 = vector.broadcast %cst_97 : f32 to vector<24x1024xf32>
    %289 = arith.mulf %288, %285 : vector<24x1024xf32>
    %290 = arith.mulf %289, %285 : vector<24x1024xf32>
    %291 = arith.mulf %290, %285 : vector<24x1024xf32>
    %292 = arith.addf %285, %291 : vector<24x1024xf32>
    %cst_98 = arith.constant 0.797884583 : f32
    %293 = vector.broadcast %cst_98 : f32 to vector<24x1024xf32>
    %294 = arith.mulf %293, %292 : vector<24x1024xf32>
    %295 = math.tanh %294 : vector<24x1024xf32>
    %cst_99 = arith.constant 1.000000e+00 : f32
    %296 = vector.broadcast %cst_99 : f32 to vector<24x1024xf32>
    %297 = arith.addf %296, %295 : vector<24x1024xf32>
    %298 = arith.mulf %287, %297 : vector<24x1024xf32>
    %c0_i32_100 = arith.constant 0 : i32
    %299 = tpu.memref_slice %arg29[%c0_i32_100] : memref<4x!tpu.dma_semaphore, #tpu.memory_space<semaphore_mem>> -> memref<1x!tpu.dma_semaphore, #tpu.memory_space<semaphore_mem>>
    %300 = tpu.memref_squeeze %299 : memref<1x!tpu.dma_semaphore, #tpu.memory_space<semaphore_mem>> -> memref<!tpu.dma_semaphore, #tpu.memory_space<semaphore_mem>>
    tpu.wait_dma2 semaphore(%300 : memref<!tpu.dma_semaphore, #tpu.memory_space<semaphore_mem>>) src(%arg20 : memref<1024x32xbf16, #tpu.memory_space<any>>) dst(%arg25 : memref<1024x32xbf16, #tpu.memory_space<vmem>>)
    %301 = arith.truncf %298 : vector<24x1024xf32> to vector<24x1024xbf16>
    %c0_101 = arith.constant 0 : index
    %c0_102 = arith.constant 0 : index
    %302 = vector.load %arg25[%c0_101, %c0_102] : memref<1024x32xbf16, #tpu.memory_space<vmem>>, vector<1024x32xbf16>
    %cst_103 = arith.constant dense<0.000000e+00> : vector<24x32xf32>
    %303 = tpu.matmul %301, %302, %cst_103 {dimension_numbers = #tpu.dot_dimension_numbers<[1], [0], [0], [1], [0, 0, 1, 1], [], []>} : vector<24x1024xbf16>, vector<1024x32xbf16>, vector<24x32xf32> -> vector<24x32xf32>
    %c0_104 = arith.constant 0 : index
    %c0_105 = arith.constant 0 : index
    %304 = vector.load %arg14[%c0_104, %c0_105] : memref<1x32xf32, #tpu.memory_space<vmem>>, vector<1x32xf32>
    %305 = vector.broadcast %304 : vector<1x32xf32> to vector<24x32xf32>
    %306 = arith.addf %303, %305 : vector<24x32xf32>
    %307 = vector.extract_strided_slice %306 {offsets = [0, 0], sizes = [8, 32], strides = [1, 1]} : vector<24x32xf32> to vector<8x32xf32>
    %cst_106 = arith.constant dense<0.000000e+00> : vector<32xf32>
    %308 = vector.multi_reduction <add>, %307, %cst_106 [0] : vector<8x32xf32> to vector<32xf32>
    %309 = vector.shape_cast %308 : vector<32xf32> to vector<1x32xf32>
    %cst_107 = arith.constant 8.000000e+00 : f32
    %310 = vector.broadcast %cst_107 : f32 to vector<1x32xf32>
    %311 = arith.divf %309, %310 : vector<1x32xf32>
    %312 = vector.broadcast %311 : vector<1x32xf32> to vector<8x32xf32>
    %313 = arith.subf %307, %312 : vector<8x32xf32>
    %314 = arith.mulf %313, %313 : vector<8x32xf32>
    %cst_108 = arith.constant dense<0.000000e+00> : vector<32xf32>
    %315 = vector.multi_reduction <add>, %314, %cst_108 [0] : vector<8x32xf32> to vector<32xf32>
    %316 = vector.shape_cast %315 : vector<32xf32> to vector<1x32xf32>
    %cst_109 = arith.constant 8.000000e+00 : f32
    %317 = vector.broadcast %cst_109 : f32 to vector<1x32xf32>
    %318 = arith.divf %316, %317 : vector<1x32xf32>
    %cst_110 = arith.constant 9.99999974E-6 : f32
    %319 = vector.broadcast %cst_110 : f32 to vector<1x32xf32>
    %320 = arith.addf %318, %319 : vector<1x32xf32>
    %321 = math.rsqrt %320 : vector<1x32xf32>
    %322 = vector.broadcast %321 : vector<1x32xf32> to vector<8x32xf32>
    %323 = arith.mulf %313, %322 : vector<8x32xf32>
    %324 = vector.extract_strided_slice %306 {offsets = [8, 0], sizes = [8, 32], strides = [1, 1]} : vector<24x32xf32> to vector<8x32xf32>
    %cst_111 = arith.constant dense<0.000000e+00> : vector<32xf32>
    %325 = vector.multi_reduction <add>, %324, %cst_111 [0] : vector<8x32xf32> to vector<32xf32>
    %326 = vector.shape_cast %325 : vector<32xf32> to vector<1x32xf32>
    %cst_112 = arith.constant 8.000000e+00 : f32
    %327 = vector.broadcast %cst_112 : f32 to vector<1x32xf32>
    %328 = arith.divf %326, %327 : vector<1x32xf32>
    %329 = vector.broadcast %328 : vector<1x32xf32> to vector<8x32xf32>
    %330 = arith.subf %324, %329 : vector<8x32xf32>
    %331 = arith.mulf %330, %330 : vector<8x32xf32>
    %cst_113 = arith.constant dense<0.000000e+00> : vector<32xf32>
    %332 = vector.multi_reduction <add>, %331, %cst_113 [0] : vector<8x32xf32> to vector<32xf32>
    %333 = vector.shape_cast %332 : vector<32xf32> to vector<1x32xf32>
    %cst_114 = arith.constant 8.000000e+00 : f32
    %334 = vector.broadcast %cst_114 : f32 to vector<1x32xf32>
    %335 = arith.divf %333, %334 : vector<1x32xf32>
    %cst_115 = arith.constant 9.99999974E-6 : f32
    %336 = vector.broadcast %cst_115 : f32 to vector<1x32xf32>
    %337 = arith.addf %335, %336 : vector<1x32xf32>
    %338 = math.rsqrt %337 : vector<1x32xf32>
    %339 = vector.broadcast %338 : vector<1x32xf32> to vector<8x32xf32>
    %340 = arith.mulf %330, %339 : vector<8x32xf32>
    %341 = vector.extract_strided_slice %306 {offsets = [16, 0], sizes = [8, 32], strides = [1, 1]} : vector<24x32xf32> to vector<8x32xf32>
    %cst_116 = arith.constant dense<0.000000e+00> : vector<32xf32>
    %342 = vector.multi_reduction <add>, %341, %cst_116 [0] : vector<8x32xf32> to vector<32xf32>
    %343 = vector.shape_cast %342 : vector<32xf32> to vector<1x32xf32>
    %cst_117 = arith.constant 8.000000e+00 : f32
    %344 = vector.broadcast %cst_117 : f32 to vector<1x32xf32>
    %345 = arith.divf %343, %344 : vector<1x32xf32>
    %346 = vector.broadcast %345 : vector<1x32xf32> to vector<8x32xf32>
    %347 = arith.subf %341, %346 : vector<8x32xf32>
    %348 = arith.mulf %347, %347 : vector<8x32xf32>
    %cst_118 = arith.constant dense<0.000000e+00> : vector<32xf32>
    %349 = vector.multi_reduction <add>, %348, %cst_118 [0] : vector<8x32xf32> to vector<32xf32>
    %350 = vector.shape_cast %349 : vector<32xf32> to vector<1x32xf32>
    %cst_119 = arith.constant 8.000000e+00 : f32
    %351 = vector.broadcast %cst_119 : f32 to vector<1x32xf32>
    %352 = arith.divf %350, %351 : vector<1x32xf32>
    %cst_120 = arith.constant 9.99999974E-6 : f32
    %353 = vector.broadcast %cst_120 : f32 to vector<1x32xf32>
    %354 = arith.addf %352, %353 : vector<1x32xf32>
    %355 = math.rsqrt %354 : vector<1x32xf32>
    %356 = vector.broadcast %355 : vector<1x32xf32> to vector<8x32xf32>
    %357 = arith.mulf %347, %356 : vector<8x32xf32>
    %358 = tpu.concatenate %323, %340, %357 in 0 : vector<8x32xf32>, vector<8x32xf32>, vector<8x32xf32> -> vector<24x32xf32>
    %cst_121 = arith.constant 5.000000e-01 : f32
    %359 = vector.broadcast %cst_121 : f32 to vector<24x32xf32>
    %360 = arith.mulf %359, %358 : vector<24x32xf32>
    %cst_122 = arith.constant 4.471500e-02 : f32
    %361 = vector.broadcast %cst_122 : f32 to vector<24x32xf32>
    %362 = arith.mulf %361, %358 : vector<24x32xf32>
    %363 = arith.mulf %362, %358 : vector<24x32xf32>
    %364 = arith.mulf %363, %358 : vector<24x32xf32>
    %365 = arith.addf %358, %364 : vector<24x32xf32>
    %cst_123 = arith.constant 0.797884583 : f32
    %366 = vector.broadcast %cst_123 : f32 to vector<24x32xf32>
    %367 = arith.mulf %366, %365 : vector<24x32xf32>
    %368 = math.tanh %367 : vector<24x32xf32>
    %cst_124 = arith.constant 1.000000e+00 : f32
    %369 = vector.broadcast %cst_124 : f32 to vector<24x32xf32>
    %370 = arith.addf %369, %368 : vector<24x32xf32>
    %371 = arith.mulf %360, %370 : vector<24x32xf32>
    %372 = arith.truncf %371 : vector<24x32xf32> to vector<24x32xbf16>
    %c0_125 = arith.constant 0 : index
    %c0_126 = arith.constant 0 : index
    %373 = vector.load %arg15[%c0_125, %c0_126] : memref<32x64xbf16, #tpu.memory_space<vmem>>, vector<32x64xbf16>
    %cst_127 = arith.constant dense<0.000000e+00> : vector<24x64xf32>
    %374 = tpu.matmul %372, %373, %cst_127 {dimension_numbers = #tpu.dot_dimension_numbers<[1], [0], [0], [1], [0, 0, 1, 1], [], []>} : vector<24x32xbf16>, vector<32x64xbf16>, vector<24x64xf32> -> vector<24x64xf32>
    %c0_128 = arith.constant 0 : index
    %c0_129 = arith.constant 0 : index
    %375 = vector.load %arg16[%c0_128, %c0_129] : memref<1x64xf32, #tpu.memory_space<vmem>>, vector<1x64xf32>
    %376 = vector.broadcast %375 : vector<1x64xf32> to vector<24x64xf32>
    %377 = arith.addf %374, %376 : vector<24x64xf32>
    %378 = vector.extract_strided_slice %377 {offsets = [0, 0], sizes = [24, 32], strides = [1, 1]} : vector<24x64xf32> to vector<24x32xf32>
    %379 = vector.extract_strided_slice %377 {offsets = [0, 32], sizes = [24, 32], strides = [1, 1]} : vector<24x64xf32> to vector<24x32xf32>
    %cst_130 = arith.constant 0.000000e+00 : f32
    %380 = vector.broadcast %cst_130 : f32 to vector<24x32xf32>
    %381 = arith.maximumf %379, %380 : vector<24x32xf32>
    %382 = math.absf %379 : vector<24x32xf32>
    %cst_131 = arith.constant 0.000000e+00 : f32
    %383 = vector.broadcast %cst_131 : f32 to vector<24x32xf32>
    %384 = arith.subf %383, %382 : vector<24x32xf32>
    %385 = math.exp %384 : vector<24x32xf32>
    %cst_132 = arith.constant 1.000000e+00 : f32
    %386 = vector.broadcast %cst_132 : f32 to vector<24x32xf32>
    %387 = arith.addf %386, %385 : vector<24x32xf32>
    %388 = math.log %387 : vector<24x32xf32>
    %389 = arith.addf %381, %388 : vector<24x32xf32>
    %cst_133 = arith.constant 2.000000e+01 : f32
    %390 = vector.broadcast %cst_133 : f32 to vector<24x32xf32>
    %391 = arith.cmpf ogt, %379, %390 : vector<24x32xf32>
    %392 = arith.select %391, %379, %389 : vector<24x32xi1>, vector<24x32xf32>
    %393 = vector.extract_strided_slice %378 {offsets = [0, 0], sizes = [8, 32], strides = [1, 1]} : vector<24x32xf32> to vector<8x32xf32>
    %394 = vector.extract_strided_slice %378 {offsets = [8, 0], sizes = [8, 32], strides = [1, 1]} : vector<24x32xf32> to vector<8x32xf32>
    %395 = vector.extract_strided_slice %378 {offsets = [16, 0], sizes = [8, 32], strides = [1, 1]} : vector<24x32xf32> to vector<8x32xf32>
    %396 = vector.extract_strided_slice %392 {offsets = [0, 0], sizes = [8, 32], strides = [1, 1]} : vector<24x32xf32> to vector<8x32xf32>
    %397 = vector.extract_strided_slice %392 {offsets = [8, 0], sizes = [8, 32], strides = [1, 1]} : vector<24x32xf32> to vector<8x32xf32>
    %398 = vector.extract_strided_slice %392 {offsets = [16, 0], sizes = [8, 32], strides = [1, 1]} : vector<24x32xf32> to vector<8x32xf32>
    %cst_134 = arith.constant 9.99999974E-6 : f32
    %399 = vector.broadcast %cst_134 : f32 to vector<8x32xf32>
    %400 = arith.addf %396, %399 : vector<8x32xf32>
    %cst_135 = arith.constant 1.000000e+00 : f32
    %401 = vector.broadcast %cst_135 : f32 to vector<8x32xf32>
    %402 = arith.divf %401, %400 : vector<8x32xf32>
    %cst_136 = arith.constant 9.99999974E-6 : f32
    %403 = vector.broadcast %cst_136 : f32 to vector<8x32xf32>
    %404 = arith.addf %397, %403 : vector<8x32xf32>
    %cst_137 = arith.constant 1.000000e+00 : f32
    %405 = vector.broadcast %cst_137 : f32 to vector<8x32xf32>
    %406 = arith.divf %405, %404 : vector<8x32xf32>
    %cst_138 = arith.constant 9.99999974E-6 : f32
    %407 = vector.broadcast %cst_138 : f32 to vector<8x32xf32>
    %408 = arith.addf %398, %407 : vector<8x32xf32>
    %cst_139 = arith.constant 1.000000e+00 : f32
    %409 = vector.broadcast %cst_139 : f32 to vector<8x32xf32>
    %410 = arith.divf %409, %408 : vector<8x32xf32>
    %cst_140 = arith.constant 0.999989986 : f32
    %411 = vector.broadcast %cst_140 : f32 to vector<8x32xf32>
    %412 = arith.addf %411, %402 : vector<8x32xf32>
    %413 = arith.addf %412, %406 : vector<8x32xf32>
    %414 = arith.addf %413, %410 : vector<8x32xf32>
    %cst_141 = arith.constant 9.99999974E-6 : f32
    %415 = vector.broadcast %cst_141 : f32 to vector<8x32xf32>
    %416 = arith.addf %414, %415 : vector<8x32xf32>
    %cst_142 = arith.constant 1.000000e+00 : f32
    %417 = vector.broadcast %cst_142 : f32 to vector<8x32xf32>
    %418 = arith.divf %417, %416 : vector<8x32xf32>
    %419 = arith.mulf %393, %402 : vector<8x32xf32>
    %420 = arith.mulf %394, %406 : vector<8x32xf32>
    %421 = arith.addf %419, %420 : vector<8x32xf32>
    %422 = arith.mulf %395, %410 : vector<8x32xf32>
    %423 = arith.addf %421, %422 : vector<8x32xf32>
    %424 = arith.mulf %423, %418 : vector<8x32xf32>
    %425 = math.sqrt %418 : vector<8x32xf32>
    %c0_143 = arith.constant 0 : index
    %c0_144 = arith.constant 0 : index
    %426 = vector.load %arg4[%c0_143, %c0_144] : memref<8x32xf32, #tpu.memory_space<vmem>>, vector<8x32xf32>
    %427 = arith.mulf %425, %426 : vector<8x32xf32>
    %428 = arith.addf %424, %427 : vector<8x32xf32>
    %429 = vector.extract_strided_slice %378 {offsets = [0, 0], sizes = [16, 32], strides = [1, 1]} : vector<24x32xf32> to vector<16x32xf32>
    %430 = vector.extract_strided_slice %392 {offsets = [0, 0], sizes = [16, 32], strides = [1, 1]} : vector<24x32xf32> to vector<16x32xf32>
    %431 = math.sqrt %430 : vector<16x32xf32>
    %c0_145 = arith.constant 0 : index
    %c0_146 = arith.constant 0 : index
    %432 = vector.load %arg5[%c0_145, %c0_146] : memref<16x32xf32, #tpu.memory_space<vmem>>, vector<16x32xf32>
    %433 = arith.mulf %431, %432 : vector<16x32xf32>
    %434 = arith.addf %429, %433 : vector<16x32xf32>
    %435 = tpu.concatenate %155, %225 in 0 : vector<8x32xf32>, vector<8x32xf32> -> vector<16x32xf32>
    %436 = arith.mulf %434, %435 : vector<16x32xf32>
    %cst_147 = arith.constant dense<0.000000e+00> : vector<16xf32>
    %437 = vector.multi_reduction <add>, %436, %cst_147 [1] : vector<16x32xf32> to vector<16xf32>
    %438 = vector.shape_cast %437 : vector<16xf32> to vector<16x1xf32>
    %439 = arith.mulf %434, %434 : vector<16x32xf32>
    %cst_148 = arith.constant dense<0.000000e+00> : vector<16xf32>
    %440 = vector.multi_reduction <add>, %439, %cst_148 [1] : vector<16x32xf32> to vector<16xf32>
    %441 = vector.shape_cast %440 : vector<16xf32> to vector<16x1xf32>
    %442 = math.sqrt %441 : vector<16x1xf32>
    %443 = arith.mulf %435, %435 : vector<16x32xf32>
    %cst_149 = arith.constant dense<0.000000e+00> : vector<16xf32>
    %444 = vector.multi_reduction <add>, %443, %cst_149 [1] : vector<16x32xf32> to vector<16xf32>
    %445 = vector.shape_cast %444 : vector<16xf32> to vector<16x1xf32>
    %446 = math.sqrt %445 : vector<16x1xf32>
    %cst_150 = arith.constant 9.99999997E-7 : f32
    %447 = vector.broadcast %cst_150 : f32 to vector<16x1xf32>
    %448 = arith.maximumf %442, %447 : vector<16x1xf32>
    %cst_151 = arith.constant 9.99999997E-7 : f32
    %449 = vector.broadcast %cst_151 : f32 to vector<16x1xf32>
    %450 = arith.maximumf %446, %449 : vector<16x1xf32>
    %451 = arith.mulf %448, %450 : vector<16x1xf32>
    %452 = arith.divf %438, %451 : vector<16x1xf32>
    %cst_152 = arith.constant 1.000000e+00 : f32
    %453 = vector.broadcast %cst_152 : f32 to vector<16x1xf32>
    %454 = arith.addf %452, %453 : vector<16x1xf32>
    %cst_153 = arith.constant 5.000000e-01 : f32
    %455 = vector.broadcast %cst_153 : f32 to vector<16x1xf32>
    %456 = arith.mulf %454, %455 : vector<16x1xf32>
    %cst_154 = arith.constant 1.000000e+00 : f32
    %457 = vector.broadcast %cst_154 : f32 to vector<16x1xf32>
    %458 = arith.subf %457, %456 : vector<16x1xf32>
    %459 = vector.shape_cast %458 : vector<16x1xf32> to vector<1x16x1xf32>
    %cst_155 = arith.constant dense<0.000000e+00> : vector<1xf32>
    %460 = vector.multi_reduction <add>, %459, %cst_155 [1, 2] : vector<1x16x1xf32> to vector<1xf32>
    %461 = vector.shape_cast %460 : vector<1xf32> to vector<1x1x1xf32>
    %462 = vector.extract %461[0, 0, 0] : f32 from vector<1x1x1xf32>
    %463 = vector.broadcast %462 : f32 to vector<1x1xf32>
    %cst_156 = arith.constant 1.600000e+01 : f32
    %464 = vector.broadcast %cst_156 : f32 to vector<1x1xf32>
    %465 = arith.divf %463, %464 : vector<1x1xf32>
    %c1_i32_157 = arith.constant 1 : i32
    %466 = tpu.memref_slice %arg29[%c1_i32_157] : memref<4x!tpu.dma_semaphore, #tpu.memory_space<semaphore_mem>> -> memref<1x!tpu.dma_semaphore, #tpu.memory_space<semaphore_mem>>
    %467 = tpu.memref_squeeze %466 : memref<1x!tpu.dma_semaphore, #tpu.memory_space<semaphore_mem>> -> memref<!tpu.dma_semaphore, #tpu.memory_space<semaphore_mem>>
    tpu.wait_dma2 semaphore(%467 : memref<!tpu.dma_semaphore, #tpu.memory_space<semaphore_mem>>) src(%arg21 : memref<32x1024xbf16, #tpu.memory_space<any>>) dst(%arg26 : memref<32x1024xbf16, #tpu.memory_space<vmem>>)
    %c2_i32_158 = arith.constant 2 : i32
    %468 = tpu.memref_slice %arg29[%c2_i32_158] : memref<4x!tpu.dma_semaphore, #tpu.memory_space<semaphore_mem>> -> memref<1x!tpu.dma_semaphore, #tpu.memory_space<semaphore_mem>>
    %469 = tpu.memref_squeeze %468 : memref<1x!tpu.dma_semaphore, #tpu.memory_space<semaphore_mem>> -> memref<!tpu.dma_semaphore, #tpu.memory_space<semaphore_mem>>
    tpu.wait_dma2 semaphore(%469 : memref<!tpu.dma_semaphore, #tpu.memory_space<semaphore_mem>>) src(%arg22 : memref<2x32x512xbf16, #tpu.memory_space<any>>) dst(%arg27 : memref<2x32x512xbf16, #tpu.memory_space<vmem>>)
    %c3_i32_159 = arith.constant 3 : i32
    %470 = tpu.memref_slice %arg29[%c3_i32_159] : memref<4x!tpu.dma_semaphore, #tpu.memory_space<semaphore_mem>> -> memref<1x!tpu.dma_semaphore, #tpu.memory_space<semaphore_mem>>
    %471 = tpu.memref_squeeze %470 : memref<1x!tpu.dma_semaphore, #tpu.memory_space<semaphore_mem>> -> memref<!tpu.dma_semaphore, #tpu.memory_space<semaphore_mem>>
    tpu.wait_dma2 semaphore(%471 : memref<!tpu.dma_semaphore, #tpu.memory_space<semaphore_mem>>) src(%arg23 : memref<4x512x128xbf16, #tpu.memory_space<any>>) dst(%arg28 : memref<4x512x128xbf16, #tpu.memory_space<vmem>>)
    %472 = arith.truncf %428 : vector<8x32xf32> to vector<8x32xbf16>
    %c0_160 = arith.constant 0 : index
    %c0_161 = arith.constant 0 : index
    %473 = vector.load %arg26[%c0_160, %c0_161] : memref<32x1024xbf16, #tpu.memory_space<vmem>>, vector<32x1024xbf16>
    %cst_162 = arith.constant dense<0.000000e+00> : vector<8x1024xf32>
    %474 = tpu.matmul %472, %473, %cst_162 {dimension_numbers = #tpu.dot_dimension_numbers<[1], [0], [0], [1], [0, 0, 1, 1], [], []>} : vector<8x32xbf16>, vector<32x1024xbf16>, vector<8x1024xf32> -> vector<8x1024xf32>
    %c0_163 = arith.constant 0 : index
    %c0_164 = arith.constant 0 : index
    %475 = vector.load %arg17[%c0_163, %c0_164] : memref<1x1024xf32, #tpu.memory_space<vmem>>, vector<1x1024xf32>
    %476 = vector.broadcast %475 : vector<1x1024xf32> to vector<8x1024xf32>
    %477 = arith.addf %474, %476 : vector<8x1024xf32>
    %cst_165 = arith.constant dense<0.000000e+00> : vector<1024xf32>
    %478 = vector.multi_reduction <add>, %477, %cst_165 [0] : vector<8x1024xf32> to vector<1024xf32>
    %479 = vector.shape_cast %478 : vector<1024xf32> to vector<1x1024xf32>
    %cst_166 = arith.constant 8.000000e+00 : f32
    %480 = vector.broadcast %cst_166 : f32 to vector<1x1024xf32>
    %481 = arith.divf %479, %480 : vector<1x1024xf32>
    %482 = vector.broadcast %481 : vector<1x1024xf32> to vector<8x1024xf32>
    %483 = arith.subf %477, %482 : vector<8x1024xf32>
    %484 = arith.mulf %483, %483 : vector<8x1024xf32>
    %cst_167 = arith.constant dense<0.000000e+00> : vector<1024xf32>
    %485 = vector.multi_reduction <add>, %484, %cst_167 [0] : vector<8x1024xf32> to vector<1024xf32>
    %486 = vector.shape_cast %485 : vector<1024xf32> to vector<1x1024xf32>
    %cst_168 = arith.constant 8.000000e+00 : f32
    %487 = vector.broadcast %cst_168 : f32 to vector<1x1024xf32>
    %488 = arith.divf %486, %487 : vector<1x1024xf32>
    %cst_169 = arith.constant 9.99999974E-6 : f32
    %489 = vector.broadcast %cst_169 : f32 to vector<1x1024xf32>
    %490 = arith.addf %488, %489 : vector<1x1024xf32>
    %491 = math.rsqrt %490 : vector<1x1024xf32>
    %492 = vector.broadcast %491 : vector<1x1024xf32> to vector<8x1024xf32>
    %493 = arith.mulf %483, %492 : vector<8x1024xf32>
    %cst_170 = arith.constant 5.000000e-01 : f32
    %494 = vector.broadcast %cst_170 : f32 to vector<8x1024xf32>
    %495 = arith.mulf %494, %493 : vector<8x1024xf32>
    %cst_171 = arith.constant 4.471500e-02 : f32
    %496 = vector.broadcast %cst_171 : f32 to vector<8x1024xf32>
    %497 = arith.mulf %496, %493 : vector<8x1024xf32>
    %498 = arith.mulf %497, %493 : vector<8x1024xf32>
    %499 = arith.mulf %498, %493 : vector<8x1024xf32>
    %500 = arith.addf %493, %499 : vector<8x1024xf32>
    %cst_172 = arith.constant 0.797884583 : f32
    %501 = vector.broadcast %cst_172 : f32 to vector<8x1024xf32>
    %502 = arith.mulf %501, %500 : vector<8x1024xf32>
    %503 = math.tanh %502 : vector<8x1024xf32>
    %cst_173 = arith.constant 1.000000e+00 : f32
    %504 = vector.broadcast %cst_173 : f32 to vector<8x1024xf32>
    %505 = arith.addf %504, %503 : vector<8x1024xf32>
    %506 = arith.mulf %495, %505 : vector<8x1024xf32>
    %507 = vector.extract_strided_slice %506 {offsets = [0, 0], sizes = [8, 512], strides = [1, 1]} : vector<8x1024xf32> to vector<8x512xf32>
    %508 = arith.truncf %507 : vector<8x512xf32> to vector<8x512xbf16>
    %c0_174 = arith.constant 0 : index
    %c0_175 = arith.constant 0 : index
    %c0_176 = arith.constant 0 : index
    %509 = vector.load %arg28[%c0_174, %c0_175, %c0_176] : memref<4x512x128xbf16, #tpu.memory_space<vmem>>, vector<1x512x128xbf16>
    %510 = vector.shape_cast %509 : vector<1x512x128xbf16> to vector<512x128xbf16>
    %cst_177 = arith.constant dense<0.000000e+00> : vector<8x128xf32>
    %511 = tpu.matmul %508, %510, %cst_177 {dimension_numbers = #tpu.dot_dimension_numbers<[1], [0], [0], [1], [0, 0, 1, 1], [], []>} : vector<8x512xbf16>, vector<512x128xbf16>, vector<8x128xf32> -> vector<8x128xf32>
    %c0_178 = arith.constant 0 : index
    %c0_179 = arith.constant 0 : index
    %c0_180 = arith.constant 0 : index
    %512 = vector.load %arg19[%c0_178, %c0_179, %c0_180] : memref<4x1x128xf32, #tpu.memory_space<vmem>>, vector<1x1x128xf32>
    %513 = vector.shape_cast %512 : vector<1x1x128xf32> to vector<1x128xf32>
    %514 = vector.broadcast %513 : vector<1x128xf32> to vector<8x128xf32>
    %515 = arith.addf %511, %514 : vector<8x128xf32>
    %516 = vector.extract_strided_slice %506 {offsets = [0, 512], sizes = [8, 512], strides = [1, 1]} : vector<8x1024xf32> to vector<8x512xf32>
    %517 = arith.truncf %516 : vector<8x512xf32> to vector<8x512xbf16>
    %c1 = arith.constant 1 : index
    %c0_181 = arith.constant 0 : index
    %c0_182 = arith.constant 0 : index
    %518 = vector.load %arg28[%c1, %c0_181, %c0_182] : memref<4x512x128xbf16, #tpu.memory_space<vmem>>, vector<1x512x128xbf16>
    %519 = vector.shape_cast %518 : vector<1x512x128xbf16> to vector<512x128xbf16>
    %cst_183 = arith.constant dense<0.000000e+00> : vector<8x128xf32>
    %520 = tpu.matmul %517, %519, %cst_183 {dimension_numbers = #tpu.dot_dimension_numbers<[1], [0], [0], [1], [0, 0, 1, 1], [], []>} : vector<8x512xbf16>, vector<512x128xbf16>, vector<8x128xf32> -> vector<8x128xf32>
    %c1_184 = arith.constant 1 : index
    %c0_185 = arith.constant 0 : index
    %c0_186 = arith.constant 0 : index
    %521 = vector.load %arg19[%c1_184, %c0_185, %c0_186] : memref<4x1x128xf32, #tpu.memory_space<vmem>>, vector<1x1x128xf32>
    %522 = vector.shape_cast %521 : vector<1x1x128xf32> to vector<1x128xf32>
    %523 = vector.broadcast %522 : vector<1x128xf32> to vector<8x128xf32>
    %524 = arith.addf %520, %523 : vector<8x128xf32>
    %525 = arith.truncf %155 : vector<8x32xf32> to vector<8x32xbf16>
    %c0_187 = arith.constant 0 : index
    %c0_188 = arith.constant 0 : index
    %c0_189 = arith.constant 0 : index
    %526 = vector.load %arg27[%c0_187, %c0_188, %c0_189] : memref<2x32x512xbf16, #tpu.memory_space<vmem>>, vector<1x32x512xbf16>
    %527 = vector.shape_cast %526 : vector<1x32x512xbf16> to vector<32x512xbf16>
    %cst_190 = arith.constant dense<0.000000e+00> : vector<8x512xf32>
    %528 = tpu.matmul %525, %527, %cst_190 {dimension_numbers = #tpu.dot_dimension_numbers<[1], [0], [0], [1], [0, 0, 1, 1], [], []>} : vector<8x32xbf16>, vector<32x512xbf16>, vector<8x512xf32> -> vector<8x512xf32>
    %c0_191 = arith.constant 0 : index
    %c0_192 = arith.constant 0 : index
    %c0_193 = arith.constant 0 : index
    %529 = vector.load %arg18[%c0_191, %c0_192, %c0_193] : memref<2x1x512xf32, #tpu.memory_space<vmem>>, vector<1x1x512xf32>
    %530 = vector.shape_cast %529 : vector<1x1x512xf32> to vector<1x512xf32>
    %531 = vector.broadcast %530 : vector<1x512xf32> to vector<8x512xf32>
    %532 = arith.addf %528, %531 : vector<8x512xf32>
    %cst_194 = arith.constant dense<0.000000e+00> : vector<512xf32>
    %533 = vector.multi_reduction <add>, %532, %cst_194 [0] : vector<8x512xf32> to vector<512xf32>
    %534 = vector.shape_cast %533 : vector<512xf32> to vector<1x512xf32>
    %cst_195 = arith.constant 8.000000e+00 : f32
    %535 = vector.broadcast %cst_195 : f32 to vector<1x512xf32>
    %536 = arith.divf %534, %535 : vector<1x512xf32>
    %537 = vector.broadcast %536 : vector<1x512xf32> to vector<8x512xf32>
    %538 = arith.subf %532, %537 : vector<8x512xf32>
    %539 = arith.mulf %538, %538 : vector<8x512xf32>
    %cst_196 = arith.constant dense<0.000000e+00> : vector<512xf32>
    %540 = vector.multi_reduction <add>, %539, %cst_196 [0] : vector<8x512xf32> to vector<512xf32>
    %541 = vector.shape_cast %540 : vector<512xf32> to vector<1x512xf32>
    %cst_197 = arith.constant 8.000000e+00 : f32
    %542 = vector.broadcast %cst_197 : f32 to vector<1x512xf32>
    %543 = arith.divf %541, %542 : vector<1x512xf32>
    %cst_198 = arith.constant 9.99999974E-6 : f32
    %544 = vector.broadcast %cst_198 : f32 to vector<1x512xf32>
    %545 = arith.addf %543, %544 : vector<1x512xf32>
    %546 = math.rsqrt %545 : vector<1x512xf32>
    %547 = vector.broadcast %546 : vector<1x512xf32> to vector<8x512xf32>
    %548 = arith.mulf %538, %547 : vector<8x512xf32>
    %cst_199 = arith.constant 5.000000e-01 : f32
    %549 = vector.broadcast %cst_199 : f32 to vector<8x512xf32>
    %550 = arith.mulf %549, %548 : vector<8x512xf32>
    %cst_200 = arith.constant 4.471500e-02 : f32
    %551 = vector.broadcast %cst_200 : f32 to vector<8x512xf32>
    %552 = arith.mulf %551, %548 : vector<8x512xf32>
    %553 = arith.mulf %552, %548 : vector<8x512xf32>
    %554 = arith.mulf %553, %548 : vector<8x512xf32>
    %555 = arith.addf %548, %554 : vector<8x512xf32>
    %cst_201 = arith.constant 0.797884583 : f32
    %556 = vector.broadcast %cst_201 : f32 to vector<8x512xf32>
    %557 = arith.mulf %556, %555 : vector<8x512xf32>
    %558 = math.tanh %557 : vector<8x512xf32>
    %cst_202 = arith.constant 1.000000e+00 : f32
    %559 = vector.broadcast %cst_202 : f32 to vector<8x512xf32>
    %560 = arith.addf %559, %558 : vector<8x512xf32>
    %561 = arith.mulf %550, %560 : vector<8x512xf32>
    %562 = arith.truncf %561 : vector<8x512xf32> to vector<8x512xbf16>
    %c2 = arith.constant 2 : index
    %c0_203 = arith.constant 0 : index
    %c0_204 = arith.constant 0 : index
    %563 = vector.load %arg28[%c2, %c0_203, %c0_204] : memref<4x512x128xbf16, #tpu.memory_space<vmem>>, vector<1x512x128xbf16>
    %564 = vector.shape_cast %563 : vector<1x512x128xbf16> to vector<512x128xbf16>
    %cst_205 = arith.constant dense<0.000000e+00> : vector<8x128xf32>
    %565 = tpu.matmul %562, %564, %cst_205 {dimension_numbers = #tpu.dot_dimension_numbers<[1], [0], [0], [1], [0, 0, 1, 1], [], []>} : vector<8x512xbf16>, vector<512x128xbf16>, vector<8x128xf32> -> vector<8x128xf32>
    %c2_206 = arith.constant 2 : index
    %c0_207 = arith.constant 0 : index
    %c0_208 = arith.constant 0 : index
    %566 = vector.load %arg19[%c2_206, %c0_207, %c0_208] : memref<4x1x128xf32, #tpu.memory_space<vmem>>, vector<1x1x128xf32>
    %567 = vector.shape_cast %566 : vector<1x1x128xf32> to vector<1x128xf32>
    %568 = vector.broadcast %567 : vector<1x128xf32> to vector<8x128xf32>
    %569 = arith.addf %565, %568 : vector<8x128xf32>
    %570 = arith.truncf %225 : vector<8x32xf32> to vector<8x32xbf16>
    %c1_209 = arith.constant 1 : index
    %c0_210 = arith.constant 0 : index
    %c0_211 = arith.constant 0 : index
    %571 = vector.load %arg27[%c1_209, %c0_210, %c0_211] : memref<2x32x512xbf16, #tpu.memory_space<vmem>>, vector<1x32x512xbf16>
    %572 = vector.shape_cast %571 : vector<1x32x512xbf16> to vector<32x512xbf16>
    %cst_212 = arith.constant dense<0.000000e+00> : vector<8x512xf32>
    %573 = tpu.matmul %570, %572, %cst_212 {dimension_numbers = #tpu.dot_dimension_numbers<[1], [0], [0], [1], [0, 0, 1, 1], [], []>} : vector<8x32xbf16>, vector<32x512xbf16>, vector<8x512xf32> -> vector<8x512xf32>
    %c1_213 = arith.constant 1 : index
    %c0_214 = arith.constant 0 : index
    %c0_215 = arith.constant 0 : index
    %574 = vector.load %arg18[%c1_213, %c0_214, %c0_215] : memref<2x1x512xf32, #tpu.memory_space<vmem>>, vector<1x1x512xf32>
    %575 = vector.shape_cast %574 : vector<1x1x512xf32> to vector<1x512xf32>
    %576 = vector.broadcast %575 : vector<1x512xf32> to vector<8x512xf32>
    %577 = arith.addf %573, %576 : vector<8x512xf32>
    %cst_216 = arith.constant dense<0.000000e+00> : vector<512xf32>
    %578 = vector.multi_reduction <add>, %577, %cst_216 [0] : vector<8x512xf32> to vector<512xf32>
    %579 = vector.shape_cast %578 : vector<512xf32> to vector<1x512xf32>
    %cst_217 = arith.constant 8.000000e+00 : f32
    %580 = vector.broadcast %cst_217 : f32 to vector<1x512xf32>
    %581 = arith.divf %579, %580 : vector<1x512xf32>
    %582 = vector.broadcast %581 : vector<1x512xf32> to vector<8x512xf32>
    %583 = arith.subf %577, %582 : vector<8x512xf32>
    %584 = arith.mulf %583, %583 : vector<8x512xf32>
    %cst_218 = arith.constant dense<0.000000e+00> : vector<512xf32>
    %585 = vector.multi_reduction <add>, %584, %cst_218 [0] : vector<8x512xf32> to vector<512xf32>
    %586 = vector.shape_cast %585 : vector<512xf32> to vector<1x512xf32>
    %cst_219 = arith.constant 8.000000e+00 : f32
    %587 = vector.broadcast %cst_219 : f32 to vector<1x512xf32>
    %588 = arith.divf %586, %587 : vector<1x512xf32>
    %cst_220 = arith.constant 9.99999974E-6 : f32
    %589 = vector.broadcast %cst_220 : f32 to vector<1x512xf32>
    %590 = arith.addf %588, %589 : vector<1x512xf32>
    %591 = math.rsqrt %590 : vector<1x512xf32>
    %592 = vector.broadcast %591 : vector<1x512xf32> to vector<8x512xf32>
    %593 = arith.mulf %583, %592 : vector<8x512xf32>
    %cst_221 = arith.constant 5.000000e-01 : f32
    %594 = vector.broadcast %cst_221 : f32 to vector<8x512xf32>
    %595 = arith.mulf %594, %593 : vector<8x512xf32>
    %cst_222 = arith.constant 4.471500e-02 : f32
    %596 = vector.broadcast %cst_222 : f32 to vector<8x512xf32>
    %597 = arith.mulf %596, %593 : vector<8x512xf32>
    %598 = arith.mulf %597, %593 : vector<8x512xf32>
    %599 = arith.mulf %598, %593 : vector<8x512xf32>
    %600 = arith.addf %593, %599 : vector<8x512xf32>
    %cst_223 = arith.constant 0.797884583 : f32
    %601 = vector.broadcast %cst_223 : f32 to vector<8x512xf32>
    %602 = arith.mulf %601, %600 : vector<8x512xf32>
    %603 = math.tanh %602 : vector<8x512xf32>
    %cst_224 = arith.constant 1.000000e+00 : f32
    %604 = vector.broadcast %cst_224 : f32 to vector<8x512xf32>
    %605 = arith.addf %604, %603 : vector<8x512xf32>
    %606 = arith.mulf %595, %605 : vector<8x512xf32>
    %607 = arith.truncf %606 : vector<8x512xf32> to vector<8x512xbf16>
    %c3 = arith.constant 3 : index
    %c0_225 = arith.constant 0 : index
    %c0_226 = arith.constant 0 : index
    %608 = vector.load %arg28[%c3, %c0_225, %c0_226] : memref<4x512x128xbf16, #tpu.memory_space<vmem>>, vector<1x512x128xbf16>
    %609 = vector.shape_cast %608 : vector<1x512x128xbf16> to vector<512x128xbf16>
    %cst_227 = arith.constant dense<0.000000e+00> : vector<8x128xf32>
    %610 = tpu.matmul %607, %609, %cst_227 {dimension_numbers = #tpu.dot_dimension_numbers<[1], [0], [0], [1], [0, 0, 1, 1], [], []>} : vector<8x512xbf16>, vector<512x128xbf16>, vector<8x128xf32> -> vector<8x128xf32>
    %c3_228 = arith.constant 3 : index
    %c0_229 = arith.constant 0 : index
    %c0_230 = arith.constant 0 : index
    %611 = vector.load %arg19[%c3_228, %c0_229, %c0_230] : memref<4x1x128xf32, #tpu.memory_space<vmem>>, vector<1x1x128xf32>
    %612 = vector.shape_cast %611 : vector<1x1x128xf32> to vector<1x128xf32>
    %613 = vector.broadcast %612 : vector<1x128xf32> to vector<8x128xf32>
    %614 = arith.addf %610, %613 : vector<8x128xf32>
    %cst_231 = arith.constant 0.000000e+00 : f32
    %615 = vector.broadcast %cst_231 : f32 to vector<8x32xf32>
    %616 = vector.broadcast %465 : vector<1x1xf32> to vector<8x32xf32>
    %617 = arith.addf %615, %616 : vector<8x32xf32>
    %618 = tpu.concatenate %424, %418, %428, %617, %393, %394, %395, %396, %397, %398, %155, %225, %515, %524, %569, %614 in 1 : vector<8x32xf32>, vector<8x32xf32>, vector<8x32xf32>, vector<8x32xf32>, vector<8x32xf32>, vector<8x32xf32>, vector<8x32xf32>, vector<8x32xf32>, vector<8x32xf32>, vector<8x32xf32>, vector<8x32xf32>, vector<8x32xf32>, vector<8x128xf32>, vector<8x128xf32>, vector<8x128xf32>, vector<8x128xf32> -> vector<8x896xf32>
    %c0_232 = arith.constant 0 : index
    %c0_233 = arith.constant 0 : index
    %619 = vector.load %arg24[%c0_232, %c0_233] : memref<8x896xf32, #tpu.memory_space<vmem>>, vector<8x896xf32>
    tpu.vector_store %arg24[%c0_232, %c0_233], %618 {strides = array<i32>} : memref<8x896xf32, #tpu.memory_space<vmem>>, vector<8x896xf32>,
    return
  }
  func.func @transform_0(%arg0: i32) -> (i32, i32) {
    %c0_i32 = arith.constant 0 : i32
    %c0_i32_0 = arith.constant 0 : i32
    %c0_i32_1 = arith.constant 0 : i32
    return %c0_i32, %c0_i32_0 : i32, i32
  }
  func.func @transform_1(%arg0: i32) -> (i32, i32) {
    %c0_i32 = arith.constant 0 : i32
    %c0_i32_0 = arith.constant 0 : i32
    %c0_i32_1 = arith.constant 0 : i32
    return %c0_i32, %c0_i32_0 : i32, i32
  }
  func.func @transform_2(%arg0: i32) -> (i32, i32) {
    %c0_i32 = arith.constant 0 : i32
    %c0_i32_0 = arith.constant 0 : i32
    %c0_i32_1 = arith.constant 0 : i32
    return %c0_i32, %c0_i32_0 : i32, i32
  }
  func.func @transform_3(%arg0: i32) -> (i32, i32) {
    %c0_i32 = arith.constant 0 : i32
    %c0_i32_0 = arith.constant 0 : i32
    %c0_i32_1 = arith.constant 0 : i32
    return %c0_i32, %c0_i32_0 : i32, i32
  }
  func.func @transform_4(%arg0: i32) -> (i32, i32) {
    %c0_i32 = arith.constant 0 : i32
    %c0_i32_0 = arith.constant 0 : i32
    %c0_i32_1 = arith.constant 0 : i32
    return %c0_i32, %c0_i32_0 : i32, i32
  }
  func.func @transform_5(%arg0: i32) -> (i32, i32) {
    %c0_i32 = arith.constant 0 : i32
    %c0_i32_0 = arith.constant 0 : i32
    %c0_i32_1 = arith.constant 0 : i32
    return %c0_i32, %c0_i32_0 : i32, i32
  }
  func.func @transform_6(%arg0: i32) -> (i32, i32) {
    %c0_i32 = arith.constant 0 : i32
    %c0_i32_0 = arith.constant 0 : i32
    %c0_i32_1 = arith.constant 0 : i32
    return %c0_i32, %c0_i32_0 : i32, i32
  }
  func.func @transform_7(%arg0: i32) -> (i32, i32) {
    %c0_i32 = arith.constant 0 : i32
    %c0_i32_0 = arith.constant 0 : i32
    %c0_i32_1 = arith.constant 0 : i32
    return %c0_i32, %c0_i32_0 : i32, i32
  }
  func.func @transform_8(%arg0: i32) -> (i32, i32) {
    %c0_i32 = arith.constant 0 : i32
    %c0_i32_0 = arith.constant 0 : i32
    %c0_i32_1 = arith.constant 0 : i32
    return %c0_i32, %c0_i32_0 : i32, i32
  }
  func.func @transform_9(%arg0: i32) -> (i32, i32) {
    %c0_i32 = arith.constant 0 : i32
    %c0_i32_0 = arith.constant 0 : i32
    %c0_i32_1 = arith.constant 0 : i32
    return %c0_i32, %c0_i32_0 : i32, i32
  }
  func.func @transform_10(%arg0: i32) -> (i32, i32) {
    %c0_i32 = arith.constant 0 : i32
    %c0_i32_0 = arith.constant 0 : i32
    %c0_i32_1 = arith.constant 0 : i32
    return %c0_i32, %c0_i32_0 : i32, i32
  }
  func.func @transform_11(%arg0: i32) -> (i32, i32) {
    %c0_i32 = arith.constant 0 : i32
    %c0_i32_0 = arith.constant 0 : i32
    %c0_i32_1 = arith.constant 0 : i32
    return %c0_i32, %c0_i32_0 : i32, i32
  }
  func.func @transform_12(%arg0: i32) -> (i32, i32) {
    %c0_i32 = arith.constant 0 : i32
    %c0_i32_0 = arith.constant 0 : i32
    %c0_i32_1 = arith.constant 0 : i32
    return %c0_i32, %c0_i32_0 : i32, i32
  }
  func.func @transform_13(%arg0: i32) -> (i32, i32) {
    %c0_i32 = arith.constant 0 : i32
    %c0_i32_0 = arith.constant 0 : i32
    %c0_i32_1 = arith.constant 0 : i32
    return %c0_i32, %c0_i32_0 : i32, i32
  }
  func.func @transform_14(%arg0: i32) -> (i32, i32) {
    %c0_i32 = arith.constant 0 : i32
    %c0_i32_0 = arith.constant 0 : i32
    %c0_i32_1 = arith.constant 0 : i32
    return %c0_i32, %c0_i32_0 : i32, i32
  }
  func.func @transform_15(%arg0: i32) -> (i32, i32) {
    %c0_i32 = arith.constant 0 : i32
    %c0_i32_0 = arith.constant 0 : i32
    %c0_i32_1 = arith.constant 0 : i32
    return %c0_i32, %c0_i32_0 : i32, i32
  }
  func.func @transform_16(%arg0: i32) -> (i32, i32) {
    %c0_i32 = arith.constant 0 : i32
    %c0_i32_0 = arith.constant 0 : i32
    %c0_i32_1 = arith.constant 0 : i32
    return %c0_i32, %c0_i32_0 : i32, i32
  }
  func.func @transform_17(%arg0: i32) -> (i32, i32, i32) {
    %c0_i32 = arith.constant 0 : i32
    %c0_i32_0 = arith.constant 0 : i32
    %c0_i32_1 = arith.constant 0 : i32
    %c0_i32_2 = arith.constant 0 : i32
    return %c0_i32, %c0_i32_0, %c0_i32_1 : i32, i32, i32
  }
  func.func @transform_18(%arg0: i32) -> (i32, i32, i32) {
    %c0_i32 = arith.constant 0 : i32
    %c0_i32_0 = arith.constant 0 : i32
    %c0_i32_1 = arith.constant 0 : i32
    %c0_i32_2 = arith.constant 0 : i32
    return %c0_i32, %c0_i32_0, %c0_i32_1 : i32, i32, i32
  }
  func.func @transform_23(%arg0: i32) -> (i32, i32) {
    %c0_i32 = arith.constant 0 : i32
    %c0_i32_0 = arith.constant 0 : i32
    %c0_i32_1 = arith.constant 0 : i32
    return %c0_i32, %c0_i32_0 : i32, i32
  }
}

</mosaic_0001>

<bundles_post_ra>
// kernel: vae_forward.3
= control target key start
LH: loop header
LB: loop body
LE: loop exit
PB: predicated region body
PF: predicated region fallthrough
CT: control target
= control target key end

     0   :  { %s13902_s0 = inlined_call_operand.hbm [shape: f32[8,40], index: 0, kind: input, shape index: {}]   ;;  %s13903_s1 = inlined_call_operand.hbm [shape: f32[8,24], index: 1, kind: input, shape index: {}]   ;;  %s13904_s2 = inlined_call_operand.hbm [shape: f32[8,32], index: 2, kind: input, shape index: {}]   ;;  %s13905_s3 = inlined_call_operand.vmem [shape: f32[8,32], index: 3, kind: input, shape index: {}]   ;;  %s13906_s4 = inlined_call_operand.vmem [shape: f32[16,32], index: 4, kind: input, shape index: {}]   ;;  %s13907_s5 = inlined_call_operand.vmem [shape: bf16[40,2048], index: 5, kind: input, shape index: {}]   ;;  %s13908_s6 = inlined_call_operand.hbm [shape: f32[1,2048], index: 6, kind: input, shape index: {}]   ;;  %s13909_s7 = inlined_call_operand.hbm [shape: bf16[24,2048], index: 7, kind: input, shape index: {}]   ;;  %s13910_s8 = inlined_call_operand.hbm [shape: f32[1,2048], index: 8, kind: input, shape index: {}]   ;;  %s13911_s9 = inlined_call_operand.vmem [shape: bf16[1024,128], index: 9, kind: input, shape index: {}]   ;;  %s13912_s10 = inlined_call_operand.vmem [shape: f32[1,128], index: 10, kind: input, shape index: {}]   ;;  %s13913_s11 = inlined_call_operand.hbm [shape: bf16[32,1024], index: 11, kind: input, shape index: {}]   ;;  %s13914_s12 = inlined_call_operand.hbm [shape: f32[1,1024], index: 12, kind: input, shape index: {}]   ;;  %s13915_s13 = inlined_call_operand.hbm [shape: f32[1,32], index: 13, kind: input, shape index: {}]   ;;  %s13916_s14 = inlined_call_operand.hbm [shape: bf16[32,64], index: 14, kind: input, shape index: {}]   ;;  %s13917_s15 = inlined_call_operand.hbm [shape: f32[1,64], index: 15, kind: input, shape index: {}]   ;;  %s13918_s16 = inlined_call_operand.hbm [shape: f32[1,1024], index: 16, kind: input, shape index: {}]   ;;  %s13919_s17 = inlined_call_operand.hbm [shape: f32[2,1,512], index: 17, kind: input, shape index: {}]   ;;  %s13920_s18 = inlined_call_operand.hbm [shape: f32[4,1,128], index: 18, kind: input, shape index: {}]   ;;  %s13921_s19 = inlined_call_operand.vmem [shape: bf16[1024,32], index: 19, kind: input, shape index: {}]   ;;  %s13922_s20 = inlined_call_operand.hbm [shape: bf16[32,1024], index: 20, kind: input, shape index: {}]   ;;  %s13923_s21 = inlined_call_operand.vmem [shape: bf16[2,32,512], index: 21, kind: input, shape index: {}]   ;;  %s13924_s22 = inlined_call_operand.hbm [shape: bf16[4,512,128], index: 22, kind: input, shape index: {}]   ;;  %s13925_s23 = inlined_call_operand.vmem [shape: f32[8,896], index: 23, kind: output, shape index: {}]  }
   0x1   :  { %13964 = sst [smem:[#allocation250_spill]] %s13902_s0 }
   0x2   :  { %13965 = sst [smem:[#allocation251_spill]] %s13903_s1 }
   0x3   :  { %13966 = sst [smem:[#allocation252_spill]] %s13904_s2 }
   0x4   :  { %13967 = sst [smem:[#allocation253_spill]] %s13905_s3 }
   0x5   :  { %13968 = sst [smem:[#allocation254_spill]] %s13906_s4 }
   0x6   :  { %13969 = sst [smem:[#allocation255_spill]] %s13907_s5 }
   0x7   :  { %13970 = sst [smem:[#allocation256_spill]] %s13908_s6 }
   0x8   :  { %13971 = sst [smem:[#allocation257_spill]] %s13909_s7 }
   0x9   :  { %28 = vsyncpa [#allocation8], 0 }
   0xa   :  { %29 = vsyncpa [#allocation10], 0 }
   0xb   :  { %30 = vsyncpa [#allocation13], 0 }
   0xc   :  { %31 = vsyncpa [#allocation16], 0 }
   0xd   :  { %32 = vsyncpa [#allocation19], 0 }
   0xe   :  { %33 = vsyncpa [#allocation22], 0 }
   0xf   :  { %34 = vsyncpa [#allocation25], 0 }
  0x10   :  { %35 = vsyncpa [#allocation28], 0  ;;  %s9734_s4 = smov [#allocation9]   ;;  %s9735_s24 = smov [#allocation12]  }
  0x11   :  { %s52_s30 = sshll.u32 %s9734_s4, 4  ;;  %s78_s25 = sshll.u32 %s9735_s24, 4  ;;  %s53_s30 = int_to_ptr.vmem [resolvable:$true] %s52_s30  ;;  %s79_s25 = int_to_ptr.vmem [resolvable:$true] %s78_s25 }
  0x12   :  { %s13972_s26 = sld [smem:[#allocation251_spill]] }
  0x18   :  { %s9380_s2 = scalar_lea.hbm %s13972_s26, 128 }
  0x19   :  { %p9381_p0 = scmp.ne.s32.totalorder %s13972_s26, %s9380_s2  ;;  %p9384_p1 = scmp.lt.u32.totalorder %s9380_s2, %s13972_s26 }
  0x1b   :  { %p9386_p2 = pnand %p9384_p1, %p9381_p0 }
  0x1d   :  { %9389 = shalt.err (!%p9386_p2)
}
  0x1e   :  { %s9390_s29 = scalar_lea.vmem %s53_s30, 128  ;;  %p9395_p4 = scmp.lt.s32.totalorder %s53_s30, %s53_s30 }
  0x1f   :  { %p9391_p3 = scmp.ne.s32.totalorder %s53_s30, %s9390_s29  ;;  %p9396_p5 = scmp.lt.s32.totalorder %s9390_s29, %s9390_s29 }
  0x21   :  { %p9397_p6 = por %p9396_p5, %p9395_p4 }
  0x23   :  { %p9398_p7 = pnand %p9397_p6, %p9391_p3 }
  0x25   :  { %9401 = shalt.err (!%p9398_p7)
}
  0x26   :  { %55 = dma.hbm_to_vmem [thread:$0]  %s13972_s26, 128, %s53_s30, [#allocation10]  }
  0x27   :  { %s13973_s5 = sld [smem:[#allocation256_spill]] }
  0x2d   :  { %s9402_s1 = scalar_lea.hbm %s13973_s5, 256 }
  0x2e   :  { %p9403_p8 = scmp.ne.s32.totalorder %s13973_s5, %s9402_s1  ;;  %p9406_p9 = scmp.lt.u32.totalorder %s9402_s1, %s13973_s5 }
  0x30   :  { %p9408_p10 = pnand %p9406_p9, %p9403_p8 }
  0x32   :  { %9411 = shalt.err (!%p9408_p10)
}
  0x33   :  { %s9412_s28 = scalar_lea.vmem %s79_s25, 256  ;;  %p9417_p12 = scmp.lt.s32.totalorder %s79_s25, %s79_s25 }
  0x34   :  { %p9413_p11 = scmp.ne.s32.totalorder %s79_s25, %s9412_s28  ;;  %p9418_p13 = scmp.lt.s32.totalorder %s9412_s28, %s9412_s28 }
  0x36   :  { %p9419_p0 = por %p9418_p13, %p9417_p12 }
  0x38   :  { %p9420_p1 = pnand %p9419_p0, %p9413_p11 }
  0x3a   :  { %9423 = shalt.err (!%p9420_p1)
}
  0x3b   :  { %81 = dma.hbm_to_vmem [thread:$0]  %s13973_s5, 256, %s79_s25, [#allocation13]  }
  0x3c   :  { %s9736_s29 = smov [#allocation15]   ;;  %s9737_s0 = smov [#allocation18]  }
  0x3d   :  { %s100_s3 = sshll.u32 %s9736_s29, 4  ;;  %s126_s4 = sshll.u32 %s9737_s0, 4  ;;  %s101_s3 = int_to_ptr.vmem [resolvable:$true] %s100_s3  ;;  %s127_s4 = int_to_ptr.vmem [resolvable:$true] %s126_s4 }
  0x3e   :  { %s9424_s6 = scalar_lea.hbm %s13910_s8, 256 }
  0x3f   :  { %p9425_p2 = scmp.ne.s32.totalorder %s13910_s8, %s9424_s6  ;;  %p9428_p3 = scmp.lt.u32.totalorder %s9424_s6, %s13910_s8 }
  0x41   :  { %p9430_p4 = pnand %p9428_p3, %p9425_p2 }
  0x43   :  { %9433 = shalt.err (!%p9430_p4)
}
  0x44   :  { %s9434_s25 = scalar_lea.vmem %s101_s3, 256  ;;  %p9439_p6 = scmp.lt.s32.totalorder %s101_s3, %s101_s3 }
  0x45   :  { %p9435_p5 = scmp.ne.s32.totalorder %s101_s3, %s9434_s25  ;;  %p9440_p7 = scmp.lt.s32.totalorder %s9434_s25, %s9434_s25 }
  0x47   :  { %p9441_p8 = por %p9440_p7, %p9439_p6 }
  0x49   :  { %p9442_p9 = pnand %p9441_p8, %p9435_p5 }
  0x4b   :  { %9445 = shalt.err (!%p9442_p9)
}
  0x4c   :  { %103 = dma.hbm_to_vmem [thread:$0]  %s13910_s8, 256, %s101_s3, [#allocation16]  }
  0x4d   :  { %s9446_s0 = scalar_lea.hbm %s13914_s12, 128 }
  0x4e   :  { %p9447_p10 = scmp.ne.s32.totalorder %s13914_s12, %s9446_s0  ;;  %p9450_p11 = scmp.lt.u32.totalorder %s9446_s0, %s13914_s12 }
  0x50   :  { %p9452_p12 = pnand %p9450_p11, %p9447_p10 }
  0x52   :  { %9455 = shalt.err (!%p9452_p12)
}
  0x53   :  { %s9456_s2 = scalar_lea.vmem %s127_s4, 128  ;;  %p9461_p0 = scmp.lt.s32.totalorder %s127_s4, %s127_s4 }
  0x54   :  { %p9457_p13 = scmp.ne.s32.totalorder %s127_s4, %s9456_s2  ;;  %p9462_p1 = scmp.lt.s32.totalorder %s9456_s2, %s9456_s2 }
  0x56   :  { %p9463_p2 = por %p9462_p1, %p9461_p0 }
  0x58   :  { %p9464_p3 = pnand %p9463_p2, %p9457_p13 }
  0x5a   :  { %9467 = shalt.err (!%p9464_p3)
}
  0x5b   :  { %129 = dma.hbm_to_vmem [thread:$0]  %s13914_s12, 128, %s127_s4, [#allocation19]  }
  0x5c   :  { %s9738_s7 = smov [#allocation21]   ;;  %s9468_s30 = scalar_lea.hbm %s13916_s14, 256 }
  0x5d   :  { %s145_s28 = sshll.u32 %s9738_s7, 4  ;;  %p9469_p4 = scmp.ne.s32.totalorder %s13916_s14, %s9468_s30  ;;  %s146_s28 = int_to_ptr.vmem [resolvable:$true] %s145_s28 }
  0x5e   :  { %p9472_p5 = scmp.lt.u32.totalorder %s9468_s30, %s13916_s14 }
  0x60   :  { %p9474_p6 = pnand %p9472_p5, %p9469_p4 }
  0x62   :  { %9477 = shalt.err (!%p9474_p6)
}
  0x63   :  { %s9478_s1 = scalar_lea.vmem %s146_s28, 256  ;;  %p9483_p8 = scmp.lt.s32.totalorder %s146_s28, %s146_s28 }
  0x64   :  { %p9479_p7 = scmp.ne.s32.totalorder %s146_s28, %s9478_s1  ;;  %p9484_p9 = scmp.lt.s32.totalorder %s9478_s1, %s9478_s1 }
  0x66   :  { %p9485_p10 = por %p9484_p9, %p9483_p8 }
  0x68   :  { %p9486_p11 = pnand %p9485_p10, %p9479_p7 }
  0x6a   :  { %9489 = shalt.err (!%p9486_p11)
}
  0x6b   :  { %s9739_s12 = smov 64   ;;  %s9740_s4 = smov 4  }
  0x6c   :  { %151 = dma.hbm_to_vmem [thread:$0]  %s13916_s14, 256, %s146_s28, [#allocation22], %s9739_s12, %s9739_s12, %s9740_s4  }
  0x6d   :  { %s9741_s2 = smov [#allocation24]   ;;  %s9742_s3 = smov [#allocation7]  }
  0x6e   :  { %s168_s8 = sshll.u32 %s9741_s2, 4  ;;  %s42_s7 = sshll.u32 %s9742_s3, 4  ;;  %s169_s8 = int_to_ptr.vmem [resolvable:$true] %s168_s8  ;;  %s43_s7 = int_to_ptr.vmem [resolvable:$true] %s42_s7 }
  0x6f   :  { %s9490_s30 = scalar_lea.hbm %s13918_s16, 128 }
  0x70   :  { %p9491_p12 = scmp.ne.s32.totalorder %s13918_s16, %s9490_s30  ;;  %p9494_p13 = scmp.lt.u32.totalorder %s9490_s30, %s13918_s16 }
  0x72   :  { %p9496_p0 = pnand %p9494_p13, %p9491_p12 }
  0x74   :  { %9499 = shalt.err (!%p9496_p0)
}
  0x75   :  { %s9500_s14 = scalar_lea.vmem %s169_s8, 128  ;;  %p9505_p2 = scmp.lt.s32.totalorder %s169_s8, %s169_s8 }
  0x76   :  { %p9501_p1 = scmp.ne.s32.totalorder %s169_s8, %s9500_s14  ;;  %p9506_p3 = scmp.lt.s32.totalorder %s9500_s14, %s9500_s14 }
  0x78   :  { %p9507_p4 = por %p9506_p3, %p9505_p2 }
  0x7a   :  { %p9508_p5 = pnand %p9507_p4, %p9501_p1 }
  0x7c   :  { %9511 = shalt.err (!%p9508_p5)
}
  0x7d   :  { %171 = dma.hbm_to_vmem [thread:$0]  %s13918_s16, 128, %s169_s8, [#allocation25]  }
  0x7e   :  { %s13974_s2 = sld [smem:[#allocation250_spill]] }
  0x84   :  { %s9512_s3 = scalar_lea.hbm %s13974_s2, 128 }
  0x85   :  { %p9513_p6 = scmp.ne.s32.totalorder %s13974_s2, %s9512_s3  ;;  %p9516_p7 = scmp.lt.u32.totalorder %s9512_s3, %s13974_s2 }
  0x87   :  { %p9518_p8 = pnand %p9516_p7, %p9513_p6 }
  0x89   :  { %9521 = shalt.err (!%p9518_p8)
}
  0x8a   :  { %s9522_s29 = scalar_lea.vmem %s43_s7, 128  ;;  %p9527_p10 = scmp.lt.s32.totalorder %s43_s7, %s43_s7 }
  0x8b   :  { %p9523_p9 = scmp.ne.s32.totalorder %s43_s7, %s9522_s29  ;;  %p9528_p11 = scmp.lt.s32.totalorder %s9522_s29, %s9522_s29 }
  0x8d   :  { %p9529_p12 = por %p9528_p11, %p9527_p10 }
  0x8f   :  { %p9530_p13 = pnand %p9529_p12, %p9523_p9 }
  0x91   :  { %9533 = shalt.err (!%p9530_p13)
}
  0x92   :  { %45 = dma.hbm_to_vmem [thread:$0]  %s13974_s2, 128, %s43_s7, [#allocation8]  }
  0x93   :  { %s9743_s0 = smov [#allocation11]   ;;  %s9744_s14 = smov [#allocation14]  }
  0x94   :  { %s62_s24 = sshll.u32 %s9743_s0, 4  ;;  %s87_s28 = sshll.u32 %s9744_s14, 4  ;;  %s63_s24 = int_to_ptr.vmem [resolvable:$true] %s62_s24  ;;  %s88_s28 = int_to_ptr.vmem [resolvable:$true] %s87_s28 }
  0x95   :  { %s13975_s27 = sld [smem:[#allocation252_spill]] }
  0x9b   :  { %s9534_s3 = scalar_lea.hbm %s13975_s27, 128 }
  0x9c   :  { %p9535_p0 = scmp.ne.s32.totalorder %s13975_s27, %s9534_s3  ;;  %p9538_p1 = scmp.lt.u32.totalorder %s9534_s3, %s13975_s27 }
  0x9e   :  { %p9540_p2 = pnand %p9538_p1, %p9535_p0 }
  0xa0   :  { %9543 = shalt.err (!%p9540_p2)
}
  0xa1   :  { %s9544_s7 = scalar_lea.vmem %s63_s24, 128  ;;  %p9549_p4 = scmp.lt.s32.totalorder %s63_s24, %s63_s24 }
  0xa2   :  { %p9545_p3 = scmp.ne.s32.totalorder %s63_s24, %s9544_s7  ;;  %p9550_p5 = scmp.lt.s32.totalorder %s9544_s7, %s9544_s7 }
  0xa4   :  { %p9551_p6 = por %p9550_p5, %p9549_p4 }
  0xa6   :  { %p9552_p7 = pnand %p9551_p6, %p9545_p3 }
  0xa8   :  { %9555 = shalt.err (!%p9552_p7)
}
  0xa9   :  { %65 = dma.hbm_to_vmem [thread:$0]  %s13975_s27, 128, %s63_s24, [#allocation10]  }
  0xaa   :  { %s13976_s0 = sld [smem:[#allocation257_spill]] }
  0xb0   :  { %s9556_s14 = scalar_lea.hbm %s13976_s0, 3072 }
  0xb1   :  { %p9557_p8 = scmp.ne.s32.totalorder %s13976_s0, %s9556_s14  ;;  %p9560_p9 = scmp.lt.u32.totalorder %s9556_s14, %s13976_s0 }
  0xb3   :  { %p9562_p10 = pnand %p9560_p9, %p9557_p8 }
  0xb5   :  { %9565 = shalt.err (!%p9562_p10)
}
  0xb6   :  { %s9566_s5 = scalar_lea.vmem %s88_s28, 3072  ;;  %p9571_p12 = scmp.lt.s32.totalorder %s88_s28, %s88_s28 }
  0xb7   :  { %p9567_p11 = scmp.ne.s32.totalorder %s88_s28, %s9566_s5  ;;  %p9572_p13 = scmp.lt.s32.totalorder %s9566_s5, %s9566_s5 }
  0xb9   :  { %p9573_p0 = por %p9572_p13, %p9571_p12 }
  0xbb   :  { %p9574_p1 = pnand %p9573_p0, %p9567_p11 }
  0xbd   :  { %9577 = shalt.err (!%p9574_p1)
}
  0xbe   :  { %s9745_s24 = smov 1024   ;;  %s9746_s26 = smov [#allocation17]  }
  0xbf   :  { %93 = dma.hbm_to_vmem [thread:$0]  %s13976_s0, 3072, %s88_s28, [#allocation13], %s9745_s24, %s9745_s24, %s9739_s12  }
  0xc0   :  { %s113_s7 = sshll.u32 %s9746_s26, 4  ;;  %s9578_s16 = scalar_lea.hbm %s13913_s11, 2048  ;;  %s114_s7 = int_to_ptr.vmem [resolvable:$true] %s113_s7 }
  0xc1   :  { %p9579_p2 = scmp.ne.s32.totalorder %s13913_s11, %s9578_s16  ;;  %p9582_p3 = scmp.lt.u32.totalorder %s9578_s16, %s13913_s11 }
  0xc3   :  { %p9584_p4 = pnand %p9582_p3, %p9579_p2 }
  0xc5   :  { %9587 = shalt.err (!%p9584_p4)
}
  0xc6   :  { %s9588_s3 = scalar_lea.vmem %s114_s7, 2048  ;;  %p9593_p6 = scmp.lt.s32.totalorder %s114_s7, %s114_s7 }
  0xc7   :  { %p9589_p5 = scmp.ne.s32.totalorder %s114_s7, %s9588_s3  ;;  %p9594_p7 = scmp.lt.s32.totalorder %s9588_s3, %s9588_s3 }
  0xc9   :  { %p9595_p8 = por %p9594_p7, %p9593_p6 }
  0xcb   :  { %p9596_p9 = pnand %p9595_p8, %p9589_p5 }
  0xcd   :  { %9599 = shalt.err (!%p9596_p9)
}
  0xce   :  { %s9747_s28 = smov 512   ;;  %s9748_s0 = smov 32  }
  0xcf   :  { %119 = dma.hbm_to_vmem [thread:$0]  %s13913_s11, 2048, %s114_s7, [#allocation16], %s9747_s28, %s9747_s28, %s9748_s0  }
  0xd0   :  { %s9749_s27 = smov [#allocation20]   ;;  %s9750_s26 = smov [#allocation23]  }
  0xd1   :  { %s136_s30 = sshll.u32 %s9749_s27, 4  ;;  %s158_s2 = sshll.u32 %s9750_s26, 4  ;;  %s137_s30 = int_to_ptr.vmem [resolvable:$true] %s136_s30  ;;  %s159_s2 = int_to_ptr.vmem [resolvable:$true] %s158_s2 }
  0xd2   :  { %s9600_s8 = scalar_lea.hbm %s13915_s13, 16 }
  0xd3   :  { %p9601_p10 = scmp.ne.s32.totalorder %s13915_s13, %s9600_s8  ;;  %p9604_p11 = scmp.lt.u32.totalorder %s9600_s8, %s13915_s13 }
  0xd5   :  { %p9606_p12 = pnand %p9604_p11, %p9601_p10 }
  0xd7   :  { %9609 = shalt.err (!%p9606_p12)
}
  0xd8   :  { %s9610_s11 = scalar_lea.vmem %s137_s30, 16  ;;  %s9614_s7 = scalar_lea.vmem %s137_s30, 32 }
  0xd9   :  { %p9611_p13 = scmp.ne.s32.totalorder %s137_s30, %s9610_s11  ;;  %p9615_p0 = scmp.lt.s32.totalorder %s137_s30, %s137_s30 }
  0xda   :  { %p9616_p1 = scmp.lt.s32.totalorder %s9614_s7, %s9610_s11 }
  0xdc   :  { %p9617_p2 = por %p9616_p1, %p9615_p0 }
  0xde   :  { %p9618_p3 = pnand %p9617_p2, %p9611_p13 }
  0xe0   :  { %9621 = shalt.err (!%p9618_p3)
}
  0xe1   :  { %139 = dma.hbm_to_vmem [thread:$0]  %s13915_s13, 16, %s137_s30, [#allocation19]  }
  0xe2   :  { %s9622_s29 = scalar_lea.hbm %s13917_s15, 16 }
  0xe3   :  { %p9623_p4 = scmp.ne.s32.totalorder %s13917_s15, %s9622_s29  ;;  %p9626_p5 = scmp.lt.u32.totalorder %s9622_s29, %s13917_s15 }
  0xe5   :  { %p9628_p6 = pnand %p9626_p5, %p9623_p4 }
  0xe7   :  { %9631 = shalt.err (!%p9628_p6)
}
  0xe8   :  { %s9632_s6 = scalar_lea.vmem %s159_s2, 16  ;;  %s9636_s3 = scalar_lea.vmem %s159_s2, 32 }
  0xe9   :  { %p9633_p7 = scmp.ne.s32.totalorder %s159_s2, %s9632_s6  ;;  %p9637_p8 = scmp.lt.s32.totalorder %s159_s2, %s159_s2 }
  0xea   :  { %p9638_p9 = scmp.lt.s32.totalorder %s9636_s3, %s9632_s6 }
  0xec   :  { %p9639_p10 = por %p9638_p9, %p9637_p8 }
  0xee   :  { %p9640_p11 = pnand %p9639_p10, %p9633_p7 }
  0xf0   :  { %9643 = shalt.err (!%p9640_p11)
}
  0xf1   :  { %161 = dma.hbm_to_vmem [thread:$0]  %s13917_s15, 16, %s159_s2, [#allocation22]  }
  0xf2   :  { %s9751_s11 = smov [#allocation26]   ;;  %s9752_s25 = smov [#allocation27]  }
  0xf3   :  { %s177_s7 = sshll.u32 %s9751_s11, 4  ;;  %s189_s5 = sshll.u32 %s9752_s25, 4  ;;  %s178_s7 = int_to_ptr.vmem [resolvable:$true] %s177_s7  ;;  %s190_s5 = int_to_ptr.vmem [resolvable:$true] %s189_s5 }
  0xf4   :  { %s9644_s29 = scalar_lea.hbm %s13919_s17, 128 }
  0xf5   :  { %p9645_p12 = scmp.ne.s32.totalorder %s13919_s17, %s9644_s29  ;;  %p9648_p13 = scmp.lt.u32.totalorder %s9644_s29, %s13919_s17 }
  0xf7   :  { %p9650_p0 = pnand %p9648_p13, %p9645_p12 }
  0xf9   :  { %9653 = shalt.err (!%p9650_p0)
}
  0xfa   :  { %s9654_s15 = scalar_lea.vmem %s178_s7, 128  ;;  %p9659_p2 = scmp.lt.s32.totalorder %s178_s7, %s178_s7 }
  0xfb   :  { %p9655_p1 = scmp.ne.s32.totalorder %s178_s7, %s9654_s15  ;;  %p9660_p3 = scmp.lt.s32.totalorder %s9654_s15, %s9654_s15 }
  0xfd   :  { %p9661_p4 = por %p9660_p3, %p9659_p2 }
  0xff   :  { %p9662_p5 = pnand %p9661_p4, %p9655_p1 }
 0x101   :  { %9665 = shalt.err (!%p9662_p5)
}
 0x102   :  { %183 = dma.hbm_to_vmem [thread:$0]  %s13919_s17, 128, %s178_s7, [#allocation25], %s9739_s12, %s9739_s12, %s9740_s4  }
 0x103   :  { %s9666_s30 = scalar_lea.hbm %s13920_s18, 64 }
 0x104   :  { %p9667_p6 = scmp.ne.s32.totalorder %s13920_s18, %s9666_s30  ;;  %p9670_p7 = scmp.lt.u32.totalorder %s9666_s30, %s13920_s18 }
 0x106   :  { %p9672_p8 = pnand %p9670_p7, %p9667_p6 }
 0x108   :  { %9675 = shalt.err (!%p9672_p8)
}
 0x109   :  { %s9676_s29 = scalar_lea.vmem %s190_s5, 64  ;;  %p9681_p10 = scmp.lt.s32.totalorder %s190_s5, %s190_s5 }
 0x10a   :  { %p9677_p9 = scmp.ne.s32.totalorder %s190_s5, %s9676_s29  ;;  %p9682_p11 = scmp.lt.s32.totalorder %s9676_s29, %s9676_s29 }
 0x10c   :  { %p9683_p12 = por %p9682_p11, %p9681_p10 }
 0x10e   :  { %p9684_p13 = pnand %p9683_p12, %p9677_p9 }
 0x110   :  { %9687 = shalt.err (!%p9684_p13)
}
 0x111   :  { %s9753_s17 = smov 16   ;;  %s9754_s7 = smov 1  }
 0x112   :  { %195 = dma.hbm_to_vmem [thread:$0]  %s13920_s18, 64, %s190_s5, [#allocation28], %s9753_s17, %s9753_s17, %s9754_s7  }
 0x113   :  { %9710 = dma.done.wait [#allocation8], 128  }
 0x114   :  { %9711 = vsyncadd [#allocation8], 4294967168 }
 0x115   :  { %9712 = dma.done.wait [#allocation10], 256  }
 0x116   :  { %9713 = vsyncadd [#allocation10], 4294967040 }
 0x117   :  { %9714 = dma.done.wait [#allocation13], 3328  }
 0x118   :  { %9715 = vsyncadd [#allocation13], 4294963968 }
 0x119   :  { %9716 = dma.done.wait [#allocation16], 2304  }
 0x11a   :  { %9717 = vsyncadd [#allocation16], 4294964992 }
 0x11b   :  { %9718 = dma.done.wait [#allocation19], 144  }
 0x11c   :  { %9719 = vsyncadd [#allocation19], 4294967152 }
 0x11d   :  { %9720 = dma.done.wait [#allocation22], 272  }
 0x11e   :  { %9721 = vsyncadd [#allocation22], 4294967024 }
 0x11f   :  { %9722 = dma.done.wait [#allocation25], 256  }
 0x120   :  { %9723 = vsyncadd [#allocation25], 4294967040 }
 0x121   :  { %9724 = dma.done.wait [#allocation28], 64  }
 0x122   :  { %9725 = vsyncadd [#allocation28], 4294967232  ;;  %v10067_v0 = vld [vmem:[%s13921_s19] sm:$0xff]  ;;  %v10072_v1 = vld [vmem:[%s13921_s19 + $0x8] sm:$0xff] }
 0x123   :  { %13977 = vst [vmem:[#allocation49_spill] sm:$0xff] %v10067_v0  ;;  %13978 = vst [vmem:[#allocation50_spill] sm:$0xff] %v10072_v1  ;;  %v10077_v2 = vld [vmem:[%s13921_s19 + $0x10] sm:$0xff]  ;;  %v10082_v3 = vld [vmem:[%s13921_s19 + $0x18] sm:$0xff] }
 0x124   :  { %13979 = vst [vmem:[#allocation51_spill] sm:$0xff] %v10077_v2  ;;  %13980 = vst [vmem:[#allocation52_spill] sm:$0xff] %v10082_v3  ;;  %v10087_v4 = vld [vmem:[%s13921_s19 + $0x20] sm:$0xff]  ;;  %v10092_v5 = vld [vmem:[%s13921_s19 + $0x28] sm:$0xff] }
 0x125   :  { %13981 = vst [vmem:[#allocation53_spill] sm:$0xff] %v10087_v4  ;;  %13982 = vst [vmem:[#allocation54_spill] sm:$0xff] %v10092_v5  ;;  %v10097_v6 = vld [vmem:[%s13921_s19 + $0x30] sm:$0xff]  ;;  %v10102_v7 = vld [vmem:[%s13921_s19 + $0x38] sm:$0xff] }
 0x126   :  { %13983 = vst [vmem:[#allocation55_spill] sm:$0xff] %v10097_v6  ;;  %13984 = vst [vmem:[#allocation56_spill] sm:$0xff] %v10102_v7  ;;  %v10107_v8 = vld [vmem:[%s13921_s19 + $0x40] sm:$0xff]  ;;  %v10112_v9 = vld [vmem:[%s13921_s19 + $0x48] sm:$0xff] }
 0x127   :  { %13985 = vst [vmem:[#allocation57_spill] sm:$0xff] %v10107_v8  ;;  %13986 = vst [vmem:[#allocation58_spill] sm:$0xff] %v10112_v9  ;;  %v10117_v10 = vld [vmem:[%s13921_s19 + $0x50] sm:$0xff]  ;;  %v10122_v11 = vld [vmem:[%s13921_s19 + $0x58] sm:$0xff] }
 0x128   :  { %13987 = vst [vmem:[#allocation59_spill] sm:$0xff] %v10117_v10  ;;  %13988 = vst [vmem:[#allocation60_spill] sm:$0xff] %v10122_v11  ;;  %v10127_v12 = vld [vmem:[%s13921_s19 + $0x60] sm:$0xff]  ;;  %v10132_v13 = vld [vmem:[%s13921_s19 + $0x68] sm:$0xff] }
 0x129   :  { %13989 = vst [vmem:[#allocation61_spill] sm:$0xff] %v10127_v12  ;;  %13990 = vst [vmem:[#allocation62_spill] sm:$0xff] %v10132_v13  ;;  %v10137_v14 = vld [vmem:[%s13921_s19 + $0x70] sm:$0xff]  ;;  %v10142_v15 = vld [vmem:[%s13921_s19 + $0x78] sm:$0xff] }
 0x12a   :  { %13991 = vst [vmem:[#allocation63_spill] sm:$0xff] %v10137_v14  ;;  %13992 = vst [vmem:[#allocation64_spill] sm:$0xff] %v10142_v15  ;;  %v10147_v16 = vld [vmem:[%s13921_s19 + $0x80] sm:$0xff]  ;;  %v10152_v17 = vld [vmem:[%s13921_s19 + $0x88] sm:$0xff] }
 0x12b   :  { %13993 = vst [vmem:[#allocation65_spill] sm:$0xff] %v10147_v16  ;;  %13994 = vst [vmem:[#allocation66_spill] sm:$0xff] %v10152_v17  ;;  %v10157_v18 = vld [vmem:[%s13921_s19 + $0x90] sm:$0xff]  ;;  %v10162_v19 = vld [vmem:[%s13921_s19 + $0x98] sm:$0xff] }
 0x12c   :  { %13995 = vst [vmem:[#allocation67_spill] sm:$0xff] %v10157_v18  ;;  %13996 = vst [vmem:[#allocation68_spill] sm:$0xff] %v10162_v19  ;;  %v10167_v20 = vld [vmem:[%s13921_s19 + $0xa0] sm:$0xff]  ;;  %v10172_v21 = vld [vmem:[%s13921_s19 + $0xa8] sm:$0xff] }
 0x12d   :  { %13997 = vst [vmem:[#allocation69_spill] sm:$0xff] %v10167_v20  ;;  %13998 = vst [vmem:[#allocation70_spill] sm:$0xff] %v10172_v21  ;;  %v10177_v22 = vld [vmem:[%s13921_s19 + $0xb0] sm:$0xff]  ;;  %v10182_v23 = vld [vmem:[%s13921_s19 + $0xb8] sm:$0xff] }
 0x12e   :  { %13999 = vst [vmem:[#allocation71_spill] sm:$0xff] %v10177_v22  ;;  %14000 = vst [vmem:[#allocation72_spill] sm:$0xff] %v10182_v23  ;;  %v10187_v24 = vld [vmem:[%s13921_s19 + $0xc0] sm:$0xff]  ;;  %v10192_v25 = vld [vmem:[%s13921_s19 + $0xc8] sm:$0xff] }
 0x12f   :  { %14001 = vst [vmem:[#allocation73_spill] sm:$0xff] %v10187_v24  ;;  %14002 = vst [vmem:[#allocation74_spill] sm:$0xff] %v10192_v25  ;;  %v10197_v26 = vld [vmem:[%s13921_s19 + $0xd0] sm:$0xff]  ;;  %v10202_v27 = vld [vmem:[%s13921_s19 + $0xd8] sm:$0xff] }
 0x130   :  { %14003 = vst [vmem:[#allocation75_spill] sm:$0xff] %v10197_v26  ;;  %14004 = vst [vmem:[#allocation76_spill] sm:$0xff] %v10202_v27  ;;  %v10207_v28 = vld [vmem:[%s13921_s19 + $0xe0] sm:$0xff]  ;;  %v10212_v29 = vld [vmem:[%s13921_s19 + $0xe8] sm:$0xff] }
 0x131   :  { %14005 = vst [vmem:[#allocation77_spill] sm:$0xff] %v10207_v28  ;;  %14006 = vst [vmem:[#allocation78_spill] sm:$0xff] %v10212_v29  ;;  %v10217_v30 = vld [vmem:[%s13921_s19 + $0xf0] sm:$0xff]  ;;  %v10222_v31 = vld [vmem:[%s13921_s19 + $0xf8] sm:$0xff] }
 0x132   :  { %14007 = vst [vmem:[#allocation79_spill] sm:$0xff] %v10217_v30  ;;  %14008 = vst [vmem:[#allocation80_spill] sm:$0xff] %v10222_v31  ;;  %v10227_v32 = vld [vmem:[%s13921_s19 + $0x100] sm:$0xff]  ;;  %v10232_v33 = vld [vmem:[%s13921_s19 + $0x108] sm:$0xff] }
 0x133   :  { %14009 = vst [vmem:[#allocation81_spill] sm:$0xff] %v10227_v32  ;;  %14010 = vst [vmem:[#allocation82_spill] sm:$0xff] %v10232_v33  ;;  %v10237_v34 = vld [vmem:[%s13921_s19 + $0x110] sm:$0xff]  ;;  %v10242_v35 = vld [vmem:[%s13921_s19 + $0x118] sm:$0xff] }
 0x134   :  { %14011 = vst [vmem:[#allocation83_spill] sm:$0xff] %v10237_v34  ;;  %14012 = vst [vmem:[#allocation84_spill] sm:$0xff] %v10242_v35  ;;  %v10247_v36 = vld [vmem:[%s13921_s19 + $0x120] sm:$0xff]  ;;  %v10252_v37 = vld [vmem:[%s13921_s19 + $0x128] sm:$0xff] }
 0x135   :  { %14013 = vst [vmem:[#allocation85_spill] sm:$0xff] %v10247_v36  ;;  %14014 = vst [vmem:[#allocation86_spill] sm:$0xff] %v10252_v37  ;;  %v10257_v38 = vld [vmem:[%s13921_s19 + $0x130] sm:$0xff]  ;;  %v10262_v39 = vld [vmem:[%s13921_s19 + $0x138] sm:$0xff] }
 0x136   :  { %14015 = vst [vmem:[#allocation87_spill] sm:$0xff] %v10257_v38  ;;  %14016 = vst [vmem:[#allocation88_spill] sm:$0xff] %v10262_v39  ;;  %v10267_v40 = vld [vmem:[%s13921_s19 + $0x140] sm:$0xff]  ;;  %v10272_v41 = vld [vmem:[%s13921_s19 + $0x148] sm:$0xff] }
 0x137   :  { %14017 = vst [vmem:[#allocation89_spill] sm:$0xff] %v10267_v40  ;;  %14018 = vst [vmem:[#allocation90_spill] sm:$0xff] %v10272_v41  ;;  %v10277_v42 = vld [vmem:[%s13921_s19 + $0x150] sm:$0xff]  ;;  %v10282_v43 = vld [vmem:[%s13921_s19 + $0x158] sm:$0xff] }
 0x138   :  { %14019 = vst [vmem:[#allocation91_spill] sm:$0xff] %v10277_v42  ;;  %14020 = vst [vmem:[#allocation92_spill] sm:$0xff] %v10282_v43  ;;  %v10287_v44 = vld [vmem:[%s13921_s19 + $0x160] sm:$0xff]  ;;  %v10292_v45 = vld [vmem:[%s13921_s19 + $0x168] sm:$0xff] }
 0x139   :  { %14021 = vst [vmem:[#allocation93_spill] sm:$0xff] %v10287_v44  ;;  %14022 = vst [vmem:[#allocation94_spill] sm:$0xff] %v10292_v45  ;;  %v10297_v46 = vld [vmem:[%s13921_s19 + $0x170] sm:$0xff]  ;;  %v10302_v47 = vld [vmem:[%s13921_s19 + $0x178] sm:$0xff] }
 0x13a   :  { %14023 = vst [vmem:[#allocation95_spill] sm:$0xff] %v10297_v46  ;;  %14024 = vst [vmem:[#allocation96_spill] sm:$0xff] %v10302_v47  ;;  %v10307_v48 = vld [vmem:[%s13921_s19 + $0x180] sm:$0xff]  ;;  %v10312_v49 = vld [vmem:[%s13921_s19 + $0x188] sm:$0xff] }
 0x13b   :  { %14025 = vst [vmem:[#allocation97_spill] sm:$0xff] %v10307_v48  ;;  %14026 = vst [vmem:[#allocation98_spill] sm:$0xff] %v10312_v49  ;;  %v10317_v50 = vld [vmem:[%s13921_s19 + $0x190] sm:$0xff]  ;;  %v10322_v51 = vld [vmem:[%s13921_s19 + $0x198] sm:$0xff] }
 0x13c   :  { %14027 = vst [vmem:[#allocation99_spill] sm:$0xff] %v10317_v50  ;;  %14028 = vst [vmem:[#allocation100_spill] sm:$0xff] %v10322_v51  ;;  %v10327_v52 = vld [vmem:[%s13921_s19 + $0x1a0] sm:$0xff]  ;;  %v10332_v53 = vld [vmem:[%s13921_s19 + $0x1a8] sm:$0xff] }
 0x13d   :  { %14029 = vst [vmem:[#allocation101_spill] sm:$0xff] %v10327_v52  ;;  %14030 = vst [vmem:[#allocation102_spill] sm:$0xff] %v10332_v53  ;;  %v10337_v54 = vld [vmem:[%s13921_s19 + $0x1b0] sm:$0xff]  ;;  %v10342_v55 = vld [vmem:[%s13921_s19 + $0x1b8] sm:$0xff] }
 0x13e   :  { %14031 = vst [vmem:[#allocation103_spill] sm:$0xff] %v10337_v54  ;;  %14032 = vst [vmem:[#allocation104_spill] sm:$0xff] %v10342_v55  ;;  %v10347_v56 = vld [vmem:[%s13921_s19 + $0x1c0] sm:$0xff]  ;;  %v10352_v57 = vld [vmem:[%s13921_s19 + $0x1c8] sm:$0xff] }
 0x13f   :  { %14033 = vst [vmem:[#allocation105_spill] sm:$0xff] %v10347_v56  ;;  %14034 = vst [vmem:[#allocation106_spill] sm:$0xff] %v10352_v57  ;;  %v10357_v58 = vld [vmem:[%s13921_s19 + $0x1d0] sm:$0xff]  ;;  %v10362_v59 = vld [vmem:[%s13921_s19 + $0x1d8] sm:$0xff] }
 0x140   :  { %14035 = vst [vmem:[#allocation107_spill] sm:$0xff] %v10357_v58  ;;  %14036 = vst [vmem:[#allocation108_spill] sm:$0xff] %v10362_v59  ;;  %v10367_v60 = vld [vmem:[%s13921_s19 + $0x1e0] sm:$0xff]  ;;  %v10372_v61 = vld [vmem:[%s13921_s19 + $0x1e8] sm:$0xff] }
 0x141   :  { %14037 = vst [vmem:[#allocation109_spill] sm:$0xff] %v10367_v60  ;;  %14038 = vst [vmem:[#allocation110_spill] sm:$0xff] %v10372_v61  ;;  %v10377_v62 = vld [vmem:[%s13921_s19 + $0x1f0] sm:$0xff]  ;;  %v10382_v63 = vld [vmem:[%s13921_s19 + $0x1f8] sm:$0xff] }
 0x142   :  { %14039 = vst [vmem:[#allocation111_spill] sm:$0xff] %v10377_v62  ;;  %14040 = vst [vmem:[#allocation112_spill] sm:$0xff] %v10382_v63 }
 0x143   :  { %406 = vsyncadd [#allocation6], 8192  ;;  %s412_s29 = sld [smem:[#allocation0]]   ;;  %s9755_s17 = smov [#allocation3]   ;;  %v13933_v53 = vmov 0   ;;  %vm962_vm0 = vcmask 1043456  }
 0x144   :  { %s420_s7 = sshll.u32 %s9755_s17, 4  ;;  %424 = sst [smem:[#allocation31]] %s9745_s24  ;;  %1043 = vmatprep.mubr.bf16.mxu0 %v13933_v53  ;;  %1084 = vmatprep.mubr.bf16.mxu1 %v13933_v53  ;;  %vm958_vm1 = vcmask 326656   ;;  %vm2018_vm2 = vcmask 195584   ;;  %s421_s7 = int_to_ptr.vmem [resolvable:$true] %s420_s7 }
 0x145   :  { %426 = sst [smem:[#allocation31 + $0x1]] %s9745_s24  ;;  %s9756_s16 = smov 8  }
 0x146   :  { %430 = sst [smem:[#allocation31 + $0x3]] %s9739_s12  ;;  %s9757_s8 = smov 128  }
 0x147   :  { %428 = sst [smem:[#allocation31 + $0x2]] %s9756_s16  ;;  %s9758_s1 = smov 2  }
 0x148   :  { %432 = sst [smem:[#allocation31 + $0x4]] %s9757_s8  ;;  %s9759_s18 = smov [#allocation6 + $0x1]  }
 0x149   :  { %s7953_s14 = sshll.u32 %s412_s29, 26  ;;  %434 = sst [smem:[#allocation31 + $0x5]] %s9758_s1 }
 0x14a   :  { %s7954_s19 = sadd.s32 134217728, %s7953_s14  ;;  %436 = sst [smem:[#allocation31 + $0x6]] %s9747_s28 }
 0x14b   :  { %438 = sst [smem:[#allocation31 + $0x7]] %s9739_s12  ;;  %s9760_s5 = smov [#allocation30]  }
 0x14c   :  { %440 = sst [smem:[#allocation31 + $0x8]] %s9740_s4 }
 0x14d   :  { %442 = dma.general %s13922_s20, 2048, %s421_s7, %s9759_s18, %s9760_s5, [#allocation31], %s7954_s19, 0  }
 0x14e   :  { %v461_v55 = vld [vmem:[%s13923_s21] sm:$0xf]  ;;  %v463_v39 = vld [vmem:[%s13923_s21 + $0x10] sm:$0xf]  ;;  %v465_v63 = vld [vmem:[%s13923_s21 + $0x4] sm:$0xf] }
 0x14f   :  { %462 = vst [vmem:[#allocation4] sm:$0xf] %v461_v55  ;;  %464 = vst [vmem:[#allocation4 + $0x4] sm:$0xf] %v463_v39  ;;  %v467_v47 = vld [vmem:[%s13923_s21 + $0x14] sm:$0xf] }
 0x150   :  { %466 = vst [vmem:[#allocation4 + $0x8] sm:$0xf] %v465_v63  ;;  %v469_v54 = vld [vmem:[%s13923_s21 + $0x8] sm:$0xf]  ;;  %v471_v38 = vld [vmem:[%s13923_s21 + $0x18] sm:$0xf] }
 0x151   :  { %468 = vst [vmem:[#allocation4 + $0xc] sm:$0xf] %v467_v47  ;;  %470 = vst [vmem:[#allocation4 + $0x10] sm:$0xf] %v469_v54  ;;  %v473_v39 = vld [vmem:[%s13923_s21 + $0xc] sm:$0xf] }
 0x152   :  { %472 = vst [vmem:[#allocation4 + $0x14] sm:$0xf] %v471_v38  ;;  %v475_v55 = vld [vmem:[%s13923_s21 + $0x1c] sm:$0xff]   ;;  %v479_v63 = vld [vmem:[%s13923_s21 + $0x30] sm:$0xf]  ;;  %s14041_s29 = sld [smem:[#allocation255_spill]] }
 0x153   :  { %474 = vst [vmem:[#allocation4 + $0x18] sm:$0xf] %v473_v39  ;;  %476 = vst [vmem:[#allocation4 + $0x1c] sm:$0xff] %v475_v55   ;;  %v481_v47 = vld [vmem:[%s13923_s21 + $0x24] sm:$0xf]  ;;  %s9762_s18 = smov 96  }
 0x154   :  { %480 = vst [vmem:[#allocation4 + $0x24] sm:$0xf] %v479_v63  ;;  %v483_v38 = vld [vmem:[%s13923_s21 + $0x34] sm:$0xf]  ;;  %v485_v54 = vld [vmem:[%s13923_s21 + $0x28] sm:$0xf] }
 0x155   :  { %482 = vst [vmem:[#allocation4 + $0x28] sm:$0xf] %v481_v47  ;;  %484 = vst [vmem:[#allocation4 + $0x2c] sm:$0xf] %v483_v38  ;;  %v487_v39 = vld [vmem:[%s13923_s21 + $0x38] sm:$0xf] }
 0x156   :  { %486 = vst [vmem:[#allocation4 + $0x30] sm:$0xf] %v485_v54  ;;  %v489_v55 = vld [vmem:[%s13923_s21 + $0x2c] sm:$0xf]  ;;  %v491_v63 = vld [vmem:[%s13923_s21 + $0x3c] sm:$0xff]   ;;  %v1803_v13 = vld [vmem:[#allocation14 + $0x68] sm:$0xff] }
 0x157   :  { %488 = vst [vmem:[#allocation4 + $0x34] sm:$0xf] %v487_v39  ;;  %490 = vst [vmem:[#allocation4 + $0x38] sm:$0xf] %v489_v55  ;;  %v495_v47 = vld [vmem:[%s13923_s21 + $0x50] sm:$0xf] }
 0x158   :  { %492 = vst [vmem:[#allocation4 + $0x3c] sm:$0xff] %v491_v63   ;;  %v497_v38 = vld [vmem:[%s13923_s21 + $0x44] sm:$0xf]  ;;  %v499_v54 = vld [vmem:[%s13923_s21 + $0x54] sm:$0xf]  ;;  %v643_v62 = vld [vmem:[%s14041_s29 + $0x48] sm:$0xff] }
 0x159   :  { %496 = vst [vmem:[#allocation4 + $0x44] sm:$0xf] %v495_v47  ;;  %498 = vst [vmem:[#allocation4 + $0x48] sm:$0xf] %v497_v38  ;;  %v501_v39 = vld [vmem:[%s13923_s21 + $0x48] sm:$0xf] }
 0x15a   :  { %500 = vst [vmem:[#allocation4 + $0x4c] sm:$0xf] %v499_v54  ;;  %v503_v55 = vld [vmem:[%s13923_s21 + $0x58] sm:$0xf]  ;;  %v505_v63 = vld [vmem:[%s13923_s21 + $0x4c] sm:$0xf] }
 0x15b   :  { %502 = vst [vmem:[#allocation4 + $0x50] sm:$0xf] %v501_v39  ;;  %504 = vst [vmem:[#allocation4 + $0x54] sm:$0xf] %v503_v55  ;;  %v507_v47 = vld [vmem:[%s13923_s21 + $0x5c] sm:$0xff]   ;;  %v667_v53 = vld [vmem:[%s14041_s29 + $0x108] sm:$0xff] }
 0x15c   :  { %506 = vst [vmem:[#allocation4 + $0x58] sm:$0xf] %v505_v63  ;;  %v511_v38 = vld [vmem:[%s13923_s21 + $0x70] sm:$0xf]  ;;  %v513_v54 = vld [vmem:[%s13923_s21 + $0x64] sm:$0xf]  ;;  %v7989_v35 = vcombine.low %v667_v53, %v667_v53 }
 0x15d   :  { %508 = vst [vmem:[#allocation4 + $0x5c] sm:$0xff] %v507_v47   ;;  %512 = vst [vmem:[#allocation4 + $0x64] sm:$0xf] %v511_v38  ;;  %v515_v39 = vld [vmem:[%s13923_s21 + $0x74] sm:$0xf]  ;;  %v666_v52 = vld [vmem:[%s14041_s29 + $0x100] sm:$0xff] }
 0x15e   :  { %514 = vst [vmem:[#allocation4 + $0x68] sm:$0xf] %v513_v54  ;;  %v517_v55 = vld [vmem:[%s13923_s21 + $0x68] sm:$0xf]  ;;  %v519_v63 = vld [vmem:[%s13923_s21 + $0x78] sm:$0xf]  ;;  %v7988_v60 = vcombine.high %v666_v52, %v666_v52  ;;  %v7987_v44 = vcombine.low %v666_v52, %v666_v52 }
 0x15f   :  { %516 = vst [vmem:[#allocation4 + $0x6c] sm:$0xf] %v515_v39  ;;  %518 = vst [vmem:[#allocation4 + $0x70] sm:$0xf] %v517_v55  ;;  %v521_v47 = vld [vmem:[%s13923_s21 + $0x6c] sm:$0xf] }
 0x160   :  { %520 = vst [vmem:[#allocation4 + $0x74] sm:$0xf] %v519_v63  ;;  %v523_v38 = vld [vmem:[%s13923_s21 + $0x7c] sm:$0xf]  ;;  %522 = vst [vmem:[#allocation4 + $0x78] sm:$0xf] %v521_v47 }
 0x161   :  { %524 = vst [vmem:[#allocation4 + $0x7c] sm:$0xf] %v523_v38  ;;  %v634_v54 = vld [vmem:[%s14041_s29] sm:$0xff]  ;;  %v635_v55 = vld [vmem:[%s14041_s29 + $0x8] sm:$0xff]  ;;  %v636_v51 = vld [vmem:[%s14041_s29 + $0x10] sm:$0xff] }
 0x162   :  { %v642_v39 = vld [vmem:[%s14041_s29 + $0x40] sm:$0xff]  ;;  %v7958_v37 = vcombine.high %v635_v55, %v643_v62  ;;  %v7957_v61 = vcombine.low %v635_v55, %v643_v62  ;;  %v644_v59 = vld [vmem:[%s14041_s29 + $0x50] sm:$0xff]  ;;  %v669_v34 = vld [vmem:[%s14041_s29 + $0x118] sm:$0xff] }
 0x163   :  { %v7956_v63 = vcombine.high %v634_v54, %v642_v39  ;;  %v7955_v46 = vcombine.low %v634_v54, %v642_v39  ;;  %v650_v47 = vld [vmem:[%s14041_s29 + $0x80] sm:$0xff]  ;;  %v651_v54 = vld [vmem:[%s14041_s29 + $0x88] sm:$0xff]  ;;  %v652_v52 = vld [vmem:[%s14041_s29 + $0x90] sm:$0xff] }
 0x164   :  { %v658_v38 = vld [vmem:[%s14041_s29 + $0xc0] sm:$0xff]  ;;  %v659_v39 = vld [vmem:[%s14041_s29 + $0xc8] sm:$0xff]  ;;  %1052 = vmatprep.subr.bf16.mxu1 %v7958_v37  ;;  %v637_v37 = vld [vmem:[%s14041_s29 + $0x18] sm:$0xff] }
 0x165   :  { %v7972_v45 = vcombine.high %v650_v47, %v658_v38  ;;  %1011 = vmatprep.subr.bf16.mxu0 %v7956_v63  ;;  %v7974_v36 = vcombine.high %v651_v54, %v659_v39  ;;  %v7971_v62 = vcombine.low %v650_v47, %v658_v38  ;;  %1053 = vmatpush1.bf16.msra.mxu1 %v7957_v61  ;;  %v660_v47 = vld [vmem:[%s14041_s29 + $0xd0] sm:$0xff]  ;;  %v970_v38 = vsel %vm962_vm0, %v7989_v35, 0  ;;  %v653_v35 = vld [vmem:[%s14041_s29 + $0x98] sm:$0xff]  ;;  %v655_v58 = vld [vmem:[%s14041_s29 + $0xa8] sm:$0xff] }
 0x166   :  { %1012 = vmatpush1.bf16.msra.mxu0 %v7955_v46  ;;  %v7973_v55 = vcombine.low %v651_v54, %v659_v39  ;;  %v7990_v63 = vcombine.high %v667_v53, %v667_v53  ;;  %v10527_v46 = vld [vmem:[%s13911_s9 + $0x40] sm:$0xff]   ;;  %v964_v53 = vsel %vm962_vm0, %v7987_v44, 0  ;;  %v7960_v61 = vcombine.high %v636_v51, %v644_v59  ;;  %v668_v50 = vld [vmem:[%s14041_s29 + $0x110] sm:$0xff]  ;;  %v10632_v42 = vld [vmem:[%s13911_s9 + $0x88] sm:$0xff]  }
 0x167   :  { %1013 = vmatprep.subr.bf16.mxu0 %v7972_v45  ;;  %1054 = vmatprep.subr.bf16.mxu1 %v7974_v36  ;;  %v645_v45 = vld [vmem:[%s14041_s29 + $0x58] sm:$0xff]  ;;  %v632_v36 = vld [vmem:[#allocation7] sm:$0xff]  ;;  %v7976_v43 = vcombine.high %v652_v52, %v660_v47  ;;  %v671_v41 = vld [vmem:[%s14041_s29 + $0x128] sm:$0xff] }
 0x168   :  { %v7962_v54 = vcombine.high %v637_v37, %v645_v45  ;;  %3588 = vrot.lane.b32.xlu0 %v10527_v46, %s9762_s18  ;;  %v10549_v44 = vld [vmem:[%s13911_s9] sm:$0xff]   ;;  %v10551_v39 = vpack.c.bf16 %v632_v36, %v632_v36  ;;  %v649_v48 = vld [vmem:[%s14041_s29 + $0x78] sm:$0xff]  ;;  %v1810_v20 = vld [vmem:[#allocation14 + $0xa0] sm:$0xff] }
 0x169   :  { %1055 = vmatpush1.bf16.msra.mxu1 %v7973_v55  ;;  %v7959_v55 = vcombine.low %v636_v51, %v644_v59  ;;  %v10574_v51 = vld [vmem:[%s13911_s9 + $0x80] sm:$0xff]   ;;  %v7975_v59 = vcombine.low %v652_v52, %v660_v47  ;;  %v7994_v52 = vcombine.high %v669_v34, %v669_v34  ;;  %v7993_v47 = vcombine.low %v669_v34, %v669_v34  ;;  %v10609_v34 = vld [vmem:[%s13911_s9 + $0xc8] sm:$0xff]   ;;  %v665_v56 = vld [vmem:[%s14041_s29 + $0xf8] sm:$0xff] }
 0x16a   :  { %1014 = vmatpush1.bf16.msra.mxu0 %v7971_v62  ;;  %8005 = vmatprep.subr.msk.bf16.mxu1 %vm962_vm0, %v7990_v63  ;;  %v661_v62 = vld [vmem:[%s14041_s29 + $0xd8] sm:$0xff]  ;;  %v7961_v63 = vcombine.low %v637_v37, %v645_v45  ;;  %v10581_v37 = vld [vmem:[%s13911_s9 + $0x48] sm:$0xff]   ;;  %v670_v33 = vld [vmem:[%s14041_s29 + $0x120] sm:$0xff]  ;;  %v8044_v3 = vcombine.high %v1810_v20, %v1810_v20  ;;  %v8043_v27 = vcombine.low %v1810_v20, %v1810_v20 }
 0x16b   :  { %8003 = vmatprep.subr.msk.bf16.mxu0 %vm962_vm0, %v7988_v60  ;;  %v10544_v60 = vld [vmem:[%s13911_s9 + $0xc0] sm:$0xff]   ;;  %v7978_v36 = vcombine.high %v653_v35, %v661_v62  ;;  %v7977_v45 = vcombine.low %v653_v35, %v661_v62  ;;  %v10602_v35 = vld [vmem:[%s13911_s9 + $0x8] sm:$0xff]   ;;  %v673_v23 = vld [vmem:[%s14041_s29 + $0x138] sm:$0xff] }
 0x16c   :  { %3620 = vrot.lane.b32.xlu1 %v10544_v60, %s9762_s18  ;;  %3572 = vrot.lane.b32.xlu0 %v10549_v44, %s9762_s18  ;;  %v8002_v7 = vcombine.high %v673_v23, %v673_v23  ;;  %v1809_v14 = vld [vmem:[#allocation14 + $0x98] sm:$0xff]  ;;  %v1811_v4 = vld [vmem:[#allocation14 + $0xa8] sm:$0xff]  ;;  %v10919_v28 = vld [vmem:[%s13911_s9 + $0x148] sm:$0xff]  }
 0x16d   :  { %1057 = vmatpush1.bf16.msra.mxu1 %v970_v38  ;;  %v638_v38 = vld [vmem:[%s14041_s29 + $0x20] sm:$0xff]  ;;  %v8042_v21 = vcombine.high %v1809_v14, %v1809_v14  ;;  %v8046_v11 = vcombine.high %v1811_v4, %v1811_v4  ;;  %v8045_v18 = vcombine.low %v1811_v4, %v1811_v4  ;;  %v1796_v2 = vld [vmem:[#allocation14 + $0x30] sm:$0xff] }
 0x16e   :  { %1016 = vmatpush1.bf16.msra.mxu0 %v964_v53  ;;  %1134 = vmatprep.subr.bf16.mxu1 %v7962_v54  ;;  %v7992_v53 = vcombine.high %v668_v50, %v668_v50  ;;  %v646_v54 = vld [vmem:[%s14041_s29 + $0x60] sm:$0xff] }
 0x16f   :  { %1093 = vmatprep.subr.bf16.mxu0 %v7960_v61  ;;  %v7991_v61 = vcombine.low %v668_v50, %v668_v50  ;;  %v647_v50 = vld [vmem:[%s14041_s29 + $0x68] sm:$0xff]  ;;  %v7963_v49 = vcombine.low %v638_v38, %v646_v54  ;;  %v1805_v26 = vld [vmem:[#allocation14 + $0x78] sm:$0xff] }
 0x170   :  { %8006 = vmatmul.mubr.msk.bf16.vlgmr.msra.gmra.mrb[0].mxu1 %vm958_vm1, %v10551_v39  ;;  %3604 = vrot.lane.b32.xlu1 %v10574_v51, %s9762_s18 }
 0x171   :  { %8004 = vmatmul.mubr.msk.bf16.vlgmr.msra.gmra.mrb[0].mxu0 %vm958_vm1, %v10551_v39  ;;  %1135 = vmatpush1.bf16.msra.mxu1 %v7961_v63  ;;  %v976_v62 = vsel %vm962_vm0, %v7991_v61, 0  ;;  %v7964_v63 = vcombine.high %v638_v38, %v646_v54  ;;  %v663_v61 = vld [vmem:[%s14041_s29 + $0xe8] sm:$0xff]  ;;  %v10649_v38 = vld [vmem:[%s13911_s9 + $0x50] sm:$0xff]  }
 0x172   :  { %1094 = vmatpush1.bf16.msra.mxu0 %v7959_v55  ;;  %1136 = vmatprep.subr.bf16.mxu1 %v7978_v36  ;;  %v14042_v55 = vmov 0   ;;  %v654_v36 = vld [vmem:[%s14041_s29 + $0xa0] sm:$0xff]  ;;  %v7982_v57 = vcombine.high %v655_v58, %v663_v61 }
 0x173   :  { %1095 = vmatprep.subr.bf16.mxu0 %v7976_v43  ;;  %1125 = vmatprep.mubr.bf16.mxu0 %v14042_v55  ;;  %v639_v43 = vld [vmem:[%s14041_s29 + $0x28] sm:$0xff] }
 0x174   :  { %1166 = vmatprep.mubr.bf16.mxu1 %v14042_v55  ;;  %3590 = vrot.lane.b32.xlu0 %v10581_v37, %s9762_s18 }
 0x175   :  { %1137 = vmatpush1.bf16.msra.mxu1 %v7977_v45  ;;  %v982_v45 = vsel %vm962_vm0, %v7993_v47, 0  ;;  %3574 = vrot.lane.b32.xlu1 %v10602_v35, %s9762_s18 }
 0x176   :  { %1096 = vmatpush1.bf16.msra.mxu0 %v7975_v59  ;;  %v662_v59 = vld [vmem:[%s14041_s29 + $0xe0] sm:$0xff]  ;;  %8009 = vmatprep.subr.msk.bf16.mxu1 %vm962_vm0, %v7994_v52  ;;  %v7965_v52 = vcombine.low %v639_v43, %v647_v50 }
 0x177   :  { %8007 = vmatprep.subr.msk.bf16.mxu0 %vm962_vm0, %v7992_v53  ;;  %v7966_v53 = vcombine.high %v639_v43, %v647_v50  ;;  %v7980_v47 = vcombine.high %v654_v36, %v662_v59  ;;  %v7979_v54 = vcombine.low %v654_v36, %v662_v59  ;;  %v640_v43 = vld [vmem:[%s14041_s29 + $0x30] sm:$0xff]  ;;  %v7998_v36 = vcombine.high %v671_v41, %v671_v41 }
 0x178   :  { %3622 = vrot.lane.b32.xlu0 %v10609_v34, %s9762_s18  ;;  %v648_v50 = vld [vmem:[%s14041_s29 + $0x70] sm:$0xff]  ;;  %v7997_v59 = vcombine.low %v671_v41, %v671_v41 }
 0x179   :  { %1139 = vmatpush1.bf16.msra.mxu1 %v982_v45  ;;  %3606 = vrot.lane.b32.xlu1 %v10632_v42, %s9762_s18  ;;  %v7996_v45 = vcombine.high %v670_v33, %v670_v33  ;;  %v656_v41 = vld [vmem:[%s14041_s29 + $0xb0] sm:$0xff] }
 0x17a   :  { %1098 = vmatpush1.bf16.msra.mxu0 %v976_v62  ;;  %1216 = vmatprep.subr.bf16.mxu1 %v7966_v53  ;;  %v10662_v62 = vld [vmem:[%s13911_s9 + $0x10] sm:$0xff]   ;;  %v7995_v53 = vcombine.low %v670_v33, %v670_v33 }
 0x17b   :  { %1175 = vmatprep.subr.bf16.mxu0 %v7964_v63  ;;  %v7981_v63 = vcombine.low %v655_v58, %v663_v61  ;;  %v10677_v33 = vld [vmem:[%s13911_s9 + $0xd0] sm:$0xff]  }
 0x17c   :  { %8010 = vmatmul.mubr.msk.bf16.vlgmr.msra.gmra.mrb[4].mxu1 %vm958_vm1, %v10551_v39  ;;  %3592 = vrot.lane.b32.xlu0 %v10649_v38, %s9762_s18  ;;  %v10690_v58 = vld [vmem:[%s13911_s9 + $0x90] sm:$0xff]   ;;  %v988_v61 = vsel %vm962_vm0, %v7995_v53, 0 }
 0x17d   :  { %8008 = vmatmul.mubr.msk.bf16.vlgmr.msra.gmra.mrb[4].mxu0 %vm958_vm1, %v10551_v39  ;;  %1217 = vmatpush1.bf16.msra.mxu1 %v7965_v52  ;;  %v7968_v52 = vcombine.high %v640_v43, %v648_v50 }
 0x17e   :  { %1176 = vmatpush1.bf16.msra.mxu0 %v7963_v49  ;;  %v641_v49 = vld [vmem:[%s14041_s29 + $0x38] sm:$0xff]  ;;  %1218 = vmatprep.subr.bf16.mxu1 %v7982_v57  ;;  %v664_v57 = vld [vmem:[%s14041_s29 + $0xf0] sm:$0xff] }
 0x17f   :  { %1177 = vmatprep.subr.bf16.mxu0 %v7980_v47  ;;  %1207 = vmatprep.mubr.bf16.mxu0 %v14042_v55  ;;  %v657_v47 = vld [vmem:[%s14041_s29 + $0xb8] sm:$0xff]  ;;  %v7970_v32 = vcombine.high %v641_v49, %v649_v48  ;;  %v7969_v53 = vcombine.low %v641_v49, %v649_v48 }
 0x180   :  { %1248 = vmatprep.mubr.bf16.mxu1 %v14042_v55  ;;  %3576 = vrot.lane.b32.xlu1 %v10662_v62, %s9762_s18  ;;  %v7986_v40 = vcombine.high %v657_v47, %v665_v56  ;;  %v10724_v48 = vld [vmem:[%s13911_s9 + $0x18] sm:$0xff]  }
 0x181   :  { %1219 = vmatpush1.bf16.msra.mxu1 %v7981_v63  ;;  %3624 = vrot.lane.b32.xlu0 %v10677_v33, %s9762_s18  ;;  %v10707_v63 = vld [vmem:[%s13911_s9 + $0x58] sm:$0xff]  }
 0x182   :  { %1178 = vmatpush1.bf16.msra.mxu0 %v7979_v54  ;;  %8013 = vmatprep.subr.msk.bf16.mxu1 %vm962_vm0, %v7998_v36  ;;  %v994_v54 = vsel %vm962_vm0, %v7997_v59, 0  ;;  %v7984_v36 = vcombine.high %v656_v41, %v664_v57  ;;  %v672_v59 = vld [vmem:[%s14041_s29 + $0x130] sm:$0xff] }
 0x183   :  { %8011 = vmatprep.subr.msk.bf16.mxu0 %vm962_vm0, %v7996_v45  ;;  %v7967_v45 = vcombine.low %v640_v43, %v648_v50  ;;  %v10731_v43 = vld [vmem:[%s13911_s9 + $0xd8] sm:$0xff]   ;;  %v7985_v50 = vcombine.low %v657_v47, %v665_v56  ;;  %v8000_v49 = vcombine.high %v672_v59, %v672_v59  ;;  %v1799_v56 = vld [vmem:[#allocation14 + $0x48] sm:$0xff]  ;;  %v10754_v47 = vld [vmem:[%s13911_s9 + $0x20] sm:$0xff]  }
 0x184   :  { %3608 = vrot.lane.b32.xlu1 %v10690_v58, %s9762_s18 }
 0x185   :  { %1221 = vmatpush1.bf16.msra.mxu1 %v994_v54  ;;  %3594 = vrot.lane.b32.xlu0 %v10707_v63, %s9762_s18  ;;  %v1790_v54 = vld [vmem:[#allocation14] sm:$0xff] }
 0x186   :  { %1180 = vmatpush1.bf16.msra.mxu0 %v988_v61  ;;  %1298 = vmatprep.subr.bf16.mxu1 %v7970_v32  ;;  %v7983_v32 = vcombine.low %v656_v41, %v664_v57  ;;  %v7999_v61 = vcombine.low %v672_v59, %v672_v59  ;;  %v1798_v41 = vld [vmem:[#allocation14 + $0x40] sm:$0xff]  ;;  %v1791_v57 = vld [vmem:[#allocation14 + $0x8] sm:$0xff] }
 0x187   :  { %1257 = vmatprep.subr.bf16.mxu0 %v7968_v52  ;;  %v10736_v52 = vld [vmem:[%s13911_s9 + $0x98] sm:$0xff]   ;;  %v8022_v59 = vcombine.high %v1791_v57, %v1799_v56 }
 0x188   :  { %8014 = vmatmul.mubr.msk.bf16.vlgmr.msra.gmra.mrb[8].mxu1 %vm958_vm1, %v10551_v39  ;;  %3578 = vrot.lane.b32.xlu1 %v10724_v48, %s9762_s18 }
 0x189   :  { %8012 = vmatmul.mubr.msk.bf16.vlgmr.msra.gmra.mrb[8].mxu0 %vm958_vm1, %v10551_v39  ;;  %1299 = vmatpush1.bf16.msra.mxu1 %v7969_v53  ;;  %v8020_v53 = vcombine.high %v1790_v54, %v1798_v41 }
 0x18a   :  { %1258 = vmatpush1.bf16.msra.mxu0 %v7967_v45  ;;  %1300 = vmatprep.subr.bf16.mxu1 %v7986_v40  ;;  %v8001_v45 = vcombine.low %v673_v23, %v673_v23  ;;  %v10747_v40 = vld [vmem:[%s13911_s9 + $0x60] sm:$0xff]   ;;  %v1000_v23 = vsel %vm962_vm0, %v7999_v61, 0  ;;  %v8019_v61 = vcombine.low %v1790_v54, %v1798_v41  ;;  %v10779_v54 = vld [vmem:[%s13911_s9 + $0x68] sm:$0xff]  }
 0x18b   :  { %1259 = vmatprep.subr.bf16.mxu0 %v7984_v36  ;;  %1289 = vmatprep.mubr.bf16.mxu0 %v14042_v55  ;;  %v1788_v41 = vld [vmem:[#allocation9] sm:$0xff] }
 0x18c   :  { %1330 = vmatprep.mubr.bf16.mxu1 %v14042_v55  ;;  %3626 = vrot.lane.b32.xlu0 %v10731_v43, %s9762_s18  ;;  %v1006_v36 = vsel %vm962_vm0, %v8001_v45, 0  ;;  %v10770_v45 = vld [vmem:[%s13911_s9 + $0xa0] sm:$0xff]  }
 0x18d   :  { %1301 = vmatpush1.bf16.msra.mxu1 %v7985_v50  ;;  %3610 = vrot.lane.b32.xlu1 %v10736_v52, %s9762_s18  ;;  %v1807_v50 = vld [vmem:[#allocation14 + $0x88] sm:$0xff] }
 0x18e   :  { %1260 = vmatpush1.bf16.msra.mxu0 %v7983_v32  ;;  %8017 = vmatprep.subr.msk.bf16.mxu1 %vm962_vm0, %v8002_v7  ;;  %v1806_v32 = vld [vmem:[#allocation14 + $0x80] sm:$0xff]  ;;  %v8021_v7 = vcombine.low %v1791_v57, %v1799_v56  ;;  %v8038_v15 = vcombine.high %v1807_v50, %v1807_v50  ;;  %v8037_v22 = vcombine.low %v1807_v50, %v1807_v50  ;;  %v1792_v56 = vld [vmem:[#allocation14 + $0x10] sm:$0xff]  ;;  %v1793_v50 = vld [vmem:[#allocation14 + $0x18] sm:$0xff] }
 0x18f   :  { %8015 = vmatprep.subr.msk.bf16.mxu0 %vm962_vm0, %v8000_v49  ;;  %v10765_v49 = vld [vmem:[%s13911_s9 + $0xe0] sm:$0xff]   ;;  %v8036_v31 = vcombine.high %v1806_v32, %v1806_v32  ;;  %v10788_v57 = vld [vmem:[%s13911_s9 + $0x28] sm:$0xff]  }
 0x190   :  { %3596 = vrot.lane.b32.xlu0 %v10747_v40, %s9762_s18 }
 0x191   :  { %1303 = vmatpush1.bf16.msra.mxu1 %v1006_v36  ;;  %3580 = vrot.lane.b32.xlu1 %v10754_v47, %s9762_s18 }
 0x192   :  { %1262 = vmatpush1.bf16.msra.mxu0 %v1000_v23  ;;  %2111 = vmatprep.subr.bf16.mxu1 %v8022_v59  ;;  %v8035_v23 = vcombine.low %v1806_v32, %v1806_v32  ;;  %v10799_v32 = vld [vmem:[%s13911_s9 + $0xe8] sm:$0xff]  }
 0x193   :  { %2070 = vmatprep.subr.bf16.mxu0 %v8020_v53  ;;  %v1800_v53 = vld [vmem:[#allocation14 + $0x50] sm:$0xff] }
 0x194   :  { %8018 = vmatmul.mubr.msk.bf16.vlgmr.msra.gmra.mrb[12].mxu1 %vm958_vm1, %v10551_v39  ;;  %3628 = vrot.lane.b32.xlu0 %v10765_v49, %s9762_s18  ;;  %v2023_v36 = vsel %vm962_vm0, %v8035_v23, 0  ;;  %v8024_v59 = vcombine.high %v1792_v56, %v1800_v53 }
 0x195   :  { %8016 = vmatmul.mubr.msk.bf16.vlgmr.msra.gmra.mrb[12].mxu0 %vm958_vm1, %v10551_v39  ;;  %2112 = vmatpush1.bf16.msra.mxu1 %v8021_v7  ;;  %v2029_v39 = vsel %vm962_vm0, %v8037_v22, 0  ;;  %v1808_v22 = vld [vmem:[#allocation14 + $0x90] sm:$0xff] }
 0x196   :  { %2071 = vmatpush1.bf16.msra.mxu0 %v8019_v61  ;;  %8053 = vmatprep.subr.msk.bf16.mxu1 %vm962_vm0, %v8038_v15  ;;  %v1801_v15 = vld [vmem:[#allocation14 + $0x58] sm:$0xff]  ;;  %v8023_v61 = vcombine.low %v1792_v56, %v1800_v53  ;;  %v8040_v6 = vcombine.high %v1808_v22, %v1808_v22  ;;  %v8039_v30 = vcombine.low %v1808_v22, %v1808_v22  ;;  %v10819_v56 = vld [vmem:[%s13911_s9 + $0x70] sm:$0xff]  }
 0x197   :  { %8051 = vmatprep.subr.msk.bf16.mxu0 %vm962_vm0, %v8036_v31  ;;  %3612 = vrot.lane.b32.xlu1 %v10770_v45, %s9762_s18  ;;  %v10804_v31 = vpack.c.bf16 %v1788_v41, %v1788_v41  ;;  %v8026_v7 = vcombine.high %v1793_v50, %v1801_v15  ;;  %v8025_v23 = vcombine.low %v1793_v50, %v1801_v15  ;;  %v10812_v41 = vld [vmem:[%s13911_s9 + $0xa8] sm:$0xff]   ;;  %v10832_v53 = vld [vmem:[%s13911_s9 + $0x30] sm:$0xff]   ;;  %v10877_v50 = vld [vmem:[%s13911_s9 + $0xf8] sm:$0xff]  }
 0x198   :  { %2102 = vmatprep.mubr.bf16.mxu0 %v14042_v55  ;;  %3598 = vrot.lane.b32.xlu0 %v10779_v54, %s9762_s18  ;;  %v10884_v15 = vld [vmem:[%s13911_s9 + $0xb8] sm:$0xff]   ;;  %v10891_v22 = vld [vmem:[%s13911_s9 + $0x140] sm:$0xff]  }
 0x199   :  { %2143 = vmatprep.mubr.bf16.mxu1 %v14042_v55  ;;  %2114 = vmatpush1.bf16.msra.mxu1 %v2029_v39 }
 0x19a   :  { %2073 = vmatpush1.bf16.msra.mxu0 %v2023_v36  ;;  %2193 = vmatprep.subr.bf16.mxu1 %v8026_v7  ;;  %v8041_v36 = vcombine.low %v1809_v14, %v1809_v14  ;;  %v2035_v14 = vsel %vm962_vm0, %v8039_v30, 0  ;;  %v10857_v30 = vld [vmem:[%s13911_s9 + $0x78] sm:$0xff]   ;;  %v10905_v7 = vld [vmem:[%s13911_s9 + $0x1c0] sm:$0xff]  }
 0x19b   :  { %2152 = vmatprep.subr.bf16.mxu0 %v8024_v59  ;;  %3582 = vrot.lane.b32.xlu1 %v10788_v57, %s9762_s18  ;;  %v10870_v59 = vld [vmem:[%s13911_s9 + $0x38] sm:$0xff]  }
 0x19c   :  { %3630 = vrot.lane.b32.xlu0 %v10799_v32, %s9762_s18  ;;  %8054 = vmatmul.mubr.msk.bf16.vlgmr.msra.gmra.mrb[16].mxu1 %vm2018_vm2, %v10804_v31  ;;  %v2041_v39 = vsel %vm962_vm0, %v8041_v36, 0  ;;  %v1794_v36 = vld [vmem:[#allocation14 + $0x20] sm:$0xff] }
 0x19d   :  { %8052 = vmatmul.mubr.msk.bf16.vlgmr.msra.gmra.mrb[16].mxu0 %vm2018_vm2, %v10804_v31  ;;  %2194 = vmatpush1.bf16.msra.mxu1 %v8025_v23  ;;  %v10910_v23 = vld [vmem:[%s13911_s9 + $0x180] sm:$0xff]  }
 0x19e   :  { %2153 = vmatpush1.bf16.msra.mxu0 %v8023_v61  ;;  %8057 = vmatprep.subr.msk.bf16.mxu1 %vm962_vm0, %v8042_v21  ;;  %v10850_v21 = vld [vmem:[%s13911_s9 + $0xb0] sm:$0xff]   ;;  %v10898_v61 = vld [vmem:[%s13911_s9 + $0x100] sm:$0xff]  }
 0x19f   :  { %8055 = vmatprep.subr.msk.bf16.mxu0 %vm962_vm0, %v8040_v6  ;;  %3614 = vrot.lane.b32.xlu1 %v10812_v41, %s9762_s18  ;;  %v10841_v6 = vld [vmem:[%s13911_s9 + $0xf0] sm:$0xff]  }
 0x1a0   :  { %3600 = vrot.lane.b32.xlu0 %v10819_v56, %s9762_s18  ;;  %2184 = vmatprep.mubr.bf16.mxu0 %v14042_v55 }
 0x1a1   :  { %2225 = vmatprep.mubr.bf16.mxu1 %v14042_v55  ;;  %2196 = vmatpush1.bf16.msra.mxu1 %v2041_v39  ;;  %v1795_v39 = vld [vmem:[#allocation14 + $0x28] sm:$0xff] }
 0x1a2   :  { %2155 = vmatpush1.bf16.msra.mxu0 %v2035_v14  ;;  %v1802_v14 = vld [vmem:[#allocation14 + $0x60] sm:$0xff]  ;;  %v8029_v12 = vcombine.low %v1795_v39, %v1803_v13  ;;  %v8030_v19 = vcombine.high %v1795_v39, %v1803_v13 }
 0x1a3   :  { %3584 = vrot.lane.b32.xlu1 %v10832_v53, %s9762_s18  ;;  %v8027_v5 = vcombine.low %v1794_v36, %v1802_v14  ;;  %v8028_v29 = vcombine.high %v1794_v36, %v1802_v14  ;;  %v1804_v36 = vld [vmem:[#allocation14 + $0x70] sm:$0xff]  ;;  %v1797_v14 = vld [vmem:[#allocation14 + $0x38] sm:$0xff] }
 0x1a4   :  { %3632 = vrot.lane.b32.xlu0 %v10841_v6, %s9762_s18  ;;  %8058 = vmatmul.mubr.msk.bf16.vlgmr.msra.gmra.mrb[20].mxu1 %vm2018_vm2, %v10804_v31 }
 0x1a5   :  { %8056 = vmatmul.mubr.msk.bf16.vlgmr.msra.gmra.mrb[20].mxu0 %vm2018_vm2, %v10804_v31  ;;  %2307 = vmatprep.mubr.bf16.mxu1 %v14042_v55 }
 0x1a6   :  { %2266 = vmatprep.mubr.bf16.mxu0 %v14042_v55  ;;  %2234 = vmatprep.subr.bf16.mxu0 %v8028_v29 }
 0x1a7   :  { %3616 = vrot.lane.b32.xlu1 %v10850_v21, %s9762_s18  ;;  %2235 = vmatpush1.bf16.msra.mxu0 %v8027_v5 }
 0x1a8   :  { %3602 = vrot.lane.b32.xlu0 %v10857_v30, %s9762_s18  ;;  %2275 = vmatprep.subr.bf16.mxu1 %v8030_v19 }
 0x1ab   :  { %3586 = vrot.lane.b32.xlu1 %v10870_v59, %s9762_s18 }
 0x1ac   :  { %3634 = vrot.lane.b32.xlu0 %v10877_v50, %s9762_s18 }
 0x1af   :  { %3618 = vrot.lane.b32.xlu1 %v10884_v15, %s9762_s18 }
 0x1b0   :  { %3652 = vrot.lane.b32.xlu0 %v10891_v22, %s9762_s18 }
 0x1b3   :  { %3636 = vrot.lane.b32.xlu1 %v10898_v61, %s9762_s18 }
 0x1b4   :  { %3684 = vrot.lane.b32.xlu0 %v10905_v7, %s9762_s18 }
 0x1b5   :  { %619 = vsyncadd [#allocation6 + $0x2], 2048  ;;  %v10926_v10 = vld [vmem:[%s13911_s9 + $0x108] sm:$0xff]   ;;  %2276 = vmatpush1.bf16.msra.mxu1 %v8029_v12  ;;  %v2047_v13 = vsel %vm962_vm0, %v8043_v27, 0  ;;  %8059 = vmatprep.subr.msk.bf16.mxu0 %vm962_vm0, %v8044_v3  ;;  %v2053_v5 = vsel %vm962_vm0, %v8045_v18, 0  ;;  %v8032_v19 = vcombine.high %v1796_v2, %v1804_v36  ;;  %v1812_v20 = vld [vmem:[#allocation14 + $0xb0] sm:$0xff]  ;;  %v8034_v29 = vcombine.high %v1797_v14, %v1805_v26 }
 0x1b6   :  { %v10934_v4 = vld [vmem:[%s13911_s9 + $0x1c8] sm:$0xff]   ;;  %8061 = vmatprep.subr.msk.bf16.mxu1 %vm962_vm0, %v8046_v11  ;;  %v1813_v12 = vld [vmem:[#allocation14 + $0xb8] sm:$0xff]  ;;  %2237 = vmatpush1.bf16.msra.mxu0 %v2047_v13  ;;  %v8031_v27 = vcombine.low %v1796_v2, %v1804_v36  ;;  %v8033_v3 = vcombine.low %v1797_v14, %v1805_v26  ;;  %v8047_v17 = vcombine.low %v1812_v20, %v1812_v20  ;;  %v10951_v11 = vld [vmem:[%s13911_s9 + $0x150] sm:$0xff]   ;;  %vm3533_vm3 = vcmask 261120   ;;  %s9688_s15 = scalar_lea.hbm %s13924_s22, 16384 }
 0x1b7   :  { %3668 = vrot.lane.b32.xlu1 %v10910_v23, %s9762_s18  ;;  %v10944_v39 = vld [vmem:[%s13911_s9 + $0x188] sm:$0xff]   ;;  %2316 = vmatprep.subr.bf16.mxu0 %v8032_v19  ;;  %v8048_v2 = vcombine.high %v1812_v20, %v1812_v20  ;;  %v8049_v18 = vcombine.low %v1813_v12, %v1813_v12  ;;  %v8050_v36 = vcombine.high %v1813_v12, %v1813_v12  ;;  %v10962_v26 = vld [vmem:[%s13911_s9 + $0x110] sm:$0xff]   ;;  %v10989_v19 = vld [vmem:[%s13911_s9 + $0x158] sm:$0xff]   ;;  %p9689_p0 = scmp.ne.s32.totalorder %s13924_s22, %s9688_s15  ;;  %p9692_p1 = scmp.lt.u32.totalorder %s9688_s15, %s13924_s22 }
 0x1b8   :  { %3654 = vrot.lane.b32.xlu0 %v10919_v28, %s9762_s18  ;;  %v2059_v14 = vsel %vm962_vm0, %v8047_v17, 0  ;;  %v10970_v13 = vld [vmem:[%s13911_s9 + $0x1d0] sm:$0xff]   ;;  %v11003_v20 = vld [vmem:[%s13911_s9 + $0x118] sm:$0xff]   ;;  %v11057_v12 = vld [vmem:[%s13911_s9 + $0x1a0] sm:$0xff]  }
 0x1b9   :  { %2278 = vmatpush1.bf16.msra.mxu1 %v2053_v5  ;;  %8060 = vmatmul.mubr.msk.bf16.vlgmr.msra.gmra.mrb[24].mxu0 %vm2018_vm2, %v10804_v31  ;;  %v2065_v5 = vsel %vm962_vm0, %v8049_v18, 0  ;;  %v10982_v17 = vld [vmem:[%s13911_s9 + $0x190] sm:$0xff]   ;;  %v11093_v18 = vld [vmem:[%s13911_s9 + $0x1a8] sm:$0xff]   ;;  %v11143_v0 = vld [vmem:[%s13911_s9 + $0x178] sm:$0xff]   ;;  %p9694_p2 = pnand %p9692_p1, %p9689_p0 }
 0x1ba   :  { %2357 = vmatprep.subr.bf16.mxu1 %v8034_v29  ;;  %2317 = vmatpush1.bf16.msra.mxu0 %v8031_v27  ;;  %v11047_v29 = vld [vmem:[%s13911_s9 + $0x1e0] sm:$0xff]   ;;  %v11065_v27 = vld [vmem:[%s13911_s9 + $0x168] sm:$0xff]   ;;  %v11123_v25 = vld [vmem:[%s13911_s9 + $0x1f0] sm:$0xff]  }
 0x1bb   :  { %3638 = vrot.lane.b32.xlu1 %v10926_v10, %s9762_s18  ;;  %8063 = vmatprep.subr.msk.bf16.mxu0 %vm962_vm0, %v8048_v2  ;;  %v11083_v2 = vld [vmem:[%s13911_s9 + $0x1e8] sm:$0xff]   ;;  %v11135_v16 = vld [vmem:[%s13911_s9 + $0x1b0] sm:$0xff]  }
 0x1bc   :  { %3686 = vrot.lane.b32.xlu0 %v10934_v4, %s9762_s18  ;;  %8062 = vmatmul.mubr.msk.bf16.vlgmr.msra.gmra.mrb[24].mxu1 %vm2018_vm2, %v10804_v31 }
 0x1bd   :  { %2358 = vmatpush1.bf16.msra.mxu1 %v8033_v3  ;;  %2348 = vmatprep.mubr.bf16.mxu0 %v14042_v55  ;;  %v11075_v3 = vld [vmem:[%s13911_s9 + $0x128] sm:$0xff]  }
 0x1be   :  { %8065 = vmatprep.subr.msk.bf16.mxu1 %vm962_vm0, %v8050_v36  ;;  %2319 = vmatpush1.bf16.msra.mxu0 %v2059_v14  ;;  %v11101_v36 = vld [vmem:[%s13911_s9 + $0x170] sm:$0xff]  }
 0x1bf   :  { %3670 = vrot.lane.b32.xlu1 %v10944_v39, %s9762_s18  ;;  %2389 = vmatprep.mubr.bf16.mxu1 %v14042_v55  ;;  %v11156_v55 = vld [vmem:[%s13911_s9 + $0x138] sm:$0xff]  }
 0x1c0   :  { %3656 = vrot.lane.b32.xlu0 %v10951_v11, %s9762_s18  ;;  %8178 = vmatprep.subr.bf16.mxu0 %v10527_v46  ;;  %v11011_v46 = vld [vmem:[%s13911_s9 + $0x1d8] sm:$0xff]   ;;  %14048 = vst [vmem:[#allocation118_spill] sm:$0xff] %v11156_v55 }
 0x1c1   :  { %2360 = vmatpush1.bf16.msra.mxu1 %v2065_v5  ;;  %8064 = vmatmul.mubr.msk.bf16.vlgmr.msra.gmra.mrb[28].mxu0 %vm2018_vm2, %v10804_v31  ;;  %v11113_v5 = vld [vmem:[%s13911_s9 + $0x130] sm:$0xff]  }
 0x1c2   :  { %8200 = vmatprep.subr.bf16.mxu1 %v10544_v60  ;;  %8179 = vmatpush3.bf16.msra.mxu0 %v10549_v44  ;;  %v11021_v60 = vld [vmem:[%s13911_s9 + $0x198] sm:$0xff]   ;;  %v11029_v44 = vld [vmem:[%s13911_s9 + $0x160] sm:$0xff]  }
 0x1c3   :  { %3640 = vrot.lane.b32.xlu1 %v10962_v26, %s9762_s18  ;;  %8180 = vmatprep.subr.bf16.mxu0 %v10581_v37 }
 0x1c4   :  { %3688 = vrot.lane.b32.xlu0 %v10970_v13, %s9762_s18  ;;  %8066 = vmatmul.mubr.msk.bf16.vlgmr.msra.gmra.mrb[28].mxu1 %vm2018_vm2, %v10804_v31  ;;  %v11039_v31 = vld [vmem:[%s13911_s9 + $0x120] sm:$0xff]  }
 0x1c5   :  { %8201 = vmatpush3.bf16.msra.mxu1 %v10574_v51 }
 0x1c6   :  { %8202 = vmatprep.subr.bf16.mxu1 %v10609_v34  ;;  %8181 = vmatpush3.bf16.msra.mxu0 %v10602_v35 }
 0x1c7   :  { %3672 = vrot.lane.b32.xlu1 %v10982_v17, %s9762_s18  ;;  %8182 = vmatprep.subr.bf16.mxu0 %v10649_v38 }
 0x1c8   :  { %3658 = vrot.lane.b32.xlu0 %v10989_v19, %s9762_s18 }
 0x1c9   :  { %8203 = vmatpush3.bf16.msra.mxu1 %v10632_v42 }
 0x1ca   :  { %8204 = vmatprep.subr.bf16.mxu1 %v10677_v33  ;;  %8183 = vmatpush3.bf16.msra.mxu0 %v10662_v62 }
 0x1cb   :  { %3642 = vrot.lane.b32.xlu1 %v11003_v20, %s9762_s18  ;;  %8184 = vmatprep.subr.bf16.mxu0 %v10707_v63 }
 0x1cc   :  { %3690 = vrot.lane.b32.xlu0 %v11011_v46, %s9762_s18 }
 0x1cd   :  { %8205 = vmatpush3.bf16.msra.mxu1 %v10690_v58 }
 0x1ce   :  { %8206 = vmatprep.subr.bf16.mxu1 %v10731_v43  ;;  %8185 = vmatpush3.bf16.msra.mxu0 %v10724_v48 }
 0x1cf   :  { %3674 = vrot.lane.b32.xlu1 %v11021_v60, %s9762_s18  ;;  %8186 = vmatprep.subr.bf16.mxu0 %v10747_v40 }
 0x1d0   :  { %3660 = vrot.lane.b32.xlu0 %v11029_v44, %s9762_s18 }
 0x1d1   :  { %8207 = vmatpush3.bf16.msra.mxu1 %v10736_v52 }
 0x1d2   :  { %8208 = vmatprep.subr.bf16.mxu1 %v10765_v49  ;;  %8187 = vmatpush3.bf16.msra.mxu0 %v10754_v47 }
 0x1d3   :  { %3644 = vrot.lane.b32.xlu1 %v11039_v31, %s9762_s18  ;;  %8188 = vmatprep.subr.bf16.mxu0 %v10779_v54 }
 0x1d4   :  { %3692 = vrot.lane.b32.xlu0 %v11047_v29, %s9762_s18 }
 0x1d5   :  { %8209 = vmatpush3.bf16.msra.mxu1 %v10770_v45 }
 0x1d6   :  { %8210 = vmatprep.subr.bf16.mxu1 %v10799_v32  ;;  %8189 = vmatpush3.bf16.msra.mxu0 %v10788_v57 }
 0x1d7   :  { %3676 = vrot.lane.b32.xlu1 %v11057_v12, %s9762_s18  ;;  %8190 = vmatprep.subr.bf16.mxu0 %v10819_v56 }
 0x1d8   :  { %3662 = vrot.lane.b32.xlu0 %v11065_v27, %s9762_s18 }
 0x1d9   :  { %8211 = vmatpush3.bf16.msra.mxu1 %v10812_v41 }
 0x1da   :  { %v11103_v14 = vpop.permute.xlu0 %3588  ;;  %8212 = vmatprep.subr.bf16.mxu1 %v10841_v6  ;;  %8191 = vmatpush3.bf16.msra.mxu0 %v10832_v53 }
 0x1db   :  { %3646 = vrot.lane.b32.xlu1 %v11075_v3, %s9762_s18  ;;  %14043 = vst [vmem:[#allocation113_spill] sm:$0xff] %v11103_v14  ;;  %8192 = vmatprep.subr.bf16.mxu0 %v10857_v30 }
 0x1dc   :  { %3694 = vrot.lane.b32.xlu0 %v11083_v2, %s9762_s18 }
 0x1dd   :  { %8213 = vmatpush3.bf16.msra.mxu1 %v10850_v21 }
 0x1de   :  { %v11115_v1 = vpop.permute.xlu1 %3620  ;;  %v11125_v9 = vpop.permute.xlu0 %3572  ;;  %8214 = vmatprep.subr.bf16.mxu1 %v10877_v50  ;;  %8193 = vmatpush3.bf16.msra.mxu0 %v10870_v59 }
 0x1df   :  { %3678 = vrot.lane.b32.xlu1 %v11093_v18, %s9762_s18  ;;  %14044 = vst [vmem:[#allocation114_spill] sm:$0xff] %v11115_v1  ;;  %14045 = vst [vmem:[#allocation115_spill] sm:$0xff] %v11125_v9  ;;  %8222 = vmatprep.subr.bf16.mxu0 %v10891_v22  ;;  %v11163_v1 = vld [vmem:[%s13911_s9 + $0x1f8] sm:$0xff]  }
 0x1e0   :  { %3664 = vrot.lane.b32.xlu0 %v11101_v36, %s9762_s18  ;;  %14049 = vst [vmem:[#allocation119_spill] sm:$0xff] %v11163_v1  ;;  %v11174_v9 = vld [vmem:[%s13911_s9 + $0x1b8] sm:$0xff]  }
 0x1e1   :  { %8215 = vmatpush3.bf16.msra.mxu1 %v10884_v15 }
 0x1e2   :  { %v11146_v24 = vpop.permute.xlu1 %3604  ;;  %8244 = vmatprep.subr.bf16.mxu1 %v10905_v7 }
 0x1e3   :  { %3648 = vrot.lane.b32.xlu1 %v11113_v5, %s9762_s18  ;;  %14046 = vst [vmem:[#allocation116_spill] sm:$0xff] %v11146_v24 }
 0x1e4   :  { %3696 = vrot.lane.b32.xlu0 %v11123_v25, %s9762_s18 }
 0x1e6   :  { %v11149_v8 = vpop.permute.xlu0 %3590 }
 0x1e7   :  { %14047 = vst [vmem:[#allocation117_spill] sm:$0xff] %v11149_v8  ;;  %3680 = vrot.lane.b32.xlu1 %v11135_v16, %s9762_s18  ;;  %v11165_v24 = vpop.permute.xlu1 %3574 }
 0x1e8   :  { %3666 = vrot.lane.b32.xlu0 %v11143_v0, %s9762_s18  ;;  %14050 = vst [vmem:[#allocation120_spill] sm:$0xff] %v11165_v24  ;;  %v11185_v24 = vld [vmem:[%s13911_s9 + $0x40] sm:$0xff]  }
 0x1e9   :  { %14053 = vst [vmem:[#allocation123_spill] sm:$0xff] %v11185_v24 }
 0x1ea   :  { %v11169_v8 = vpop.permute.xlu0 %3622 }
 0x1eb   :  { %3650 = vrot.lane.b32.xlu1 %v11156_v55, %s9762_s18  ;;  %14051 = vst [vmem:[#allocation121_spill] sm:$0xff] %v11169_v8  ;;  %v11178_v14 = vpop.permute.xlu1 %3606 }
 0x1ec   :  { %3698 = vrot.lane.b32.xlu0 %v11163_v1, %s9762_s18  ;;  %14052 = vst [vmem:[#allocation122_spill] sm:$0xff] %v11178_v14  ;;  %v11196_v1 = vld [vmem:[%s13911_s9] sm:$0xff]  }
 0x1ed   :  { %14056 = vst [vmem:[#allocation126_spill] sm:$0xff] %v11196_v1  ;;  %v11203_v14 = vld [vmem:[%s13911_s9 + $0xc0] sm:$0xff]  }
 0x1ee   :  { %v11189_v8 = vpop.permute.xlu0 %3592  ;;  %14057 = vst [vmem:[#allocation127_spill] sm:$0xff] %v11203_v14 }
 0x1ef   :  { %3682 = vrot.lane.b32.xlu1 %v11174_v9, %s9762_s18  ;;  %14054 = vst [vmem:[#allocation124_spill] sm:$0xff] %v11189_v8 }
 0x1f0   :  { %3981 = vrot.lane.b32.xlu0 %v11185_v24, %s9739_s12 }
 0x1f2   :  { %v11191_v55 = vpop.permute.xlu1 %3576 }
 0x1f3   :  { %14055 = vst [vmem:[#allocation125_spill] sm:$0xff] %v11191_v55  ;;  %3965 = vrot.lane.b32.xlu1 %v11196_v1, %s9739_s12  ;;  %v11207_v24 = vpop.permute.xlu0 %3624 }
 0x1f4   :  { %4013 = vrot.lane.b32.xlu0 %v11203_v14, %s9739_s12  ;;  %14058 = vst [vmem:[#allocation128_spill] sm:$0xff] %v11207_v24 }
 0x1f6   :  { %v11211_v55 = vpop.permute.xlu1 %3608 }
 0x1f7   :  { %3997 = vrot.lane.b32.xlu1 %v10574_v51, %s9739_s12  ;;  %14059 = vst [vmem:[#allocation129_spill] sm:$0xff] %v11211_v55  ;;  %v11215_v8 = vpop.permute.xlu0 %3594 }
 0x1f8   :  { %3983 = vrot.lane.b32.xlu0 %v10581_v37, %s9739_s12  ;;  %14060 = vst [vmem:[#allocation130_spill] sm:$0xff] %v11215_v8 }
 0x1fa   :  { %v11221_v1 = vpop.permute.xlu1 %3578 }
 0x1fb   :  { %3967 = vrot.lane.b32.xlu1 %v10602_v35, %s9739_s12  ;;  %14061 = vst [vmem:[#allocation131_spill] sm:$0xff] %v11221_v1 }
 0x1fc   :  { %4015 = vrot.lane.b32.xlu0 %v10609_v34, %s9739_s12 }
 0x1fe   :  { %v11223_v14 = vpop.permute.xlu0 %3626 }
 0x1ff   :  { %14062 = vst [vmem:[#allocation132_spill] sm:$0xff] %v11223_v14  ;;  %3999 = vrot.lane.b32.xlu1 %v10632_v42, %s9739_s12  ;;  %v11229_v51 = vpop.permute.xlu1 %3610 }
 0x200   :  { %3985 = vrot.lane.b32.xlu0 %v10649_v38, %s9739_s12  ;;  %14063 = vst [vmem:[#allocation133_spill] sm:$0xff] %v11229_v51 }
 0x202   :  { %v11231_v37 = vpop.permute.xlu0 %3596 }
 0x203   :  { %14064 = vst [vmem:[#allocation134_spill] sm:$0xff] %v11231_v37  ;;  %3969 = vrot.lane.b32.xlu1 %v10662_v62, %s9739_s12  ;;  %v11237_v35 = vpop.permute.xlu1 %3580 }
 0x204   :  { %4017 = vrot.lane.b32.xlu0 %v10677_v33, %s9739_s12  ;;  %14065 = vst [vmem:[#allocation135_spill] sm:$0xff] %v11237_v35 }
 0x206   :  { %v11239_v34 = vpop.permute.xlu0 %3628 }
 0x207   :  { %14066 = vst [vmem:[#allocation136_spill] sm:$0xff] %v11239_v34  ;;  %4001 = vrot.lane.b32.xlu1 %v10690_v58, %s9739_s12 }
 0x208   :  { %3987 = vrot.lane.b32.xlu0 %v10707_v63, %s9739_s12 }
 0x209   :  { %v11245_v42 = vpop.permute.xlu1 %3612 }
 0x20a   :  { %14067 = vst [vmem:[#allocation137_spill] sm:$0xff] %v11245_v42  ;;  %v11247_v38 = vpop.permute.xlu0 %3598 }
 0x20b   :  { %14068 = vst [vmem:[#allocation138_spill] sm:$0xff] %v11247_v38  ;;  %3971 = vrot.lane.b32.xlu1 %v10724_v48, %s9739_s12 }
 0x20c   :  { %4019 = vrot.lane.b32.xlu0 %v10731_v43, %s9739_s12 }
 0x20d   :  { %v11253_v62 = vpop.permute.xlu1 %3582 }
 0x20e   :  { %14069 = vst [vmem:[#allocation139_spill] sm:$0xff] %v11253_v62  ;;  %v11255_v33 = vpop.permute.xlu0 %3630 }
 0x20f   :  { %14070 = vst [vmem:[#allocation140_spill] sm:$0xff] %v11255_v33  ;;  %4003 = vrot.lane.b32.xlu1 %v10736_v52, %s9739_s12 }
 0x210   :  { %3989 = vrot.lane.b32.xlu0 %v10747_v40, %s9739_s12 }
 0x211   :  { %v11261_v58 = vpop.permute.xlu1 %3614 }
 0x212   :  { %14071 = vst [vmem:[#allocation141_spill] sm:$0xff] %v11261_v58  ;;  %v11263_v63 = vpop.permute.xlu0 %3600 }
 0x213   :  { %14072 = vst [vmem:[#allocation142_spill] sm:$0xff] %v11263_v63  ;;  %3973 = vrot.lane.b32.xlu1 %v10754_v47, %s9739_s12 }
 0x214   :  { %4021 = vrot.lane.b32.xlu0 %v10765_v49, %s9739_s12 }
 0x215   :  { %v11269_v48 = vpop.permute.xlu1 %3584 }
 0x216   :  { %14073 = vst [vmem:[#allocation143_spill] sm:$0xff] %v11269_v48  ;;  %v11271_v43 = vpop.permute.xlu0 %3632 }
 0x217   :  { %14074 = vst [vmem:[#allocation144_spill] sm:$0xff] %v11271_v43  ;;  %4005 = vrot.lane.b32.xlu1 %v10770_v45, %s9739_s12 }
 0x218   :  { %3991 = vrot.lane.b32.xlu0 %v10779_v54, %s9739_s12 }
 0x219   :  { %v11277_v52 = vpop.permute.xlu1 %3616 }
 0x21a   :  { %14075 = vst [vmem:[#allocation145_spill] sm:$0xff] %v11277_v52  ;;  %v11279_v40 = vpop.permute.xlu0 %3602 }
 0x21b   :  { %14076 = vst [vmem:[#allocation146_spill] sm:$0xff] %v11279_v40  ;;  %3975 = vrot.lane.b32.xlu1 %v10788_v57, %s9739_s12 }
 0x21c   :  { %4023 = vrot.lane.b32.xlu0 %v10799_v32, %s9739_s12 }
 0x21d   :  { %v11285_v47 = vpop.permute.xlu1 %3586 }
 0x21e   :  { %14077 = vst [vmem:[#allocation147_spill] sm:$0xff] %v11285_v47  ;;  %v11287_v49 = vpop.permute.xlu0 %3634 }
 0x21f   :  { %14078 = vst [vmem:[#allocation148_spill] sm:$0xff] %v11287_v49  ;;  %4007 = vrot.lane.b32.xlu1 %v10812_v41, %s9739_s12 }
 0x220   :  { %3993 = vrot.lane.b32.xlu0 %v10819_v56, %s9739_s12 }
 0x221   :  { %v11293_v45 = vpop.permute.xlu1 %3618 }
 0x222   :  { %14079 = vst [vmem:[#allocation149_spill] sm:$0xff] %v11293_v45  ;;  %v11295_v54 = vpop.permute.xlu0 %3652 }
 0x223   :  { %14080 = vst [vmem:[#allocation150_spill] sm:$0xff] %v11295_v54  ;;  %3977 = vrot.lane.b32.xlu1 %v10832_v53, %s9739_s12 }
 0x224   :  { %4025 = vrot.lane.b32.xlu0 %v10841_v6, %s9739_s12 }
 0x225   :  { %v11301_v57 = vpop.permute.xlu1 %3636 }
 0x226   :  { %14081 = vst [vmem:[#allocation151_spill] sm:$0xff] %v11301_v57  ;;  %v11303_v32 = vpop.permute.xlu0 %3684 }
 0x227   :  { %14082 = vst [vmem:[#allocation152_spill] sm:$0xff] %v11303_v32  ;;  %4009 = vrot.lane.b32.xlu1 %v10850_v21, %s9739_s12 }
 0x228   :  { %3995 = vrot.lane.b32.xlu0 %v10857_v30, %s9739_s12 }
 0x229   :  { %v11309_v41 = vpop.permute.xlu1 %3668 }
 0x22a   :  { %14083 = vst [vmem:[#allocation153_spill] sm:$0xff] %v11309_v41  ;;  %v11311_v56 = vpop.permute.xlu0 %3654 }
 0x22b   :  { %14084 = vst [vmem:[#allocation154_spill] sm:$0xff] %v11311_v56  ;;  %3979 = vrot.lane.b32.xlu1 %v10870_v59, %s9739_s12  ;;  %v678_v59 = vlaneseq }
 0x22c   :  { %4027 = vrot.lane.b32.xlu0 %v10877_v50, %s9739_s12 }
 0x22d   :  { %v11317_v53 = vpop.permute.xlu1 %3638 }
 0x22e   :  { %14085 = vst [vmem:[#allocation155_spill] sm:$0xff] %v11317_v53  ;;  %v11319_v6 = vpop.permute.xlu0 %3686 }
 0x22f   :  { %14086 = vst [vmem:[#allocation156_spill] sm:$0xff] %v11319_v6  ;;  %4011 = vrot.lane.b32.xlu1 %v10884_v15, %s9739_s12  ;;  %v679_v15 = vshrl.u32 %v678_v59, 7 }
 0x230   :  { %4045 = vrot.lane.b32.xlu0 %v10891_v22, %s9739_s12 }
 0x231   :  { %v11325_v21 = vpop.permute.xlu1 %3670 }
 0x232   :  { %14087 = vst [vmem:[#allocation157_spill] sm:$0xff] %v11325_v21  ;;  %v11327_v30 = vpop.permute.xlu0 %3656 }
 0x233   :  { %14088 = vst [vmem:[#allocation158_spill] sm:$0xff] %v11327_v30  ;;  %4029 = vrot.lane.b32.xlu1 %v10898_v61, %s9739_s12  ;;  %v11345_v61 = vsub.s32 0, %v679_v15 }
 0x234   :  { %4077 = vrot.lane.b32.xlu0 %v10905_v7, %s9739_s12  ;;  %v11349_v7 = vld [vmem:[#allocation12] sm:$0xff] }
 0x235   :  { %v11333_v50 = vpop.permute.xlu1 %3640  ;;  %14093 = vst [vmem:[#allocation163_spill] sm:$0xff] %v11345_v61 }
 0x236   :  { %14089 = vst [vmem:[#allocation159_spill] sm:$0xff] %v11333_v50  ;;  %v11335_v53 = vpop.permute.xlu0 %3688  ;;  %v11351_v50 = vsub.s32 2, %v679_v15 }
 0x237   :  { %14090 = vst [vmem:[#allocation160_spill] sm:$0xff] %v11335_v53  ;;  %4061 = vrot.lane.b32.xlu1 %v10910_v23, %s9739_s12  ;;  %v11353_v53 = vsub.s32 1, %v679_v15 }
 0x238   :  { %4047 = vrot.lane.b32.xlu0 %v10919_v28, %s9739_s12  ;;  %14094 = vst [vmem:[#allocation164_spill] sm:$0xff] %v11351_v50  ;;  %v11359_v28 = vsub.s32 3, %v679_v15 }
 0x239   :  { %v11341_v22 = vpop.permute.xlu1 %3672  ;;  %14095 = vst [vmem:[#allocation165_spill] sm:$0xff] %v11353_v53 }
 0x23a   :  { %14091 = vst [vmem:[#allocation161_spill] sm:$0xff] %v11341_v22  ;;  %v11343_v21 = vpop.permute.xlu0 %3658  ;;  %14097 = vst [vmem:[#allocation167_spill] sm:$0xff] %v11359_v28  ;;  %v681_v22 = vrot.slane %v11349_v7, %v11345_v61 }
 0x23b   :  { %14092 = vst [vmem:[#allocation162_spill] sm:$0xff] %v11343_v21  ;;  %4031 = vrot.lane.b32.xlu1 %v10926_v10, %s9739_s12  ;;  %v689_v10 = vrot.slane %v11349_v7, %v11351_v50  ;;  %v685_v21 = vrot.slane %v11349_v7, %v11353_v53 }
 0x23c   :  { %4079 = vrot.lane.b32.xlu0 %v10934_v4, %s9739_s12 }
 0x23d   :  { %v11357_v23 = vpop.permute.xlu1 %3642 }
 0x23e   :  { %14096 = vst [vmem:[#allocation166_spill] sm:$0xff] %v11357_v23  ;;  %v11361_v59 = vpop.permute.xlu0 %3690 }
 0x23f   :  { %14098 = vst [vmem:[#allocation168_spill] sm:$0xff] %v11361_v59  ;;  %4063 = vrot.lane.b32.xlu1 %v10944_v39, %s9739_s12  ;;  %v693_v59 = vrot.slane %v11349_v7, %v11359_v28 }
 0x240   :  { %4049 = vrot.lane.b32.xlu0 %v10951_v11, %s9739_s12 }
 0x241   :  { %v11373_v4 = vpop.permute.xlu1 %3674 }
 0x242   :  { %14099 = vst [vmem:[#allocation169_spill] sm:$0xff] %v11373_v4  ;;  %v11377_v30 = vpop.permute.xlu0 %3660 }
 0x243   :  { %14100 = vst [vmem:[#allocation170_spill] sm:$0xff] %v11377_v30  ;;  %v1086_v39 = vpop.f32.mrb[0].mxu1  ;;  %4033 = vrot.lane.b32.xlu1 %v10962_v26, %s9739_s12 }
 0x244   :  { %v1045_v23 = vpop.f32.mrb[0].mxu0  ;;  %v11383_v56 = vadd.f32 %v1086_v39, %v689_v10  ;;  %v1088_v11 = vpop.f32.mrb[1].mxu1  ;;  %4081 = vrot.lane.b32.xlu0 %v10970_v13, %s9739_s12  ;;  %v11403_v13 = vsub.s32 6, %v679_v15 }
 0x245   :  { %v11379_v6 = vadd.f32 %v1045_v23, %v681_v22  ;;  %v1047_v41 = vpop.f32.mrb[1].mxu0  ;;  %v1090_v45 = vpop.f32.mrb[2].mxu1  ;;  %v11391_v23 = vadd.f32 %v1088_v11, %v693_v59 }
 0x246   :  { %v11385_v32 = vadd.f32 %v1047_v41, %v685_v21  ;;  %v1049_v57 = vpop.f32.mrb[2].mxu0  ;;  %v1351_v22 = vrot.slane %v11383_v56, 4  ;;  %v1091_v54 = vpop.f32.mrb[3].mxu1  ;;  %v11397_v21 = vsub.s32 4, %v679_v15  ;;  %14104 = vst [vmem:[#allocation174_spill] sm:$0xff] %v11403_v13  ;;  %v11405_v45 = vsub.s32 5, %v679_v15 }
 0x247   :  { %v1339_v4 = vrot.slane %v11379_v6, 4  ;;  %v1050_v30 = vpop.f32.mrb[3].mxu0  ;;  %v11393_v49 = vpop.permute.xlu1 %3644  ;;  %4065 = vrot.lane.b32.xlu1 %v10982_v17, %s9739_s12  ;;  %v1357_v59 = vrot.slane %v11391_v23, 4 }
 0x248   :  { %14101 = vst [vmem:[#allocation171_spill] sm:$0xff] %v11393_v49  ;;  %v1345_v41 = vrot.slane %v11385_v32, 4  ;;  %14102 = vst [vmem:[#allocation172_spill] sm:$0xff] %v11397_v21  ;;  %v11399_v57 = vpop.permute.xlu0 %3692  ;;  %4051 = vrot.lane.b32.xlu0 %v10989_v19, %s9739_s12  ;;  %v1352_v54 = vadd.f32 %v1351_v22, %v11383_v56  ;;  %v11410_v30 = vsub.s32 7, %v679_v15  ;;  %v697_v17 = vrot.slane %v11349_v7, %v11397_v21 }
 0x249   :  { %v1340_v26 = vadd.f32 %v1339_v4, %v11379_v6  ;;  %14103 = vst [vmem:[#allocation173_spill] sm:$0xff] %v11399_v57  ;;  %14105 = vst [vmem:[#allocation175_spill] sm:$0xff] %v11405_v45  ;;  %v705_v19 = vrot.slane %v11349_v7, %v11403_v13  ;;  %v701_v15 = vrot.slane %v11349_v7, %v11405_v45 }
 0x24a   :  { %14106 = vst [vmem:[#allocation176_spill] sm:$0xff] %v11410_v30  ;;  %v1346_v39 = vadd.f32 %v1345_v41, %v11385_v32  ;;  %v1353_v22 = vrot.slane %v1352_v54, 2  ;;  %v709_v41 = vrot.slane %v11349_v7, %v11410_v30 }
 0x24b   :  { %v11413_v10 = vpop.permute.xlu1 %3676  ;;  %v1341_v4 = vrot.slane %v1340_v26, 2  ;;  %4035 = vrot.lane.b32.xlu1 %v11003_v20, %s9739_s12 }
 0x24c   :  { %14107 = vst [vmem:[#allocation177_spill] sm:$0xff] %v11413_v10  ;;  %v11418_v11 = vpop.permute.xlu0 %3662  ;;  %4083 = vrot.lane.b32.xlu0 %v11011_v46, %s9739_s12  ;;  %v1358_v10 = vadd.f32 %v1357_v59, %v11391_v23  ;;  %v1347_v20 = vrot.slane %v1346_v39, 2  ;;  %v1354_v59 = vadd.f32 %v1353_v22, %v1352_v54 }
 0x24d   :  { %14108 = vst [vmem:[#allocation178_spill] sm:$0xff] %v11418_v11  ;;  %v1342_v57 = vadd.f32 %v1341_v4, %v1340_v26 }
 0x24e   :  { %v1348_v58 = vadd.f32 %v1347_v20, %v1346_v39 }
 0x24f   :  { %v11431_v11 = vpop.permute.xlu1 %3646  ;;  %v1168_v52 = vpop.f32.mrb[4].mxu1  ;;  %4067 = vrot.lane.b32.xlu1 %v11021_v60, %s9739_s12 }
 0x250   :  { %v1127_v49 = vpop.f32.mrb[4].mxu0  ;;  %14109 = vst [vmem:[#allocation179_spill] sm:$0xff] %v11431_v11  ;;  %v11437_v43 = vadd.f32 %v1168_v52, %v705_v19  ;;  %v1170_v48 = vpop.f32.mrb[5].mxu1  ;;  %4053 = vrot.lane.b32.xlu0 %v11029_v44, %s9739_s12  ;;  %v1359_v11 = vrot.slane %v1358_v10, 2 }
 0x251   :  { %v11433_v47 = vadd.f32 %v1127_v49, %v697_v17  ;;  %v1129_v40 = vpop.f32.mrb[5].mxu0  ;;  %v11441_v7 = vpop.permute.xlu0 %3694  ;;  %v11446_v49 = vadd.f32 %v1170_v48, %v709_v41 }
 0x252   :  { %v11439_v46 = vadd.f32 %v1129_v40, %v701_v15  ;;  %14110 = vst [vmem:[#allocation180_spill] sm:$0xff] %v11441_v7  ;;  %v1131_v4 = vpop.f32.mrb[6].mxu0  ;;  %v1172_v17 = vpop.f32.mrb[6].mxu1  ;;  %v1375_v60 = vrot.slane %v11437_v43, 4  ;;  %v1343_v15 = vrot.slane %v1342_v57, 1 }
 0x253   :  { %v1363_v26 = vrot.slane %v11433_v47, 4  ;;  %v1132_v40 = vpop.f32.mrb[7].mxu0  ;;  %v1173_v19 = vpop.f32.mrb[7].mxu1  ;;  %v1381_v44 = vrot.slane %v11446_v49, 4  ;;  %4037 = vrot.lane.b32.xlu1 %v11039_v31, %s9739_s12  ;;  %v1355_v4 = vrot.slane %v1354_v59, 1 }
 0x254   :  { %v1369_v52 = vrot.slane %v11439_v46, 4  ;;  %v11452_v54 = vpop.permute.xlu1 %3678  ;;  %v1376_v48 = vadd.f32 %v1375_v60, %v11437_v43  ;;  %4085 = vrot.lane.b32.xlu0 %v11047_v29, %s9739_s12  ;;  %v1344_v19 = vadd.f32 %v1343_v15, %v1342_v57 }
 0x255   :  { %v1364_v7 = vadd.f32 %v1363_v26, %v11433_v47  ;;  %14111 = vst [vmem:[#allocation181_spill] sm:$0xff] %v11452_v54  ;;  %v11458_v41 = vpop.permute.xlu0 %3664  ;;  %v1382_v20 = vadd.f32 %v1381_v44, %v11446_v49  ;;  %v1360_v26 = vadd.f32 %v1359_v11, %v1358_v10  ;;  %v1349_v54 = vrot.slane %v1348_v58, 1 }
 0x256   :  { %v1370_v22 = vadd.f32 %v1369_v52, %v11439_v46  ;;  %14112 = vst [vmem:[#allocation182_spill] sm:$0xff] %v11458_v41  ;;  %v1377_v17 = vrot.slane %v1376_v48, 2  ;;  %v1356_v29 = vadd.f32 %v1355_v4, %v1354_v59 }
 0x257   :  { %v1365_v39 = vrot.slane %v1364_v7, 2  ;;  %v1383_v31 = vrot.slane %v1382_v20, 2  ;;  %4069 = vrot.lane.b32.xlu1 %v11057_v12, %s9739_s12  ;;  %v1361_v41 = vrot.slane %v1360_v26, 1 }
 0x258   :  { %v1371_v40 = vrot.slane %v1370_v22, 2  ;;  %v11463_v33 = vpop.permute.xlu1 %3648  ;;  %v1378_v60 = vadd.f32 %v1377_v17, %v1376_v48  ;;  %4055 = vrot.lane.b32.xlu0 %v11065_v27, %s9739_s12  ;;  %v1438_v27 = vmul.f32 0.125, %v1356_v29 }
 0x259   :  { %v1366_v63 = vadd.f32 %v1365_v39, %v1364_v7  ;;  %14113 = vst [vmem:[#allocation183_spill] sm:$0xff] %v11463_v33  ;;  %v11467_v52 = vpop.permute.xlu0 %3696  ;;  %v1384_v11 = vadd.f32 %v1383_v31, %v1382_v20  ;;  %v1436_v7 = vmul.f32 0.125, %v1344_v19  ;;  %v1350_v39 = vadd.f32 %v1349_v54, %v1348_v58 }
 0x25a   :  { %14114 = vst [vmem:[#allocation184_spill] sm:$0xff] %v11467_v52  ;;  %v1372_v10 = vadd.f32 %v1371_v40, %v1370_v22  ;;  %v1379_v57 = vrot.slane %v1378_v60, 1  ;;  %v11493_v29 = vsub.f32 %v11383_v56, %v1438_v27 }
 0x25b   :  { %v1367_v44 = vrot.slane %v1366_v63, 1  ;;  %v1250_v33 = vpop.f32.mrb[8].mxu1  ;;  %4039 = vrot.lane.b32.xlu1 %v11075_v3, %s9739_s12  ;;  %v1385_v22 = vrot.slane %v1384_v11, 1  ;;  %v11484_v40 = vsub.f32 %v11379_v6, %v1436_v7  ;;  %v1437_v3 = vmul.f32 0.125, %v1350_v39 }
 0x25c   :  { %v1209_v15 = vpop.f32.mrb[8].mxu0  ;;  %v11475_v12 = vpop.f32.mrb[9].mxu1  ;;  %4087 = vrot.lane.b32.xlu0 %v11083_v2, %s9739_s12  ;;  %v1373_v59 = vrot.slane %v1372_v10, 1  ;;  %v1380_v54 = vadd.f32 %v1379_v57, %v1378_v60  ;;  %v11495_v60 = vld [vmem:[#allocation12 + $0x8] sm:$0xff] }
 0x25d   :  { %v1368_v62 = vadd.f32 %v1367_v44, %v1366_v63  ;;  %v11471_v42 = vpop.f32.mrb[9].mxu0  ;;  %v11477_v48 = vpop.permute.xlu1 %3680  ;;  %v1362_v63 = vadd.f32 %v1361_v41, %v1360_v26  ;;  %v1386_v26 = vadd.f32 %v1385_v22, %v1384_v11  ;;  %v1468_v57 = vmul.f32 %v11484_v40, %v11484_v40 }
 0x25e   :  { %14115 = vst [vmem:[#allocation185_spill] sm:$0xff] %v11477_v48  ;;  %v11481_v4 = vpop.permute.xlu0 %3666  ;;  %v1213_v58 = vpop.f32.mrb[10].mxu0  ;;  %v1374_v41 = vadd.f32 %v1373_v59, %v1372_v10  ;;  %v1470_v10 = vmul.f32 %v11493_v29, %v11493_v29 }
 0x25f   :  { %14116 = vst [vmem:[#allocation186_spill] sm:$0xff] %v11481_v4  ;;  %v1254_v20 = vpop.f32.mrb[10].mxu1  ;;  %v1214_v17 = vpop.f32.mrb[11].mxu0  ;;  %v1440_v19 = vmul.f32 0.125, %v1368_v62  ;;  %4071 = vrot.lane.b32.xlu1 %v11093_v18, %s9739_s12  ;;  %v1439_v44 = vmul.f32 0.125, %v1362_v63  ;;  %v1442_v62 = vmul.f32 0.125, %v1380_v54  ;;  %v11502_v18 = vsub.f32 %v11385_v32, %v1437_v3 }
 0x260   :  { %v1255_v31 = vpop.f32.mrb[11].mxu1  ;;  %4057 = vrot.lane.b32.xlu0 %v11101_v36, %s9739_s12  ;;  %v713_v36 = vrot.slane %v11495_v60, %v11345_v61  ;;  %v1441_v11 = vmul.f32 0.125, %v1374_v41  ;;  %v1443_v32 = vmul.f32 0.125, %v1386_v26  ;;  %v1484_v22 = vrot.slane %v1468_v57, 4 }
 0x261   :  { %v11488_v2 = vpop.permute.xlu1 %3650  ;;  %v11505_v7 = vsub.f32 %v11433_v47, %v1440_v19  ;;  %v721_v47 = vrot.slane %v11495_v60, %v11351_v50  ;;  %v11525_v27 = vsub.f32 %v11437_v43, %v1442_v62  ;;  %v717_v63 = vrot.slane %v11495_v60, %v11353_v53 }
 0x262   :  { %14117 = vst [vmem:[#allocation187_spill] sm:$0xff] %v11488_v2  ;;  %v11497_v6 = vpop.permute.xlu0 %3698  ;;  %v11541_v43 = vadd.f32 %v1209_v15, %v713_v36  ;;  %v1496_v3 = vrot.slane %v1470_v10, 4  ;;  %v11550_v19 = vsub.f32 %v11439_v46, %v1441_v11  ;;  %v11553_v31 = vsub.f32 %v11446_v49, %v1443_v32 }
 0x263   :  { %14118 = vst [vmem:[#allocation188_spill] sm:$0xff] %v11497_v6  ;;  %4041 = vrot.lane.b32.xlu1 %v11113_v5, %s9739_s12  ;;  %v11522_v5 = vsub.f32 %v11391_v23, %v1439_v44  ;;  %v1472_v58 = vmul.f32 %v11505_v7, %v11505_v7  ;;  %v11555_v41 = vadd.f32 %v1250_v33, %v721_v47  ;;  %v14123_v47 = vld [vmem:[#allocation118_spill] sm:$0xff] }
 0x264   :  { %4089 = vrot.lane.b32.xlu0 %v11123_v25, %s9739_s12  ;;  %v1469_v25 = vmul.f32 %v11502_v18, %v11502_v18  ;;  %v1474_v44 = vmul.f32 %v11525_v27, %v11525_v27  ;;  %v725_v46 = vrot.slane %v11495_v60, %v11359_v28  ;;  %v1485_v49 = vadd.f32 %v1484_v22, %v1468_v57 }
 0x265   :  { %v11511_v56 = vpop.permute.xlu1 %3682  ;;  %v1471_v15 = vmul.f32 %v11522_v5, %v11522_v5  ;;  %v1508_v33 = vrot.slane %v1472_v58, 4  ;;  %v11567_v32 = vadd.f32 %v11471_v42, %v717_v63  ;;  %v1473_v57 = vmul.f32 %v11550_v19, %v11550_v19 }
 0x266   :  { %14119 = vst [vmem:[#allocation189_spill] sm:$0xff] %v11511_v56  ;;  %v11519_v39 = vpop.permute.xlu0 %3981  ;;  %v1490_v11 = vrot.slane %v1469_v25, 4  ;;  %v1475_v42 = vmul.f32 %v11553_v31, %v11553_v31 }
 0x267   :  { %14120 = vst [vmem:[#allocation190_spill] sm:$0xff] %v11519_v39  ;;  %v11535_v54 = vpop.f32.mrb[12].mxu1  ;;  %4073 = vrot.lane.b32.xlu1 %v11135_v16, %s9739_s12  ;;  %v14125_v39 = vld [vmem:[#allocation119_spill] sm:$0xff]  ;;  %v1393_v22 = vrot.slane %v11567_v32, 4 }
 0x268   :  { %v11527_v59 = vpop.f32.mrb[12].mxu0  ;;  %v11543_v23 = vpop.f32.mrb[13].mxu1  ;;  %4059 = vrot.lane.b32.xlu0 %v11143_v0, %s9739_s12  ;;  %v1387_v0 = vrot.slane %v11541_v43, 4 }
 0x269   :  { %v11537_v20 = vpop.f32.mrb[13].mxu0  ;;  %v11545_v17 = vpop.permute.xlu1 %3965  ;;  %v1394_v6 = vadd.f32 %v1393_v22, %v11567_v32 }
 0x26a   :  { %14121 = vst [vmem:[#allocation191_spill] sm:$0xff] %v11545_v17  ;;  %v11557_v26 = vpop.permute.xlu0 %4013  ;;  %v1295_v16 = vpop.f32.mrb[14].mxu0  ;;  %v1388_v17 = vadd.f32 %v1387_v0, %v11541_v43  ;;  %v8067_v0 = vld [vmem:[%s13912_s10] ss:$0 sm:$0xff] }
 0x26b   :  { %14122 = vst [vmem:[#allocation192_spill] sm:$0xff] %v11557_v26  ;;  %v1296_v62 = vpop.f32.mrb[15].mxu0  ;;  %v1336_v36 = vpop.f32.mrb[14].mxu1  ;;  %4043 = vrot.lane.b32.xlu1 %v14123_v47, %s9739_s12  ;;  %v1399_v26 = vrot.slane %v11555_v41, 4  ;;  %v1395_v14 = vrot.slane %v1394_v6, 2 }
 0x26c   :  { %v1337_v16 = vpop.f32.mrb[15].mxu1  ;;  %4091 = vrot.lane.b32.xlu0 %v14125_v39, %s9739_s12  ;;  %v1497_v62 = vadd.f32 %v1496_v3, %v1470_v10  ;;  %v1520_v36 = vrot.slane %v1474_v44, 4  ;;  %v1389_v47 = vrot.slane %v1388_v17, 2  ;;  %v1486_v10 = vrot.slane %v1485_v49, 2 }
 0x26d   :  { %v11573_v56 = vpop.permute.xlu1 %3997  ;;  %v11588_v16 = vadd.f32 %v11475_v12, %v725_v46  ;;  %v1491_v39 = vadd.f32 %v1490_v11, %v1469_v25  ;;  %v1502_v3 = vrot.slane %v1471_v15, 4  ;;  %v1514_v46 = vrot.slane %v1473_v57, 4 }
 0x26e   :  { %14124 = vst [vmem:[#allocation118_spill] sm:$0xff] %v11573_v56  ;;  %v11582_v63 = vpop.permute.xlu0 %3983  ;;  %v1509_v56 = vadd.f32 %v1508_v33, %v1472_v58  ;;  %v1498_v12 = vrot.slane %v1497_v62, 2  ;;  %v1526_v25 = vrot.slane %v1475_v42, 4  ;;  %v1390_v33 = vadd.f32 %v1389_v47, %v1388_v17 }
 0x26f   :  { %14126 = vst [vmem:[#allocation119_spill] sm:$0xff] %v11582_v63  ;;  %4075 = vrot.lane.b32.xlu1 %v11174_v9, %s9739_s12  ;;  %v1400_v63 = vadd.f32 %v1399_v26, %v11555_v41  ;;  %v11603_v58 = vpop.f32.mrb[16].mxu1  ;;  %v1521_v9 = vadd.f32 %v1520_v36, %v1474_v44  ;;  %v1405_v52 = vrot.slane %v11588_v16, 4  ;;  %v1487_v22 = vadd.f32 %v1486_v10, %v1485_v49  ;;  %v14131_v44 = vld [vmem:[#allocation127_spill] sm:$0xff] }
 0x270   :  { %v11592_v2 = vpop.f32.mrb[16].mxu0  ;;  %4157 = vrot.lane.b32.xlu0 %v8067_v0, %s9739_s12  ;;  %v11606_v26 = vpop.f32.mrb[17].mxu1  ;;  %v1492_v38 = vrot.slane %v1491_v39, 2  ;;  %v1510_v34 = vrot.slane %v1509_v56, 2  ;;  %v14129_v0 = vld [vmem:[#allocation123_spill] sm:$0xff]  ;;  %v1499_v36 = vadd.f32 %v1498_v12, %v1497_v62  ;;  %v1515_v47 = vadd.f32 %v1514_v46, %v1473_v57 }
 0x271   :  { %v11596_v48 = vpop.permute.xlu1 %3967  ;;  %v11599_v4 = vpop.f32.mrb[17].mxu0  ;;  %v1401_v37 = vrot.slane %v1400_v63, 2  ;;  %v1527_v1 = vadd.f32 %v1526_v25, %v1475_v42  ;;  %v1522_v10 = vrot.slane %v1521_v9, 2  ;;  %v1396_v62 = vadd.f32 %v1395_v14, %v1394_v6  ;;  %v9201_v42 = vld [vmem:[%s13911_s9 + $0x80] sm:$0xff]  }
 0x272   :  { %14127 = vst [vmem:[#allocation193_spill] sm:$0xff] %v11596_v48  ;;  %v11601_v11 = vpop.permute.xlu0 %4015  ;;  %v1503_v48 = vadd.f32 %v1502_v3, %v1471_v15  ;;  %v2108_v35 = vpop.f32.mrb[18].mxu0  ;;  %v1391_v3 = vrot.slane %v1390_v33, 1  ;;  %v1511_v8 = vadd.f32 %v1510_v34, %v1509_v56  ;;  %v729_v56 = vrot.slane %v11495_v60, %v11397_v21 }
 0x273   :  { %14128 = vst [vmem:[#allocation194_spill] sm:$0xff] %v11601_v11  ;;  %4374 = vrot.lane.b32.xlu1 %v14129_v0, %s9748_s0  ;;  %v2149_v51 = vpop.f32.mrb[18].mxu1  ;;  %v2109_v17 = vpop.f32.mrb[19].mxu0  ;;  %v1406_v0 = vadd.f32 %v1405_v52, %v11588_v16  ;;  %v1488_v35 = vrot.slane %v1487_v22, 1  ;;  %v1528_v34 = vrot.slane %v1527_v1, 2  ;;  %v1523_v14 = vadd.f32 %v1522_v10, %v1521_v9 }
 0x274   :  { %4406 = vrot.lane.b32.xlu0 %v14131_v44, %s9748_s0  ;;  %v2150_v15 = vpop.f32.mrb[19].mxu1  ;;  %v1493_v51 = vadd.f32 %v1492_v38, %v1491_v39  ;;  %v1504_v55 = vrot.slane %v1503_v48, 2  ;;  %v1402_v44 = vadd.f32 %v1401_v37, %v1400_v63  ;;  %v1500_v38 = vrot.slane %v1499_v36, 1 }
 0x275   :  { %v11610_v11 = vpop.permute.xlu1 %3999  ;;  %v1516_v39 = vrot.slane %v1515_v47, 2  ;;  %v1392_v6 = vadd.f32 %v1391_v3, %v1390_v33  ;;  %v1407_v63 = vrot.slane %v1406_v0, 2  ;;  %v733_v46 = vrot.slane %v11495_v60, %v11405_v45 }
 0x276   :  { %14130 = vst [vmem:[#allocation123_spill] sm:$0xff] %v11610_v11  ;;  %v11614_v49 = vpop.permute.xlu0 %3985  ;;  %v14133_v11 = vld [vmem:[#allocation126_spill] sm:$0xff]  ;;  %v1489_v17 = vadd.f32 %v1488_v35, %v1487_v22  ;;  %v1494_v15 = vrot.slane %v1493_v51, 1  ;;  %v1403_v33 = vrot.slane %v1402_v44, 1  ;;  %v1397_v10 = vrot.slane %v1396_v62, 1 }
 0x277   :  { %14132 = vst [vmem:[#allocation127_spill] sm:$0xff] %v11614_v49  ;;  %4358 = vrot.lane.b32.xlu1 %v14133_v11, %s9748_s0  ;;  %v11633_v37 = vpop.f32.mrb[20].mxu1  ;;  %v9202_v49 = vld [vmem:[%s13911_s9 + $0x48] sm:$0xff]   ;;  %v737_v3 = vrot.slane %v11495_v60, %v11403_v13  ;;  %v1517_v35 = vadd.f32 %v1516_v39, %v1515_v47  ;;  %v1524_v13 = vrot.slane %v1523_v14, 1 }
 0x278   :  { %v11619_v24 = vpop.f32.mrb[20].mxu0  ;;  %4390 = vrot.lane.b32.xlu0 %v9201_v42, %s9748_s0  ;;  %14138 = vst [vmem:[#allocation198_spill] sm:$0xff] %v11633_v37  ;;  %v11637_v25 = vpop.f32.mrb[21].mxu1  ;;  %v1505_v42 = vadd.f32 %v1504_v55, %v1503_v48  ;;  %v9203_v55 = vld [vmem:[%s13911_s9 + $0xc8] sm:$0xff]   ;;  %v1495_v21 = vadd.f32 %v1494_v15, %v1493_v51 }
 0x279   :  { %14134 = vst [vmem:[#allocation126_spill] sm:$0xff] %v11619_v24  ;;  %v11621_v57 = vpop.permute.xlu1 %3969  ;;  %v11627_v52 = vpop.f32.mrb[21].mxu0  ;;  %14139 = vst [vmem:[#allocation199_spill] sm:$0xff] %v11637_v25  ;;  %v1444_v24 = vmul.f32 0.125, %v1392_v6  ;;  %v1580_v25 = vmul.f32 0.125, %v1489_v17  ;;  %v11666_v47 = vadd.f32 %v11535_v54, %v737_v3  ;;  %v1525_v54 = vadd.f32 %v1524_v13, %v1523_v14  ;;  %v9206_v17 = vld [vmem:[%s13911_s9 + $0x50] sm:$0xff]  }
 0x27a   :  { %14135 = vst [vmem:[#allocation195_spill] sm:$0xff] %v11621_v57  ;;  %14136 = vst [vmem:[#allocation196_spill] sm:$0xff] %v11627_v52  ;;  %v11631_v12 = vpop.permute.xlu0 %4017  ;;  %v2190_v11 = vpop.f32.mrb[22].mxu0  ;;  %v1512_v57 = vrot.slane %v1511_v8, 1  ;;  %v1581_v6 = vmul.f32 0.125, %v1495_v21  ;;  %v9207_v21 = vld [vmem:[%s13911_s9 + $0xd0] sm:$0xff]  }
 0x27b   :  { %14137 = vst [vmem:[#allocation197_spill] sm:$0xff] %v11631_v12  ;;  %4376 = vrot.lane.b32.xlu1 %v9202_v49, %s9748_s0  ;;  %v2191_v12 = vpop.f32.mrb[23].mxu0  ;;  %v2231_v9 = vpop.f32.mrb[22].mxu1  ;;  %v741_v11 = vrot.slane %v11495_v60, %v11410_v30  ;;  %v1501_v49 = vadd.f32 %v1500_v38, %v1499_v36  ;;  %v1408_v60 = vadd.f32 %v1407_v63, %v1406_v0  ;;  %v1506_v30 = vrot.slane %v1505_v42, 1  ;;  %v9204_v36 = vld [vmem:[%s13911_s9 + $0x8] sm:$0xff]  }
 0x27c   :  { %4408 = vrot.lane.b32.xlu0 %v9203_v55, %s9748_s0  ;;  %v2232_v48 = vpop.f32.mrb[23].mxu1  ;;  %v1529_v12 = vadd.f32 %v1528_v34, %v1527_v1  ;;  %v11654_v9 = vadd.f32 %v11527_v59, %v729_v56  ;;  %v1513_v52 = vadd.f32 %v1512_v57, %v1511_v8  ;;  %v1404_v1 = vadd.f32 %v1403_v33, %v1402_v44  ;;  %v9205_v8 = vld [vmem:[%s13911_s9 + $0x88] sm:$0xff]  }
 0x27d   :  { %v11647_v22 = vpop.permute.xlu1 %4001  ;;  %v1398_v59 = vadd.f32 %v1397_v10, %v1396_v62  ;;  %v11669_v0 = vadd.f32 %v11543_v23, %v741_v11  ;;  %v1582_v51 = vmul.f32 0.125, %v1501_v49  ;;  %v1518_v57 = vrot.slane %v1517_v35, 1 }
 0x27e   :  { %14140 = vst [vmem:[#allocation200_spill] sm:$0xff] %v11647_v22  ;;  %v11656_v37 = vpop.permute.xlu0 %3987  ;;  %v11659_v22 = vadd.f32 %v11537_v20, %v733_v46  ;;  %v1530_v38 = vrot.slane %v1529_v12, 1  ;;  %v1411_v44 = vrot.slane %v11654_v9, 4  ;;  %v11681_v39 = vsub.f32 %v11541_v43, %v1444_v24 }
 0x27f   :  { %14141 = vst [vmem:[#allocation201_spill] sm:$0xff] %v11656_v37  ;;  %4360 = vrot.lane.b32.xlu1 %v9204_v36, %s9748_s0  ;;  %v1409_v23 = vrot.slane %v1408_v60, 1  ;;  %v1596_v56 = vadd.f32 1e-05, %v1580_v25  ;;  %v1507_v63 = vadd.f32 %v1506_v30, %v1505_v42  ;;  %v1584_v46 = vmul.f32 0.125, %v1513_v52 }
 0x280   :  { %4392 = vrot.lane.b32.xlu0 %v9205_v8, %s9748_s0  ;;  %v1417_v34 = vrot.slane %v11659_v22, 4  ;;  %v1446_v15 = vmul.f32 0.125, %v1404_v1  ;;  %v1445_v33 = vmul.f32 0.125, %v1398_v59  ;;  %v1423_v13 = vrot.slane %v11666_v47, 4 }
 0x281   :  { %v11671_v20 = vpop.permute.xlu1 %3971  ;;  %v1429_v24 = vrot.slane %v11669_v0, 4  ;;  %v1598_v30 = vadd.f32 1e-05, %v1582_v51  ;;  %v1519_v52 = vadd.f32 %v1518_v57, %v1517_v35  ;;  %v1531_v14 = vadd.f32 %v1530_v38, %v1529_v12  ;;  %v9208_v35 = vld [vmem:[%s13911_s9 + $0x10] sm:$0xff]  }
 0x282   :  { %14142 = vst [vmem:[#allocation202_spill] sm:$0xff] %v11671_v20  ;;  %v11678_v62 = vpop.permute.xlu0 %4019  ;;  %v1412_v25 = vadd.f32 %v1411_v44, %v11654_v9  ;;  %v1586_v10 = vmul.f32 0.125, %v1525_v54  ;;  %v1476_v3 = vmul.f32 %v11681_v39, %v11681_v39  ;;  %v1410_v11 = vadd.f32 %v1409_v23, %v1408_v60  ;;  %v9209_v51 = vld [vmem:[%s13911_s9 + $0x90] sm:$0xff]  }
 0x283   :  { %14143 = vst [vmem:[#allocation203_spill] sm:$0xff] %v11678_v62  ;;  %4378 = vrot.lane.b32.xlu1 %v9206_v17, %s9748_s0  ;;  %v1418_v55 = vadd.f32 %v1417_v34, %v11659_v22  ;;  %8958 = vrsqrt.f32 %v1596_v56  ;;  %v1597_v48 = vadd.f32 1e-05, %v1581_v6  ;;  %v1583_v49 = vmul.f32 0.125, %v1507_v63  ;;  %v9210_v6 = vld [vmem:[%s13911_s9 + $0x58] sm:$0xff]  }
 0x284   :  { %4410 = vrot.lane.b32.xlu0 %v9207_v21, %s9748_s0  ;;  %v1600_v36 = vadd.f32 1e-05, %v1584_v46  ;;  %v11707_v12 = vsub.f32 %v11555_v41, %v1446_v15  ;;  %v11710_v1 = vsub.f32 %v11567_v32, %v1445_v33  ;;  %v1424_v60 = vadd.f32 %v1423_v13, %v11666_v47  ;;  %v9211_v13 = vld [vmem:[%s13911_s9 + $0xd8] sm:$0xff]  }
 0x285   :  { %v11690_v43 = vpop.permute.xlu1 %4003  ;;  %v1430_v59 = vadd.f32 %v1429_v24, %v11669_v0  ;;  %8960 = vrsqrt.f32 %v1598_v30  ;;  %v1585_v57 = vmul.f32 0.125, %v1519_v52  ;;  %v1587_v38 = vmul.f32 0.125, %v1531_v14 }
 0x286   :  { %14144 = vst [vmem:[#allocation204_spill] sm:$0xff] %v11690_v43  ;;  %v11697_v42 = vpop.permute.xlu0 %3989  ;;  %v1413_v41 = vrot.slane %v1412_v25, 2  ;;  %v1602_v32 = vadd.f32 1e-05, %v1586_v10  ;;  %v1532_v54 = vrot.slane %v1476_v3, 4  ;;  %v1447_v23 = vmul.f32 0.125, %v1410_v11 }
 0x287   :  { %14145 = vst [vmem:[#allocation205_spill] sm:$0xff] %v11697_v42  ;;  %4362 = vrot.lane.b32.xlu1 %v9208_v35, %s9748_s0  ;;  %v1419_v34 = vrot.slane %v1418_v55, 2  ;;  %v1599_v56 = vadd.f32 1e-05, %v1583_v49  ;;  %8962 = vrsqrt.f32 %v1600_v36  ;;  %v1478_v63 = vmul.f32 %v11707_v12, %v11707_v12  ;;  %v9212_v49 = vld [vmem:[%s13911_s9 + $0x18] sm:$0xff]  }
 0x288   :  { %4394 = vrot.lane.b32.xlu0 %v9209_v51, %s9748_s0  ;;  %v1477_v46 = vmul.f32 %v11710_v1, %v11710_v1  ;;  %v1425_v17 = vrot.slane %v1424_v60, 2  ;;  %v1431_v15 = vrot.slane %v1430_v59, 2  ;;  %8964 = vrsqrt.f32 %v1597_v48 }
 0x289   :  { %v11714_v8 = vpop.permute.xlu1 %3973  ;;  %v1601_v24 = vadd.f32 1e-05, %v1585_v57  ;;  %v1603_v21 = vadd.f32 1e-05, %v1587_v38  ;;  %v1414_v30 = vadd.f32 %v1413_v41, %v1412_v25  ;;  %8966 = vrsqrt.f32 %v1602_v32  ;;  %v9214_v32 = vld [vmem:[%s13911_s9 + $0x60] sm:$0xff]  }
 0x28a   :  { %14146 = vst [vmem:[#allocation206_spill] sm:$0xff] %v11714_v8  ;;  %v11720_v44 = vpop.permute.xlu0 %4021  ;;  %v1533_v14 = vadd.f32 %v1532_v54, %v1476_v3  ;;  %v11739_v10 = vsub.f32 %v11588_v16, %v1447_v23  ;;  %v1420_v11 = vadd.f32 %v1419_v34, %v1418_v55  ;;  %8968 = vrsqrt.f32 %v1599_v56  ;;  %v9213_v3 = vld [vmem:[%s13911_s9 + $0x98] sm:$0xff]  }
 0x28b   :  { %14147 = vst [vmem:[#allocation207_spill] sm:$0xff] %v11720_v44  ;;  %4380 = vrot.lane.b32.xlu1 %v9210_v6, %s9748_s0  ;;  %v1544_v36 = vrot.slane %v1478_v63, 4  ;;  %v1538_v48 = vrot.slane %v1477_v46, 4  ;;  %v1426_v35 = vadd.f32 %v1425_v17, %v1424_v60  ;;  %v1432_v51 = vadd.f32 %v1431_v15, %v1430_v59  ;;  %v11759_v6 = vld [vmem:[#allocation15] sm:$0xff]  ;;  %v9215_v15 = vld [vmem:[%s13911_s9 + $0xe0] sm:$0xff]  }
 0x28c   :  { %4412 = vrot.lane.b32.xlu0 %v9211_v13, %s9748_s0  ;;  %8970 = vrsqrt.f32 %v1601_v24  ;;  %v1415_v55 = vrot.slane %v1414_v30, 1  ;;  %v1534_v38 = vrot.slane %v1533_v14, 2  ;;  %v1479_v41 = vmul.f32 %v11739_v10, %v11739_v10 }
 0x28d   :  { %v11730_v33 = vpop.permute.xlu1 %4005  ;;  %v8959_v16 = vpop.eup %8958  ;;  %8972 = vrsqrt.f32 %v1603_v21  ;;  %v1421_v60 = vrot.slane %v1420_v11, 1  ;;  %v1545_v54 = vadd.f32 %v1544_v36, %v1478_v63  ;;  %v1539_v23 = vadd.f32 %v1538_v48, %v1477_v46 }
 0x28e   :  { %14148 = vst [vmem:[#allocation208_spill] sm:$0xff] %v11730_v33  ;;  %v11736_v52 = vpop.permute.xlu0 %3991  ;;  %v1427_v34 = vrot.slane %v1426_v35, 1  ;;  %v1433_v56 = vrot.slane %v1432_v51, 1  ;;  %v1416_v24 = vadd.f32 %v1415_v55, %v1414_v30  ;;  %v11770_v36 = vmul.f32 %v8959_v16, %v11484_v40  ;;  %v9217_v40 = vld [vmem:[%s13911_s9 + $0xa0] sm:$0xff]  }
 0x28f   :  { %14149 = vst [vmem:[#allocation209_spill] sm:$0xff] %v11736_v52  ;;  %4364 = vrot.lane.b32.xlu1 %v9212_v49, %s9748_s0  ;;  %v8961_v59 = vpop.eup %8960  ;;  %v1535_v49 = vadd.f32 %v1534_v38, %v1533_v14  ;;  %v1422_v63 = vadd.f32 %v1421_v60, %v1420_v11  ;;  %v1546_v14 = vrot.slane %v1545_v54, 2  ;;  %v1540_v55 = vrot.slane %v1539_v23, 2 }
 0x290   :  { %4396 = vrot.lane.b32.xlu0 %v9213_v3, %s9748_s0  ;;  %v1550_v3 = vrot.slane %v1479_v41, 4  ;;  %v11773_v48 = vmul.f32 %v8961_v59, %v11493_v29  ;;  %v1428_v11 = vadd.f32 %v1427_v34, %v1426_v35  ;;  %v1434_v38 = vadd.f32 %v1433_v56, %v1432_v51 }
 0x291   :  { %v11745_v25 = vpop.permute.xlu1 %3975  ;;  %v8963_v13 = vpop.eup %8962  ;;  %v1448_v59 = vmul.f32 0.125, %v1416_v24  ;;  %v1536_v34 = vrot.slane %v1535_v49, 1  ;;  %v1541_v35 = vadd.f32 %v1540_v55, %v1539_v23 }
 0x292   :  { %14150 = vst [vmem:[#allocation210_spill] sm:$0xff] %v11745_v25  ;;  %v11751_v57 = vpop.permute.xlu0 %4023  ;;  %v8965_v46 = vpop.eup %8964  ;;  %v11788_v16 = vmul.f32 %v8963_v13, %v11505_v7  ;;  %v1551_v56 = vadd.f32 %v1550_v3, %v1479_v41  ;;  %v11800_v7 = vmul.f32 0.044715, %v11773_v48  ;;  %v9218_v41 = vld [vmem:[%s13911_s9 + $0x68] sm:$0xff]  }
 0x293   :  { %14151 = vst [vmem:[#allocation211_spill] sm:$0xff] %v11751_v57  ;;  %4382 = vrot.lane.b32.xlu1 %v9214_v32, %s9748_s0  ;;  %v8967_v30 = vpop.eup %8966  ;;  %v1449_v32 = vmul.f32 0.125, %v1422_v63  ;;  %v11803_v13 = vmul.f32 %v8965_v46, %v11502_v18  ;;  %v1547_v63 = vadd.f32 %v1546_v14, %v1545_v54  ;;  %v9219_v18 = vld [vmem:[%s13911_s9 + $0xe8] sm:$0xff]   ;;  %v1537_v14 = vadd.f32 %v1536_v34, %v1535_v49 }
 0x294   :  { %4414 = vrot.lane.b32.xlu0 %v9215_v15, %s9748_s0  ;;  %v9216_v15 = vld [vmem:[%s13911_s9 + $0x20] sm:$0xff]   ;;  %v8969_v29 = vpop.eup %8968  ;;  %v11806_v24 = vmul.f32 %v8967_v30, %v11525_v27  ;;  %v11822_v46 = vmul.f32 0.044715, %v11788_v16  ;;  %v11825_v30 = vsub.f32 %v11654_v9, %v1448_v59  ;;  %v1552_v55 = vrot.slane %v1551_v56, 2  ;;  %v9220_v49 = vld [vmem:[%s13911_s9 + $0x28] sm:$0xff]  }
 0x295   :  { %v11761_v17 = vpop.permute.xlu1 %4007  ;;  %v11819_v27 = vmul.f32 %v8969_v29, %v11522_v5 }
 0x296   :  { %14152 = vst [vmem:[#allocation212_spill] sm:$0xff] %v11761_v17  ;;  %v11767_v21 = vpop.permute.xlu0 %3993  ;;  %v1660_v17 = vmul.f32 0.044715, %v11770_v36  ;;  %v11839_v5 = vmul.f32 0.044715, %v11806_v24  ;;  %v1480_v59 = vmul.f32 %v11825_v30, %v11825_v30 }
 0x297   :  { %14153 = vst [vmem:[#allocation213_spill] sm:$0xff] %v11767_v21  ;;  %4366 = vrot.lane.b32.xlu1 %v9216_v15, %s9748_s0  ;;  %v1825_v15 = vrot.slane %v11759_v6, %v11353_v53  ;;  %v1451_v21 = vmul.f32 0.125, %v1434_v38 }
 0x298   :  { %4398 = vrot.lane.b32.xlu0 %v9217_v40, %s9748_s0  ;;  %v8971_v40 = vpop.eup %8970 }
 0x299   :  { %v11781_v60 = vpop.permute.xlu1 %3977  ;;  %v8973_v3 = vpop.eup %8972  ;;  %v11828_v54 = vadd.f32 %v11599_v4, %v1825_v15  ;;  %v11842_v29 = vmul.f32 %v8971_v40, %v11550_v19  ;;  %v1661_v4 = vmul.f32 0.044715, %v11803_v13 }
 0x29a   :  { %14154 = vst [vmem:[#allocation214_spill] sm:$0xff] %v11781_v60  ;;  %v11794_v51 = vpop.permute.xlu0 %4025  ;;  %v1833_v60 = vrot.slane %v11759_v6, %v11359_v28  ;;  %v11845_v9 = vmul.f32 %v8973_v3, %v11553_v31  ;;  %v9221_v31 = vld [vmem:[%s13911_s9 + $0xa8] sm:$0xff]   ;;  %v14160_v3 = vrot.slane %v11759_v6, %v11345_v61 }
 0x29b   :  { %14155 = vst [vmem:[#allocation215_spill] sm:$0xff] %v11794_v51  ;;  %4384 = vrot.lane.b32.xlu1 %v9218_v41, %s9748_s0  ;;  %v1450_v51 = vmul.f32 0.125, %v1428_v11  ;;  %v11833_v11 = vsub.f32 %v11659_v22, %v1449_v32  ;;  %v1548_v22 = vrot.slane %v1547_v63, 1  ;;  %v2404_v15 = vrot.slane %v11828_v54, 4 }
 0x29c   :  { %4416 = vrot.lane.b32.xlu0 %v9219_v18, %s9748_s0  ;;  %v11836_v38 = vadd.f32 %v11606_v26, %v1833_v60  ;;  %v1542_v26 = vrot.slane %v1541_v35, 1  ;;  %v11856_v60 = vsub.f32 %v11669_v0, %v1451_v21  ;;  %v1677_v34 = vmul.f32 %v1661_v4, %v11803_v13 }
 0x29d   :  { %v11812_v25 = vpop.permute.xlu1 %4009  ;;  %v11853_v32 = vsub.f32 %v11666_v47, %v1450_v51  ;;  %v1663_v47 = vmul.f32 0.044715, %v11819_v27  ;;  %v1588_v0 = vmul.f32 0.125, %v1537_v14  ;;  %v1553_v21 = vadd.f32 %v1552_v55, %v1551_v56  ;;  %v9222_v56 = vld [vmem:[%s13911_s9 + $0x70] sm:$0xff]  }
 0x29e   :  { %14156 = vst [vmem:[#allocation216_spill] sm:$0xff] %v11812_v25  ;;  %v11830_v23 = vpop.permute.xlu0 %3995  ;;  %v1481_v40 = vmul.f32 %v11833_v11, %v11833_v11  ;;  %v2416_v41 = vrot.slane %v11836_v38, 4  ;;  %v11878_v18 = vadd.f32 %v11592_v2, %v14160_v3  ;;  %v1549_v14 = vadd.f32 %v1548_v22, %v1547_v63 }
 0x29f   :  { %14157 = vst [vmem:[#allocation217_spill] sm:$0xff] %v11830_v23  ;;  %4368 = vrot.lane.b32.xlu1 %v9220_v49, %s9748_s0  ;;  %v1693_v49 = vmul.f32 %v1677_v34, %v11803_v13  ;;  %v1679_v4 = vmul.f32 %v1663_v47, %v11819_v27  ;;  %v1543_v55 = vadd.f32 %v1542_v26, %v1541_v35  ;;  %v1556_v34 = vrot.slane %v1480_v59, 4 }
 0x2a0   :  { %4400 = vrot.lane.b32.xlu0 %v9221_v31, %s9748_s0  ;;  %v1676_v31 = vmul.f32 %v1660_v17, %v11770_v36  ;;  %v1483_v2 = vmul.f32 %v11856_v60, %v11856_v60  ;;  %v9223_v17 = vld [vmem:[%s13911_s9 + $0xf0] sm:$0xff]   ;;  %v2405_v47 = vadd.f32 %v2404_v15, %v11828_v54  ;;  %v1604_v26 = vadd.f32 1e-05, %v1588_v0 }
 0x2a1   :  { %v11858_v19 = vpop.permute.xlu1 %3979  ;;  %v1709_v63 = vadd.f32 %v1693_v49, %v11803_v13  ;;  %v1695_v35 = vmul.f32 %v1679_v4, %v11819_v27  ;;  %v2398_v25 = vrot.slane %v11878_v18, 4  ;;  %v9224_v15 = vld [vmem:[%s13911_s9 + $0x30] sm:$0xff]   ;;  %v1589_v49 = vmul.f32 0.125, %v1543_v55 }
 0x2a2   :  { %14158 = vst [vmem:[#allocation218_spill] sm:$0xff] %v11858_v19  ;;  %v11869_v51 = vpop.permute.xlu0 %4027  ;;  %v1482_v19 = vmul.f32 %v11853_v32, %v11853_v32  ;;  %v1574_v0 = vrot.slane %v1483_v2, 4  ;;  %v1590_v55 = vmul.f32 0.125, %v1549_v14 }
 0x2a3   :  { %14159 = vst [vmem:[#allocation219_spill] sm:$0xff] %v11869_v51  ;;  %4386 = vrot.lane.b32.xlu1 %v9222_v56, %s9748_s0  ;;  %v1554_v56 = vrot.slane %v1553_v21, 1  ;;  %v1562_v51 = vrot.slane %v1481_v40, 4  ;;  %v1725_v23 = vmul.f32 0.7978846, %v1709_v63  ;;  %v1711_v57 = vadd.f32 %v1695_v35, %v11819_v27  ;;  %v9225_v63 = vld [vmem:[%s13911_s9 + $0xb0] sm:$0xff]  }
 0x2a4   :  { %4418 = vrot.lane.b32.xlu0 %v9223_v17, %s9748_s0  ;;  %v1692_v17 = vmul.f32 %v1676_v31, %v11770_v36  ;;  %v1568_v4 = vrot.slane %v1482_v19, 4  ;;  %v1557_v31 = vadd.f32 %v1556_v34, %v1480_v59  ;;  %v2406_v35 = vrot.slane %v2405_v47, 2 }
 0x2a5   :  { %v11891_v3 = vpop.permute.xlu1 %4011  ;;  %8974 = vtanh.f32 %v1725_v23  ;;  %v1727_v33 = vmul.f32 0.7978846, %v1711_v57  ;;  %v1563_v44 = vadd.f32 %v1562_v51, %v1481_v40  ;;  %v1605_v23 = vadd.f32 1e-05, %v1589_v49  ;;  %v11945_v49 = vpop.f32.mrb[24].mxu0 }
 0x2a6   :  { %14161 = vst [vmem:[#allocation220_spill] sm:$0xff] %v11891_v3  ;;  %v11900_v22 = vpop.permute.xlu0 %4045  ;;  %v2417_v3 = vadd.f32 %v2416_v41, %v11836_v38  ;;  %8976 = vrsqrt.f32 %v1604_v26  ;;  %v11926_v57 = vadd.f32 %v1568_v4, %v1482_v19  ;;  %v1575_v59 = vadd.f32 %v1574_v0, %v1483_v2  ;;  %v11947_v4 = vpop.f32.mrb[24].mxu1 }
 0x2a7   :  { %14162 = vst [vmem:[#allocation221_spill] sm:$0xff] %v11900_v22  ;;  %4370 = vrot.lane.b32.xlu1 %v9224_v15, %s9748_s0  ;;  %v1678_v22 = vmul.f32 %v11800_v7, %v11773_v48  ;;  %v1555_v15 = vadd.f32 %v1554_v56, %v1553_v21  ;;  %v2399_v7 = vadd.f32 %v2398_v25, %v11878_v18  ;;  %8978 = vtanh.f32 %v1727_v33  ;;  %v9227_v33 = vld [vmem:[%s13911_s9 + $0xf8] sm:$0xff]  }
 0x2a8   :  { %4402 = vrot.lane.b32.xlu0 %v9225_v63, %s9748_s0  ;;  %v2418_v8 = vrot.slane %v2417_v3, 2  ;;  %v9226_v63 = vld [vmem:[%s13911_s9 + $0x78] sm:$0xff]   ;;  %v1558_v25 = vrot.slane %v1557_v31, 2  ;;  %v2407_v51 = vadd.f32 %v2406_v35, %v2405_v47  ;;  %v14166_v40 = vrot.slane %v11759_v6, %v11351_v50  ;;  %14168 = vst [vmem:[#allocation226_spill] sm:$0xff] %v11947_v4 }
 0x2a9   :  { %v11912_v41 = vpop.permute.xlu1 %4029  ;;  %v1694_v14 = vmul.f32 %v1678_v22, %v11773_v48  ;;  %v1591_v22 = vmul.f32 0.125, %v1555_v15  ;;  %v11949_v47 = vadd.f32 1e-05, %v1590_v55  ;;  %v1564_v0 = vrot.slane %v1563_v44, 2  ;;  %v9229_v55 = vld [vmem:[%s13911_s9 + $0xb8] sm:$0xff]  }
 0x2aa   :  { %14163 = vst [vmem:[#allocation222_spill] sm:$0xff] %v11912_v41  ;;  %v11918_v52 = vpop.permute.xlu0 %4077  ;;  %v1708_v41 = vadd.f32 %v1692_v17, %v11770_v36  ;;  %v11939_v34 = vadd.f32 %v11603_v58, %v14166_v40  ;;  %v2419_v26 = vadd.f32 %v2418_v8, %v2417_v3  ;;  %v1665_v17 = vmul.f32 0.044715, %v11842_v29  ;;  %v9228_v58 = vld [vmem:[%s13911_s9 + $0x38] sm:$0xff]   ;;  %v11955_v8 = vpop.f32.mrb[25].mxu0 }
 0x2ab   :  { %14164 = vst [vmem:[#allocation223_spill] sm:$0xff] %v11918_v52  ;;  %4388 = vrot.lane.b32.xlu1 %v9226_v63, %s9748_s0  ;;  %v1710_v56 = vadd.f32 %v1694_v14, %v11773_v48  ;;  %v2400_v35 = vrot.slane %v2399_v7, 2  ;;  %v2408_v40 = vrot.slane %v2407_v51, 1 }
 0x2ac   :  { %4420 = vrot.lane.b32.xlu0 %v9227_v33, %s9748_s0  ;;  %v1724_v19 = vmul.f32 0.7978846, %v1708_v41  ;;  %v1576_v41 = vrot.slane %v1575_v59, 2  ;;  %v1681_v63 = vmul.f32 %v1665_v17, %v11842_v29  ;;  %v2272_v33 = vpop.f32.mrb[26].mxu0  ;;  %v1607_v17 = vadd.f32 1e-05, %v1591_v22 }
 0x2ad   :  { %v11929_v21 = vpop.permute.xlu1 %4061  ;;  %v1726_v15 = vmul.f32 0.7978846, %v1710_v56  ;;  %v11969_v56 = vpop.f32.mrb[25].mxu1  ;;  %v11974_v33 = vadd.f32 %v1564_v0, %v1563_v44  ;;  %v9231_v0 = vld [vmem:[%s13911_s9 + $0x1c0] sm:$0xff]  }
 0x2ae   :  { %14165 = vst [vmem:[#allocation224_spill] sm:$0xff] %v11929_v21  ;;  %v11941_v2 = vpop.permute.xlu0 %4047  ;;  %8980 = vtanh.f32 %v1724_v19  ;;  %v2410_v19 = vrot.slane %v11939_v34, 4  ;;  %v11971_v21 = vadd.f32 %v1558_v25, %v1557_v31  ;;  %v2273_v52 = vpop.f32.mrb[27].mxu0  ;;  %v1577_v22 = vadd.f32 %v1576_v41, %v1575_v59 }
 0x2af   :  { %14167 = vst [vmem:[#allocation225_spill] sm:$0xff] %v11941_v2  ;;  %4372 = vrot.lane.b32.xlu1 %v9228_v58, %s9748_s0  ;;  %8982 = vrsqrt.f32 %v1605_v23  ;;  %v1667_v58 = vmul.f32 0.044715, %v11845_v9  ;;  %v1697_v2 = vmul.f32 %v1681_v63, %v11842_v29  ;;  %v2313_v43 = vpop.f32.mrb[26].mxu1  ;;  %v11976_v23 = vadd.f32 %v2400_v35, %v2399_v7 }
 0x2b0   :  { %4404 = vrot.lane.b32.xlu0 %v9229_v55, %s9748_s0  ;;  %v8975_v55 = vpop.eup %8974  ;;  %8984 = vtanh.f32 %v1726_v15  ;;  %v2314_v31 = vpop.f32.mrb[27].mxu1  ;;  %v1645_v43 = vmul.f32 0.5, %v11803_v13  ;;  %v2409_v15 = vadd.f32 %v2408_v40, %v2407_v51  ;;  %v1647_v63 = vmul.f32 0.5, %v11819_v27 }
 0x2b1   :  { %v11959_v14 = vpop.permute.xlu1 %4031  ;;  %v1683_v42 = vmul.f32 %v1667_v58, %v11845_v9  ;;  %v11983_v25 = vpop.eup %8976  ;;  %v1757_v52 = vadd.f32 1.0, %v8975_v55  ;;  %v1713_v44 = vadd.f32 %v1697_v2, %v11842_v29  ;;  %8986 = vrsqrt.f32 %v1607_v17 }
 0x2b2   :  { %14169 = vst [vmem:[#allocation227_spill] sm:$0xff] %v11959_v14  ;;  %v11967_v3 = vpop.permute.xlu0 %4079  ;;  %v2420_v14 = vrot.slane %v2419_v26, 1  ;;  %v8979_v35 = vpop.eup %8978  ;;  %v1841_v27 = vrot.slane %v11759_v6, %v11405_v45 }
 0x2b3   :  { %14170 = vst [vmem:[#allocation228_spill] sm:$0xff] %v11967_v3  ;;  %v9230_v3 = vld [vmem:[%s13911_s9 + $0x140] sm:$0xff]   ;;  %v1699_v59 = vmul.f32 %v1683_v42, %v11845_v9  ;;  %v1773_v2 = vmul.f32 %v1757_v52, %v1645_v43  ;;  %v1759_v58 = vadd.f32 1.0, %v8979_v35  ;;  %v1729_v55 = vmul.f32 0.7978846, %v1713_v44  ;;  %v11998_v31 = vpop.f32.mrb[28].mxu0 }
 0x2b4   :  { %4438 = vrot.lane.b32.xlu1 %v9230_v3, %s9748_s0  ;;  %4470 = vrot.lane.b32.xlu0 %v9231_v0, %s9748_s0  ;;  %v2411_v3 = vadd.f32 %v2410_v19, %v11939_v34  ;;  %v2421_v41 = vadd.f32 %v2420_v14, %v2419_v26  ;;  %14173 = vst [vmem:[#allocation231_spill] sm:$0xff] %v11998_v31  ;;  %v1566_v0 = vrot.slane %v11974_v33, 1  ;;  %v12009_v42 = vld [vmem:[%s13911_s9 + $0x100] sm:$0xff]   ;;  %v12013_v26 = vpop.f32.mrb[29].mxu0  ;;  %v1578_v14 = vrot.slane %v1577_v22, 1 }
 0x2b5   :  { %v11987_v7 = vpop.permute.xlu1 %4063  ;;  %v1715_v51 = vadd.f32 %v1699_v59, %v11845_v9  ;;  %14174 = vst [vmem:[#allocation232_spill] sm:$0xff] %v12013_v26  ;;  %v2976_v40 = vpack.c.bf16 %v1773_v2, %v1773_v2  ;;  %v1775_v19 = vmul.f32 %v1759_v58, %v1647_v63  ;;  %8988 = vtanh.f32 %v1729_v55  ;;  %v12020_v43 = vld [vmem:[%s13911_s9 + $0x180] sm:$0xff]   ;;  %v2354_v52 = vpop.f32.mrb[30].mxu0 }
 0x2b6   :  { %14171 = vst [vmem:[#allocation229_spill] sm:$0xff] %v11987_v7  ;;  %v11996_v13 = vpop.permute.xlu0 %4049  ;;  %v12000_v7 = vpop.f32.mrb[28].mxu1  ;;  %v2402_v35 = vrot.slane %v11976_v23, 1  ;;  %v2495_v59 = vmul.f32 0.125, %v2409_v15  ;;  %v2497_v58 = vmul.f32 0.125, %v2421_v41  ;;  %v1560_v52 = vrot.slane %v11971_v21, 1 }
 0x2b7   :  { %14172 = vst [vmem:[#allocation230_spill] sm:$0xff] %v11996_v13  ;;  %v2412_v13 = vrot.slane %v2411_v3, 2  ;;  %v1731_v20 = vmul.f32 0.7978846, %v1715_v51  ;;  %v12027_v63 = vpop.f32.mrb[29].mxu1  ;;  %3405 = vmatprep.mubr.bf16.mxu0 %v2976_v40  ;;  %v2978_v55 = vpack.c.bf16 %v1775_v19, %v1775_v19  ;;  %v2355_v37 = vpop.f32.mrb[31].mxu0 }
 0x2b8   :  { %4422 = vrot.lane.b32.xlu1 %v12009_v42, %s9748_s0  ;;  %4454 = vrot.lane.b32.xlu0 %v12020_v43, %s9748_s0  ;;  %v8981_v44 = vpop.eup %8980  ;;  %14177 = vst [vmem:[#allocation235_spill] sm:$0xff] %v12027_v63  ;;  %v2395_v31 = vpop.f32.mrb[30].mxu1  ;;  %v14178_v15 = vrot.slane %v11926_v57, 2  ;;  %v14179_v51 = vld [vmem:[#allocation196_spill] sm:$0xff]  ;;  %v9234_v41 = vld [vmem:[%s13911_s9 + $0x148] sm:$0xff]   ;;  %v1646_v63 = vmul.f32 0.5, %v11773_v48  ;;  %v12066_v48 = vadd.f32 %v1560_v52, %v11971_v21 }
 0x2b9   :  { %v12015_v17 = vpop.permute.xlu1 %4033  ;;  %v1756_v62 = vadd.f32 1.0, %v8981_v44  ;;  %v8983_v4 = vpop.eup %8982  ;;  %8990 = vtanh.f32 %v1731_v20  ;;  %v1579_v31 = vadd.f32 %v1578_v14, %v1577_v22  ;;  %3445 = vmatprep.mubr.bf16.mxu1 %v2978_v55  ;;  %v14180_v19 = vld [vmem:[#allocation176_spill] sm:$0xff]  ;;  %v9236_v14 = vld [vmem:[%s13911_s9 + $0x108] sm:$0xff]  }
 0x2ba   :  { %14175 = vst [vmem:[#allocation233_spill] sm:$0xff] %v12015_v17  ;;  %v12025_v2 = vpop.permute.xlu0 %4081  ;;  %v1644_v17 = vmul.f32 0.5, %v11770_v36  ;;  %v12034_v26 = vadd.f32 %v14178_v15, %v11926_v57  ;;  %v2396_v37 = vpop.f32.mrb[31].mxu1  ;;  %v1567_v36 = vadd.f32 %v1566_v0, %v11974_v33  ;;  %v1849_v57 = vrot.slane %v11759_v6, %v14180_v19 }
 0x2bb   :  { %14176 = vst [vmem:[#allocation234_spill] sm:$0xff] %v12025_v2  ;;  %v12037_v2 = vadd.f32 %v14179_v51, %v1841_v27  ;;  %v8985_v20 = vpop.eup %8984  ;;  %v2403_v27 = vadd.f32 %v2402_v35, %v11976_v23  ;;  %v12050_v15 = vsub.f32 %v11828_v54, %v2495_v59  ;;  %v2413_v51 = vadd.f32 %v2412_v13, %v2411_v3  ;;  %v14183_v23 = vld [vmem:[#allocation172_spill] sm:$0xff]  ;;  %v14184_v59 = vld [vmem:[#allocation199_spill] sm:$0xff] }
 0x2bc   :  { %4440 = vrot.lane.b32.xlu1 %v9234_v41, %s9748_s0  ;;  %v1772_v40 = vmul.f32 %v1756_v62, %v1644_v17  ;;  %v9235_v62 = vld [vmem:[%s13911_s9 + $0x1c8] sm:$0xff]   ;;  %v12060_v33 = vsub.f32 %v11836_v38, %v2497_v58  ;;  %v1758_v0 = vadd.f32 1.0, %v8985_v20  ;;  %v1837_v54 = vrot.slane %v11759_v6, %v14183_v23  ;;  %v8987_v21 = vpop.eup %8986 }
 0x2bd   :  { %v12046_v44 = vpop.permute.xlu1 %4065  ;;  %4472 = vrot.lane.b32.xlu0 %v9235_v62, %s9748_s0  ;;  %8992 = vrsqrt.f32 %v11949_v47  ;;  %v2428_v13 = vrot.slane %v12037_v2, 4  ;;  %v1593_v38 = vmul.f32 0.125, %v1567_v36  ;;  %v1595_v17 = vmul.f32 0.125, %v1579_v31 }
 0x2be   :  { %14181 = vst [vmem:[#allocation196_spill] sm:$0xff] %v12046_v44  ;;  %v12053_v37 = vpop.permute.xlu0 %4051  ;;  %v2975_v22 = vpack.c.bf16 %v1772_v40, %v1772_v40  ;;  %v1774_v35 = vmul.f32 %v1758_v0, %v1646_v63  ;;  %v12075_v58 = vadd.f32 %v14184_v59, %v1849_v57  ;;  %v2494_v55 = vmul.f32 0.125, %v2403_v27  ;;  %v9237_v63 = vld [vmem:[%s13911_s9 + $0x188] sm:$0xff]  }
 0x2bf   :  { %14182 = vst [vmem:[#allocation236_spill] sm:$0xff] %v12053_v37  ;;  %v2527_v52 = vmul.f32 %v12050_v15, %v12050_v15  ;;  %v2414_v40 = vrot.slane %v2413_v51, 1  ;;  %v1680_v20 = vmul.f32 %v11822_v46, %v11788_v16  ;;  %v8989_v31 = vpop.eup %8988  ;;  %v12091_v57 = vmul.f32 %v8983_v4, %v11710_v1  ;;  %v9238_v1 = vld [vmem:[%s13911_s9 + $0x150] sm:$0xff]  }
 0x2c0   :  { %4424 = vrot.lane.b32.xlu1 %v9236_v14, %s9748_s0  ;;  %3406 = vmatmul.mubr.bf16.vlgmr.msra.gmra.mrb[32].mxu0 %v2975_v22  ;;  %v2529_v27 = vmul.f32 %v12060_v33, %v12060_v33  ;;  %v2977_v22 = vpack.c.bf16 %v1774_v35, %v1774_v35  ;;  %v1649_v46 = vmul.f32 0.5, %v11842_v29  ;;  %v1761_v59 = vadd.f32 1.0, %v8989_v31 }
 0x2c1   :  { %v12077_v47 = vpop.permute.xlu1 %4035  ;;  %8223 = vmatpush3.bf16.msra.mxu0 %v12009_v42  ;;  %4456 = vrot.lane.b32.xlu0 %v9237_v63, %s9748_s0  ;;  %v14187_v42 = vld [vmem:[#allocation126_spill] sm:$0xff]  ;;  %v2429_v3 = vadd.f32 %v2428_v13, %v12037_v2  ;;  %v1609_v4 = vadd.f32 1e-05, %v1593_v38  ;;  %v2548_v13 = vrot.slane %v2527_v52, 4  ;;  %v2415_v31 = vadd.f32 %v2414_v40, %v2413_v51 }
 0x2c2   :  { %14185 = vst [vmem:[#allocation199_spill] sm:$0xff] %v12077_v47  ;;  %v12084_v36 = vpop.permute.xlu0 %4083  ;;  %8224 = vmatprep.subr.bf16.mxu0 %v9234_v41  ;;  %v12096_v0 = vadd.f32 %v14187_v42, %v1837_v54  ;;  %v1696_v47 = vmul.f32 %v1680_v20, %v11788_v16  ;;  %3446 = vmatmul.mubr.bf16.vlgmr.msra.gmra.mrb[32].mxu1 %v2977_v22  ;;  %v2440_v41 = vrot.slane %v12075_v58, 4  ;;  %v2560_v38 = vrot.slane %v2529_v27, 4 }
 0x2c3   :  { %14186 = vst [vmem:[#allocation237_spill] sm:$0xff] %v12084_v36  ;;  %v1611_v36 = vadd.f32 1e-05, %v1595_v17  ;;  %v1682_v54 = vmul.f32 %v11839_v5, %v11806_v24  ;;  %v8991_v35 = vpop.eup %8990  ;;  %8245 = vmatpush3.bf16.msra.mxu1 %v12020_v43  ;;  %v1777_v20 = vmul.f32 %v1761_v59, %v1649_v46  ;;  %v1651_v17 = vmul.f32 0.5, %v11845_v9  ;;  %v9239_v43 = vld [vmem:[%s13911_s9 + $0x1d0] sm:$0xff]  }
 0x2c4   :  { %4442 = vrot.lane.b32.xlu1 %v9238_v1, %s9748_s0  ;;  %v1712_v42 = vadd.f32 %v1696_v47, %v11788_v16  ;;  %8246 = vmatprep.subr.bf16.mxu1 %v9235_v62  ;;  %v1763_v22 = vadd.f32 1.0, %v8991_v35  ;;  %v2422_v5 = vrot.slane %v12096_v0, 4  ;;  %v2430_v37 = vrot.slane %v2429_v3, 2  ;;  %v9240_v62 = vld [vmem:[%s13911_s9 + $0x110] sm:$0xff]  }
 0x2c5   :  { %v12108_v29 = vpop.permute.xlu1 %4067  ;;  %8225 = vmatpush3.bf16.msra.mxu0 %v9236_v14  ;;  %v1698_v51 = vmul.f32 %v1682_v54, %v11806_v24  ;;  %4474 = vrot.lane.b32.xlu0 %v9239_v43, %s9748_s0  ;;  %8994 = vrsqrt.f32 %v1609_v4  ;;  %v12126_v9 = vsub.f32 %v11878_v18, %v2494_v55  ;;  %v2441_v47 = vadd.f32 %v2440_v41, %v12075_v58  ;;  %v9241_v55 = vld [vmem:[%s13911_s9 + $0x158] sm:$0xff]  }
 0x2c6   :  { %14188 = vst [vmem:[#allocation126_spill] sm:$0xff] %v12108_v29  ;;  %v12112_v44 = vpop.permute.xlu0 %4053  ;;  %8226 = vmatprep.subr.bf16.mxu0 %v9238_v1  ;;  %v2980_v29 = vpack.c.bf16 %v1777_v20, %v1777_v20  ;;  %v1728_v23 = vmul.f32 0.7978846, %v1712_v42  ;;  %v1779_v14 = vmul.f32 %v1763_v22, %v1651_v17  ;;  %v2549_v59 = vadd.f32 %v2548_v13, %v2527_v52 }
 0x2c7   :  { %14189 = vst [vmem:[#allocation238_spill] sm:$0xff] %v12112_v44  ;;  %14190 = vst [vmem:[#allocation239_spill] sm:$0xff] %v12126_v9  ;;  %v8993_v46 = vpop.eup %8992  ;;  %v2496_v1 = vmul.f32 0.125, %v2415_v31  ;;  %8247 = vmatpush3.bf16.msra.mxu1 %v9237_v63  ;;  %v1714_v54 = vadd.f32 %v1698_v51, %v11806_v24  ;;  %v12135_v4 = vmul.f32 %v8987_v21, %v11739_v10  ;;  %v1669_v13 = vmul.f32 0.044715, %v12091_v57  ;;  %v9242_v10 = vld [vmem:[%s13911_s9 + $0x190] sm:$0xff]  }
 0x2c8   :  { %4426 = vrot.lane.b32.xlu1 %v9240_v62, %s9748_s0  ;;  %8996 = vtanh.f32 %v1728_v23  ;;  %v2561_v18 = vadd.f32 %v2560_v38, %v2529_v27  ;;  %8248 = vmatprep.subr.bf16.mxu1 %v9239_v43  ;;  %v2982_v52 = vpack.c.bf16 %v1779_v14, %v1779_v14  ;;  %v2423_v63 = vadd.f32 %v2422_v5, %v12096_v0  ;;  %v9244_v5 = vld [vmem:[%s13911_s9 + $0x1d8] sm:$0xff]   ;;  %v9245_v51 = vld [vmem:[%s13911_s9 + $0x160] sm:$0xff]  }
 0x2c9   :  { %v12129_v40 = vpop.permute.xlu1 %4037  ;;  %8227 = vmatpush3.bf16.msra.mxu0 %v9240_v62  ;;  %8998 = vrsqrt.f32 %v1611_v36  ;;  %3485 = vmatprep.mubr.bf16.mxu0 %v2980_v29  ;;  %v2431_v23 = vadd.f32 %v2430_v37, %v2429_v3  ;;  %v1730_v41 = vmul.f32 0.7978846, %v1714_v54  ;;  %v14193_v21 = vrot.slane %v12034_v26, 1  ;;  %v14194_v29 = vld [vmem:[#allocation174_spill] sm:$0xff] }
 0x2ca   :  { %14191 = vst [vmem:[#allocation240_spill] sm:$0xff] %v12129_v40  ;;  %v12132_v35 = vpop.permute.xlu0 %4085  ;;  %8228 = vmatprep.subr.bf16.mxu0 %v9241_v55  ;;  %4458 = vrot.lane.b32.xlu0 %v9242_v10, %s9748_s0  ;;  %v2526_v27 = vmul.f32 %v12126_v9, %v12126_v9  ;;  %v1845_v37 = vrot.slane %v11759_v6, %v14194_v29  ;;  %v2442_v3 = vrot.slane %v2441_v47, 2  ;;  %v2550_v20 = vrot.slane %v2549_v59, 2 }
 0x2cb   :  { %14192 = vst [vmem:[#allocation241_spill] sm:$0xff] %v12132_v35  ;;  %v1573_v36 = vadd.f32 %v14193_v21, %v12034_v26  ;;  %3525 = vmatprep.mubr.bf16.mxu1 %v2982_v52  ;;  %v12157_v42 = vsub.f32 %v11939_v34, %v2496_v1  ;;  %8249 = vmatpush3.bf16.msra.mxu1 %v9242_v10  ;;  %v9243_v26 = vld [vmem:[%s13911_s9 + $0x118] sm:$0xff]   ;;  %9000 = vtanh.f32 %v1730_v41  ;;  %v2562_v34 = vrot.slane %v2561_v18, 2 }
 0x2cc   :  { %4444 = vrot.lane.b32.xlu1 %v9241_v55, %s9748_s0  ;;  %v1685_v38 = vmul.f32 %v1669_v13, %v12091_v57  ;;  %v12167_v6 = vmul.f32 %v11983_v25, %v11681_v39  ;;  %v12170_v22 = vmul.f32 %v8993_v46, %v11707_v12  ;;  %8250 = vmatprep.subr.bf16.mxu1 %v9244_v5  ;;  %v1671_v43 = vmul.f32 0.044715, %v12135_v4  ;;  %v14198_v46 = vld [vmem:[#allocation198_spill] sm:$0xff]  ;;  %v9246_v10 = vld [vmem:[%s13911_s9 + $0x198] sm:$0xff]  }
 0x2cd   :  { %v12153_v31 = vpop.permute.xlu1 %4069  ;;  %14196 = vst [vmem:[#allocation243_spill] sm:$0xff] %v12157_v42  ;;  %8229 = vmatpush3.bf16.msra.mxu0 %v9243_v26  ;;  %v1592_v62 = vmul.f32 0.125, %v12066_v48  ;;  %v2424_v39 = vrot.slane %v2423_v63, 2  ;;  %v2432_v25 = vrot.slane %v2431_v23, 1  ;;  %v2542_v14 = vrot.slane %v2526_v27, 4 }
 0x2ce   :  { %14195 = vst [vmem:[#allocation242_spill] sm:$0xff] %v12153_v31  ;;  %v12163_v17 = vpop.permute.xlu0 %4055  ;;  %8230 = vmatprep.subr.bf16.mxu0 %v9245_v51  ;;  %v1701_v12 = vmul.f32 %v1685_v38, %v12091_v57  ;;  %4476 = vrot.lane.b32.xlu0 %v9244_v5, %s9748_s0  ;;  %v12183_v1 = vadd.f32 %v14198_v46, %v1845_v37  ;;  %v1594_v41 = vmul.f32 0.125, %v1573_v36  ;;  %v12202_v36 = vmul.f32 0.044715, %v12170_v22  ;;  %v12210_v38 = vld [vmem:[%s13911_s9 + $0x168] sm:$0xff]  }
 0x2cf   :  { %14197 = vst [vmem:[#allocation244_spill] sm:$0xff] %v12163_v17  ;;  %v2443_v54 = vadd.f32 %v2442_v3, %v2441_v47  ;;  %v1687_v55 = vmul.f32 %v1671_v43, %v12135_v4  ;;  %v2551_v13 = vadd.f32 %v2550_v20, %v2549_v59  ;;  %v2528_v48 = vmul.f32 %v12157_v42, %v12157_v42  ;;  %v9247_v47 = vld [vmem:[%s13911_s9 + $0x120] sm:$0xff]   ;;  %v8995_v3 = vpop.eup %8994 }
 0x2d0   :  { %4428 = vrot.lane.b32.xlu1 %v9243_v26, %s9748_s0  ;;  %8251 = vmatpush3.bf16.msra.mxu1 %v9246_v10  ;;  %v1717_v21 = vadd.f32 %v1701_v12, %v12091_v57  ;;  %v1668_v59 = vmul.f32 0.044715, %v12167_v6  ;;  %v2563_v20 = vadd.f32 %v2562_v34, %v2561_v18  ;;  %v9248_v26 = vld [vmem:[%s13911_s9 + $0x1e0] sm:$0xff]   ;;  %v1608_v12 = vadd.f32 1e-05, %v1592_v62 }
 0x2d1   :  { %v12186_v52 = vpop.permute.xlu1 %4039  ;;  %8231 = vmatpush3.bf16.msra.mxu0 %v9247_v47  ;;  %8252 = vmatprep.subr.bf16.mxu1 %v9248_v26  ;;  %v1703_v5 = vmul.f32 %v1687_v55, %v12135_v4  ;;  %v2425_v46 = vadd.f32 %v2424_v39, %v2423_v63  ;;  %v12215_v34 = vadd.f32 %v2542_v14, %v2526_v27  ;;  %v2434_v31 = vrot.slane %v12183_v1, 4  ;;  %v9250_v62 = vld [vmem:[%s13911_s9 + $0x1a0] sm:$0xff]   ;;  %v12231_v27 = vld [vmem:[%s13911_s9 + $0x128] sm:$0xff]   ;;  %v12245_v14 = vld [vmem:[%s13911_s9 + $0x170] sm:$0xff]  }
 0x2d2   :  { %14199 = vst [vmem:[#allocation198_spill] sm:$0xff] %v12186_v52  ;;  %v12198_v37 = vpop.permute.xlu0 %4087  ;;  %8232 = vmatprep.subr.bf16.mxu0 %v12210_v38  ;;  %v8997_v43 = vpop.eup %8996  ;;  %v2433_v52 = vadd.f32 %v2432_v25, %v2431_v23  ;;  %4460 = vrot.lane.b32.xlu0 %v9246_v10, %s9748_s0  ;;  %v2444_v17 = vrot.slane %v2443_v54, 1  ;;  %v12223_v55 = vmul.f32 %v8995_v3, %v11833_v11  ;;  %v2552_v63 = vrot.slane %v2551_v13, 1  ;;  %v12239_v25 = vld [vmem:[%s13911_s9 + $0x1e8] sm:$0xff]  }
 0x2d3   :  { %14200 = vst [vmem:[#allocation245_spill] sm:$0xff] %v12198_v37  ;;  %v1733_v37 = vmul.f32 0.7978846, %v1717_v21  ;;  %v8999_v18 = vpop.eup %8998  ;;  %v1719_v40 = vadd.f32 %v1703_v5, %v12135_v4  ;;  %v2554_v23 = vrot.slane %v2528_v48, 4  ;;  %v2564_v11 = vrot.slane %v2563_v20, 1 }
 0x2d4   :  { %4446 = vrot.lane.b32.xlu1 %v9245_v51, %s9748_s0  ;;  %8253 = vmatpush3.bf16.msra.mxu1 %v9250_v62  ;;  %v1610_v51 = vadd.f32 1e-05, %v1594_v41  ;;  %v1760_v10 = vadd.f32 1.0, %v8997_v43  ;;  %v12249_v41 = vmul.f32 %v8999_v18, %v11856_v60  ;;  %v2426_v3 = vrot.slane %v2425_v46, 1  ;;  %v12261_v60 = vld [vmem:[%s13911_s9 + $0x1a8] sm:$0xff]  }
 0x2d5   :  { %v12219_v35 = vpop.permute.xlu1 %4071  ;;  %8233 = vmatpush3.bf16.msra.mxu0 %v12231_v27  ;;  %9002 = vtanh.f32 %v1733_v37  ;;  %8254 = vmatprep.subr.bf16.mxu1 %v12239_v25  ;;  %v1735_v21 = vmul.f32 0.7978846, %v1719_v40  ;;  %v9001_v37 = vpop.eup %9000  ;;  %v2499_v5 = vmul.f32 0.125, %v2433_v52  ;;  %v2445_v44 = vadd.f32 %v2444_v17, %v2443_v54 }
 0x2d6   :  { %14201 = vst [vmem:[#allocation246_spill] sm:$0xff] %v12219_v35  ;;  %v12234_v39 = vpop.permute.xlu0 %4057  ;;  %8234 = vmatprep.subr.bf16.mxu0 %v12245_v14  ;;  %9004 = vrsqrt.f32 %v1608_v12  ;;  %4478 = vrot.lane.b32.xlu0 %v9248_v26, %s9748_s0  ;;  %v2544_v35 = vrot.slane %v12215_v34, 2  ;;  %v1648_v42 = vmul.f32 0.5, %v11788_v16  ;;  %v2553_v40 = vadd.f32 %v2552_v63, %v2551_v13  ;;  %v12277_v13 = vld [vmem:[%s13911_s9 + $0x1f0] sm:$0xff]  }
 0x2d7   :  { %14202 = vst [vmem:[#allocation247_spill] sm:$0xff] %v12234_v39  ;;  %v2435_v39 = vadd.f32 %v2434_v31, %v12183_v1  ;;  %v2555_v43 = vadd.f32 %v2554_v23, %v2528_v48  ;;  %v12267_v31 = vld [vmem:[%s13911_s9 + $0x130] sm:$0xff]   ;;  %v1684_v16 = vmul.f32 %v1668_v59, %v12167_v6  ;;  %v1673_v17 = vmul.f32 0.044715, %v12223_v55  ;;  %v12283_v48 = vld [vmem:[%s13911_s9 + $0x178] sm:$0xff]  }
 0x2d8   :  { %4430 = vrot.lane.b32.xlu1 %v9247_v47, %s9748_s0  ;;  %8255 = vmatpush3.bf16.msra.mxu1 %v12261_v60  ;;  %v2565_v52 = vadd.f32 %v2564_v11, %v2563_v20  ;;  %v1776_v47 = vmul.f32 %v1760_v10, %v1648_v42  ;;  %v1762_v59 = vadd.f32 1.0, %v9001_v37  ;;  %9006 = vtanh.f32 %v1735_v21 }
 0x2d9   :  { %v12255_v9 = vpop.permute.xlu1 %4041  ;;  %8235 = vmatpush3.bf16.msra.mxu0 %v12267_v31  ;;  %8256 = vmatprep.subr.bf16.mxu1 %v12277_v13  ;;  %v2427_v26 = vadd.f32 %v2426_v3, %v2425_v46  ;;  %v12287_v20 = vsub.f32 %v12037_v2, %v2499_v5  ;;  %v1689_v12 = vmul.f32 %v1673_v17, %v12223_v55  ;;  %v1675_v18 = vmul.f32 0.044715, %v12249_v41  ;;  %v12303_v46 = vld [vmem:[%s13911_s9 + $0x1b0] sm:$0xff]  }
 0x2da   :  { %14203 = vst [vmem:[#allocation248_spill] sm:$0xff] %v12255_v9  ;;  %v12272_v54 = vpop.permute.xlu0 %4089  ;;  %8236 = vmatprep.subr.bf16.mxu0 %v12283_v48  ;;  %4462 = vrot.lane.b32.xlu0 %v9250_v62, %s9748_s0  ;;  %9008 = vrsqrt.f32 %v1610_v51  ;;  %v2436_v63 = vrot.slane %v2435_v39, 2  ;;  %v2501_v23 = vmul.f32 0.125, %v2445_v44  ;;  %v1650_v11 = vmul.f32 0.5, %v11806_v24  ;;  %v12309_v24 = vld [vmem:[%s13911_s9 + $0x138] sm:$0xff]   ;;  %v14205_v51 = vld [vmem:[#allocation113_spill] sm:$0xff] }
 0x2db   :  { %v12298_v42 = vadd.f32 %v2544_v35, %v12215_v34  ;;  %v2556_v2 = vrot.slane %v2555_v43, 2  ;;  %v1700_v44 = vmul.f32 %v1684_v16, %v12167_v6  ;;  %v1686_v35 = vmul.f32 %v12202_v36, %v12170_v22  ;;  %v12320_v62 = vld [vmem:[%s13911_s9 + $0x1f8] sm:$0xff]  }
 0x2dc   :  { %4448 = vrot.lane.b32.xlu1 %v12210_v38, %s9748_s0  ;;  %8257 = vmatpush3.bf16.msra.mxu1 %v12303_v46  ;;  %v2639_v34 = vmul.f32 0.125, %v2553_v40  ;;  %v2979_v10 = vpack.c.bf16 %v1776_v47, %v1776_v47  ;;  %v1778_v21 = vmul.f32 %v1762_v59, %v1650_v11  ;;  %v1691_v37 = vmul.f32 %v1675_v18, %v12249_v41 }
 0x2dd   :  { %v12293_v9 = vpop.permute.xlu1 %4073  ;;  %8237 = vmatpush3.bf16.msra.mxu0 %v12309_v24  ;;  %8258 = vmatprep.subr.bf16.mxu1 %v12320_v62  ;;  %v2641_v5 = vmul.f32 0.125, %v2565_v52  ;;  %v2498_v16 = vmul.f32 0.125, %v2427_v26  ;;  %v2531_v36 = vmul.f32 %v12287_v20, %v12287_v20  ;;  %v1705_v40 = vmul.f32 %v1689_v12, %v12223_v55 }
 0x2de   :  { %14204 = vst [vmem:[#allocation249_spill] sm:$0xff] %v12293_v9  ;;  %v12315_v38 = vpop.permute.xlu0 %4059  ;;  %8266 = vmatprep.subr.bf16.mxu0 %v14205_v51  ;;  %4480 = vrot.lane.b32.xlu0 %v12239_v25, %s9748_s0  ;;  %v2437_v17 = vadd.f32 %v2436_v63, %v2435_v39  ;;  %v12331_v9 = vsub.f32 %v12075_v58, %v2501_v23  ;;  %v1653_v47 = vmul.f32 0.5, %v12091_v57  ;;  %v2546_v26 = vrot.slane %v12298_v42, 1  ;;  %v12346_v58 = vld [vmem:[%s13911_s9 + $0x1b8] sm:$0xff]   ;;  %v14208_v23 = vld [vmem:[#allocation114_spill] sm:$0xff] }
 0x2df   :  { %v9003_v3 = vpop.eup %9002  ;;  %v12341_v12 = vadd.f32 %v2556_v2, %v2555_v43  ;;  %v14207_v57 = vld [vmem:[#allocation115_spill] sm:$0xff]  ;;  %v1716_v39 = vadd.f32 %v1700_v44, %v12167_v6  ;;  %v1702_v25 = vmul.f32 %v1686_v35, %v12170_v22  ;;  %v2655_v63 = vadd.f32 1e-05, %v2639_v34  ;;  %v14209_v2 = vld [vmem:[#allocation117_spill] sm:$0xff] }
 0x2e0   :  { %3486 = vmatmul.mubr.bf16.vlgmr.msra.gmra.mrb[36].mxu0 %v2979_v10  ;;  %v1765_v59 = vadd.f32 1.0, %v9003_v3  ;;  %4432 = vrot.lane.b32.xlu1 %v12231_v27, %s9748_s0  ;;  %v12338_v52 = vpop.eup %9004  ;;  %v2981_v43 = vpack.c.bf16 %v1778_v21, %v1778_v21  ;;  %v1707_v51 = vmul.f32 %v1691_v37, %v12249_v41  ;;  %v2657_v10 = vadd.f32 1e-05, %v2641_v5  ;;  %v14210_v37 = vld [vmem:[#allocation116_spill] sm:$0xff] }
 0x2e1   :  { %v12334_v18 = vpop.permute.xlu1 %4043  ;;  %8259 = vmatpush3.bf16.msra.mxu1 %v12346_v58  ;;  %8267 = vmatpush3.bf16.msra.mxu0 %v14207_v57  ;;  %v2572_v3 = vrot.slane %v2531_v36, 4  ;;  %v12361_v35 = vsub.f32 %v12096_v0, %v2498_v16  ;;  %v2438_v34 = vrot.slane %v2437_v17, 1  ;;  %v2533_v21 = vmul.f32 %v12331_v9, %v12331_v9 }
 0x2e2   :  { %14206 = vst [vmem:[#allocation113_spill] sm:$0xff] %v12334_v18  ;;  %v12352_v27 = vpop.permute.xlu0 %4091  ;;  %8288 = vmatprep.subr.bf16.mxu1 %v14208_v23  ;;  %v1781_v11 = vmul.f32 %v1765_v59, %v1653_v47  ;;  %8268 = vmatprep.subr.bf16.mxu0 %v14209_v2  ;;  %v1721_v18 = vadd.f32 %v1705_v40, %v12223_v55  ;;  %v9007_v44 = vpop.eup %9006  ;;  %v1655_v5 = vmul.f32 0.5, %v12135_v4  ;;  %v14211_v40 = vld [vmem:[#allocation120_spill] sm:$0xff]  ;;  %v1732_v0 = vmul.f32 0.7978846, %v1716_v39  ;;  %v12375_v23 = vld [vmem:[#allocation15 + $0x8] sm:$0xff] }
 0x2e3   :  { %4464 = vrot.lane.b32.xlu0 %v12261_v60, %s9748_s0  ;;  %v1767_v60 = vadd.f32 1.0, %v9007_v44  ;;  %v1718_v16 = vadd.f32 %v1702_v25, %v12170_v22  ;;  %9010 = vrsqrt.f32 %v2655_v63  ;;  %v14213_v2 = vld [vmem:[#allocation121_spill] sm:$0xff]  ;;  %v1723_v4 = vadd.f32 %v1707_v51, %v12249_v41 }
 0x2e4   :  { %3526 = vmatmul.mubr.bf16.vlgmr.msra.gmra.mrb[36].mxu1 %v2981_v43  ;;  %v3565_v47 = vpack.c.bf16 %v1781_v11, %v1781_v11  ;;  %4450 = vrot.lane.b32.xlu1 %v12245_v14, %s9748_s0  ;;  %v9009_v43 = vpop.eup %9008  ;;  %v2547_v11 = vadd.f32 %v2546_v26, %v12298_v42  ;;  %v2558_v14 = vrot.slane %v12341_v12, 1  ;;  %9012 = vrsqrt.f32 %v2657_v10 }
 0x2e5   :  { %v12365_v59 = vpop.permute.xlu1 %4075  ;;  %8289 = vmatpush3.bf16.msra.mxu1 %v14210_v37  ;;  %8269 = vmatpush3.bf16.msra.mxu0 %v14211_v40  ;;  %v2573_v44 = vadd.f32 %v2572_v3, %v2531_v36  ;;  %v1783_v39 = vmul.f32 %v1767_v60, %v1655_v5  ;;  %v14214_v37 = vld [vmem:[#allocation124_spill] sm:$0xff]  ;;  %v1737_v25 = vmul.f32 0.7978846, %v1721_v18  ;;  %v2530_v42 = vmul.f32 %v12361_v35, %v12361_v35  ;;  %v14215_v3 = vld [vmem:[#allocation122_spill] sm:$0xff] }
 0x2e6   :  { %v12373_v57 = vpop.permute.xlu0 %4157  ;;  %3799 = vmatprep.mubr.bf16.mxu0 %v3565_v47  ;;  %8290 = vmatprep.subr.bf16.mxu1 %v14213_v2  ;;  %v2584_v26 = vrot.slane %v2533_v21, 4  ;;  %v1857_v51 = vrot.slane %v12375_v23, %v11353_v53  ;;  %v1865_v36 = vrot.slane %v12375_v23, %v11359_v28  ;;  %v2439_v10 = vadd.f32 %v2438_v34, %v2437_v17  ;;  %v14217_v40 = vld [vmem:[#allocation128_spill] sm:$0xff] }
 0x2e7   :  { %14212 = vst [vmem:[#allocation115_spill] sm:$0xff] %v12373_v57  ;;  %8270 = vmatprep.subr.bf16.mxu0 %v14214_v37  ;;  %4482 = vrot.lane.b32.xlu0 %v12277_v13, %s9748_s0  ;;  %v3567_v18 = vpack.c.bf16 %v1783_v39, %v1783_v39  ;;  %v14216_v13 = vld [vmem:[#allocation125_spill] sm:$0xff]  ;;  %9014 = vtanh.f32 %v1732_v0  ;;  %v1734_v47 = vmul.f32 0.7978846, %v1718_v16  ;;  %v2638_v60 = vmul.f32 0.125, %v2547_v11 }
 0x2e8   :  { %4434 = vrot.lane.b32.xlu1 %v12267_v31, %s9748_s0  ;;  %v14218_v31 = vld [vmem:[#allocation130_spill] sm:$0xff]  ;;  %v1739_v2 = vmul.f32 0.7978846, %v1723_v4  ;;  %v12401_v37 = vadd.f32 %v11955_v8, %v1857_v51  ;;  %v2559_v17 = vadd.f32 %v2558_v14, %v12341_v12  ;;  %v2574_v34 = vrot.slane %v2573_v44, 2  ;;  %v14219_v4 = vld [vmem:[#allocation129_spill] sm:$0xff] }
 0x2e9   :  { %v12386_v63 = vpop.permute.xlu1 %4374  ;;  %8291 = vmatpush3.bf16.msra.mxu1 %v14215_v3  ;;  %8271 = vmatpush3.bf16.msra.mxu0 %v14216_v13  ;;  %9016 = vtanh.f32 %v1737_v25  ;;  %v12407_v0 = vadd.f32 %v11969_v56, %v1865_v36  ;;  %v2566_v16 = vrot.slane %v2530_v42, 4  ;;  %v2585_v11 = vadd.f32 %v2584_v26, %v2533_v21  ;;  %v14221_v26 = vld [vmem:[#allocation132_spill] sm:$0xff] }
 0x2ea   :  { %v12396_v5 = vpop.permute.xlu0 %4406  ;;  %8292 = vmatprep.subr.bf16.mxu1 %v14217_v40  ;;  %8272 = vmatprep.subr.bf16.mxu0 %v14218_v31  ;;  %v2452_v8 = vrot.slane %v12401_v37, 4  ;;  %v12416_v12 = vmul.f32 %v12338_v52, %v11825_v30  ;;  %v2500_v14 = vmul.f32 0.125, %v2439_v10  ;;  %9018 = vtanh.f32 %v1734_v47  ;;  %v14225_v31 = vld [vmem:[#allocation136_spill] sm:$0xff] }
 0x2eb   :  { %3839 = vmatprep.mubr.bf16.mxu1 %v3567_v18  ;;  %4466 = vrot.lane.b32.xlu0 %v12303_v46, %s9748_s0  ;;  %v14220_v46 = vld [vmem:[#allocation131_spill] sm:$0xff]  ;;  %v12423_v21 = vmul.f32 %v9009_v43, %v11853_v32  ;;  %v2654_v25 = vadd.f32 1e-05, %v2638_v60  ;;  %9020 = vtanh.f32 %v1739_v2  ;;  %v2640_v52 = vmul.f32 0.125, %v2559_v17  ;;  %v14226_v2 = vld [vmem:[#allocation138_spill] sm:$0xff] }
 0x2ec   :  { %4452 = vrot.lane.b32.xlu1 %v12283_v48, %s9748_s0  ;;  %v14222_v48 = vld [vmem:[#allocation134_spill] sm:$0xff]  ;;  %v2453_v30 = vadd.f32 %v2452_v8, %v12401_v37  ;;  %v2575_v51 = vadd.f32 %v2574_v34, %v2573_v44  ;;  %v2464_v36 = vrot.slane %v12407_v0, 4  ;;  %v12431_v18 = vadd.f32 %v2566_v16, %v2530_v42  ;;  %v14223_v44 = vld [vmem:[#allocation133_spill] sm:$0xff]  ;;  %v14224_v60 = vld [vmem:[#allocation135_spill] sm:$0xff] }
 0x2ed   :  { %v12409_v39 = vpop.permute.xlu1 %4358  ;;  %8293 = vmatpush3.bf16.msra.mxu1 %v14219_v4  ;;  %8273 = vmatpush3.bf16.msra.mxu0 %v14220_v46  ;;  %v9011_v10 = vpop.eup %9010  ;;  %v2586_v32 = vrot.slane %v2585_v11, 2  ;;  %v12438_v47 = vsub.f32 %v12183_v1, %v2500_v14  ;;  %v1672_v42 = vmul.f32 0.044715, %v12416_v12  ;;  %v1674_v40 = vmul.f32 0.044715, %v12423_v21  ;;  %v14231_v4 = vld [vmem:[#allocation141_spill] sm:$0xff] }
 0x2ee   :  { %v12420_v56 = vpop.permute.xlu0 %4390  ;;  %8294 = vmatprep.subr.bf16.mxu1 %v14221_v26  ;;  %8274 = vmatprep.subr.bf16.mxu0 %v14222_v48  ;;  %v2454_v3 = vrot.slane %v2453_v30, 2  ;;  %v9013_v13 = vpop.eup %9012  ;;  %9022 = vrsqrt.f32 %v2654_v25  ;;  %v12449_v1 = vmul.f32 %v9011_v10, %v12050_v15  ;;  %v12451_v34 = vadd.f32 1e-05, %v2640_v52  ;;  %v9262_v15 = vld [vmem:[%s13912_s10] ss:$0 sm:$0xff] }
 0x2ef   :  { %4484 = vrot.lane.b32.xlu0 %v12320_v62, %s9748_s0  ;;  %v2576_v16 = vrot.slane %v2575_v51, 1  ;;  %v2465_v8 = vadd.f32 %v2464_v36, %v12407_v0  ;;  %v12457_v14 = vmul.f32 %v9013_v13, %v12060_v33  ;;  %v2587_v46 = vadd.f32 %v2586_v32, %v2585_v11  ;;  %v14228_v33 = vld [vmem:[#allocation139_spill] sm:$0xff]  ;;  %v14229_v10 = vld [vmem:[#allocation140_spill] sm:$0xff]  ;;  %v14230_v32 = vld [vmem:[#allocation142_spill] sm:$0xff] }
 0x2f0   :  { %4436 = vrot.lane.b32.xlu1 %v12309_v24, %s9748_s0  ;;  %v2455_v24 = vadd.f32 %v2454_v3, %v2453_v30  ;;  %v14227_v30 = vld [vmem:[#allocation137_spill] sm:$0xff]  ;;  %v1652_v11 = vmul.f32 0.5, %v12167_v6  ;;  %v1654_v52 = vmul.f32 0.5, %v12170_v22  ;;  %v1657_v13 = vmul.f32 0.5, %v12223_v55 }
 0x2f1   :  { %v12433_v43 = vpop.permute.xlu1 %4376  ;;  %8295 = vmatpush3.bf16.msra.mxu1 %v14223_v44  ;;  %8275 = vmatpush3.bf16.msra.mxu0 %v14224_v60  ;;  %v9015_v17 = vpop.eup %9014  ;;  %v2466_v36 = vrot.slane %v2465_v8, 2  ;;  %v1688_v44 = vmul.f32 %v1672_v42, %v12416_v12  ;;  %v1877_v22 = vrot.slane %v12375_v23, %v14194_v29  ;;  %v2719_v55 = vmul.f32 0.044715, %v12449_v1 }
 0x2f2   :  { %v12442_v62 = vpop.permute.xlu0 %4408  ;;  %8296 = vmatprep.subr.bf16.mxu1 %v14225_v31  ;;  %8276 = vmatprep.subr.bf16.mxu0 %v14226_v2  ;;  %v2456_v26 = vrot.slane %v2455_v24, 1  ;;  %v1764_v3 = vadd.f32 1.0, %v9015_v17  ;;  %v1853_v42 = vrot.slane %v12375_v23, %v11345_v61  ;;  %v1690_v28 = vmul.f32 %v1674_v40, %v12423_v21  ;;  %v14236_v40 = vld [vmem:[#allocation147_spill] sm:$0xff] }
 0x2f3   :  { %4468 = vrot.lane.b32.xlu0 %v12346_v58, %s9748_s0  ;;  %v9017_v48 = vpop.eup %9016  ;;  %v12468_v58 = vmul.f32 %v12438_v47, %v12438_v47  ;;  %v2467_v6 = vadd.f32 %v2466_v36, %v2465_v8  ;;  %v1873_v8 = vrot.slane %v12375_v23, %v11405_v45  ;;  %v1881_v45 = vrot.slane %v12375_v23, %v14180_v19 }
 0x2f4   :  { %3764 = vrot.lane.b32.xlu1 %v9262_v15, %s9762_s18  ;;  %v2457_v31 = vadd.f32 %v2456_v26, %v2455_v24  ;;  %v9019_v2 = vpop.eup %9018  ;;  %v1769_v17 = vadd.f32 1.0, %v9017_v48  ;;  %v14232_v24 = vld [vmem:[#allocation143_spill] sm:$0xff]  ;;  %v12494_v26 = vadd.f32 %v12000_v7, %v1877_v22  ;;  %v14234_v48 = vld [vmem:[#allocation146_spill] sm:$0xff]  ;;  %v1780_v36 = vmul.f32 %v1764_v3, %v1652_v11 }
 0x2f5   :  { %v12460_v25 = vpop.permute.xlu1 %4360  ;;  %8297 = vmatpush3.bf16.msra.mxu1 %v14227_v30  ;;  %8277 = vmatpush3.bf16.msra.mxu0 %v14228_v33  ;;  %v2577_v30 = vadd.f32 %v2576_v16, %v2575_v51  ;;  %v1659_v33 = vmul.f32 0.5, %v12249_v41  ;;  %v2468_v41 = vrot.slane %v2467_v6, 1  ;;  %v1766_v29 = vadd.f32 1.0, %v9019_v2  ;;  %v14235_v2 = vld [vmem:[#allocation145_spill] sm:$0xff] }
 0x2f6   :  { %8298 = vmatprep.subr.bf16.mxu1 %v14229_v10  ;;  %8278 = vmatprep.subr.bf16.mxu0 %v14230_v32  ;;  %v12478_v60 = vpop.permute.xlu0 %4392  ;;  %v9021_v10 = vpop.eup %9020  ;;  %v2588_v32 = vrot.slane %v2587_v46, 1  ;;  %v2503_v51 = vmul.f32 0.125, %v2457_v31  ;;  %v1785_v7 = vmul.f32 %v1769_v17, %v1657_v13  ;;  %v2735_v22 = vmul.f32 %v2719_v55, %v12449_v1  ;;  %v14237_v13 = vld [vmem:[#allocation232_spill] sm:$0xff] }
 0x2f7   :  { %4550 = vrot.lane.b32.xlu0 %v9262_v15, %s9748_s0  ;;  %v14233_v15 = vld [vmem:[#allocation144_spill] sm:$0xff]  ;;  %v1771_v31 = vadd.f32 1.0, %v9021_v10  ;;  %v2469_v53 = vadd.f32 %v2468_v41, %v2467_v6  ;;  %v1861_v11 = vrot.slane %v12375_v23, %v11351_v50  ;;  %v12519_v17 = vadd.f32 %v14237_v13, %v1873_v8 }
 0x2f8   :  { %v12503_v61 = vpop.eup %9022  ;;  %v12516_v6 = vsub.f32 %v12401_v37, %v2503_v51  ;;  %v2643_v55 = vmul.f32 0.125, %v2577_v30  ;;  %v3564_v41 = vpack.c.bf16 %v1780_v36, %v1780_v36  ;;  %v3569_v30 = vpack.c.bf16 %v1785_v7, %v1785_v7 }
 0x2f9   :  { %8299 = vmatpush3.bf16.msra.mxu1 %v14231_v4  ;;  %8279 = vmatpush3.bf16.msra.mxu0 %v14232_v24  ;;  %v12489_v16 = vpop.permute.xlu1 %4378  ;;  %v1704_v4 = vmul.f32 %v1688_v44, %v12416_v12  ;;  %v2721_v24 = vmul.f32 0.044715, %v12457_v14  ;;  %v2589_v44 = vadd.f32 %v2588_v32, %v2587_v46  ;;  %v2505_v10 = vmul.f32 0.125, %v2469_v53  ;;  %v14240_v53 = vld [vmem:[#allocation235_spill] sm:$0xff] }
 0x2fa   :  { %8300 = vmatprep.subr.bf16.mxu1 %v14233_v15  ;;  %8280 = vmatprep.subr.bf16.mxu0 %v14234_v48  ;;  %v12507_v15 = vadd.f32 %v11945_v49, %v1853_v42  ;;  %v12511_v3 = vpop.permute.xlu0 %4410  ;;  %v14238_v49 = vld [vmem:[#allocation148_spill] sm:$0xff]  ;;  %v14239_v42 = vld [vmem:[#allocation150_spill] sm:$0xff]  ;;  %v1782_v48 = vmul.f32 %v1766_v29, %v1654_v52  ;;  %v1787_v32 = vmul.f32 %v1771_v31, %v1659_v33  ;;  %v2578_v33 = vrot.slane %v12468_v58, 4 }
 0x2fb   :  { %v2737_v46 = vmul.f32 %v2721_v24, %v12457_v14  ;;  %v12531_v51 = vadd.f32 %v14240_v53, %v1881_v45  ;;  %v2751_v8 = vmul.f32 %v2735_v22, %v12449_v1  ;;  %v14241_v29 = vld [vmem:[#allocation226_spill] sm:$0xff]  ;;  %v14242_v24 = vld [vmem:[#allocation149_spill] sm:$0xff]  ;;  %v2535_v45 = vmul.f32 %v12516_v6, %v12516_v6 }
 0x2fc   :  { %v2446_v36 = vrot.slane %v12507_v15, 4  ;;  %v12536_v52 = vadd.f32 %v14241_v29, %v1861_v11  ;;  %v2476_v31 = vrot.slane %v12519_v17, 4  ;;  %v2659_v7 = vadd.f32 1e-05, %v2643_v55 }
 0x2fd   :  { %8301 = vmatpush3.bf16.msra.mxu1 %v14235_v2  ;;  %8281 = vmatpush3.bf16.msra.mxu0 %v14236_v40  ;;  %v1706_v2 = vmul.f32 %v1690_v28, %v12423_v21  ;;  %v12526_v40 = vsub.f32 %v12407_v0, %v2505_v10  ;;  %v12528_v37 = vpop.permute.xlu1 %4362  ;;  %v2645_v28 = vmul.f32 0.125, %v2589_v44  ;;  %v14243_v0 = vld [vmem:[#allocation151_spill] sm:$0xff]  ;;  %v14244_v10 = vld [vmem:[#allocation152_spill] sm:$0xff]  ;;  %v3566_v22 = vpack.c.bf16 %v1782_v48, %v1782_v48 }
 0x2fe   :  { %8302 = vmatprep.subr.bf16.mxu1 %v14238_v49  ;;  %8310 = vmatprep.subr.bf16.mxu0 %v14239_v42  ;;  %v1720_v11 = vadd.f32 %v1704_v4, %v12416_v12  ;;  %v2753_v13 = vmul.f32 %v2737_v46, %v12457_v14  ;;  %v12547_v49 = vpop.permute.xlu0 %4394  ;;  %v3571_v44 = vpack.c.bf16 %v1787_v32, %v1787_v32  ;;  %v14246_v42 = vld [vmem:[#allocation154_spill] sm:$0xff]  ;;  %v2488_v55 = vrot.slane %v12531_v51, 4 }
 0x2ff   :  { %14245 = vst [vmem:[#allocation114_spill] sm:$0xff] %v12547_v49  ;;  %v2537_v53 = vmul.f32 %v12526_v40, %v12526_v40  ;;  %9024 = vrsqrt.f32 %v12451_v34  ;;  %v2767_v48 = vadd.f32 %v2751_v8, %v12449_v1  ;;  %v2447_v4 = vadd.f32 %v2446_v36, %v12507_v15  ;;  %v14250_v8 = vld [vmem:[#allocation156_spill] sm:$0xff]  ;;  %v14251_v36 = vld [vmem:[#allocation155_spill] sm:$0xff] }
 0x300   :  { %3800 = vmatmul.mubr.bf16.vlgmr.msra.gmra.mrb[40].mxu0 %v3564_v41  ;;  %v1722_v41 = vadd.f32 %v1706_v2, %v12423_v21  ;;  %v2458_v46 = vrot.slane %v12536_v52, 4  ;;  %v14247_v32 = vrot.slane %v12431_v18, 2  ;;  %v2661_v29 = vadd.f32 1e-05, %v2645_v28  ;;  %v14248_v2 = vld [vmem:[#allocation153_spill] sm:$0xff] }
 0x301   :  { %8303 = vmatpush3.bf16.msra.mxu1 %v14242_v24  ;;  %8311 = vmatpush3.bf16.msra.mxu0 %v14243_v0  ;;  %v2596_v24 = vrot.slane %v2535_v45, 4  ;;  %v2477_v0 = vadd.f32 %v2476_v31, %v12519_v17  ;;  %v2579_v34 = vadd.f32 %v2578_v33, %v12468_v58  ;;  %9026 = vrsqrt.f32 %v2659_v7  ;;  %v14254_v33 = vld [vmem:[#allocation157_spill] sm:$0xff]  ;;  %v14255_v7 = vld [vmem:[#allocation160_spill] sm:$0xff] }
 0x302   :  { %8332 = vmatprep.subr.bf16.mxu1 %v14244_v10  ;;  %3879 = vmatprep.mubr.bf16.mxu0 %v3569_v30  ;;  %v2569_v30 = vadd.f32 %v14247_v32, %v12431_v18  ;;  %v12563_v10 = vpop.permute.xlu1 %4380  ;;  %v14252_v18 = vld [vmem:[#allocation158_spill] sm:$0xff]  ;;  %v1738_v28 = vmul.f32 0.7978846, %v1722_v41  ;;  %v2608_v32 = vrot.slane %v2537_v53, 4  ;;  %v2448_v31 = vrot.slane %v2447_v4, 2  ;;  %v12572_v50 = vpop.permute.xlu0 %4412 }
 0x303   :  { %8312 = vmatprep.subr.bf16.mxu0 %v14246_v42  ;;  %14249 = vst [vmem:[#allocation117_spill] sm:$0xff] %v12563_v10  ;;  %v2769_v42 = vadd.f32 %v2753_v13, %v12457_v14  ;;  %v2459_v19 = vadd.f32 %v2458_v46, %v12536_v52  ;;  %14253 = vst [vmem:[#allocation116_spill] sm:$0xff] %v12572_v50  ;;  %9028 = vrsqrt.f32 %v2661_v29  ;;  %v2580_v13 = vrot.slane %v2579_v34, 2  ;;  %v14278_v10 = vld [vmem:[#allocation181_spill] sm:$0xff] }
 0x304   :  { %3840 = vmatmul.mubr.bf16.vlgmr.msra.gmra.mrb[40].mxu1 %v3566_v22  ;;  %v1736_v22 = vmul.f32 0.7978846, %v1720_v11  ;;  %v2570_v58 = vrot.slane %v2569_v30, 1  ;;  %v2597_v11 = vadd.f32 %v2596_v24, %v2535_v45  ;;  %v2449_v29 = vadd.f32 %v2448_v31, %v2447_v4  ;;  %v14259_v45 = vld [vmem:[#allocation161_spill] sm:$0xff]  ;;  %v14264_v4 = vld [vmem:[#allocation239_spill] sm:$0xff] }
 0x305   :  { %8333 = vmatpush3.bf16.msra.mxu1 %v14248_v2  ;;  %3919 = vmatprep.mubr.bf16.mxu1 %v3571_v44  ;;  %v2489_v44 = vadd.f32 %v2488_v55, %v12531_v51  ;;  %v2783_v2 = vmul.f32 0.7978846, %v2767_v48  ;;  %v2785_v41 = vmul.f32 0.7978846, %v2769_v42  ;;  %v14257_v55 = vld [vmem:[#allocation162_spill] sm:$0xff]  ;;  %v2609_v48 = vadd.f32 %v2608_v32, %v2537_v53 }
 0x306   :  { %8334 = vmatprep.subr.bf16.mxu1 %v14250_v8  ;;  %8313 = vmatpush3.bf16.msra.mxu0 %v14251_v36  ;;  %v2478_v8 = vrot.slane %v2477_v0, 2  ;;  %v14256_v36 = vld [vmem:[#allocation159_spill] sm:$0xff]  ;;  %9030 = vtanh.f32 %v1736_v22  ;;  %v2460_v57 = vrot.slane %v2459_v19, 2  ;;  %v2598_v24 = vrot.slane %v2597_v11, 2  ;;  %v14261_v22 = vld [vmem:[#allocation166_spill] sm:$0xff]  ;;  %v12583_v42 = vpop.permute.xlu0 %4396 }
 0x307   :  { %8314 = vmatprep.subr.bf16.mxu0 %v14252_v18  ;;  %9032 = vtanh.f32 %v1738_v28  ;;  %v2490_v46 = vrot.slane %v2489_v44, 2  ;;  %v12578_v18 = vpop.permute.xlu1 %4364  ;;  %v2581_v49 = vadd.f32 %v2580_v13, %v2579_v34  ;;  %14262 = vst [vmem:[#allocation121_spill] sm:$0xff] %v12583_v42  ;;  %v14263_v53 = vld [vmem:[#allocation170_spill] sm:$0xff]  ;;  %v2610_v28 = vrot.slane %v2609_v48, 2  ;;  %v14266_v13 = vld [vmem:[#allocation169_spill] sm:$0xff] }
 0x308   :  { %14258 = vst [vmem:[#allocation120_spill] sm:$0xff] %v12578_v18  ;;  %9034 = vtanh.f32 %v2783_v2  ;;  %v2479_v50 = vadd.f32 %v2478_v8, %v2477_v0  ;;  %v2450_v2 = vrot.slane %v2449_v29, 1  ;;  %v2461_v31 = vadd.f32 %v2460_v57, %v2459_v19 }
 0x309   :  { %8335 = vmatpush3.bf16.msra.mxu1 %v14254_v33  ;;  %v2571_v33 = vadd.f32 %v2570_v58, %v2569_v30  ;;  %9036 = vtanh.f32 %v2785_v41  ;;  %v2491_v32 = vadd.f32 %v2490_v46, %v2489_v44  ;;  %v12588_v30 = vmul.f32 %v12503_v61, %v14264_v4  ;;  %v14265_v58 = vld [vmem:[#allocation243_spill] sm:$0xff]  ;;  %v14270_v46 = vld [vmem:[#allocation178_spill] sm:$0xff] }
 0x30a   :  { %8336 = vmatprep.subr.bf16.mxu1 %v14255_v7  ;;  %8315 = vmatpush3.bf16.msra.mxu0 %v14256_v36  ;;  %v9025_v7 = vpop.eup %9024  ;;  %v14260_v36 = vld [vmem:[#allocation168_spill] sm:$0xff]  ;;  %v2599_v41 = vadd.f32 %v2598_v24, %v2597_v11  ;;  %v14269_v44 = vld [vmem:[#allocation171_spill] sm:$0xff]  ;;  %v2611_v19 = vadd.f32 %v2610_v28, %v2609_v48  ;;  %v2451_v11 = vadd.f32 %v2450_v2, %v2449_v29  ;;  %v2462_v24 = vrot.slane %v2461_v31, 1  ;;  %v12603_v4 = vpop.permute.xlu0 %4414 }
 0x30b   :  { %8316 = vmatprep.subr.bf16.mxu0 %v14257_v55  ;;  %v9027_v0 = vpop.eup %9026  ;;  %v12591_v34 = vmul.f32 %v9025_v7, %v14265_v58  ;;  %v2642_v8 = vmul.f32 0.125, %v2571_v33  ;;  %v2480_v55 = vrot.slane %v2479_v50, 1  ;;  %v2492_v57 = vrot.slane %v2491_v32, 1  ;;  %14271 = vst [vmem:[#allocation122_spill] sm:$0xff] %v12603_v4  ;;  %v14274_v29 = vld [vmem:[#allocation179_spill] sm:$0xff] }
 0x30c   :  { %v2718_v7 = vmul.f32 0.044715, %v12588_v30  ;;  %v12601_v33 = vmul.f32 %v9027_v0, %v12287_v20  ;;  %v14273_v20 = vld [vmem:[#allocation180_spill] sm:$0xff]  ;;  %v1656_v2 = vmul.f32 0.5, %v12416_v12  ;;  %v2703_v12 = vmul.f32 0.5, %v12449_v1 }
 0x30d   :  { %8337 = vmatpush3.bf16.msra.mxu1 %v14259_v45  ;;  %v12594_v45 = vpop.permute.xlu1 %4382  ;;  %v9029_v61 = vpop.eup %9028  ;;  %v2481_v48 = vadd.f32 %v2480_v55, %v2479_v50  ;;  %v14275_v0 = vld [vmem:[#allocation172_spill] sm:$0xff]  ;;  %v2612_v50 = vrot.slane %v2611_v19, 1  ;;  %v2493_v55 = vadd.f32 %v2492_v57, %v2491_v32  ;;  %v2705_v32 = vmul.f32 0.5, %v12457_v14  ;;  %v14281_v57 = vld [vmem:[#allocation231_spill] sm:$0xff] }
 0x30e   :  { %8338 = vmatprep.subr.bf16.mxu1 %v14260_v36  ;;  %8317 = vmatpush3.bf16.msra.mxu0 %v14261_v22  ;;  %14267 = vst [vmem:[#allocation124_spill] sm:$0xff] %v12594_v45  ;;  %v2582_v36 = vrot.slane %v2581_v49, 1  ;;  %v14268_v22 = vld [vmem:[#allocation173_spill] sm:$0xff]  ;;  %v12610_v45 = vmul.f32 %v9029_v61, %v12331_v9  ;;  %v1869_v4 = vrot.slane %v12375_v23, %v14275_v0  ;;  %v2502_v61 = vmul.f32 0.125, %v2451_v11 }
 0x30f   :  { %8318 = vmatprep.subr.bf16.mxu0 %v14263_v53 }
 0x310   :  { %v9031_v53 = vpop.eup %9030  ;;  %v2583_v42 = vadd.f32 %v2582_v36, %v2581_v49  ;;  %v2725_v11 = vmul.f32 0.044715, %v12610_v45 }
 0x311   :  { %8339 = vmatpush3.bf16.msra.mxu1 %v14266_v13  ;;  %v9033_v58 = vpop.eup %9032  ;;  %v2720_v13 = vmul.f32 0.044715, %v12591_v34  ;;  %v1768_v18 = vadd.f32 1.0, %v9031_v53  ;;  %v12619_v49 = vpop.permute.xlu1 %4366  ;;  %v14279_v53 = vld [vmem:[#allocation184_spill] sm:$0xff] }
 0x312   :  { %8340 = vmatprep.subr.bf16.mxu1 %v14268_v22  ;;  %8319 = vmatpush3.bf16.msra.mxu0 %v14269_v44  ;;  %v12606_v22 = vadd.f32 1e-05, %v2642_v8  ;;  %v14272_v44 = vld [vmem:[#allocation177_spill] sm:$0xff]  ;;  %v9035_v28 = vpop.eup %9034  ;;  %v14276_v8 = vld [vmem:[#allocation182_spill] sm:$0xff]  ;;  %14277 = vst [vmem:[#allocation125_spill] sm:$0xff] %v12619_v49  ;;  %v1770_v36 = vadd.f32 1.0, %v9033_v58  ;;  %v12628_v49 = vadd.f32 %v14281_v57, %v1869_v4  ;;  %v2613_v58 = vadd.f32 %v2612_v50, %v2611_v19 }
 0x313   :  { %8320 = vmatprep.subr.bf16.mxu0 %v14270_v46  ;;  %v2600_v46 = vrot.slane %v2599_v41, 1  ;;  %v9037_v9 = vpop.eup %9036  ;;  %v2815_v23 = vadd.f32 1.0, %v9035_v28  ;;  %v1784_v1 = vmul.f32 %v1768_v18, %v1656_v2  ;;  %v12636_v28 = vsub.f32 %v12507_v15, %v2502_v61  ;;  %v14284_v2 = vld [vmem:[#allocation188_spill] sm:$0xff] }
 0x314   :  { %v2644_v19 = vmul.f32 0.125, %v2583_v42  ;;  %v2470_v15 = vrot.slane %v12628_v49, 4  ;;  %9038 = vrsqrt.f32 %v12606_v22  ;;  %v14291_v22 = vld [vmem:[#allocation118_spill] sm:$0xff] }
 0x315   :  { %8341 = vmatpush3.bf16.msra.mxu1 %v14272_v44  ;;  %v1658_v44 = vmul.f32 0.5, %v12423_v21  ;;  %v2601_v0 = vadd.f32 %v2600_v46, %v2599_v41  ;;  %v14280_v21 = vld [vmem:[#allocation183_spill] sm:$0xff]  ;;  %v2817_v41 = vadd.f32 1.0, %v9037_v9  ;;  %v2509_v46 = vmul.f32 0.125, %v2493_v55  ;;  %v12644_v18 = vpop.permute.xlu1 %4384  ;;  %v14286_v9 = vld [vmem:[#allocation190_spill] sm:$0xff] }
 0x316   :  { %8342 = vmatprep.subr.bf16.mxu1 %v14273_v20  ;;  %8321 = vmatpush3.bf16.msra.mxu0 %v14274_v29  ;;  %v2463_v20 = vadd.f32 %v2462_v24, %v2461_v31  ;;  %v2723_v29 = vmul.f32 0.044715, %v12601_v33  ;;  %v2734_v31 = vmul.f32 %v2718_v7, %v12588_v30  ;;  %v12632_v24 = vpop.permute.xlu0 %4398  ;;  %v2831_v7 = vmul.f32 %v2815_v23, %v2703_v12  ;;  %v14287_v23 = vld [vmem:[#allocation189_spill] sm:$0xff] }
 0x317   :  { %8322 = vmatprep.subr.bf16.mxu0 %v14276_v8  ;;  %v2507_v8 = vmul.f32 0.125, %v2481_v48  ;;  %v1786_v48 = vmul.f32 %v1770_v36, %v1658_v44  ;;  %v14285_v44 = vld [vmem:[#allocation187_spill] sm:$0xff]  ;;  %v2741_v55 = vmul.f32 %v2725_v11, %v12610_v45  ;;  %v2649_v36 = vmul.f32 0.125, %v2613_v58 }
 0x318   :  { %v2504_v14 = vmul.f32 0.125, %v2463_v20  ;;  %v2739_v4 = vmul.f32 %v2723_v29, %v12601_v33  ;;  %v2750_v50 = vmul.f32 %v2734_v31, %v12588_v30  ;;  %v2534_v42 = vmul.f32 %v12636_v28, %v12636_v28 }
 0x319   :  { %8343 = vmatpush3.bf16.msra.mxu1 %v14278_v10  ;;  %v14282_v10 = vld [vmem:[#allocation186_spill] sm:$0xff]  ;;  %v12641_v57 = vsub.f32 %v12519_v17, %v2507_v8  ;;  %v2833_v17 = vmul.f32 %v2817_v41, %v2705_v32  ;;  %v3570_v61 = vpack.c.bf16 %v1786_v48, %v1786_v48  ;;  %v3958_v8 = vpack.c.bf16 %v2831_v7, %v2831_v7  ;;  %v14289_v41 = vld [vmem:[#allocation191_spill] sm:$0xff]  ;;  %v12676_v7 = vpop.permute.xlu1 %4368 }
 0x31a   :  { %8344 = vmatprep.subr.bf16.mxu1 %v14279_v53  ;;  %8323 = vmatpush3.bf16.msra.mxu0 %v14280_v21  ;;  %v14283_v53 = vld [vmem:[#allocation185_spill] sm:$0xff]  ;;  %v2647_v21 = vmul.f32 0.125, %v2601_v0  ;;  %v3568_v0 = vpack.c.bf16 %v1784_v1, %v1784_v1  ;;  %v12658_v20 = vsub.f32 %v12536_v52, %v2504_v14  ;;  %v2755_v29 = vmul.f32 %v2739_v4, %v12601_v33  ;;  %v12661_v12 = vpop.permute.xlu0 %4416  ;;  %v14288_v1 = vld [vmem:[#allocation192_spill] sm:$0xff]  ;;  %v14290_v14 = vld [vmem:[#allocation119_spill] sm:$0xff] }
 0x31b   :  { %8324 = vmatprep.subr.bf16.mxu0 %v14282_v10  ;;  %v2736_v10 = vmul.f32 %v2720_v13, %v12591_v34  ;;  %v12653_v13 = vsub.f32 %v12531_v51, %v2509_v46  ;;  %v2539_v51 = vmul.f32 %v12641_v57, %v12641_v57  ;;  %v2660_v11 = vadd.f32 1e-05, %v2644_v19 }
 0x31c   :  { %v2663_v32 = vadd.f32 1e-05, %v2647_v21  ;;  %v2471_v52 = vadd.f32 %v2470_v15, %v12628_v49  ;;  %v2766_v58 = vadd.f32 %v2750_v50, %v12588_v30  ;;  %v2757_v46 = vmul.f32 %v2741_v55, %v12610_v45  ;;  %v14292_v50 = vld [vmem:[#allocation194_spill] sm:$0xff]  ;;  %v14293_v55 = vld [vmem:[#allocation193_spill] sm:$0xff] }
 0x31d   :  { %8345 = vmatpush3.bf16.msra.mxu1 %v14283_v53  ;;  %v2752_v31 = vmul.f32 %v2736_v10, %v12591_v34  ;;  %v3960_v48 = vpack.c.bf16 %v2833_v17, %v2833_v17  ;;  %v2665_v4 = vadd.f32 1e-05, %v2649_v36  ;;  %v2541_v53 = vmul.f32 %v12653_v13, %v12653_v13 }
 0x31e   :  { %8346 = vmatprep.subr.bf16.mxu1 %v14284_v2  ;;  %8325 = vmatpush3.bf16.msra.mxu0 %v14285_v44  ;;  %v2590_v21 = vrot.slane %v2534_v42, 4  ;;  %v2536_v10 = vmul.f32 %v12658_v20, %v12658_v20  ;;  %v2482_v19 = vrot.slane %v12494_v26, 4  ;;  %v2771_v2 = vadd.f32 %v2755_v29, %v12601_v33  ;;  %v12687_v36 = vpop.permute.xlu0 %4400 }
 0x31f   :  { %8354 = vmatprep.subr.bf16.mxu0 %v14286_v9  ;;  %9040 = vrsqrt.f32 %v2663_v32  ;;  %v2620_v44 = vrot.slane %v2539_v51, 4  ;;  %v2768_v15 = vadd.f32 %v2752_v31, %v12591_v34  ;;  %v2472_v9 = vrot.slane %v2471_v52, 2  ;;  %14294 = vst [vmem:[#allocation128_spill] sm:$0xff] %v12687_v36 }
 0x320   :  { %9042 = vrsqrt.f32 %v2660_v11  ;;  %v2773_v17 = vadd.f32 %v2757_v46, %v12610_v45  ;;  %v2632_v29 = vrot.slane %v2541_v53, 4  ;;  %v2483_v32 = vadd.f32 %v2482_v19, %v12494_v26  ;;  %v14296_v11 = vld [vmem:[#allocation123_spill] sm:$0xff] }
 0x321   :  { %8347 = vmatpush3.bf16.msra.mxu1 %v14287_v23  ;;  %3880 = vmatmul.mubr.bf16.vlgmr.msra.gmra.mrb[44].mxu0 %v3568_v0  ;;  %v2782_v0 = vmul.f32 0.7978846, %v2766_v58  ;;  %9044 = vrsqrt.f32 %v2665_v4  ;;  %v2591_v23 = vadd.f32 %v2590_v21, %v2534_v42  ;;  %v2787_v31 = vmul.f32 0.7978846, %v2771_v2  ;;  %v14297_v58 = vld [vmem:[#allocation197_spill] sm:$0xff]  ;;  %v14298_v46 = vld [vmem:[#allocation195_spill] sm:$0xff] }
 0x322   :  { %8376 = vmatprep.subr.bf16.mxu1 %v14288_v1  ;;  %8355 = vmatpush3.bf16.msra.mxu0 %v14289_v41  ;;  %v2621_v1 = vadd.f32 %v2620_v44, %v2539_v51  ;;  %v2784_v41 = vmul.f32 0.7978846, %v2768_v15  ;;  %v14299_v4 = vld [vmem:[#allocation201_spill] sm:$0xff]  ;;  %v2633_v42 = vadd.f32 %v2632_v29, %v2541_v53  ;;  %v2484_v19 = vrot.slane %v2483_v32, 2  ;;  %v12697_v2 = vpop.permute.xlu0 %4418  ;;  %v9039_v51 = vpop.eup %9038  ;;  %v14301_v44 = vld [vmem:[#allocation200_spill] sm:$0xff] }
 0x323   :  { %4192 = vmatprep.mubr.bf16.mxu0 %v3958_v8  ;;  %8356 = vmatprep.subr.bf16.mxu0 %v14290_v14  ;;  %v2602_v8 = vrot.slane %v2536_v10, 4  ;;  %v2473_v14 = vadd.f32 %v2472_v9, %v2471_v52  ;;  %9046 = vtanh.f32 %v2782_v0  ;;  %v2592_v21 = vrot.slane %v2591_v23, 2  ;;  %14300 = vst [vmem:[#allocation130_spill] sm:$0xff] %v12697_v2  ;;  %v14304_v0 = vld [vmem:[#allocation205_spill] sm:$0xff] }
 0x324   :  { %3920 = vmatmul.mubr.bf16.vlgmr.msra.gmra.mrb[44].mxu1 %v3570_v61  ;;  %v14295_v61 = vld [vmem:[#allocation127_spill] sm:$0xff]  ;;  %9048 = vtanh.f32 %v2787_v31  ;;  %v2622_v15 = vrot.slane %v2621_v1, 2  ;;  %v2634_v53 = vrot.slane %v2633_v42, 2  ;;  %v2485_v31 = vadd.f32 %v2484_v19, %v2483_v32  ;;  %v14310_v32 = vld [vmem:[#allocation209_spill] sm:$0xff] }
 0x325   :  { %8377 = vmatpush3.bf16.msra.mxu1 %v14291_v22  ;;  %4232 = vmatprep.mubr.bf16.mxu1 %v3960_v48  ;;  %v12692_v48 = vpop.permute.xlu1 %4386  ;;  %v2789_v22 = vmul.f32 0.7978846, %v2773_v17  ;;  %9050 = vtanh.f32 %v2784_v41  ;;  %v2474_v52 = vrot.slane %v2473_v14, 1  ;;  %v2593_v29 = vadd.f32 %v2592_v21, %v2591_v23  ;;  %v14306_v41 = vld [vmem:[#allocation204_spill] sm:$0xff] }
 0x326   :  { %8378 = vmatprep.subr.bf16.mxu1 %v14292_v50  ;;  %8357 = vmatpush3.bf16.msra.mxu0 %v14293_v55  ;;  %v2603_v50 = vadd.f32 %v2602_v8, %v2536_v10  ;;  %v14302_v55 = vld [vmem:[#allocation203_spill] sm:$0xff] }
 0x327   :  { %8358 = vmatprep.subr.bf16.mxu0 %v14295_v61  ;;  %v14303_v61 = vld [vmem:[#allocation202_spill] sm:$0xff]  ;;  %9052 = vtanh.f32 %v2789_v22  ;;  %v14307_v22 = vld [vmem:[#allocation207_spill] sm:$0xff]  ;;  %v2594_v19 = vrot.slane %v2593_v29, 1 }
 0x328   :  { %v2604_v8 = vrot.slane %v2603_v50, 2 }
 0x329   :  { %8379 = vmatpush3.bf16.msra.mxu1 %v14296_v11  ;;  %v9041_v9 = vpop.eup %9040  ;;  %v12703_v10 = vpop.permute.xlu1 %4370 }
 0x32a   :  { %8380 = vmatprep.subr.bf16.mxu1 %v14297_v58  ;;  %8359 = vmatpush3.bf16.msra.mxu0 %v14298_v46  ;;  %14305 = vst [vmem:[#allocation129_spill] sm:$0xff] %v12703_v10  ;;  %v9043_v17 = vpop.eup %9042  ;;  %v12706_v58 = vmul.f32 %v9039_v51, %v12361_v35  ;;  %v2623_v46 = vadd.f32 %v2622_v15, %v2621_v1  ;;  %v2707_v10 = vmul.f32 0.5, %v12601_v33  ;;  %v2709_v33 = vmul.f32 0.5, %v12610_v45 }
 0x32b   :  { %8360 = vmatprep.subr.bf16.mxu0 %v14299_v4  ;;  %v9045_v11 = vpop.eup %9044  ;;  %v12710_v4 = vmul.f32 %v9041_v9, %v12516_v6  ;;  %v12717_v23 = vmul.f32 %v9043_v17, %v12438_v47  ;;  %v2635_v35 = vadd.f32 %v2634_v53, %v2633_v42  ;;  %v2605_v51 = vadd.f32 %v2604_v8, %v2603_v50  ;;  %v14311_v9 = vld [vmem:[#allocation208_spill] sm:$0xff]  ;;  %v14313_v47 = vld [vmem:[#allocation211_spill] sm:$0xff]  ;;  %v14315_v8 = vld [vmem:[#allocation213_spill] sm:$0xff] }
 0x32c   :  { %v12721_v1 = vmul.f32 %v9045_v11, %v12526_v40  ;;  %v2486_v6 = vrot.slane %v2485_v31, 1  ;;  %v2722_v15 = vmul.f32 0.044715, %v12706_v58  ;;  %v2702_v11 = vmul.f32 0.5, %v12588_v30  ;;  %v14318_v30 = vld [vmem:[#allocation215_spill] sm:$0xff] }
 0x32d   :  { %8381 = vmatpush3.bf16.msra.mxu1 %v14301_v44  ;;  %v14308_v44 = vld [vmem:[#allocation206_spill] sm:$0xff]  ;;  %v9047_v21 = vpop.eup %9046  ;;  %v2727_v42 = vmul.f32 0.044715, %v12710_v4  ;;  %v2724_v40 = vmul.f32 0.044715, %v12717_v23  ;;  %v2636_v53 = vrot.slane %v2635_v35, 1 }
 0x32e   :  { %8382 = vmatprep.subr.bf16.mxu1 %v14302_v55  ;;  %8361 = vmatpush3.bf16.msra.mxu0 %v14303_v61  ;;  %v2475_v55 = vadd.f32 %v2474_v52, %v2473_v14  ;;  %v12714_v61 = vpop.permute.xlu0 %4402  ;;  %v2624_v14 = vrot.slane %v2623_v46, 1  ;;  %v12725_v52 = vpop.permute.xlu1 %4388  ;;  %v2738_v36 = vmul.f32 %v2722_v15, %v12706_v58 }
 0x32f   :  { %8362 = vmatprep.subr.bf16.mxu0 %v14304_v0  ;;  %14309 = vst [vmem:[#allocation131_spill] sm:$0xff] %v12714_v61  ;;  %14312 = vst [vmem:[#allocation132_spill] sm:$0xff] %v12725_v52  ;;  %v9049_v0 = vpop.eup %9048  ;;  %v2487_v61 = vadd.f32 %v2486_v6, %v2485_v31  ;;  %v2704_v31 = vmul.f32 0.5, %v12591_v34  ;;  %v14320_v6 = vld [vmem:[#allocation217_spill] sm:$0xff] }
 0x330   :  { %v2506_v17 = vmul.f32 0.125, %v2475_v55  ;;  %v9051_v50 = vpop.eup %9050  ;;  %v2729_v55 = vmul.f32 0.044715, %v12721_v1  ;;  %v2819_v2 = vadd.f32 1.0, %v9049_v0 }
 0x331   :  { %8383 = vmatpush3.bf16.msra.mxu1 %v14306_v41  ;;  %v14314_v41 = vld [vmem:[#allocation210_spill] sm:$0xff] }
 0x332   :  { %8384 = vmatprep.subr.bf16.mxu1 %v14307_v22  ;;  %8363 = vmatpush3.bf16.msra.mxu0 %v14308_v44  ;;  %v2814_v22 = vadd.f32 1.0, %v9047_v21  ;;  %v9053_v44 = vpop.eup %9052  ;;  %v12733_v52 = vpop.permute.xlu0 %4420  ;;  %v2816_v21 = vadd.f32 1.0, %v9051_v50  ;;  %v2835_v34 = vmul.f32 %v2819_v2, %v2707_v10  ;;  %v14322_v50 = vld [vmem:[#allocation219_spill] sm:$0xff] }
 0x333   :  { %8364 = vmatprep.subr.bf16.mxu0 %v14310_v32  ;;  %v2595_v32 = vadd.f32 %v2594_v19, %v2593_v29  ;;  %14316 = vst [vmem:[#allocation134_spill] sm:$0xff] %v12733_v52  ;;  %v14319_v29 = vld [vmem:[#allocation214_spill] sm:$0xff]  ;;  %v2743_v19 = vmul.f32 %v2727_v42, %v12710_v4  ;;  %v2821_v0 = vadd.f32 1.0, %v9053_v44  ;;  %v12748_v15 = vpop.permute.xlu1 %4372  ;;  %v14321_v52 = vld [vmem:[#allocation216_spill] sm:$0xff]  ;;  %v2754_v42 = vmul.f32 %v2738_v36, %v12706_v58  ;;  %v14324_v44 = vld [vmem:[#allocation221_spill] sm:$0xff] }
 0x334   :  { %v2832_v45 = vmul.f32 %v2816_v21, %v2704_v31 }
 0x335   :  { %8385 = vmatpush3.bf16.msra.mxu1 %v14311_v9  ;;  %v2606_v9 = vrot.slane %v2605_v51, 1  ;;  %v2837_v10 = vmul.f32 %v2821_v0, %v2709_v33  ;;  %v2770_v21 = vadd.f32 %v2754_v42, %v12706_v58  ;;  %v14329_v42 = vld [vmem:[#allocation224_spill] sm:$0xff] }
 0x336   :  { %8386 = vmatprep.subr.bf16.mxu1 %v14313_v47  ;;  %8365 = vmatpush3.bf16.msra.mxu0 %v14314_v41  ;;  %v2625_v47 = vadd.f32 %v2624_v14, %v2623_v46  ;;  %v14317_v41 = vld [vmem:[#allocation212_spill] sm:$0xff]  ;;  %v2637_v46 = vadd.f32 %v2636_v53, %v2635_v35  ;;  %v2830_v14 = vmul.f32 %v2814_v22, %v2702_v11  ;;  %v14323_v53 = vld [vmem:[#allocation218_spill] sm:$0xff]  ;;  %v12756_v11 = vpop.permute.xlu0 %4404 }
 0x337   :  { %8366 = vmatprep.subr.bf16.mxu0 %v14315_v8  ;;  %v12740_v8 = vsub.f32 %v12628_v49, %v2506_v17  ;;  %v2646_v49 = vmul.f32 0.125, %v2595_v32  ;;  %v2607_v17 = vadd.f32 %v2606_v9, %v2605_v51  ;;  %v2740_v35 = vmul.f32 %v2724_v40, %v12717_v23  ;;  %v12767_v31 = vpop.permute.xlu1 %4438 }
 0x338   :  { %v2759_v51 = vmul.f32 %v2743_v19, %v12710_v4  ;;  %v2653_v22 = vmul.f32 0.125, %v2637_v46  ;;  %v3957_v2 = vpack.c.bf16 %v2830_v14, %v2830_v14  ;;  %v14326_v46 = vld [vmem:[#allocation223_spill] sm:$0xff]  ;;  %v14327_v14 = vld [vmem:[#allocation222_spill] sm:$0xff] }
 0x339   :  { %8387 = vmatpush3.bf16.msra.mxu1 %v14317_v41  ;;  %v2508_v41 = vmul.f32 0.125, %v2487_v61  ;;  %v2538_v61 = vmul.f32 %v12740_v8, %v12740_v8  ;;  %v2662_v36 = vadd.f32 1e-05, %v2646_v49  ;;  %v2756_v19 = vmul.f32 %v2740_v35, %v12717_v23 }
 0x33a   :  { %8388 = vmatprep.subr.bf16.mxu1 %v14318_v30  ;;  %8367 = vmatpush3.bf16.msra.mxu0 %v14319_v29  ;;  %v2745_v30 = vmul.f32 %v2729_v55, %v12721_v1  ;;  %v2651_v29 = vmul.f32 0.125, %v2625_v47  ;;  %v14325_v55 = vld [vmem:[#allocation220_spill] sm:$0xff]  ;;  %v3962_v47 = vpack.c.bf16 %v2835_v34, %v2835_v34  ;;  %v2669_v0 = vadd.f32 1e-05, %v2653_v22  ;;  %v14332_v22 = vld [vmem:[#allocation230_spill] sm:$0xff] }
 0x33b   :  { %8368 = vmatprep.subr.bf16.mxu0 %v14320_v6  ;;  %v12763_v40 = vsub.f32 %v12494_v26, %v2508_v41  ;;  %v3959_v6 = vpack.c.bf16 %v2832_v45, %v2832_v45  ;;  %v2775_v26 = vadd.f32 %v2759_v51, %v12710_v4  ;;  %v2614_v33 = vrot.slane %v2538_v61, 4  ;;  %v14331_v45 = vld [vmem:[#allocation227_spill] sm:$0xff] }
 0x33c   :  { %v2761_v32 = vmul.f32 %v2745_v30, %v12721_v1  ;;  %v2667_v9 = vadd.f32 1e-05, %v2651_v29  ;;  %v3964_v49 = vpack.c.bf16 %v2837_v10, %v2837_v10  ;;  %9054 = vrsqrt.f32 %v2662_v36  ;;  %v12777_v29 = vpop.permute.xlu0 %4470 }
 0x33d   :  { %8389 = vmatpush3.bf16.msra.mxu1 %v14321_v52  ;;  %v2648_v52 = vmul.f32 0.125, %v2607_v17  ;;  %v14328_v17 = vld [vmem:[#allocation225_spill] sm:$0xff]  ;;  %v2540_v30 = vmul.f32 %v12763_v40, %v12763_v40  ;;  %v2786_v35 = vmul.f32 0.7978846, %v2770_v21  ;;  %v2791_v51 = vmul.f32 0.7978846, %v2775_v26 }
 0x33e   :  { %8390 = vmatprep.subr.bf16.mxu1 %v14322_v50  ;;  %8369 = vmatpush3.bf16.msra.mxu0 %v14323_v53  ;;  %v2777_v34 = vadd.f32 %v2761_v32, %v12721_v1  ;;  %9056 = vrsqrt.f32 %v2667_v9  ;;  %v2772_v50 = vadd.f32 %v2756_v19, %v12717_v23  ;;  %v14330_v53 = vld [vmem:[#allocation228_spill] sm:$0xff]  ;;  %v14334_v9 = vld [vmem:[#allocation234_spill] sm:$0xff]  ;;  %v14338_v26 = vld [vmem:[#allocation237_spill] sm:$0xff] }
 0x33f   :  { %8398 = vmatprep.subr.bf16.mxu0 %v14324_v44  ;;  %v2664_v41 = vadd.f32 1e-05, %v2648_v52  ;;  %9058 = vrsqrt.f32 %v2669_v0  ;;  %v12785_v44 = vpop.permute.xlu1 %4422  ;;  %v2626_v10 = vrot.slane %v2540_v30, 4  ;;  %v14333_v52 = vld [vmem:[#allocation229_spill] sm:$0xff]  ;;  %v14336_v21 = vld [vmem:[#allocation236_spill] sm:$0xff] }
 0x340   :  { %v2793_v36 = vmul.f32 0.7978846, %v2777_v34  ;;  %v2788_v32 = vmul.f32 0.7978846, %v2772_v50 }
 0x341   :  { %8391 = vmatpush3.bf16.msra.mxu1 %v14325_v55  ;;  %4193 = vmatmul.mubr.bf16.vlgmr.msra.gmra.mrb[48].mxu0 %v3957_v2  ;;  %9060 = vrsqrt.f32 %v2664_v41  ;;  %v2615_v2 = vadd.f32 %v2614_v33, %v2538_v61  ;;  %v14335_v55 = vld [vmem:[#allocation233_spill] sm:$0xff]  ;;  %v14339_v33 = vld [vmem:[#allocation199_spill] sm:$0xff] }
 0x342   :  { %8420 = vmatprep.subr.bf16.mxu1 %v14326_v46  ;;  %8399 = vmatpush3.bf16.msra.mxu0 %v14327_v14  ;;  %9062 = vtanh.f32 %v2786_v35  ;;  %v2627_v46 = vadd.f32 %v2626_v10, %v2540_v30  ;;  %v14341_v35 = vld [vmem:[#allocation126_spill] sm:$0xff]  ;;  %v14344_v10 = vld [vmem:[#allocation244_spill] sm:$0xff] }
 0x343   :  { %4272 = vmatprep.mubr.bf16.mxu0 %v3962_v47  ;;  %8400 = vmatprep.subr.bf16.mxu0 %v14328_v17  ;;  %v12790_v47 = vpop.permute.xlu0 %4454  ;;  %9064 = vtanh.f32 %v2791_v51  ;;  %v2616_v19 = vrot.slane %v2615_v2, 2  ;;  %v12794_v61 = vpop.permute.xlu1 %4440  ;;  %v14343_v51 = vld [vmem:[#allocation240_spill] sm:$0xff] }
 0x344   :  { %4233 = vmatmul.mubr.bf16.vlgmr.msra.gmra.mrb[48].mxu1 %v3959_v6  ;;  %9066 = vtanh.f32 %v2793_v36  ;;  %v14337_v6 = vld [vmem:[#allocation196_spill] sm:$0xff]  ;;  %v2628_v41 = vrot.slane %v2627_v46, 2 }
 0x345   :  { %8421 = vmatpush3.bf16.msra.mxu1 %v14329_v42  ;;  %4312 = vmatprep.mubr.bf16.mxu1 %v3964_v49  ;;  %9068 = vtanh.f32 %v2788_v32  ;;  %v14340_v49 = vld [vmem:[#allocation238_spill] sm:$0xff]  ;;  %v2617_v17 = vadd.f32 %v2616_v19, %v2615_v2  ;;  %v14346_v19 = vld [vmem:[#allocation245_spill] sm:$0xff] }
 0x346   :  { %8422 = vmatprep.subr.bf16.mxu1 %v14330_v53  ;;  %8401 = vmatpush3.bf16.msra.mxu0 %v14331_v45  ;;  %v9055_v14 = vpop.eup %9054  ;;  %v14342_v45 = vld [vmem:[#allocation241_spill] sm:$0xff]  ;;  %v2629_v32 = vadd.f32 %v2628_v41, %v2627_v46 }
 0x347   :  { %8402 = vmatprep.subr.bf16.mxu0 %v14332_v22  ;;  %v12799_v34 = vpop.permute.xlu0 %4472  ;;  %v12802_v30 = vmul.f32 %v9055_v14, %v12636_v28  ;;  %v12811_v2 = vpop.permute.xlu1 %4424 }
 0x348   :  { %v9057_v0 = vpop.eup %9056 }
 0x349   :  { %8423 = vmatpush3.bf16.msra.mxu1 %v14333_v52  ;;  %v9059_v42 = vpop.eup %9058  ;;  %v12806_v53 = vmul.f32 %v9057_v0, %v12641_v57  ;;  %v2618_v52 = vrot.slane %v2617_v17, 1 }
 0x34a   :  { %8424 = vmatprep.subr.bf16.mxu1 %v14334_v9  ;;  %8403 = vmatpush3.bf16.msra.mxu0 %v14335_v55  ;;  %v12814_v28 = vmul.f32 %v9059_v42, %v12653_v13  ;;  %v2726_v9 = vmul.f32 0.044715, %v12802_v30  ;;  %v14345_v55 = vld [vmem:[#allocation242_spill] sm:$0xff]  ;;  %v2706_v13 = vmul.f32 0.5, %v12706_v58  ;;  %v2630_v42 = vrot.slane %v2629_v32, 1  ;;  %v14350_v58 = vld [vmem:[#allocation248_spill] sm:$0xff] }
 0x34b   :  { %8404 = vmatprep.subr.bf16.mxu0 %v14336_v21  ;;  %v9061_v50 = vpop.eup %9060  ;;  %v12823_v14 = vpop.permute.xlu0 %4456  ;;  %v2619_v41 = vadd.f32 %v2618_v52, %v2617_v17 }
 0x34c   :  { %v9063_v22 = vpop.eup %9062  ;;  %v12818_v57 = vmul.f32 %v9061_v50, %v12658_v20  ;;  %v2711_v20 = vmul.f32 0.5, %v12710_v4  ;;  %v2708_v4 = vmul.f32 0.5, %v12717_v23 }
 0x34d   :  { %8425 = vmatpush3.bf16.msra.mxu1 %v14337_v6  ;;  %v9065_v36 = vpop.eup %9064  ;;  %v14347_v6 = vld [vmem:[#allocation198_spill] sm:$0xff]  ;;  %v2818_v0 = vadd.f32 1.0, %v9063_v22 }
 0x34e   :  { %8426 = vmatprep.subr.bf16.mxu1 %v14338_v26  ;;  %8405 = vmatpush3.bf16.msra.mxu0 %v14339_v33  ;;  %v9067_v21 = vpop.eup %9066  ;;  %v2731_v26 = vmul.f32 0.044715, %v12806_v53  ;;  %v14348_v33 = vld [vmem:[#allocation247_spill] sm:$0xff]  ;;  %v2728_v50 = vmul.f32 0.044715, %v12818_v57 }
 0x34f   :  { %8406 = vmatprep.subr.bf16.mxu0 %v14340_v49  ;;  %v9069_v46 = vpop.eup %9068  ;;  %v2823_v49 = vadd.f32 1.0, %v9065_v36  ;;  %v2834_v36 = vmul.f32 %v2818_v0, %v2706_v13 }
 0x350   :  { %v2820_v17 = vadd.f32 1.0, %v9069_v46  ;;  %v2747_v22 = vmul.f32 %v2731_v26, %v12806_v53  ;;  %v2744_v23 = vmul.f32 %v2728_v50, %v12818_v57  ;;  %v14352_v26 = vld [vmem:[#allocation113_spill] sm:$0xff] }
 0x351   :  { %8427 = vmatpush3.bf16.msra.mxu1 %v14341_v35  ;;  %v2733_v35 = vmul.f32 0.044715, %v12814_v28  ;;  %v2839_v52 = vmul.f32 %v2823_v49, %v2711_v20 }
 0x352   :  { %8428 = vmatprep.subr.bf16.mxu1 %v14342_v45  ;;  %8407 = vmatpush3.bf16.msra.mxu0 %v14343_v51  ;;  %v14349_v45 = vld [vmem:[#allocation246_spill] sm:$0xff]  ;;  %v12832_v51 = vpop.permute.xlu1 %4442  ;;  %v2763_v46 = vmul.f32 %v2747_v22, %v12806_v53  ;;  %v14356_v22 = vld [vmem:[#allocation120_spill] sm:$0xff] }
 0x353   :  { %8408 = vmatprep.subr.bf16.mxu0 %v14344_v10  ;;  %v2713_v10 = vmul.f32 0.5, %v12721_v1  ;;  %v2749_v1 = vmul.f32 %v2733_v35, %v12814_v28  ;;  %v4351_v0 = vpack.c.bf16 %v2839_v52, %v2839_v52  ;;  %v2760_v35 = vmul.f32 %v2744_v23, %v12818_v57  ;;  %v14357_v52 = vld [vmem:[#allocation124_spill] sm:$0xff] }
 0x355   :  { %8429 = vmatpush3.bf16.msra.mxu1 %v14345_v55  ;;  %v2825_v55 = vadd.f32 1.0, %v9067_v21  ;;  %v2650_v21 = vmul.f32 0.125, %v2619_v41  ;;  %v2765_v49 = vmul.f32 %v2749_v1, %v12814_v28 }
 0x356   :  { %8430 = vmatprep.subr.bf16.mxu1 %v14346_v19  ;;  %8409 = vmatpush3.bf16.msra.mxu0 %v14347_v6  ;;  %v2742_v19 = vmul.f32 %v2726_v9, %v12802_v30  ;;  %v2631_v6 = vadd.f32 %v2630_v42, %v2629_v32  ;;  %v14351_v9 = vld [vmem:[#allocation249_spill] sm:$0xff]  ;;  %v3961_v32 = vpack.c.bf16 %v2834_v36, %v2834_v36  ;;  %v12851_v13 = vpop.permute.xlu1 %4426 }
 0x357   :  { %8410 = vmatprep.subr.bf16.mxu0 %v14348_v33  ;;  %v12841_v33 = vpop.permute.xlu0 %4474  ;;  %v2666_v41 = vadd.f32 1e-05, %v2650_v21  ;;  %v14359_v21 = vld [vmem:[#allocation122_spill] sm:$0xff] }
 0x358   :  { %v2652_v20 = vmul.f32 0.125, %v2631_v6 }
 0x359   :  { %8431 = vmatpush3.bf16.msra.mxu1 %v14349_v45  ;;  %v2758_v45 = vmul.f32 %v2742_v19, %v12802_v30  ;;  %9070 = vrsqrt.f32 %v2666_v41  ;;  %v2717_v41 = vmul.f32 0.5, %v12814_v28 }
 0x35a   :  { %8432 = vmatprep.subr.bf16.mxu1 %v12272_v54  ;;  %8411 = vmatpush3.bf16.msra.mxu0 %v14350_v58  ;;  %v2841_v54 = vmul.f32 %v2825_v55, %v2713_v10  ;;  %v2779_v10 = vadd.f32 %v2763_v46, %v12806_v53  ;;  %v2668_v55 = vadd.f32 1e-05, %v2652_v20  ;;  %v12865_v19 = vpop.permute.xlu1 %4444 }
 0x35b   :  { %8412 = vmatprep.subr.bf16.mxu0 %v12315_v38  ;;  %v2836_v38 = vmul.f32 %v2820_v17, %v2708_v4  ;;  %v14353_v17 = vld [vmem:[#allocation117_spill] sm:$0xff] }
 0x35c   :  { %v4353_v42 = vpack.c.bf16 %v2841_v54, %v2841_v54  ;;  %v2795_v58 = vmul.f32 0.7978846, %v2779_v10  ;;  %9072 = vrsqrt.f32 %v2668_v55  ;;  %v14365_v55 = vld [vmem:[#allocation131_spill] sm:$0xff] }
 0x35d   :  { %8433 = vmatpush3.bf16.msra.mxu1 %v14351_v9  ;;  %v3963_v50 = vpack.c.bf16 %v2836_v38, %v2836_v38  ;;  %v14360_v9 = vld [vmem:[#allocation125_spill] sm:$0xff] }
 0x35e   :  { %8434 = vmatprep.subr.bf16.mxu1 %v12352_v27  ;;  %8413 = vmatpush3.bf16.msra.mxu0 %v14352_v26  ;;  %v2774_v27 = vadd.f32 %v2758_v45, %v12802_v30 }
 0x35f   :  { %8442 = vmatprep.subr.bf16.mxu0 %v12386_v63  ;;  %v12859_v63 = vpop.permute.xlu0 %4458 }
 0x361   :  { %8435 = vmatpush3.bf16.msra.mxu1 %v12365_v59  ;;  %4273 = vmatmul.mubr.bf16.vlgmr.msra.gmra.mrb[52].mxu0 %v3961_v32  ;;  %v2781_v59 = vadd.f32 %v2765_v49, %v12814_v28 }
 0x362   :  { %8464 = vmatprep.subr.bf16.mxu1 %v12396_v5  ;;  %8443 = vmatpush3.bf16.msra.mxu0 %v12409_v39  ;;  %v2790_v5 = vmul.f32 0.7978846, %v2774_v27  ;;  %v2776_v39 = vadd.f32 %v2760_v35, %v12818_v57 }
 0x363   :  { %8444 = vmatprep.subr.bf16.mxu0 %v12433_v43  ;;  %4585 = vmatprep.mubr.bf16.mxu0 %v4351_v0  ;;  %v12871_v43 = vpop.permute.xlu0 %4476  ;;  %v2797_v4 = vmul.f32 0.7978846, %v2781_v59  ;;  %v9071_v36 = vpop.eup %9070  ;;  %v2715_v0 = vmul.f32 0.5, %v12806_v53  ;;  %v14364_v53 = vld [vmem:[#allocation132_spill] sm:$0xff] }
 0x364   :  { %4313 = vmatmul.mubr.bf16.vlgmr.msra.gmra.mrb[52].mxu1 %v3963_v50  ;;  %9074 = vtanh.f32 %v2790_v5  ;;  %v12889_v1 = vmul.f32 %v9071_v36, %v12740_v8 }
 0x365   :  { %8465 = vmatpush3.bf16.msra.mxu1 %v12420_v56  ;;  %4625 = vmatprep.mubr.bf16.mxu1 %v4353_v42  ;;  %v2792_v56 = vmul.f32 0.7978846, %v2776_v39  ;;  %9076 = vtanh.f32 %v2795_v58  ;;  %v14366_v39 = vld [vmem:[#allocation134_spill] sm:$0xff] }
 0x366   :  { %8466 = vmatprep.subr.bf16.mxu1 %v12442_v62  ;;  %8445 = vmatpush3.bf16.msra.mxu0 %v12460_v25  ;;  %v12877_v62 = vpop.permute.xlu1 %4428  ;;  %9078 = vtanh.f32 %v2797_v4  ;;  %v14354_v25 = vld [vmem:[#allocation114_spill] sm:$0xff]  ;;  %v9073_v6 = vpop.eup %9072  ;;  %v2730_v46 = vmul.f32 0.044715, %v12889_v1 }
 0x367   :  { %8446 = vmatprep.subr.bf16.mxu0 %v12489_v16  ;;  %9080 = vtanh.f32 %v2792_v56  ;;  %v14355_v16 = vld [vmem:[#allocation116_spill] sm:$0xff]  ;;  %v12897_v26 = vmul.f32 %v9073_v6, %v12763_v40 }
 0x368   :  { %v2746_v35 = vmul.f32 %v2730_v46, %v12889_v1 }
 0x369   :  { %8467 = vmatpush3.bf16.msra.mxu1 %v12478_v60  ;;  %v12882_v60 = vpop.permute.xlu0 %4460  ;;  %v2732_v49 = vmul.f32 0.044715, %v12897_v26 }
 0x36a   :  { %8468 = vmatprep.subr.bf16.mxu1 %v12511_v3  ;;  %8447 = vmatpush3.bf16.msra.mxu0 %v12528_v37  ;;  %v14358_v3 = vld [vmem:[#allocation121_spill] sm:$0xff]  ;;  %v12886_v37 = vpop.permute.xlu1 %4446 }
 0x36b   :  { %8448 = vmatprep.subr.bf16.mxu0 %v14353_v17  ;;  %v2748_v28 = vmul.f32 %v2732_v49, %v12897_v26  ;;  %v14367_v49 = vmov 0  }
 0x36d   :  { %8469 = vmatpush3.bf16.msra.mxu1 %v14354_v25  ;;  %v12894_v23 = vpop.permute.xlu0 %4478 }
 0x36e   :  { %8470 = vmatprep.subr.bf16.mxu1 %v14355_v16  ;;  %8449 = vmatpush3.bf16.msra.mxu0 %v14356_v22  ;;  %v9075_v54 = vpop.eup %9074  ;;  %v4431_v40 = vpop.permute.xlu1 %4430  ;;  %v2764_v16 = vmul.f32 %v2748_v28, %v12897_v26 }
 0x36f   :  { %8450 = vmatprep.subr.bf16.mxu0 %v14357_v52  ;;  %v9077_v45 = vpop.eup %9076  ;;  %v2822_v32 = vadd.f32 1.0, %v9075_v54 }
 0x370   :  { %v9079_v38 = vpop.eup %9078  ;;  %v2827_v20 = vadd.f32 1.0, %v9077_v45 }
 0x371   :  { %8471 = vmatpush3.bf16.msra.mxu1 %v14358_v3  ;;  %v9081_v8 = vpop.eup %9080  ;;  %v2829_v42 = vadd.f32 1.0, %v9079_v38  ;;  %v2716_v38 = vmul.f32 0.5, %v12897_v26 }
 0x372   :  { %8472 = vmatprep.subr.bf16.mxu1 %v14359_v21  ;;  %8451 = vmatpush3.bf16.msra.mxu0 %v14360_v9  ;;  %v2824_v27 = vadd.f32 1.0, %v9081_v8  ;;  %v2843_v10 = vmul.f32 %v2827_v20, %v2715_v0  ;;  %v4449_v5 = vpop.permute.xlu1 %4448 }
 0x373   :  { %8452 = vmatprep.subr.bf16.mxu0 %v12644_v18  ;;  %v2710_v18 = vmul.f32 0.5, %v12802_v30  ;;  %v4463_v30 = vpop.permute.xlu0 %4462  ;;  %v2845_v59 = vmul.f32 %v2829_v42, %v2717_v41 }
 0x374   :  { %v4355_v56 = vpack.c.bf16 %v2843_v10, %v2843_v10 }
 0x375   :  { %8473 = vmatpush3.bf16.msra.mxu1 %v12632_v24  ;;  %v14361_v24 = vld [vmem:[#allocation128_spill] sm:$0xff]  ;;  %v2838_v50 = vmul.f32 %v2822_v32, %v2710_v18  ;;  %v4357_v25 = vpack.c.bf16 %v2845_v59, %v2845_v59 }
 0x376   :  { %8474 = vmatprep.subr.bf16.mxu1 %v12661_v12  ;;  %8453 = vmatpush3.bf16.msra.mxu0 %v12676_v7  ;;  %v14362_v12 = vld [vmem:[#allocation130_spill] sm:$0xff]  ;;  %v14363_v7 = vld [vmem:[#allocation129_spill] sm:$0xff]  ;;  %v4433_v36 = vpop.permute.xlu1 %4432 }
 0x377   :  { %8454 = vmatprep.subr.bf16.mxu0 %v12692_v48  ;;  %v2712_v48 = vmul.f32 0.5, %v12818_v57  ;;  %v2762_v57 = vmul.f32 %v2746_v35, %v12889_v1  ;;  %v4350_v4 = vpack.c.bf16 %v2838_v50, %v2838_v50  ;;  %v4481_v17 = vpop.permute.xlu0 %4480 }
 0x379   :  { %8475 = vmatpush3.bf16.msra.mxu1 %v14361_v24  ;;  %v2840_v58 = vmul.f32 %v2824_v27, %v2712_v48 }
 0x37a   :  { %8476 = vmatprep.subr.bf16.mxu1 %v14362_v12  ;;  %8455 = vmatpush3.bf16.msra.mxu0 %v14363_v7 }
 0x37b   :  { %8456 = vmatprep.subr.bf16.mxu0 %v14364_v53  ;;  %v4352_v22 = vpack.c.bf16 %v2840_v58, %v2840_v58 }
 0x37d   :  { %8477 = vmatpush3.bf16.msra.mxu1 %v14365_v55 }
 0x37e   :  { %8478 = vmatprep.subr.bf16.mxu1 %v14366_v39  ;;  %8457 = vmatpush3.bf16.msra.mxu0 %v12748_v15  ;;  %v2778_v15 = vadd.f32 %v2762_v57, %v12889_v1 }
 0x37f   :  { %8486 = vmatprep.subr.bf16.mxu0 %v12767_v31  ;;  %v4465_v31 = vpop.permute.xlu0 %4464 }
 0x381   :  { %8479 = vmatpush3.bf16.msra.mxu1 %v12756_v11  ;;  %4586 = vmatmul.mubr.bf16.vlgmr.msra.gmra.mrb[56].mxu0 %v4350_v4  ;;  %v2780_v11 = vadd.f32 %v2764_v16, %v12897_v26 }
 0x382   :  { %8508 = vmatprep.subr.bf16.mxu1 %v12777_v29  ;;  %8487 = vmatpush3.bf16.msra.mxu0 %v12785_v44  ;;  %v2794_v29 = vmul.f32 0.7978846, %v2778_v15  ;;  %v4451_v44 = vpop.permute.xlu1 %4450 }
 0x383   :  { %4665 = vmatprep.mubr.bf16.mxu0 %v4355_v56  ;;  %8488 = vmatprep.subr.bf16.mxu0 %v12794_v61  ;;  %v2796_v52 = vmul.f32 0.7978846, %v2780_v11 }
 0x384   :  { %4626 = vmatmul.mubr.bf16.vlgmr.msra.gmra.mrb[56].mxu1 %v4352_v22  ;;  %9082 = vtanh.f32 %v2794_v29 }
 0x385   :  { %8509 = vmatpush3.bf16.msra.mxu1 %v12790_v47  ;;  %4705 = vmatprep.mubr.bf16.mxu1 %v4357_v25  ;;  %v4483_v47 = vpop.permute.xlu0 %4482  ;;  %9084 = vtanh.f32 %v2796_v52 }
 0x386   :  { %8510 = vmatprep.subr.bf16.mxu1 %v12799_v34  ;;  %8489 = vmatpush3.bf16.msra.mxu0 %v12811_v2  ;;  %v4435_v61 = vpop.permute.xlu1 %4434 }
 0x387   :  { %8490 = vmatprep.subr.bf16.mxu0 %v12832_v51 }
 0x389   :  { %8511 = vmatpush3.bf16.msra.mxu1 %v12823_v14  ;;  %v4467_v34 = vpop.permute.xlu0 %4466 }
 0x38a   :  { %8512 = vmatprep.subr.bf16.mxu1 %v12841_v33  ;;  %8491 = vmatpush3.bf16.msra.mxu0 %v12851_v13 }
 0x38b   :  { %8492 = vmatprep.subr.bf16.mxu0 %v12865_v19 }
 0x38d   :  { %8513 = vmatpush3.bf16.msra.mxu1 %v12859_v63  ;;  %v4453_v63 = vpop.permute.xlu1 %4452  ;;  %v4485_v9 = vpop.permute.xlu0 %4484 }
 0x38e   :  { %8514 = vmatprep.subr.bf16.mxu1 %v12871_v43  ;;  %8493 = vmatpush3.bf16.msra.mxu0 %v12877_v62  ;;  %v9083_v14 = vpop.eup %9082 }
 0x38f   :  { %8494 = vmatprep.subr.bf16.mxu0 %v12886_v37  ;;  %v9085_v43 = vpop.eup %9084  ;;  %v2714_v37 = vmul.f32 0.5, %v12889_v1  ;;  %v2826_v6 = vadd.f32 1.0, %v9083_v14 }
 0x390   :  { %v2828_v46 = vadd.f32 1.0, %v9085_v43 }
 0x391   :  { %8515 = vmatpush3.bf16.msra.mxu1 %v12882_v60  ;;  %v9263_v60 = vld [vmem:[%s13912_s10] ss:$0 sm:$0xff]  ;;  %v4437_v18 = vpop.permute.xlu1 %4436  ;;  %v2842_v32 = vmul.f32 %v2826_v6, %v2714_v37  ;;  %v4469_v0 = vpop.permute.xlu0 %4468  ;;  %s9763_s10 = smov [#allocation5]  }
 0x392   :  { %8516 = vmatprep.subr.bf16.mxu1 %v12894_v23  ;;  %8495 = vmatpush3.bf16.msra.mxu0 %v4431_v40  ;;  %v2844_v1 = vmul.f32 %v2828_v46, %v2716_v38  ;;  %s628_s21 = sshll.u32 %s9763_s10, 4  ;;  %s629_s21 = int_to_ptr.vmem [resolvable:$true] %s628_s21 }
 0x393   :  { %v8194_v2 = vpop.f32.mrb[32].mxu0  ;;  %8496 = vmatprep.subr.bf16.mxu0 %v4449_v5  ;;  %v4354_v20 = vpack.c.bf16 %v2842_v32, %v2842_v32 }
 0x394   :  { %v8195_v51 = vpop.f32.mrb[33].mxu0  ;;  %v4356_v40 = vpack.c.bf16 %v2844_v1, %v2844_v1 }
 0x395   :  { %8517 = vmatpush3.bf16.msra.mxu1 %v4463_v30  ;;  %v8196_v33 = vadd.f32 %v8195_v51, %v8194_v2  ;;  %v8197_v13 = vpop.f32.mrb[34].mxu0  ;;  %v8216_v62 = vpop.f32.mrb[32].mxu1 }
 0x396   :  { %8518 = vmatprep.subr.bf16.mxu1 %v4481_v17  ;;  %8497 = vmatpush3.bf16.msra.mxu0 %v4433_v36  ;;  %v8198_v19 = vpop.f32.mrb[35].mxu0  ;;  %v8217_v21 = vpop.f32.mrb[33].mxu1 }
 0x397   :  { %v3408_v3 = vadd.f32 %v9263_v60, %v8196_v33  ;;  %8498 = vmatprep.subr.bf16.mxu0 %v4451_v44  ;;  %v8218_v54 = vadd.f32 %v8217_v21, %v8216_v62  ;;  %v8219_v45 = vpop.f32.mrb[34].mxu1  ;;  %v3765_v59 = vpop.permute.xlu1 %3764 }
 0x398   :  { %v8220_v23 = vpop.f32.mrb[35].mxu1 }
 0x399   :  { %8519 = vmatpush3.bf16.msra.mxu1 %v4465_v31  ;;  %v3448_v8 = vadd.f32 %v8218_v54, %v3408_v3 }
 0x39a   :  { %8520 = vmatprep.subr.bf16.mxu1 %v4483_v47  ;;  %8499 = vmatpush3.bf16.msra.mxu0 %v4435_v61 }
 0x39b   :  { %8500 = vmatprep.subr.bf16.mxu0 %v4453_v63 }
 0x39d   :  { %8521 = vmatpush3.bf16.msra.mxu1 %v4467_v34 }
 0x39e   :  { %8522 = vmatprep.subr.bf16.mxu1 %v4485_v9  ;;  %8501 = vmatpush3.bf16.msra.mxu0 %v4437_v18 }
 0x3a1   :  { %8523 = vmatpush3.bf16.msra.mxu1 %v4469_v0  ;;  %4666 = vmatmul.mubr.bf16.vlgmr.msra.gmra.mrb[60].mxu0 %v4354_v20 }
 0x3a2   :  { %4922 = vmatprep.mubr.bf16.mxu0 %v14367_v49 }
 0x3a4   :  { %4706 = vmatmul.mubr.bf16.vlgmr.msra.gmra.mrb[60].mxu1 %v4356_v40 }
 0x3a5   :  { %4973 = vmatprep.mubr.bf16.mxu1 %v14367_v49 }
 0x3b3   :  { %v8238_v26 = vpop.f32.mrb[36].mxu0 }
 0x3b4   :  { %v8239_v24 = vpop.f32.mrb[37].mxu0 }
 0x3b5   :  { %v8240_v41 = vadd.f32 %v8239_v24, %v8238_v26  ;;  %v8241_v42 = vpop.f32.mrb[38].mxu0  ;;  %v14368_v24 = vld [vmem:[#allocation115_spill] sm:$0xff] }
 0x3b6   :  { %v8242_v12 = vpop.f32.mrb[39].mxu0 }
 0x3b7   :  { %v8260_v7 = vpop.f32.mrb[36].mxu1  ;;  %v3488_v48 = vadd.f32 %v8240_v41, %v3448_v8 }
 0x3b8   :  { %v8261_v27 = vpop.f32.mrb[37].mxu1 }
 0x3b9   :  { %v8262_v30 = vadd.f32 %v8261_v27, %v8260_v7  ;;  %v8263_v35 = vpop.f32.mrb[38].mxu1 }
 0x3ba   :  { %v8264_v53 = vpop.f32.mrb[39].mxu1 }
 0x3bb   :  { %v12948_v50 = vadd.f32 %v8262_v30, %v3488_v48 }
 0x3bd   :  { %v3534_v19 = vsel %vm3533_vm3, %v12948_v50, 0.0 }
 0x3be   :  { %v3535_v62 = vrot.slane %v3534_v19, 4 }
 0x3c0   :  { %v3536_v37 = vadd.f32 %v3535_v62, %v3534_v19 }
 0x3c2   :  { %v3537_v9 = vrot.slane %v3536_v37, 2 }
 0x3c4   :  { %v3538_v38 = vadd.f32 %v3537_v9, %v3536_v37 }
 0x3c6   :  { %v3539_v26 = vrot.slane %v3538_v38, 1 }
 0x3c8   :  { %v3540_v53 = vadd.f32 %v3539_v26, %v3538_v38 }
 0x3d3   :  { %v8282_v10 = vpop.f32.mrb[40].mxu0 }
 0x3d4   :  { %v8283_v55 = vpop.f32.mrb[41].mxu0 }
 0x3d5   :  { %v8284_v5 = vadd.f32 %v8283_v55, %v8282_v10  ;;  %v8285_v28 = vpop.f32.mrb[42].mxu0 }
 0x3d6   :  { %v8286_v39 = vpop.f32.mrb[43].mxu0 }
 0x3d7   :  { %v8304_v58 = vpop.f32.mrb[40].mxu1  ;;  %v3802_v57 = vadd.f32 %v8284_v5, %v3765_v59  ;;  %v3541_v59 = vmul.f32 0.125, %v3540_v53  ;;  %v4746_v39 = vld [vmem:[#allocation17] sm:$0xff] }
 0x3d8   :  { %v8305_v4 = vpop.f32.mrb[41].mxu1 }
 0x3d9   :  { %v8306_v56 = vadd.f32 %v8305_v4, %v8304_v58  ;;  %v8307_v17 = vpop.f32.mrb[42].mxu1  ;;  %v12956_v5 = vsub.f32 %v12948_v50, %v3541_v59  ;;  %v4750_v58 = vld [vmem:[#allocation17 + $0x20] sm:$0xff] }
 0x3da   :  { %v8308_v25 = vpop.f32.mrb[43].mxu1  ;;  %v8133_v4 = vcombine.high %v4746_v39, %v4750_v58  ;;  %v8132_v17 = vcombine.low %v4746_v39, %v4750_v58  ;;  %v4754_v50 = vld [vmem:[#allocation17 + $0x40] sm:$0xff] }
 0x3db   :  { %v3842_v16 = vadd.f32 %v8306_v56, %v3802_v57  ;;  %v3543_v28 = vmul.f32 %v12956_v5, %v12956_v5  ;;  %v4747_v57 = vld [vmem:[#allocation17 + $0x8] sm:$0xff] }
 0x3dc   :  { %v4751_v56 = vld [vmem:[#allocation17 + $0x28] sm:$0xff]  ;;  %4890 = vmatprep.subr.bf16.mxu0 %v8133_v4 }
 0x3dd   :  { %v8134_v25 = vcombine.low %v4747_v57, %v4751_v56  ;;  %4891 = vmatpush1.bf16.msra.mxu0 %v8132_v17 }
 0x3f4   :  { %v8326_v22 = vpop.f32.mrb[44].mxu0 }
 0x3f5   :  { %v8327_v15 = vpop.f32.mrb[45].mxu0 }
 0x3f6   :  { %v8328_v36 = vadd.f32 %v8327_v15, %v8326_v22  ;;  %v8329_v11 = vpop.f32.mrb[46].mxu0  ;;  %v3544_v15 = vsel %vm3533_vm3, %v3543_v28, 0.0 }
 0x3f7   :  { %v8348_v31 = vpop.f32.mrb[44].mxu1  ;;  %v8330_v29 = vpop.f32.mrb[47].mxu0  ;;  %v4758_v11 = vld [vmem:[#allocation17 + $0x60] sm:$0xff] }
 0x3f8   :  { %v3882_v44 = vadd.f32 %v8328_v36, %v3842_v16  ;;  %v8349_v52 = vpop.f32.mrb[45].mxu1  ;;  %v8135_v16 = vcombine.high %v4747_v57, %v4751_v56  ;;  %v8141_v29 = vcombine.high %v4754_v50, %v4758_v11 }
 0x3f9   :  { %v8350_v47 = vadd.f32 %v8349_v52, %v8348_v31  ;;  %v8351_v61 = vpop.f32.mrb[46].mxu1  ;;  %v4755_v31 = vld [vmem:[#allocation17 + $0x48] sm:$0xff] }
 0x3fa   :  { %v8352_v34 = vpop.f32.mrb[47].mxu1  ;;  %4941 = vmatprep.subr.bf16.mxu1 %v8135_v16  ;;  %4892 = vmatprep.subr.bf16.mxu0 %v8141_v29 }
 0x3fb   :  { %v3922_v2 = vadd.f32 %v8350_v47, %v3882_v44  ;;  %4942 = vmatpush1.bf16.msra.mxu1 %v8134_v25  ;;  %v4759_v44 = vld [vmem:[#allocation17 + $0x68] sm:$0xff]  ;;  %v8140_v47 = vcombine.low %v4754_v50, %v4758_v11  ;;  %v3545_v34 = vrot.slane %v3544_v15, 4 }
 0x3fc   :  { %v8142_v61 = vcombine.low %v4755_v31, %v4759_v44 }
 0x3fd   :  { %v3927_v14 = vsel %vm3533_vm3, %v3922_v2, 0.0  ;;  %4893 = vmatpush1.bf16.msra.mxu0 %v8140_v47 }
 0x3fe   :  { %v3928_v51 = vrot.slane %v3927_v14, 4 }
 0x400   :  { %v3929_v33 = vadd.f32 %v3928_v51, %v3927_v14 }
 0x402   :  { %v3930_v13 = vrot.slane %v3929_v33, 2 }
 0x404   :  { %v3931_v63 = vadd.f32 %v3930_v13, %v3929_v33  ;;  %v3546_v33 = vadd.f32 %v3545_v34, %v3544_v15 }
 0x406   :  { %v3932_v43 = vrot.slane %v3931_v63, 1 }
 0x408   :  { %v3933_v60 = vadd.f32 %v3932_v43, %v3931_v63 }
 0x40a   :  { %v3934_v3 = vmul.f32 0.125, %v3933_v60 }
 0x40c   :  { %v3935_v6 = vsub.f32 %v3922_v2, %v3934_v3  ;;  %v8143_v2 = vcombine.high %v4755_v31, %v4759_v44  ;;  %v3547_v3 = vrot.slane %v3546_v33, 2 }
 0x40e   :  { %v3936_v21 = vmul.f32 %v3935_v6, %v3935_v6  ;;  %4943 = vmatprep.subr.bf16.mxu1 %v8143_v2 }
 0x40f   :  { %4944 = vmatpush1.bf16.msra.mxu1 %v8142_v61 }
 0x410   :  { %v3937_v54 = vsel %vm3533_vm3, %v3936_v21, 0.0 }
 0x411   :  { %v3938_v45 = vrot.slane %v3937_v54, 4 }
 0x413   :  { %v3939_v23 = vadd.f32 %v3938_v45, %v3937_v54  ;;  %v12961_v54 = vld [vmem:[#allocation17 + $0x10] sm:$0xff] }
 0x414   :  { %v8370_v46 = vpop.f32.mrb[48].mxu0  ;;  %v12963_v45 = vld [vmem:[#allocation17 + $0x30] sm:$0xff] }
 0x415   :  { %v3940_v8 = vrot.slane %v3939_v23, 2  ;;  %v8371_v18 = vpop.f32.mrb[49].mxu0 }
 0x416   :  { %v8372_v32 = vadd.f32 %v8371_v18, %v8370_v46  ;;  %v8373_v0 = vpop.f32.mrb[50].mxu0  ;;  %v12969_v18 = vld [vmem:[#allocation17 + $0x38] sm:$0xff] }
 0x417   :  { %v3941_v1 = vadd.f32 %v3940_v8, %v3939_v23  ;;  %v8392_v20 = vpop.f32.mrb[48].mxu1  ;;  %v8374_v40 = vpop.f32.mrb[51].mxu0  ;;  %v12965_v23 = vld [vmem:[#allocation17 + $0x18] sm:$0xff]  ;;  %v8137_v8 = vcombine.high %v12961_v54, %v12963_v45  ;;  %v8136_v0 = vcombine.low %v12961_v54, %v12963_v45 }
 0x418   :  { %v4195_v41 = vadd.f32 %v8372_v32, %v14368_v24  ;;  %v8393_v42 = vpop.f32.mrb[49].mxu1  ;;  %v3548_v40 = vadd.f32 %v3547_v3, %v3546_v33 }
 0x419   :  { %v3942_v12 = vrot.slane %v3941_v1, 1  ;;  %v8394_v7 = vadd.f32 %v8393_v42, %v8392_v20  ;;  %v8395_v48 = vpop.f32.mrb[50].mxu1  ;;  %v8139_v20 = vcombine.high %v12965_v23, %v12969_v18  ;;  %4992 = vmatprep.subr.bf16.mxu0 %v8137_v8 }
 0x41a   :  { %v8396_v27 = vpop.f32.mrb[51].mxu1  ;;  %v3549_v42 = vrot.slane %v3548_v40, 1 }
 0x41b   :  { %v3943_v30 = vadd.f32 %v3942_v12, %v3941_v1  ;;  %v4235_v35 = vadd.f32 %v8394_v7, %v4195_v41  ;;  %v8138_v1 = vcombine.low %v12965_v23, %v12969_v18  ;;  %5043 = vmatprep.subr.bf16.mxu1 %v8139_v20 }
 0x41c   :  { %v3550_v27 = vadd.f32 %v3549_v42, %v3548_v40 }
 0x41d   :  { %v3944_v10 = vmul.f32 0.125, %v3943_v30 }
 0x41e   :  { %v3551_v59 = vmul.f32 0.125, %v3550_v27 }
 0x41f   :  { %v3945_v55 = vadd.f32 1e-05, %v3944_v10 }
 0x420   :  { %v3552_v58 = vadd.f32 1e-05, %v3551_v59 }
 0x421   :  { %9086 = vrsqrt.f32 %v3945_v55 }
 0x42b   :  { %v9087_v22 = vpop.eup %9086 }
 0x42c   :  { %v3947_v36 = vmul.f32 %v9087_v22, %v3935_v6 }
 0x42e   :  { %v3949_v52 = vmul.f32 0.044715, %v3947_v36  ;;  %v3948_v30 = vmul.f32 0.5, %v3947_v36 }
 0x430   :  { %v3950_v14 = vmul.f32 %v3949_v52, %v3947_v36 }
 0x432   :  { %v3951_v51 = vmul.f32 %v3950_v14, %v3947_v36 }
 0x434   :  { %v3952_v13 = vadd.f32 %v3951_v51, %v3947_v36  ;;  %v8414_v63 = vpop.f32.mrb[52].mxu0  ;;  %v4551_v36 = vpop.permute.xlu0 %4550 }
 0x435   :  { %v8415_v19 = vpop.f32.mrb[53].mxu0 }
 0x436   :  { %v3953_v43 = vmul.f32 0.7978846, %v3952_v13  ;;  %v8416_v62 = vadd.f32 %v8415_v19, %v8414_v63  ;;  %v8417_v60 = vpop.f32.mrb[54].mxu0 }
 0x437   :  { %v8436_v37 = vpop.f32.mrb[52].mxu1  ;;  %v8418_v6 = vpop.f32.mrb[55].mxu0 }
 0x438   :  { %9088 = vtanh.f32 %v3953_v43  ;;  %v4275_v21 = vadd.f32 %v8416_v62, %v4235_v35  ;;  %v8437_v9 = vpop.f32.mrb[53].mxu1 }
 0x439   :  { %v8438_v38 = vadd.f32 %v8437_v9, %v8436_v37  ;;  %v8439_v46 = vpop.f32.mrb[54].mxu1  ;;  %9090 = vrsqrt.f32 %v3552_v58 }
 0x43a   :  { %v8440_v32 = vpop.f32.mrb[55].mxu1 }
 0x43b   :  { %v4315_v26 = vadd.f32 %v8438_v38, %v4275_v21 }
 0x43d   :  { %v4320_v24 = vsel %vm3533_vm3, %v4315_v26, 0.0 }
 0x43e   :  { %v4321_v41 = vrot.slane %v4320_v24, 4 }
 0x440   :  { %v4322_v12 = vadd.f32 %v4321_v41, %v4320_v24 }
 0x442   :  { %v9089_v7 = vpop.eup %9088  ;;  %v4323_v48 = vrot.slane %v4322_v12, 2 }
 0x443   :  { %v3955_v35 = vadd.f32 1.0, %v9089_v7  ;;  %v9091_v61 = vpop.eup %9090 }
 0x444   :  { %v4324_v53 = vadd.f32 %v4323_v48, %v4322_v12  ;;  %v3554_v63 = vmul.f32 %v9091_v61, %v12956_v5 }
 0x445   :  { %v12978_v10 = vmul.f32 %v3955_v35, %v3948_v30 }
 0x446   :  { %v4325_v55 = vrot.slane %v4324_v53, 1  ;;  %v3556_v62 = vmul.f32 0.044715, %v3554_v63 }
 0x447   :  { %14369 = vst [vmem:[#allocation133_spill] sm:$0xff] %v12978_v10 }
 0x448   :  { %v4326_v28 = vadd.f32 %v4325_v55, %v4324_v53  ;;  %v3557_v60 = vmul.f32 %v3556_v62, %v3554_v63 }
 0x44a   :  { %v4327_v39 = vmul.f32 0.125, %v4326_v28  ;;  %v3558_v3 = vmul.f32 %v3557_v60, %v3554_v63 }
 0x44c   :  { %v4328_v57 = vsub.f32 %v4315_v26, %v4327_v39  ;;  %v3559_v6 = vadd.f32 %v3558_v3, %v3554_v63 }
 0x44e   :  { %v4329_v4 = vmul.f32 %v4328_v57, %v4328_v57  ;;  %v3560_v46 = vmul.f32 0.7978846, %v3559_v6 }
 0x450   :  { %v4330_v56 = vsel %vm3533_vm3, %v4329_v4, 0.0  ;;  %v3555_v4 = vmul.f32 0.5, %v3554_v63 }
 0x451   :  { %v4331_v17 = vrot.slane %v4330_v56, 4 }
 0x453   :  { %v4332_v25 = vadd.f32 %v4331_v17, %v4330_v56 }
 0x454   :  { %v8458_v16 = vpop.f32.mrb[56].mxu0 }
 0x455   :  { %v4333_v22 = vrot.slane %v4332_v25, 2  ;;  %v8459_v15 = vpop.f32.mrb[57].mxu0 }
 0x456   :  { %v8460_v50 = vadd.f32 %v8459_v15, %v8458_v16  ;;  %v8461_v11 = vpop.f32.mrb[58].mxu0  ;;  %v4756_v16 = vld [vmem:[#allocation17 + $0x50] sm:$0xff] }
 0x457   :  { %v4334_v31 = vadd.f32 %v4333_v22, %v4332_v25  ;;  %v8480_v29 = vpop.f32.mrb[56].mxu1  ;;  %v8462_v44 = vpop.f32.mrb[59].mxu0  ;;  %v4761_v11 = vld [vmem:[#allocation17 + $0x78] sm:$0xff] }
 0x458   :  { %v8481_v52 = vpop.f32.mrb[57].mxu1  ;;  %v4588_v47 = vadd.f32 %v8460_v50, %v4551_v36  ;;  %v4760_v36 = vld [vmem:[#allocation17 + $0x70] sm:$0xff]  ;;  %v4757_v50 = vld [vmem:[#allocation17 + $0x58] sm:$0xff] }
 0x459   :  { %v4335_v34 = vrot.slane %v4334_v31, 1  ;;  %v8482_v2 = vadd.f32 %v8481_v52, %v8480_v29  ;;  %v8483_v14 = vpop.f32.mrb[58].mxu1  ;;  %v8145_v52 = vcombine.high %v4756_v16, %v4760_v36 }
 0x45a   :  { %v8484_v51 = vpop.f32.mrb[59].mxu1  ;;  %v4743_v14 = vld [vmem:[#allocation11] sm:$0xff] }
 0x45b   :  { %v4336_v33 = vadd.f32 %v4335_v34, %v4334_v31  ;;  %v4628_v13 = vadd.f32 %v8482_v2, %v4588_v47  ;;  %v8147_v47 = vcombine.high %v4757_v50, %v4761_v11  ;;  %v8144_v34 = vcombine.low %v4756_v16, %v4760_v36 }
 0x45c   :  { %v8146_v2 = vcombine.low %v4757_v50, %v4761_v11 }
 0x45d   :  { %v4337_v19 = vmul.f32 0.125, %v4336_v33  ;;  %v4745_v33 = vpack.c.bf16 %v4743_v14, %v4743_v14 }
 0x45f   :  { %v4338_v43 = vadd.f32 1e-05, %v4337_v19 }
 0x461   :  { %9092 = vrsqrt.f32 %v4338_v43 }
 0x462   :  { %9094 = vtanh.f32 %v3560_v46 }
 0x46b   :  { %v9093_v37 = vpop.eup %9092 }
 0x46c   :  { %v4340_v21 = vmul.f32 %v9093_v37, %v4328_v57  ;;  %v9095_v55 = vpop.eup %9094 }
 0x46d   :  { %v3562_v39 = vadd.f32 1.0, %v9095_v55 }
 0x46e   :  { %v4342_v9 = vmul.f32 0.044715, %v4340_v21  ;;  %v4341_v56 = vmul.f32 0.5, %v4340_v21 }
 0x46f   :  { %v3563_v22 = vmul.f32 %v3562_v39, %v3555_v4  ;;  %v14376_v39 = vld [vmem:[#allocation174_spill] sm:$0xff] }
 0x470   :  { %v4343_v38 = vmul.f32 %v4342_v9, %v4340_v21 }
 0x472   :  { %v4344_v8 = vmul.f32 %v4343_v38, %v4340_v21 }
 0x474   :  { %v4345_v32 = vadd.f32 %v4344_v8, %v4340_v21  ;;  %v8502_v20 = vpop.f32.mrb[60].mxu0 }
 0x475   :  { %v8503_v40 = vpop.f32.mrb[61].mxu0 }
 0x476   :  { %v8504_v26 = vadd.f32 %v8503_v40, %v8502_v20  ;;  %v8505_v24 = vpop.f32.mrb[62].mxu0  ;;  %v4346_v5 = vmul.f32 0.7978846, %v4345_v32  ;;  %v4762_v20 = vld [vmem:[#allocation18] sm:$0xff] }
 0x477   :  { %v8524_v41 = vpop.f32.mrb[60].mxu1  ;;  %v8506_v42 = vpop.f32.mrb[63].mxu0  ;;  %v14371_v40 = vld [vmem:[#allocation163_spill] sm:$0xff]  ;;  %v14372_v24 = vld [vmem:[#allocation164_spill] sm:$0xff] }
 0x478   :  { %v4668_v12 = vadd.f32 %v8504_v26, %v4628_v13  ;;  %v8525_v7 = vpop.f32.mrb[61].mxu1  ;;  %9096 = vtanh.f32 %v4346_v5  ;;  %v13007_v26 = vrot.slane %v4762_v20, %v14371_v40  ;;  %v13010_v5 = vrot.slane %v4762_v20, %v14372_v24 }
 0x479   :  { %v8526_v48 = vadd.f32 %v8525_v7, %v8524_v41  ;;  %v8527_v27 = vpop.f32.mrb[62].mxu1  ;;  %v14373_v41 = vld [vmem:[#allocation165_spill] sm:$0xff] }
 0x47a   :  { %v8528_v30 = vpop.f32.mrb[63].mxu1  ;;  %v13013_v42 = vrot.slane %v4762_v20, %v14373_v41 }
 0x47b   :  { %v4708_v35 = vadd.f32 %v8526_v48, %v4668_v12  ;;  %v14374_v12 = vld [vmem:[#allocation167_spill] sm:$0xff] }
 0x47c   :  { %v13016_v7 = vrot.slane %v4762_v20, %v14374_v12 }
 0x47d   :  { %v4713_v53 = vsel %vm3533_vm3, %v4708_v35, 0.0 }
 0x47e   :  { %v4714_v59 = vrot.slane %v4713_v53, 4 }
 0x480   :  { %v4715_v28 = vadd.f32 %v4714_v59, %v4713_v53  ;;  %v14375_v59 = vld [vmem:[#allocation172_spill] sm:$0xff] }
 0x482   :  { %v9097_v58 = vpop.eup %9096  ;;  %v4716_v57 = vrot.slane %v4715_v28, 2 }
 0x483   :  { %v4348_v17 = vadd.f32 1.0, %v9097_v58  ;;  %v13028_v58 = vrot.slane %v4762_v20, %v14376_v39 }
 0x484   :  { %v4717_v25 = vadd.f32 %v4716_v57, %v4715_v28  ;;  %v13025_v28 = vrot.slane %v4762_v20, %v14375_v59 }
 0x485   :  { %v4349_v15 = vmul.f32 %v4348_v17, %v4341_v56 }
 0x486   :  { %v4718_v31 = vrot.slane %v4717_v25, 1 }
 0x487   :  { %v4744_v29 = vpack.c.bf16 %v4349_v15, %v3563_v22  ;;  %v14378_v22 = vld [vmem:[#allocation176_spill] sm:$0xff] }
 0x488   :  { %v4719_v44 = vadd.f32 %v4718_v31, %v4717_v25  ;;  %v14377_v25 = vld [vmem:[#allocation175_spill] sm:$0xff]  ;;  %v13040_v15 = vrot.slane %v4762_v20, %v14378_v22 }
 0x489   :  { %8148 = vmatmul.mubr.msk.bf16.vlgmr.msra.gmra.mrb[64].mxu0 %vm3533_vm3, %v4744_v29  ;;  %8150 = vmatmul.mubr.msk.bf16.vlgmr.msra.gmra.mrb[64].mxu1 %vm3533_vm3, %v4744_v29  ;;  %v13037_v16 = vrot.slane %v4762_v20, %v14377_v25 }
 0x48a   :  { %v4720_v61 = vmul.f32 0.125, %v4719_v44  ;;  %4993 = vmatpush1.bf16.msra.mxu0 %v8136_v0  ;;  %5044 = vmatpush1.bf16.msra.mxu1 %v8138_v1 }
 0x48b   :  { %4932 = vmatprep.mubr.bf16.mxu0 %v14367_v49  ;;  %4983 = vmatprep.mubr.bf16.mxu1 %v14367_v49 }
 0x48c   :  { %v4721_v51 = vsub.f32 %v4708_v35, %v4720_v61  ;;  %4994 = vmatprep.subr.bf16.mxu0 %v8145_v52  ;;  %5045 = vmatprep.subr.bf16.mxu1 %v8147_v47 }
 0x48e   :  { %v4722_v13 = vmul.f32 %v4721_v51, %v4721_v51  ;;  %4995 = vmatpush1.bf16.msra.mxu0 %v8144_v34  ;;  %5046 = vmatpush1.bf16.msra.mxu1 %v8146_v2 }
 0x490   :  { %v4723_v54 = vsel %vm3533_vm3, %v4722_v13, 0.0 }
 0x491   :  { %v4724_v45 = vrot.slane %v4723_v54, 4  ;;  %8149 = vmatmul.mubr.msk.bf16.gmra.mrb[68].mxu0 %vm3533_vm3, %v4745_v33  ;;  %8151 = vmatmul.mubr.msk.bf16.gmra.mrb[68].mxu1 %vm3533_vm3, %v4745_v33 }
 0x492   :  { %5024 = vmatprep.mubr.bf16.mxu0 %v14367_v49  ;;  %5075 = vmatprep.mubr.bf16.mxu1 %v14367_v49 }
 0x493   :  { %v4725_v23 = vadd.f32 %v4724_v45, %v4723_v54 }
 0x495   :  { %v4726_v18 = vrot.slane %v4725_v23, 2 }
 0x497   :  { %v4727_v0 = vadd.f32 %v4726_v18, %v4725_v23 }
 0x499   :  { %v4728_v1 = vrot.slane %v4727_v0, 1  ;;  %8152 = vmatmul.mubr.msk.bf16.vlgmr.msra.gmra.mrb[72].mxu0 %vm3533_vm3, %v4744_v29  ;;  %8154 = vmatmul.mubr.msk.bf16.vlgmr.msra.gmra.mrb[72].mxu1 %vm3533_vm3, %v4744_v29 }
 0x49a   :  { %5034 = vmatprep.mubr.bf16.mxu0 %v14367_v49  ;;  %5085 = vmatprep.mubr.bf16.mxu1 %v14367_v49 }
 0x49b   :  { %v4729_v63 = vadd.f32 %v4728_v1, %v4727_v0 }
 0x49d   :  { %v4730_v19 = vmul.f32 0.125, %v4729_v63 }
 0x49f   :  { %v4731_v43 = vadd.f32 1e-05, %v4730_v19 }
 0x4a1   :  { %9098 = vrsqrt.f32 %v4731_v43  ;;  %8153 = vmatmul.mubr.msk.bf16.gmra.mrb[76].mxu0 %vm3533_vm3, %v4745_v33  ;;  %8155 = vmatmul.mubr.msk.bf16.gmra.mrb[76].mxu1 %vm3533_vm3, %v4745_v33 }
 0x4ab   :  { %v9099_v62 = vpop.eup %9098 }
 0x4ac   :  { %v4733_v60 = vmul.f32 %v9099_v62, %v4721_v51 }
 0x4ae   :  { %v4735_v3 = vmul.f32 0.044715, %v4733_v60  ;;  %v4734_v46 = vmul.f32 0.5, %v4733_v60 }
 0x4b0   :  { %v4736_v37 = vmul.f32 %v4735_v3, %v4733_v60 }
 0x4b2   :  { %v4737_v6 = vmul.f32 %v4736_v37, %v4733_v60 }
 0x4b4   :  { %v4738_v21 = vadd.f32 %v4737_v6, %v4733_v60 }
 0x4b6   :  { %v4739_v9 = vmul.f32 0.7978846, %v4738_v21 }
 0x4b8   :  { %9100 = vtanh.f32 %v4739_v9 }
 0x4c2   :  { %v9101_v38 = vpop.eup %9100 }
 0x4c3   :  { %v4741_v8 = vadd.f32 1.0, %v9101_v38 }
 0x4c5   :  { %v13004_v32 = vmul.f32 %v4741_v8, %v4734_v46 }
 0x4c7   :  { %14370 = vst [vmem:[#allocation135_spill] sm:$0xff] %v13004_v32 }
 0x55c   :  { %v4924_v48 = vpop.f32.mrb[64].mxu0  ;;  %v4975_v27 = vpop.f32.mrb[64].mxu1 }
 0x55d   :  { %v13019_v30 = vadd.f32 %v4924_v48, %v13007_v26  ;;  %v13022_v35 = vadd.f32 %v4975_v27, %v13010_v5  ;;  %v4926_v53 = vpop.f32.mrb[65].mxu0  ;;  %v4977_v55 = vpop.f32.mrb[65].mxu1 }
 0x55e   :  { %v13031_v57 = vadd.f32 %v4926_v53, %v13013_v42  ;;  %v13034_v4 = vadd.f32 %v4977_v55, %v13016_v7  ;;  %v4928_v56 = vpop.f32.mrb[66].mxu0  ;;  %v4979_v17 = vpop.f32.mrb[66].mxu1 }
 0x55f   :  { %v5094_v36 = vrot.slane %v13019_v30, 4  ;;  %v5106_v50 = vrot.slane %v13022_v35, 4  ;;  %v13045_v11 = vadd.f32 %v4928_v56, %v13007_v26  ;;  %v13048_v31 = vadd.f32 %v4979_v17, %v13010_v5  ;;  %v4930_v29 = vpop.f32.mrb[67].mxu0  ;;  %v4981_v44 = vpop.f32.mrb[67].mxu1 }
 0x560   :  { %v5100_v52 = vrot.slane %v13031_v57, 4  ;;  %v5112_v47 = vrot.slane %v13034_v4, 4  ;;  %v13053_v61 = vadd.f32 %v4930_v29, %v13013_v42  ;;  %v13056_v34 = vadd.f32 %v4981_v44, %v13016_v7 }
 0x561   :  { %v5095_v2 = vadd.f32 %v5094_v36, %v13019_v30  ;;  %v5107_v14 = vadd.f32 %v5106_v50, %v13022_v35  ;;  %v5246_v51 = vrot.slane %v13045_v11, 4  ;;  %v5258_v33 = vrot.slane %v13048_v31, 4 }
 0x562   :  { %v5101_v13 = vadd.f32 %v5100_v52, %v13031_v57  ;;  %v5113_v54 = vadd.f32 %v5112_v47, %v13034_v4  ;;  %v5252_v45 = vrot.slane %v13053_v61, 4  ;;  %v5264_v23 = vrot.slane %v13056_v34, 4 }
 0x563   :  { %v5096_v18 = vrot.slane %v5095_v2, 2  ;;  %v5108_v0 = vrot.slane %v5107_v14, 2  ;;  %v5247_v1 = vadd.f32 %v5246_v51, %v13045_v11  ;;  %v5259_v63 = vadd.f32 %v5258_v33, %v13048_v31 }
 0x564   :  { %v5102_v19 = vrot.slane %v5101_v13, 2  ;;  %v5114_v43 = vrot.slane %v5113_v54, 2  ;;  %v5253_v62 = vadd.f32 %v5252_v45, %v13053_v61  ;;  %v5265_v60 = vadd.f32 %v5264_v23, %v13056_v34  ;;  %v13070_v3 = vpop.f32.mrb[68].mxu0  ;;  %v13072_v37 = vpop.f32.mrb[68].mxu1 }
 0x565   :  { %v5097_v6 = vadd.f32 %v5096_v18, %v5095_v2  ;;  %v5109_v21 = vadd.f32 %v5108_v0, %v5107_v14  ;;  %v5248_v9 = vrot.slane %v5247_v1, 2  ;;  %v5260_v38 = vrot.slane %v5259_v63, 2  ;;  %v13074_v46 = vpop.f32.mrb[69].mxu0  ;;  %v13076_v8 = vpop.f32.mrb[69].mxu1 }
 0x566   :  { %v5103_v20 = vadd.f32 %v5102_v19, %v5101_v13  ;;  %v5115_v48 = vadd.f32 %v5114_v43, %v5113_v54  ;;  %v5254_v27 = vrot.slane %v5253_v62, 2  ;;  %v5266_v53 = vrot.slane %v5265_v60, 2  ;;  %v4938_v55 = vpop.f32.mrb[70].mxu0  ;;  %v4989_v56 = vpop.f32.mrb[70].mxu1 }
 0x567   :  { %v5098_v17 = vrot.slane %v5097_v6, 1  ;;  %v5110_v36 = vrot.slane %v5109_v21, 1  ;;  %v5249_v50 = vadd.f32 %v5248_v9, %v5247_v1  ;;  %v5261_v29 = vadd.f32 %v5260_v38, %v5259_v63  ;;  %v4939_v44 = vpop.f32.mrb[71].mxu0  ;;  %v4990_v52 = vpop.f32.mrb[71].mxu1 }
 0x568   :  { %v5104_v47 = vrot.slane %v5103_v20, 1  ;;  %v5116_v2 = vrot.slane %v5115_v48, 1  ;;  %v5255_v14 = vadd.f32 %v5254_v27, %v5253_v62  ;;  %v5267_v51 = vadd.f32 %v5266_v53, %v5265_v60 }
 0x569   :  { %v5099_v33 = vadd.f32 %v5098_v17, %v5097_v6  ;;  %v5111_v45 = vadd.f32 %v5110_v36, %v5109_v21  ;;  %v5250_v23 = vrot.slane %v5249_v50, 1  ;;  %v5262_v18 = vrot.slane %v5261_v29, 1 }
 0x56a   :  { %v5105_v13 = vadd.f32 %v5104_v47, %v5103_v20  ;;  %v5117_v54 = vadd.f32 %v5116_v2, %v5115_v48  ;;  %v5256_v0 = vrot.slane %v5255_v14, 1  ;;  %v5268_v19 = vrot.slane %v5267_v51, 1 }
 0x56b   :  { %v5142_v43 = vmul.f32 0.125, %v5099_v33  ;;  %v5144_v55 = vmul.f32 0.125, %v5111_v45  ;;  %v5251_v56 = vadd.f32 %v5250_v23, %v5249_v50  ;;  %v5263_v22 = vadd.f32 %v5262_v18, %v5261_v29 }
 0x56c   :  { %v5143_v1 = vmul.f32 0.125, %v5105_v13  ;;  %v5145_v63 = vmul.f32 0.125, %v5117_v54  ;;  %v5257_v9 = vadd.f32 %v5256_v0, %v5255_v14  ;;  %v5269_v38 = vadd.f32 %v5268_v19, %v5267_v51  ;;  %v13078_v44 = vpop.f32.mrb[72].mxu0  ;;  %v13080_v62 = vpop.f32.mrb[72].mxu1 }
 0x56d   :  { %v13083_v60 = vsub.f32 %v13019_v30, %v5142_v43  ;;  %v13086_v6 = vsub.f32 %v13022_v35, %v5144_v55  ;;  %v5294_v21 = vmul.f32 0.125, %v5251_v56  ;;  %v5296_v20 = vmul.f32 0.125, %v5263_v22  ;;  %v13088_v48 = vpop.f32.mrb[73].mxu0  ;;  %v13090_v27 = vpop.f32.mrb[73].mxu1 }
 0x56e   :  { %v13093_v53 = vsub.f32 %v13031_v57, %v5143_v1  ;;  %v13096_v17 = vsub.f32 %v13034_v4, %v5145_v63  ;;  %v5295_v36 = vmul.f32 0.125, %v5257_v9  ;;  %v5297_v50 = vmul.f32 0.125, %v5269_v38  ;;  %v13098_v29 = vpop.f32.mrb[74].mxu0  ;;  %v13100_v30 = vpop.f32.mrb[74].mxu1 }
 0x56f   :  { %v5158_v35 = vmul.f32 %v13083_v60, %v13083_v60  ;;  %v5160_v22 = vmul.f32 %v13086_v6, %v13086_v6  ;;  %v13107_v52 = vsub.f32 %v13045_v11, %v5294_v21  ;;  %v13110_v57 = vsub.f32 %v13048_v31, %v5296_v20  ;;  %v13112_v4 = vpop.f32.mrb[75].mxu0  ;;  %v13114_v47 = vpop.f32.mrb[75].mxu1 }
 0x570   :  { %v5159_v2 = vmul.f32 %v13093_v53, %v13093_v53  ;;  %v5161_v14 = vmul.f32 %v13096_v17, %v13096_v17  ;;  %v13121_v51 = vsub.f32 %v13053_v61, %v5295_v36  ;;  %v13124_v33 = vsub.f32 %v13056_v34, %v5297_v50 }
 0x571   :  { %v5166_v11 = vrot.slane %v5158_v35, 4  ;;  %v5178_v45 = vrot.slane %v5160_v22, 4  ;;  %v5310_v31 = vmul.f32 %v13107_v52, %v13107_v52  ;;  %v5312_v23 = vmul.f32 %v13110_v57, %v13110_v57 }
 0x572   :  { %v5172_v18 = vrot.slane %v5159_v2, 4  ;;  %v5184_v13 = vrot.slane %v5161_v14, 4  ;;  %v5311_v54 = vmul.f32 %v13121_v51, %v13121_v51  ;;  %v5313_v61 = vmul.f32 %v13124_v33, %v13124_v33 }
 0x573   :  { %v5167_v0 = vadd.f32 %v5166_v11, %v5158_v35  ;;  %v5179_v19 = vadd.f32 %v5178_v45, %v5160_v22  ;;  %v5318_v34 = vrot.slane %v5310_v31, 4  ;;  %v5330_v43 = vrot.slane %v5312_v23, 4 }
 0x574   :  { %v5173_v55 = vadd.f32 %v5172_v18, %v5159_v2  ;;  %v5185_v56 = vadd.f32 %v5184_v13, %v5161_v14  ;;  %v5324_v1 = vrot.slane %v5311_v54, 4  ;;  %v5336_v63 = vrot.slane %v5313_v61, 4  ;;  %v13134_v9 = vpop.f32.mrb[76].mxu0  ;;  %v13136_v38 = vpop.f32.mrb[76].mxu1 }
 0x575   :  { %v5168_v21 = vrot.slane %v5167_v0, 2  ;;  %v5180_v20 = vrot.slane %v5179_v19, 2  ;;  %v5319_v36 = vadd.f32 %v5318_v34, %v5310_v31  ;;  %v5331_v50 = vadd.f32 %v5330_v43, %v5312_v23  ;;  %v13138_v25 = vpop.f32.mrb[77].mxu0  ;;  %v13140_v39 = vpop.f32.mrb[77].mxu1 }
 0x576   :  { %14379 = vst [vmem:[#allocation136_spill] sm:$0xff] %v13138_v25  ;;  %14380 = vst [vmem:[#allocation138_spill] sm:$0xff] %v13140_v39  ;;  %v5174_v35 = vrot.slane %v5173_v55, 2  ;;  %v5186_v22 = vrot.slane %v5185_v56, 2  ;;  %v5325_v11 = vadd.f32 %v5324_v1, %v5311_v54  ;;  %v5337_v45 = vadd.f32 %v5336_v63, %v5313_v61  ;;  %v5040_v2 = vpop.f32.mrb[78].mxu0  ;;  %v5091_v14 = vpop.f32.mrb[78].mxu1 }
 0x577   :  { %v5169_v18 = vadd.f32 %v5168_v21, %v5167_v0  ;;  %v5181_v13 = vadd.f32 %v5180_v20, %v5179_v19  ;;  %v5320_v59 = vrot.slane %v5319_v36, 2  ;;  %v5332_v12 = vrot.slane %v5331_v50, 2  ;;  %v5041_v41 = vpop.f32.mrb[79].mxu0  ;;  %v5092_v24 = vpop.f32.mrb[79].mxu1 }
 0x578   :  { %v5175_v40 = vadd.f32 %v5174_v35, %v5173_v55  ;;  %v5187_v49 = vadd.f32 %v5186_v22, %v5185_v56  ;;  %v5326_v31 = vrot.slane %v5325_v11, 2  ;;  %v5338_v23 = vrot.slane %v5337_v45, 2 }
 0x579   :  { %v5170_v34 = vrot.slane %v5169_v18, 1  ;;  %v5182_v43 = vrot.slane %v5181_v13, 1  ;;  %v5321_v32 = vadd.f32 %v5320_v59, %v5319_v36  ;;  %v5333_v10 = vadd.f32 %v5332_v12, %v5331_v50 }
 0x57a   :  { %v5176_v39 = vrot.slane %v5175_v40, 1  ;;  %v5188_v25 = vrot.slane %v5187_v49, 1  ;;  %v5327_v54 = vadd.f32 %v5326_v31, %v5325_v11  ;;  %v5339_v61 = vadd.f32 %v5338_v23, %v5337_v45 }
 0x57b   :  { %v5171_v1 = vadd.f32 %v5170_v34, %v5169_v18  ;;  %v5183_v63 = vadd.f32 %v5182_v43, %v5181_v13  ;;  %v5322_v0 = vrot.slane %v5321_v32, 1  ;;  %v5334_v19 = vrot.slane %v5333_v10, 1 }
 0x57c   :  { %v5177_v21 = vadd.f32 %v5176_v39, %v5175_v40  ;;  %v5189_v20 = vadd.f32 %v5188_v25, %v5187_v49  ;;  %v5328_v41 = vrot.slane %v5327_v54, 1  ;;  %v5340_v24 = vrot.slane %v5339_v61, 1 }
 0x57d   :  { %v5214_v55 = vmul.f32 0.125, %v5171_v1  ;;  %v5216_v56 = vmul.f32 0.125, %v5183_v63  ;;  %v5323_v35 = vadd.f32 %v5322_v0, %v5321_v32  ;;  %v5335_v22 = vadd.f32 %v5334_v19, %v5333_v10 }
 0x57e   :  { %v5215_v2 = vmul.f32 0.125, %v5177_v21  ;;  %v5217_v14 = vmul.f32 0.125, %v5189_v20  ;;  %v5329_v59 = vadd.f32 %v5328_v41, %v5327_v54  ;;  %v5341_v12 = vadd.f32 %v5340_v24, %v5339_v61 }
 0x57f   :  { %v5222_v36 = vadd.f32 1e-05, %v5214_v55  ;;  %v5224_v50 = vadd.f32 1e-05, %v5216_v56  ;;  %v5366_v11 = vmul.f32 0.125, %v5323_v35  ;;  %v5368_v45 = vmul.f32 0.125, %v5335_v22 }
 0x580   :  { %v5223_v18 = vadd.f32 1e-05, %v5215_v2  ;;  %v5225_v13 = vadd.f32 1e-05, %v5217_v14  ;;  %v5367_v31 = vmul.f32 0.125, %v5329_v59  ;;  %v5369_v23 = vmul.f32 0.125, %v5341_v12 }
 0x581   :  { %9102 = vrsqrt.f32 %v5222_v36  ;;  %v5374_v49 = vadd.f32 1e-05, %v5366_v11  ;;  %v5376_v40 = vadd.f32 1e-05, %v5368_v45  ;;  %v13144_v39 = vadd.f32 %v13070_v3, %v13007_v26 }
 0x582   :  { %9104 = vrsqrt.f32 %v5224_v50  ;;  %v5375_v10 = vadd.f32 1e-05, %v5367_v31  ;;  %v5377_v32 = vadd.f32 1e-05, %v5369_v23  ;;  %v13148_v25 = vadd.f32 %v13072_v37, %v13010_v5 }
 0x583   :  { %9106 = vrsqrt.f32 %v5223_v18  ;;  %v5398_v34 = vrot.slane %v13144_v39, 4  ;;  %v13153_v43 = vadd.f32 %v13074_v46, %v13013_v42  ;;  %v13157_v54 = vadd.f32 %v13076_v8, %v13016_v7 }
 0x584   :  { %9108 = vrsqrt.f32 %v5225_v13  ;;  %v5410_v26 = vrot.slane %v13148_v25, 4  ;;  %v13162_v3 = vadd.f32 %v13078_v44, %v13025_v28  ;;  %v13166_v5 = vadd.f32 %v13080_v62, %v13028_v58 }
 0x585   :  { %9110 = vrsqrt.f32 %v5374_v49  ;;  %v5399_v37 = vadd.f32 %v5398_v34, %v13144_v39  ;;  %v5404_v42 = vrot.slane %v13153_v43, 4  ;;  %v5416_v46 = vrot.slane %v13157_v54, 4 }
 0x586   :  { %9112 = vrsqrt.f32 %v5376_v40  ;;  %v5411_v7 = vadd.f32 %v5410_v26, %v13148_v25  ;;  %v5118_v8 = vrot.slane %v13162_v3, 4  ;;  %v5130_v61 = vrot.slane %v13166_v5, 4 }
 0x587   :  { %9114 = vrsqrt.f32 %v5375_v10  ;;  %v5400_v44 = vrot.slane %v5399_v37, 2  ;;  %v5405_v1 = vadd.f32 %v5404_v42, %v13153_v43  ;;  %v5417_v62 = vadd.f32 %v5416_v46, %v13157_v54 }
 0x588   :  { %9116 = vrsqrt.f32 %v5377_v32  ;;  %v5412_v63 = vrot.slane %v5411_v7, 2  ;;  %v5119_v0 = vadd.f32 %v5118_v8, %v13162_v3  ;;  %v5131_v19 = vadd.f32 %v5130_v61, %v13166_v5 }
 0x589   :  { %v5401_v21 = vadd.f32 %v5400_v44, %v5399_v37  ;;  %v5406_v20 = vrot.slane %v5405_v1, 2  ;;  %v5418_v41 = vrot.slane %v5417_v62, 2  ;;  %v13180_v24 = vadd.f32 %v13088_v48, %v13037_v16 }
 0x58a   :  { %v5413_v55 = vadd.f32 %v5412_v63, %v5411_v7  ;;  %v5120_v56 = vrot.slane %v5119_v0, 2  ;;  %v5132_v35 = vrot.slane %v5131_v19, 2  ;;  %v13184_v22 = vadd.f32 %v13090_v27, %v13040_v15 }
 0x58b   :  { %v9103_v2 = vpop.eup %9102  ;;  %v5402_v14 = vrot.slane %v5401_v21, 1  ;;  %v13186_v59 = vadd.f32 %v5406_v20, %v5405_v1  ;;  %v13188_v12 = vadd.f32 %v5418_v41, %v5417_v62 }
 0x58c   :  { %v9105_v50 = vpop.eup %9104  ;;  %v5238_v11 = vmul.f32 %v9103_v2, %v13083_v60  ;;  %v5414_v48 = vrot.slane %v5413_v55, 1  ;;  %v13192_v45 = vadd.f32 %v5120_v56, %v5119_v0  ;;  %v13194_v18 = vadd.f32 %v5132_v35, %v5131_v19 }
 0x58d   :  { %v9107_v13 = vpop.eup %9106  ;;  %v5240_v27 = vmul.f32 %v9105_v50, %v13086_v6  ;;  %v5403_v31 = vadd.f32 %v5402_v14, %v5401_v21  ;;  %v5408_v23 = vrot.slane %v13186_v59, 1  ;;  %v5420_v49 = vrot.slane %v13188_v12, 1 }
 0x58e   :  { %v9109_v40 = vpop.eup %9108  ;;  %v13199_v10 = vmul.f32 0.5, %v5238_v11  ;;  %v5574_v32 = vmul.f32 0.044715, %v5238_v11  ;;  %v5239_v34 = vmul.f32 %v9107_v13, %v13093_v53  ;;  %v5415_v60 = vadd.f32 %v5414_v48, %v5413_v55 }
 0x58f   :  { %v9111_v26 = vpop.eup %9110  ;;  %v13202_v37 = vmul.f32 0.5, %v5240_v27  ;;  %v5576_v42 = vmul.f32 0.044715, %v5240_v27  ;;  %v5241_v46 = vmul.f32 %v9109_v40, %v13096_v17  ;;  %v5446_v7 = vmul.f32 0.125, %v5403_v31 }
 0x590   :  { %v9113_v6 = vpop.eup %9112  ;;  %v5598_v8 = vmul.f32 %v5574_v32, %v5238_v11  ;;  %v13205_v61 = vmul.f32 0.5, %v5239_v34  ;;  %v5575_v44 = vmul.f32 0.044715, %v5239_v34  ;;  %v5390_v1 = vmul.f32 %v9111_v26, %v13107_v52 }
 0x591   :  { %v9115_v62 = vpop.eup %9114  ;;  %v5600_v63 = vmul.f32 %v5576_v42, %v5240_v27  ;;  %v13208_v0 = vmul.f32 0.5, %v5241_v46  ;;  %v5577_v53 = vmul.f32 0.044715, %v5241_v46  ;;  %v5392_v19 = vmul.f32 %v9113_v6, %v13110_v57 }
 0x592   :  { %v9117_v21 = vpop.eup %9116  ;;  %v5622_v20 = vmul.f32 %v5598_v8, %v5238_v11  ;;  %v5599_v41 = vmul.f32 %v5575_v44, %v5239_v34  ;;  %v13211_v55 = vmul.f32 0.5, %v5390_v1  ;;  %v5582_v17 = vmul.f32 0.044715, %v5390_v1 }
 0x593   :  { %v5624_v56 = vmul.f32 %v5600_v63, %v5240_v27  ;;  %v5601_v35 = vmul.f32 %v5577_v53, %v5241_v46  ;;  %v13213_v2 = vmul.f32 0.5, %v5392_v19  ;;  %v5584_v14 = vmul.f32 0.044715, %v5392_v19 }
 0x594   :  { %v5646_v50 = vadd.f32 %v5622_v20, %v5238_v11  ;;  %v5623_v52 = vmul.f32 %v5599_v41, %v5239_v34  ;;  %v5606_v48 = vmul.f32 %v5582_v17, %v5390_v1  ;;  %v5391_v13 = vmul.f32 %v9115_v62, %v13121_v51 }
 0x595   :  { %v5648_v31 = vadd.f32 %v5624_v56, %v5240_v27  ;;  %v5625_v40 = vmul.f32 %v5601_v35, %v5241_v46  ;;  %v5608_v32 = vmul.f32 %v5584_v14, %v5392_v19  ;;  %v5393_v57 = vmul.f32 %v9117_v21, %v13124_v33 }
 0x596   :  { %v5670_v26 = vmul.f32 0.7978846, %v5646_v50  ;;  %v5647_v42 = vadd.f32 %v5623_v52, %v5239_v34  ;;  %v5630_v6 = vmul.f32 %v5606_v48, %v5390_v1  ;;  %v13217_v8 = vmul.f32 0.5, %v5391_v13 }
 0x597   :  { %v5672_v44 = vmul.f32 0.7978846, %v5648_v31  ;;  %v5649_v63 = vadd.f32 %v5625_v40, %v5241_v46  ;;  %v5632_v53 = vmul.f32 %v5608_v32, %v5392_v19  ;;  %v5583_v36 = vmul.f32 0.044715, %v5391_v13 }
 0x598   :  { %9118 = vtanh.f32 %v5670_v26  ;;  %v5671_v11 = vmul.f32 0.7978846, %v5647_v42  ;;  %v5654_v20 = vadd.f32 %v5630_v6, %v5390_v1  ;;  %v13219_v41 = vmul.f32 0.5, %v5393_v57 }
 0x599   :  { %9120 = vtanh.f32 %v5672_v44  ;;  %v5673_v51 = vmul.f32 0.7978846, %v5649_v63  ;;  %v5656_v27 = vadd.f32 %v5632_v53, %v5392_v19  ;;  %v5607_v62 = vmul.f32 %v5583_v36, %v5391_v13 }
 0x59a   :  { %9122 = vtanh.f32 %v5671_v11  ;;  %v5678_v33 = vmul.f32 0.7978846, %v5654_v20  ;;  %v5585_v21 = vmul.f32 0.044715, %v5393_v57  ;;  %v13222_v34 = vsub.f32 %v13144_v39, %v5446_v7 }
 0x59b   :  { %9124 = vtanh.f32 %v5673_v51  ;;  %v5680_v17 = vmul.f32 0.7978846, %v5656_v27  ;;  %v5631_v46 = vmul.f32 %v5607_v62, %v5391_v13  ;;  %v5448_v56 = vmul.f32 0.125, %v5415_v60 }
 0x59c   :  { %9126 = vtanh.f32 %v5678_v33  ;;  %v5609_v35 = vmul.f32 %v5585_v21, %v5393_v57  ;;  %v5462_v1 = vmul.f32 %v13222_v34, %v13222_v34  ;;  %v5409_v19 = vadd.f32 %v5408_v23, %v13186_v59 }
 0x59d   :  { %9128 = vtanh.f32 %v5680_v17  ;;  %v5655_v36 = vadd.f32 %v5631_v46, %v5391_v13  ;;  %v13230_v14 = vsub.f32 %v13148_v25, %v5448_v56  ;;  %v5421_v39 = vadd.f32 %v5420_v49, %v13188_v12 }
 0x59e   :  { %v5633_v7 = vmul.f32 %v5609_v35, %v5393_v57  ;;  %v5470_v60 = vrot.slane %v5462_v1, 4  ;;  %v5447_v50 = vmul.f32 0.125, %v5409_v19  ;;  %v5122_v52 = vrot.slane %v13192_v45, 1 }
 0x59f   :  { %v5679_v48 = vmul.f32 0.7978846, %v5655_v36  ;;  %v5464_v31 = vmul.f32 %v13230_v14, %v13230_v14  ;;  %v5449_v40 = vmul.f32 0.125, %v5421_v39  ;;  %v5134_v59 = vrot.slane %v13194_v18, 1 }
 0x5a0   :  { %v5657_v23 = vadd.f32 %v5633_v7, %v5393_v57  ;;  %v5471_v13 = vadd.f32 %v5470_v60, %v5462_v1  ;;  %v13240_v25 = vsub.f32 %v13153_v43, %v5447_v50  ;;  %v5123_v32 = vadd.f32 %v5122_v52, %v13192_v45 }
 0x5a1   :  { %9130 = vtanh.f32 %v5679_v48  ;;  %v5482_v12 = vrot.slane %v5464_v31, 4  ;;  %v13244_v49 = vsub.f32 %v13157_v54, %v5449_v40  ;;  %v5135_v26 = vadd.f32 %v5134_v59, %v13194_v18 }
 0x5a2   :  { %v9119_v42 = vpop.eup %9118  ;;  %v5681_v6 = vmul.f32 0.7978846, %v5657_v23  ;;  %v5472_v44 = vrot.slane %v5471_v13, 2  ;;  %v5463_v63 = vmul.f32 %v13240_v25, %v13240_v25  ;;  %v5146_v57 = vmul.f32 0.125, %v5123_v32 }
 0x5a3   :  { %v9121_v53 = vpop.eup %9120  ;;  %v5718_v11 = vadd.f32 1.0, %v9119_v42  ;;  %v5483_v43 = vadd.f32 %v5482_v12, %v5464_v31  ;;  %v5465_v45 = vmul.f32 %v13244_v49, %v13244_v49  ;;  %v5148_v20 = vmul.f32 0.125, %v5135_v26 }
 0x5a4   :  { %v9123_v51 = vpop.eup %9122  ;;  %v5720_v27 = vadd.f32 1.0, %v9121_v53  ;;  %9132 = vtanh.f32 %v5681_v6  ;;  %v5473_v54 = vadd.f32 %v5472_v44, %v5471_v13  ;;  %v5476_v62 = vrot.slane %v5463_v63, 4 }
 0x5a5   :  { %v9125_v18 = vpop.eup %9124  ;;  %v13252_v33 = vmul.f32 %v5718_v11, %v13199_v10  ;;  %v5719_v21 = vadd.f32 1.0, %v9123_v51  ;;  %v5484_v17 = vrot.slane %v5483_v43, 2  ;;  %v5488_v46 = vrot.slane %v5465_v45, 4 }
 0x5a6   :  { %v9127_v56 = vpop.eup %9126  ;;  %v13255_v35 = vmul.f32 %v5720_v27, %v13202_v37  ;;  %v5721_v1 = vadd.f32 1.0, %v9125_v18  ;;  %v5474_v19 = vrot.slane %v5473_v54, 1  ;;  %v5477_v36 = vadd.f32 %v5476_v62, %v5463_v63 }
 0x5a7   :  { %v9129_v39 = vpop.eup %9128  ;;  %v13258_v7 = vmul.f32 %v5719_v21, %v13205_v61  ;;  %v5726_v60 = vadd.f32 1.0, %v9127_v56  ;;  %v5485_v50 = vadd.f32 %v5484_v17, %v5483_v43  ;;  %v5489_v52 = vadd.f32 %v5488_v46, %v5465_v45 }
 0x5a8   :  { %v13261_v10 = vmul.f32 %v5721_v1, %v13208_v0  ;;  %v5728_v48 = vadd.f32 1.0, %v9129_v39  ;;  %v5475_v31 = vadd.f32 %v5474_v19, %v5473_v54  ;;  %v5478_v40 = vrot.slane %v5477_v36, 2 }
 0x5a9   :  { %v13264_v59 = vmul.f32 %v5726_v60, %v13211_v55  ;;  %v5486_v37 = vrot.slane %v5485_v50, 1  ;;  %v5490_v23 = vrot.slane %v5489_v52, 2  ;;  %v13267_v13 = vsub.f32 %v13162_v3, %v5146_v57 }
 0x5aa   :  { %v13270_v61 = vmul.f32 %v5728_v48, %v13213_v2  ;;  %v5518_v32 = vmul.f32 0.125, %v5475_v31  ;;  %v5479_v12 = vadd.f32 %v5478_v40, %v5477_v36  ;;  %v13273_v26 = vsub.f32 %v13166_v5, %v5148_v20 }
 0x5ab   :  { %v9131_v0 = vpop.eup %9130  ;;  %v5487_v42 = vadd.f32 %v5486_v37, %v5485_v50  ;;  %v5491_v6 = vadd.f32 %v5490_v23, %v5489_v52  ;;  %v5162_v55 = vmul.f32 %v13267_v13, %v13267_v13  ;;  %v14381_v44 = vrot.slane %v13180_v24, 4 }
 0x5ac   :  { %v5727_v3 = vadd.f32 1.0, %v9131_v0  ;;  %v5526_v57 = vadd.f32 1e-05, %v5518_v32  ;;  %v5480_v53 = vrot.slane %v5479_v12, 1  ;;  %v5164_v2 = vmul.f32 %v13273_v26, %v13273_v26 }
 0x5ad   :  { %v5125_v63 = vadd.f32 %v14381_v44, %v13180_v24  ;;  %v5520_v5 = vmul.f32 0.125, %v5487_v42  ;;  %v5492_v11 = vrot.slane %v5491_v6, 1  ;;  %v5190_v43 = vrot.slane %v5162_v55, 4 }
 0x5ae   :  { %v9133_v20 = vpop.eup %9132  ;;  %v13283_v51 = vmul.f32 %v5727_v3, %v13217_v8  ;;  %9134 = vrsqrt.f32 %v5526_v57  ;;  %v5481_v27 = vadd.f32 %v5480_v53, %v5479_v12  ;;  %v5202_v54 = vrot.slane %v5164_v2, 4 }
 0x5af   :  { %v5126_v45 = vrot.slane %v5125_v63, 2 }
 0x5b0   :  { %9697 = shalt.err (!%p9694_p2)  }
 0x5b1   :  { %s9698_s13 = scalar_lea.vmem %s629_s21, 16384  ;;  %p9703_p4 = scmp.lt.s32.totalorder %s629_s21, %s629_s21 }
 0x5b2   :  { %p9699_p3 = scmp.ne.s32.totalorder %s629_s21, %s9698_s13  ;;  %p9704_p5 = scmp.lt.s32.totalorder %s9698_s13, %s9698_s13 }
 0x5b4   :  { %p9705_p6 = por %p9704_p5, %p9703_p4 }
 0x5b6   :  { %p9706_p7 = pnand %p9705_p6, %p9699_p3 }
 0x5b8   :  { %9709 = shalt.err (!%p9706_p7)  }
 0x5b9   :  { %631 = dma.hbm_to_vmem [thread:$0]  %s13924_s22, 16384, %s629_s21, [#allocation6 + $0x3]  ;;  %v5729_v8 = vadd.f32 1.0, %v9133_v20  ;;  %v5528_v62 = vadd.f32 1e-05, %v5520_v5  ;;  %v5493_v18 = vadd.f32 %v5492_v11, %v5491_v6  ;;  %v5191_v21 = vadd.f32 %v5190_v43, %v5162_v55  ;;  %v9135_v53 = vpop.eup %9134 }
 0x5ba   :  { %v5519_v17 = vmul.f32 0.125, %v5481_v27  ;;  %v5203_v46 = vadd.f32 %v5202_v54, %v5164_v2  ;;  %v5127_v56 = vadd.f32 %v5126_v45, %v5125_v63  ;;  %v5136_v1 = vrot.slane %v13184_v22, 4 }
 0x5bb   :  { %v13299_v19 = vmul.f32 %v5729_v8, %v13219_v41  ;;  %9136 = vrsqrt.f32 %v5528_v62  ;;  %v5521_v36 = vmul.f32 0.125, %v5493_v18  ;;  %v5192_v39 = vrot.slane %v5191_v21, 2 }
 0x5bc   :  { %v5527_v60 = vadd.f32 1e-05, %v5519_v17  ;;  %v5204_v50 = vrot.slane %v5203_v46, 2  ;;  %v5128_v52 = vrot.slane %v5127_v56, 1  ;;  %v5137_v48 = vadd.f32 %v5136_v1, %v13184_v22 }
 0x5bd   :  { %v5529_v31 = vadd.f32 1e-05, %v5521_v36  ;;  %v5193_v40 = vadd.f32 %v5192_v39, %v5191_v21  ;;  %v13304_v37 = vadd.f32 %v13098_v29, %v13025_v28  ;;  %v13308_v23 = vadd.f32 %v13100_v30, %v13028_v58 }
 0x5be   :  { %9138 = vrsqrt.f32 %v5527_v60  ;;  %v5205_v41 = vadd.f32 %v5204_v50, %v5203_v46  ;;  %v5129_v32 = vadd.f32 %v5128_v52, %v5127_v56  ;;  %v5138_v12 = vrot.slane %v5137_v48, 2 }
 0x5bf   :  { %9140 = vrsqrt.f32 %v5529_v31  ;;  %v5194_v0 = vrot.slane %v5193_v40, 1  ;;  %v5270_v42 = vrot.slane %v13304_v37, 4  ;;  %v5282_v6 = vrot.slane %v13308_v23, 4 }
 0x5c0   :  { %v5206_v55 = vrot.slane %v5205_v41, 1  ;;  %v5147_v44 = vmul.f32 0.125, %v5129_v32  ;;  %v5139_v63 = vadd.f32 %v5138_v12, %v5137_v48  ;;  %v13314_v29 = vadd.f32 %v13112_v4, %v13037_v16 }
 0x5c1   :  { %v5195_v3 = vadd.f32 %v5194_v0, %v5193_v40  ;;  %v5271_v30 = vadd.f32 %v5270_v42, %v13304_v37  ;;  %v5283_v57 = vadd.f32 %v5282_v6, %v13308_v23  ;;  %v5542_v45 = vmul.f32 %v9135_v53, %v13222_v34 }
 0x5c2   :  { %v5207_v2 = vadd.f32 %v5206_v55, %v5205_v41  ;;  %v13319_v5 = vsub.f32 %v13180_v24, %v5147_v44  ;;  %v5140_v11 = vrot.slane %v5139_v63, 1  ;;  %v5276_v43 = vrot.slane %v13314_v29, 4 }
 0x5c3   :  { %v5218_v20 = vmul.f32 0.125, %v5195_v3  ;;  %v5272_v27 = vrot.slane %v5271_v30, 2  ;;  %v5284_v54 = vrot.slane %v5283_v57, 2  ;;  %v13327_v18 = vadd.f32 %v13114_v47, %v13040_v15 }
 0x5c4   :  { %v5220_v4 = vmul.f32 0.125, %v5207_v2  ;;  %v5163_v8 = vmul.f32 %v13319_v5, %v13319_v5  ;;  %v5141_v62 = vadd.f32 %v5140_v11, %v5139_v63  ;;  %v5590_v24 = vmul.f32 0.044715, %v5542_v45 }
 0x5c5   :  { %v9137_v21 = vpop.eup %9136  ;;  %v5226_v17 = vadd.f32 1e-05, %v5218_v20  ;;  %v5273_v46 = vadd.f32 %v5272_v27, %v5271_v30  ;;  %v13330_v56 = vadd.f32 %v5276_v43, %v13314_v29  ;;  %v5285_v52 = vadd.f32 %v5284_v54, %v5283_v57 }
 0x5c6   :  { %v5544_v34 = vmul.f32 %v9137_v21, %v13230_v14  ;;  %v5228_v1 = vadd.f32 1e-05, %v5220_v4  ;;  %v5196_v36 = vrot.slane %v5163_v8, 4  ;;  %v5149_v39 = vmul.f32 0.125, %v5141_v62 }
 0x5c7   :  { %v5614_v60 = vmul.f32 %v5590_v24, %v5542_v45  ;;  %9142 = vrsqrt.f32 %v5226_v17  ;;  %v5274_v50 = vrot.slane %v5273_v46, 1  ;;  %v13333_v31 = vmul.f32 0.5, %v5542_v45 }
 0x5c8   :  { %v9139_v48 = vpop.eup %9138  ;;  %v5592_v47 = vmul.f32 0.044715, %v5544_v34  ;;  %9144 = vrsqrt.f32 %v5228_v1  ;;  %v5197_v40 = vadd.f32 %v5196_v36, %v5163_v8  ;;  %v13337_v0 = vsub.f32 %v13184_v22, %v5149_v39 }
 0x5c9   :  { %v9141_v41 = vpop.eup %9140  ;;  %v5638_v32 = vmul.f32 %v5614_v60, %v5542_v45  ;;  %v5543_v12 = vmul.f32 %v9139_v48, %v13240_v25  ;;  %v5275_v14 = vadd.f32 %v5274_v50, %v5273_v46  ;;  %v5286_v44 = vrot.slane %v5285_v52, 1 }
 0x5ca   :  { %v5616_v42 = vmul.f32 %v5592_v47, %v5544_v34  ;;  %v5545_v6 = vmul.f32 %v9141_v41, %v13244_v49  ;;  %v5198_v55 = vrot.slane %v5197_v40, 2  ;;  %v13340_v3 = vmul.f32 0.5, %v5544_v34 }
 0x5cb   :  { %v5662_v63 = vadd.f32 %v5638_v32, %v5542_v45  ;;  %v5591_v30 = vmul.f32 0.044715, %v5543_v12  ;;  %v5165_v57 = vmul.f32 %v13337_v0, %v13337_v0  ;;  %v13344_v2 = vmul.f32 0.5, %v5543_v12 }
 0x5cc   :  { %v5640_v53 = vmul.f32 %v5616_v42, %v5544_v34  ;;  %v5593_v25 = vmul.f32 0.044715, %v5545_v6  ;;  %v5199_v11 = vadd.f32 %v5198_v55, %v5197_v40  ;;  %v5298_v27 = vmul.f32 0.125, %v5275_v14 }
 0x5cd   :  { %v5686_v22 = vmul.f32 0.7978846, %v5662_v63  ;;  %v5615_v43 = vmul.f32 %v5591_v30, %v5543_v12  ;;  %v5208_v20 = vrot.slane %v5165_v57, 4  ;;  %v5287_v8 = vadd.f32 %v5286_v44, %v5285_v52 }
 0x5ce   :  { %v5664_v54 = vadd.f32 %v5640_v53, %v5544_v34  ;;  %v5617_v49 = vmul.f32 %v5593_v25, %v5545_v6  ;;  %v5200_v4 = vrot.slane %v5199_v11, 1  ;;  %v13347_v21 = vsub.f32 %v13304_v37, %v5298_v27 }
 0x5cf   :  { %9146 = vtanh.f32 %v5686_v22  ;;  %v5639_v45 = vmul.f32 %v5615_v43, %v5543_v12  ;;  %v5209_v62 = vadd.f32 %v5208_v20, %v5165_v57  ;;  %v5300_v1 = vmul.f32 0.125, %v5287_v8 }
 0x5d0   :  { %v5688_v24 = vmul.f32 0.7978846, %v5664_v54  ;;  %v5641_v17 = vmul.f32 %v5617_v49, %v5545_v6  ;;  %v5201_v46 = vadd.f32 %v5200_v4, %v5199_v11  ;;  %v5314_v50 = vmul.f32 %v13347_v21, %v13347_v21 }
 0x5d1   :  { %v9143_v36 = vpop.eup %9142  ;;  %v5663_v39 = vadd.f32 %v5639_v45, %v5543_v12  ;;  %v5210_v60 = vrot.slane %v5209_v62, 2  ;;  %v5278_v34 = vrot.slane %v13330_v56, 2  ;;  %v13356_v42 = vmul.f32 0.5, %v5545_v6 }
 0x5d2   :  { %v9145_v48 = vpop.eup %9144  ;;  %9148 = vtanh.f32 %v5688_v24  ;;  %v5665_v52 = vadd.f32 %v5641_v17, %v5545_v6  ;;  %v5242_v47 = vmul.f32 %v9143_v36, %v13267_v13  ;;  %v5219_v40 = vmul.f32 0.125, %v5201_v46 }
 0x5d3   :  { %v5687_v37 = vmul.f32 0.7978846, %v5663_v39  ;;  %v13354_v41 = vmul.f32 %v9145_v48, %v13273_v26  ;;  %v5211_v32 = vadd.f32 %v5210_v60, %v5209_v62  ;;  %v5342_v14 = vrot.slane %v5314_v50, 4 }
 0x5d4   :  { %v5689_v12 = vmul.f32 0.7978846, %v5665_v52  ;;  %v5578_v55 = vmul.f32 0.044715, %v5242_v47  ;;  %v13359_v44 = vsub.f32 %v13308_v23, %v5300_v1  ;;  %v13361_v63 = vmul.f32 0.5, %v5242_v47 }
 0x5d5   :  { %9150 = vtanh.f32 %v5687_v37  ;;  %v5580_v30 = vmul.f32 0.044715, %v13354_v41  ;;  %v5227_v13 = vadd.f32 1e-05, %v5219_v40  ;;  %v5212_v53 = vrot.slane %v5211_v32, 1 }
 0x5d6   :  { %9152 = vtanh.f32 %v5689_v12  ;;  %v5602_v57 = vmul.f32 %v5578_v55, %v5242_v47  ;;  %v5343_v26 = vadd.f32 %v5342_v14, %v5314_v50  ;;  %v5316_v6 = vmul.f32 %v13359_v44, %v13359_v44 }
 0x5d7   :  { %v5604_v25 = vmul.f32 %v5580_v30, %v13354_v41  ;;  %9154 = vrsqrt.f32 %v5227_v13  ;;  %v5279_v11 = vadd.f32 %v5278_v34, %v13330_v56  ;;  %v5213_v22 = vadd.f32 %v5212_v53, %v5211_v32 }
 0x5d8   :  { %v5626_v23 = vmul.f32 %v5602_v57, %v5242_v47  ;;  %v5344_v43 = vrot.slane %v5343_v26, 2  ;;  %v5288_v20 = vrot.slane %v13327_v18, 4  ;;  %v5354_v49 = vrot.slane %v5316_v6, 4 }
 0x5d9   :  { %v9147_v27 = vpop.eup %9146  ;;  %v5628_v54 = vmul.f32 %v5604_v25, %v13354_v41  ;;  %v5280_v4 = vrot.slane %v5279_v11, 1  ;;  %v13372_v8 = vadd.f32 %v13134_v9, %v13025_v28  ;;  %v5221_v24 = vmul.f32 0.125, %v5213_v22 }
 0x5da   :  { %v5734_v45 = vadd.f32 1.0, %v9147_v27  ;;  %v5650_v62 = vadd.f32 %v5626_v23, %v5242_v47  ;;  %v5345_v17 = vadd.f32 %v5344_v43, %v5343_v26  ;;  %v5355_v46 = vadd.f32 %v5354_v49, %v5316_v6 }
 0x5db   :  { %v5652_v56 = vadd.f32 %v5628_v54, %v13354_v41  ;;  %v5281_v1 = vadd.f32 %v5280_v4, %v5279_v11  ;;  %v5289_v36 = vadd.f32 %v5288_v20, %v13327_v18  ;;  %v5229_v34 = vadd.f32 1e-05, %v5221_v24 }
 0x5dc   :  { %v9149_v39 = vpop.eup %9148  ;;  %v13377_v60 = vmul.f32 %v5734_v45, %v13333_v31  ;;  %v5674_v50 = vmul.f32 0.7978846, %v5650_v62  ;;  %v5346_v48 = vrot.slane %v5345_v17, 1  ;;  %v5356_v9 = vrot.slane %v5355_v46, 2 }
 0x5dd   :  { %v5736_v52 = vadd.f32 1.0, %v9149_v39  ;;  %v5676_v28 = vmul.f32 0.7978846, %v5652_v56  ;;  %v5299_v40 = vmul.f32 0.125, %v5281_v1  ;;  %v5290_v37 = vrot.slane %v5289_v36, 2 }
 0x5de   :  { %9156 = vtanh.f32 %v5674_v50  ;;  %v5347_v47 = vadd.f32 %v5346_v48, %v5345_v17  ;;  %v5422_v32 = vrot.slane %v13372_v8, 4  ;;  %v5357_v55 = vadd.f32 %v5356_v9, %v5355_v46  ;;  %v14382_v46 = vld [vmem:[#allocation136_spill] sm:$0xff] }
 0x5df   :  { %v9151_v14 = vpop.eup %9150  ;;  %v13381_v12 = vmul.f32 %v5736_v52, %v13340_v3  ;;  %9158 = vtanh.f32 %v5676_v28  ;;  %v13384_v31 = vsub.f32 %v13314_v29, %v5299_v40  ;;  %v5291_v53 = vadd.f32 %v5290_v37, %v5289_v36 }
 0x5e0   :  { %v9153_v30 = vpop.eup %9152  ;;  %v5735_v13 = vadd.f32 1.0, %v9151_v14  ;;  %9160 = vrsqrt.f32 %v5229_v34  ;;  %v5370_v57 = vmul.f32 0.125, %v5347_v47  ;;  %v5358_v6 = vrot.slane %v5357_v55, 1 }
 0x5e1   :  { %v9155_v26 = vpop.eup %9154  ;;  %v5737_v25 = vadd.f32 1.0, %v9153_v30  ;;  %v5315_v11 = vmul.f32 %v13384_v31, %v13384_v31  ;;  %v5423_v23 = vadd.f32 %v5422_v32, %v13372_v8  ;;  %v5292_v43 = vrot.slane %v5291_v53, 1 }
 0x5e2   :  { %v13390_v3 = vmul.f32 %v5735_v13, %v13344_v2  ;;  %v13393_v22 = vmul.f32 %v9155_v26, %v13319_v5  ;;  %v5378_v29 = vadd.f32 1e-05, %v5370_v57  ;;  %v5359_v27 = vadd.f32 %v5358_v6, %v5357_v55 }
 0x5e3   :  { %v13396_v20 = vmul.f32 %v5737_v25, %v13356_v42  ;;  %v5348_v54 = vrot.slane %v5315_v11, 4  ;;  %v5424_v49 = vrot.slane %v5423_v23, 2  ;;  %v5556_v4 = vmul.f32 0.5, %v13354_v41  ;;  %v14383_v41 = vld [vmem:[#allocation138_spill] sm:$0xff] }
 0x5e4   :  { %v5579_v45 = vmul.f32 0.044715, %v13393_v22  ;;  %9162 = vrsqrt.f32 %v5378_v29  ;;  %v5293_v62 = vadd.f32 %v5292_v43, %v5291_v53  ;;  %v5372_v24 = vmul.f32 0.125, %v5359_v27 }
 0x5e5   :  { %v5349_v2 = vadd.f32 %v5348_v54, %v5315_v11  ;;  %v5425_v17 = vadd.f32 %v5424_v49, %v5423_v23  ;;  %v13402_v5 = vadd.f32 %v13136_v38, %v13028_v58  ;;  %v13407_v1 = vadd.f32 %v14382_v46, %v13037_v16 }
 0x5e6   :  { %v5603_v56 = vmul.f32 %v5579_v45, %v13393_v22  ;;  %v5301_v42 = vmul.f32 0.125, %v5293_v62  ;;  %v13411_v36 = vadd.f32 %v14383_v41, %v13040_v15  ;;  %v5380_v39 = vadd.f32 1e-05, %v5372_v24 }
 0x5e7   :  { %v5350_v50 = vrot.slane %v5349_v2, 2  ;;  %v5426_v34 = vrot.slane %v5425_v17, 1  ;;  %v5434_v48 = vrot.slane %v13402_v5, 4  ;;  %v5428_v28 = vrot.slane %v13407_v1, 4 }
 0x5e8   :  { %v9157_v52 = vpop.eup %9156  ;;  %v5627_v58 = vmul.f32 %v5603_v56, %v13393_v22  ;;  %v13416_v38 = vsub.f32 %v13327_v18, %v5301_v42  ;;  %v5440_v16 = vrot.slane %v13411_v36, 4  ;;  %9164 = vrsqrt.f32 %v5380_v39 }
 0x5e9   :  { %v9159_v9 = vpop.eup %9158  ;;  %v5722_v40 = vadd.f32 1.0, %v9157_v52  ;;  %v5351_v15 = vadd.f32 %v5350_v50, %v5349_v2  ;;  %v5427_v47 = vadd.f32 %v5426_v34, %v5425_v17  ;;  %v5435_v30 = vadd.f32 %v5434_v48, %v13402_v5 }
 0x5ea   :  { %v9161_v37 = vpop.eup %9160  ;;  %v5724_v32 = vadd.f32 1.0, %v9159_v9  ;;  %v5651_v14 = vadd.f32 %v5627_v58, %v13393_v22  ;;  %v5317_v55 = vmul.f32 %v13416_v38, %v13416_v38 }
 0x5eb   :  { %v13425_v18 = vmul.f32 %v5722_v40, %v13361_v63  ;;  %v13428_v13 = vmul.f32 %v9161_v37, %v13337_v0  ;;  %v5352_v57 = vrot.slane %v5351_v15, 1  ;;  %v5450_v53 = vmul.f32 0.125, %v5427_v47 }
 0x5ec   :  { %v13430_v26 = vmul.f32 %v5724_v32, %v5556_v4  ;;  %v5675_v25 = vmul.f32 0.7978846, %v5651_v14  ;;  %v5360_v6 = vrot.slane %v5317_v55, 4  ;;  %v5436_v11 = vrot.slane %v5435_v30, 2 }
 0x5ed   :  { %v5581_v23 = vmul.f32 0.044715, %v13428_v13  ;;  %v5353_v29 = vadd.f32 %v5352_v57, %v5351_v15  ;;  %v13434_v43 = vsub.f32 %v13372_v8, %v5450_v53  ;;  %v5429_v0 = vadd.f32 %v5428_v28, %v13407_v1 }
 0x5ee   :  { %v9163_v27 = vpop.eup %9162  ;;  %9166 = vtanh.f32 %v5675_v25  ;;  %v5361_v63 = vadd.f32 %v5360_v6, %v5317_v55  ;;  %v5437_v54 = vadd.f32 %v5436_v11, %v5435_v30  ;;  %v5441_v8 = vadd.f32 %v5440_v16, %v13411_v36 }
 0x5ef   :  { %v5605_v49 = vmul.f32 %v5581_v23, %v13428_v13  ;;  %v13439_v4 = vmul.f32 %v9163_v27, %v13347_v21  ;;  %v5371_v45 = vmul.f32 0.125, %v5353_v29  ;;  %v5466_v62 = vmul.f32 %v13434_v43, %v13434_v43 }
 0x5f0   :  { %v5362_v24 = vrot.slane %v5361_v63, 2  ;;  %v5438_v2 = vrot.slane %v5437_v54, 1  ;;  %v5430_v17 = vrot.slane %v5429_v0, 2  ;;  %v5442_v58 = vrot.slane %v5441_v8, 2 }
 0x5f1   :  { %v5629_v56 = vmul.f32 %v5605_v49, %v13428_v13  ;;  %v5586_v42 = vmul.f32 0.044715, %v13439_v4  ;;  %v5379_v46 = vadd.f32 1e-05, %v5371_v45  ;;  %v5494_v39 = vrot.slane %v5466_v62, 4 }
 0x5f2   :  { %v5363_v41 = vadd.f32 %v5362_v24, %v5361_v63  ;;  %v5439_v50 = vadd.f32 %v5438_v2, %v5437_v54  ;;  %v5431_v34 = vadd.f32 %v5430_v17, %v5429_v0  ;;  %v9165_v21 = vpop.eup %9164  ;;  %v5443_v32 = vadd.f32 %v5442_v58, %v5441_v8 }
 0x5f3   :  { %v5653_v48 = vadd.f32 %v5629_v56, %v13428_v13  ;;  %v5610_v52 = vmul.f32 %v5586_v42, %v13439_v4  ;;  %9168 = vrsqrt.f32 %v5379_v46  ;;  %v13449_v28 = vmul.f32 %v9165_v21, %v13359_v44 }
 0x5f4   :  { %v5364_v16 = vrot.slane %v5363_v41, 1  ;;  %v5495_v9 = vadd.f32 %v5494_v39, %v5466_v62  ;;  %v5452_v40 = vmul.f32 0.125, %v5439_v50  ;;  %v5432_v37 = vrot.slane %v5431_v34, 1 }
 0x5f5   :  { %v5677_v15 = vmul.f32 0.7978846, %v5653_v48  ;;  %v5634_v47 = vmul.f32 %v5610_v52, %v13439_v4  ;;  %v5555_v14 = vmul.f32 0.5, %v13393_v22  ;;  %v5588_v55 = vmul.f32 0.044715, %v13449_v28 }
 0x5f6   :  { %v5365_v30 = vadd.f32 %v5364_v16, %v5363_v41  ;;  %v5496_v57 = vrot.slane %v5495_v9, 2  ;;  %v13456_v44 = vsub.f32 %v13402_v5, %v5452_v40  ;;  %v5433_v25 = vadd.f32 %v5432_v37, %v5431_v34 }
 0x5f7   :  { %9170 = vtanh.f32 %v5677_v15  ;;  %v5658_v53 = vadd.f32 %v5634_v47, %v13439_v4  ;;  %v5612_v11 = vmul.f32 %v5588_v55, %v13449_v28  ;;  %v5444_v27 = vrot.slane %v5443_v32, 1 }
 0x5f8   :  { %v9167_v6 = vpop.eup %9166  ;;  %v5373_v23 = vmul.f32 0.125, %v5365_v30  ;;  %v5497_v29 = vadd.f32 %v5496_v57, %v5495_v9  ;;  %v5468_v22 = vmul.f32 %v13456_v44, %v13456_v44  ;;  %v5451_v0 = vmul.f32 0.125, %v5433_v25 }
 0x5f9   :  { %v5723_v63 = vadd.f32 1.0, %v9167_v6  ;;  %v5682_v54 = vmul.f32 0.7978846, %v5658_v53  ;;  %v5636_v49 = vmul.f32 %v5612_v11, %v13449_v28  ;;  %v5445_v24 = vadd.f32 %v5444_v27, %v5443_v32 }
 0x5fa   :  { %v5381_v45 = vadd.f32 1e-05, %v5373_v23  ;;  %v5498_v62 = vrot.slane %v5497_v29, 1  ;;  %v5506_v2 = vrot.slane %v5468_v22, 4  ;;  %v13465_v17 = vsub.f32 %v13407_v1, %v5451_v0 }
 0x5fb   :  { %v13462_v5 = vmul.f32 %v5723_v63, %v5555_v14  ;;  %9172 = vtanh.f32 %v5682_v54  ;;  %v5660_v8 = vadd.f32 %v5636_v49, %v13449_v28  ;;  %v5453_v42 = vmul.f32 0.125, %v5445_v24 }
 0x5fc   :  { %9174 = vrsqrt.f32 %v5381_v45  ;;  %v5499_v56 = vadd.f32 %v5498_v62, %v5497_v29  ;;  %v5507_v41 = vadd.f32 %v5506_v2, %v5468_v22  ;;  %v5467_v39 = vmul.f32 %v13465_v17, %v13465_v17 }
 0x5fd   :  { %v9169_v46 = vpop.eup %9168  ;;  %v5684_v50 = vmul.f32 0.7978846, %v5660_v8  ;;  %v13474_v48 = vsub.f32 %v13411_v36, %v5453_v42  ;;  %v5557_v37 = vmul.f32 0.5, %v13428_v13  ;;  %v5562_v29 = vmul.f32 0.5, %v13439_v4 }
 0x5fe   :  { %v13471_v34 = vmul.f32 %v9169_v46, %v13384_v31  ;;  %v5522_v21 = vmul.f32 0.125, %v5499_v56  ;;  %v5508_v1 = vrot.slane %v5507_v41, 2  ;;  %v5500_v52 = vrot.slane %v5467_v39, 4 }
 0x5ff   :  { %9176 = vtanh.f32 %v5684_v50  ;;  %v5469_v47 = vmul.f32 %v13474_v48, %v13474_v48  ;;  %v5564_v56 = vmul.f32 0.5, %v13449_v28 }
 0x600   :  { %v5587_v58 = vmul.f32 0.044715, %v13471_v34  ;;  %v5530_v16 = vadd.f32 1e-05, %v5522_v21  ;;  %v5509_v40 = vadd.f32 %v5508_v1, %v5507_v41  ;;  %v5501_v15 = vadd.f32 %v5500_v52, %v5467_v39 }
 0x601   :  { %v9171_v9 = vpop.eup %9170  ;;  %v5512_v55 = vrot.slane %v5469_v47, 4 }
 0x602   :  { %v5725_v31 = vadd.f32 1.0, %v9171_v9  ;;  %v5611_v32 = vmul.f32 %v5587_v58, %v13471_v34  ;;  %9178 = vrsqrt.f32 %v5530_v16  ;;  %v5510_v36 = vrot.slane %v5509_v40, 1 }
 0x603   :  { %v5502_v14 = vrot.slane %v5501_v15, 2  ;;  %v5513_v11 = vadd.f32 %v5512_v55, %v5469_v47 }
 0x604   :  { %v13481_v30 = vmul.f32 %v5725_v31, %v5557_v37  ;;  %v5635_v57 = vmul.f32 %v5611_v32, %v13471_v34  ;;  %v5511_v25 = vadd.f32 %v5510_v36, %v5509_v40  ;;  %v5563_v36 = vmul.f32 0.5, %v13471_v34 }
 0x605   :  { %v9173_v53 = vpop.eup %9172  ;;  %v5503_v6 = vadd.f32 %v5502_v14, %v5501_v15  ;;  %v5514_v0 = vrot.slane %v5513_v11, 2 }
 0x606   :  { %v9175_v23 = vpop.eup %9174  ;;  %v5730_v27 = vadd.f32 1.0, %v9173_v53  ;;  %v5659_v13 = vadd.f32 %v5635_v57, %v13471_v34  ;;  %v5524_v54 = vmul.f32 0.125, %v5511_v25 }
 0x607   :  { %v5397_v63 = vmul.f32 %v9175_v23, %v13416_v38  ;;  %v5504_v22 = vrot.slane %v5503_v6, 1  ;;  %v5515_v42 = vadd.f32 %v5514_v0, %v5513_v11 }
 0x608   :  { %v13487_v49 = vmul.f32 %v5730_v27, %v5562_v29  ;;  %v5683_v45 = vmul.f32 0.7978846, %v5659_v13  ;;  %v5532_v24 = vadd.f32 1e-05, %v5524_v54 }
 0x609   :  { %v5589_v62 = vmul.f32 0.044715, %v5397_v63  ;;  %v5505_v2 = vadd.f32 %v5504_v22, %v5503_v6  ;;  %v9177_v8 = vpop.eup %9176  ;;  %v5516_v38 = vrot.slane %v5515_v42, 1  ;;  %v5565_v22 = vmul.f32 0.5, %v5397_v63 }
 0x60a   :  { %9180 = vtanh.f32 %v5683_v45  ;;  %v5732_v4 = vadd.f32 1.0, %v9177_v8 }
 0x60b   :  { %v5613_v46 = vmul.f32 %v5589_v62, %v5397_v63  ;;  %9182 = vrsqrt.f32 %v5532_v24  ;;  %v5523_v41 = vmul.f32 0.125, %v5505_v2  ;;  %v5517_v58 = vadd.f32 %v5516_v38, %v5515_v42 }
 0x60c   :  { %v9179_v39 = vpop.eup %9178  ;;  %v13490_v50 = vmul.f32 %v5732_v4, %v5564_v56 }
 0x60d   :  { %v5637_v21 = vmul.f32 %v5613_v46, %v5397_v63  ;;  %v5546_v1 = vmul.f32 %v9179_v39, %v13434_v43  ;;  %v5531_v52 = vadd.f32 1e-05, %v5523_v41  ;;  %v5525_v40 = vmul.f32 0.125, %v5517_v58 }
 0x60f   :  { %v5661_v16 = vadd.f32 %v5637_v21, %v5397_v63  ;;  %v5594_v9 = vmul.f32 0.044715, %v5546_v1  ;;  %9184 = vrsqrt.f32 %v5531_v52  ;;  %v5533_v47 = vadd.f32 1e-05, %v5525_v40 }
 0x611   :  { %v5685_v28 = vmul.f32 0.7978846, %v5661_v16  ;;  %v5618_v15 = vmul.f32 %v5594_v9, %v5546_v1 }
 0x613   :  { %9186 = vtanh.f32 %v5685_v28  ;;  %v5642_v37 = vmul.f32 %v5618_v15, %v5546_v1 }
 0x614   :  { %v9181_v31 = vpop.eup %9180  ;;  %9188 = vrsqrt.f32 %v5533_v47 }
 0x615   :  { %v9183_v32 = vpop.eup %9182  ;;  %v5731_v14 = vadd.f32 1.0, %v9181_v31  ;;  %v5666_v55 = vadd.f32 %v5642_v37, %v5546_v1 }
 0x616   :  { %v5548_v43 = vmul.f32 %v9183_v32, %v13456_v44  ;;  %v14384_v32 = vld [vmem:[#allocation57_spill] sm:$0xff] }
 0x617   :  { %v13495_v57 = vmul.f32 %v5731_v14, %v5563_v36  ;;  %v5690_v53 = vmul.f32 0.7978846, %v5666_v55  ;;  %8530 = vmatprep.subr.bf16.mxu0 %v14384_v32  ;;  %v14385_v36 = vld [vmem:[#allocation73_spill] sm:$0xff]  ;;  %v5771_v14 = vpack.c.bf16 %v13283_v51, %v13258_v7  ;;  %v5773_v55 = vpack.c.bf16 %v13299_v19, %v13261_v10 }
 0x618   :  { %v5596_v25 = vmul.f32 0.044715, %v5548_v43  ;;  %v5572_v52 = vmul.f32 0.5, %v5548_v43  ;;  %8558 = vmatprep.subr.bf16.mxu1 %v14385_v36 }
 0x619   :  { %v9185_v6 = vpop.eup %9184  ;;  %9190 = vtanh.f32 %v5690_v53 }
 0x61a   :  { %v5620_v11 = vmul.f32 %v5596_v25, %v5548_v43  ;;  %v5547_v23 = vmul.f32 %v9185_v6, %v13465_v17  ;;  %v5570_v17 = vmul.f32 0.5, %v5546_v1 }
 0x61c   :  { %v5644_v29 = vmul.f32 %v5620_v11, %v5548_v43  ;;  %v5595_v27 = vmul.f32 0.044715, %v5547_v23  ;;  %v5571_v40 = vmul.f32 0.5, %v5547_v23 }
 0x61d   :  { %v9187_v13 = vpop.eup %9186 }
 0x61e   :  { %v9189_v54 = vpop.eup %9188  ;;  %v5733_v0 = vadd.f32 1.0, %v9187_v13  ;;  %v5668_v34 = vadd.f32 %v5644_v29, %v5548_v43  ;;  %v5619_v45 = vmul.f32 %v5595_v27, %v5547_v23 }
 0x61f   :  { %v5549_v62 = vmul.f32 %v9189_v54, %v13474_v48 }
 0x620   :  { %v13499_v44 = vmul.f32 %v5733_v0, %v5565_v22  ;;  %v5692_v24 = vmul.f32 0.7978846, %v5668_v34  ;;  %v5643_v2 = vmul.f32 %v5619_v45, %v5547_v23 }
 0x621   :  { %v5597_v8 = vmul.f32 0.044715, %v5549_v62  ;;  %v5573_v47 = vmul.f32 0.5, %v5549_v62 }
 0x622   :  { %9192 = vtanh.f32 %v5692_v24  ;;  %v5667_v56 = vadd.f32 %v5643_v2, %v5547_v23 }
 0x623   :  { %v9191_v42 = vpop.eup %9190  ;;  %v5621_v4 = vmul.f32 %v5597_v8, %v5549_v62 }
 0x624   :  { %v5738_v46 = vadd.f32 1.0, %v9191_v42  ;;  %v5691_v41 = vmul.f32 0.7978846, %v5667_v56 }
 0x625   :  { %v5645_v39 = vmul.f32 %v5621_v4, %v5549_v62 }
 0x626   :  { %v13501_v38 = vmul.f32 %v5738_v46, %v5570_v17  ;;  %9194 = vtanh.f32 %v5691_v41 }
 0x627   :  { %v5669_v63 = vadd.f32 %v5645_v39, %v5549_v62 }
 0x629   :  { %v5693_v21 = vmul.f32 0.7978846, %v5669_v63 }
 0x62b   :  { %9196 = vtanh.f32 %v5693_v21 }
 0x62c   :  { %v9193_v48 = vpop.eup %9192 }
 0x62d   :  { %v5740_v58 = vadd.f32 1.0, %v9193_v48 }
 0x62f   :  { %v13503_v16 = vmul.f32 %v5740_v58, %v5572_v52 }
 0x630   :  { %v9195_v9 = vpop.eup %9194 }
 0x631   :  { %v5739_v28 = vadd.f32 1.0, %v9195_v9 }
 0x633   :  { %v13505_v15 = vmul.f32 %v5739_v28, %v5571_v40 }
 0x635   :  { %v9197_v1 = vpop.eup %9196 }
 0x636   :  { %v5741_v37 = vadd.f32 1.0, %v9197_v1 }
 0x638   :  { %v13507_v31 = vmul.f32 %v5741_v37, %v5573_v47 }
 0x639   :  { %9726 = dma.done.wait [#allocation6], 8192 }
 0x63a   :  { %9727 = vsyncadd [#allocation6], 4294959104  ;;  %v14386_v43 = vld [vmem:[#allocation49_spill] sm:$0xff]  ;;  %v14388_v25 = vld [vmem:[#allocation58_spill] sm:$0xff]  ;;  %5889 = vmatprep.mubr.bf16.mxu0 %v5771_v14  ;;  %5937 = vmatprep.mubr.bf16.mxu1 %v5773_v55  ;;  %v5770_v39 = vpack.c.bf16 %v13264_v59, %v13252_v33  ;;  %v5772_v63 = vpack.c.bf16 %v13270_v61, %v13255_v35  ;;  %v5779_v9 = vpack.c.bf16 %v13390_v3, %v13390_v3  ;;  %s14448_s4 = sld [smem:[#allocation254_spill]]  ;;  %s14451_s26 = sld [smem:[#allocation253_spill]] }
 0x63b   :  { %8531 = vmatpush3.bf16.msra.mxu0 %v14386_v43  ;;  %v14387_v53 = vld [vmem:[#allocation65_spill] sm:$0xff]  ;;  %v14389_v6 = vld [vmem:[#allocation74_spill] sm:$0xff]  ;;  %v14392_v7 = vld [vmem:[#allocation59_spill] sm:$0xff]  ;;  %v5781_v40 = vpack.c.bf16 %v13396_v20, %v13396_v20  ;;  %v5778_v28 = vpack.c.bf16 %v13377_v60, %v13377_v60  ;;  %v5780_v3 = vpack.c.bf16 %v13381_v12, %v13381_v12  ;;  %v5775_v32 = vpack.c.bf16 %v13495_v57, %v13462_v5 }
 0x63c   :  { %8559 = vmatpush3.bf16.msra.mxu1 %v14387_v53  ;;  %8532 = vmatprep.subr.bf16.mxu0 %v14388_v25  ;;  %v14390_v11 = vld [vmem:[#allocation50_spill] sm:$0xff]  ;;  %v14393_v51 = vld [vmem:[#allocation75_spill] sm:$0xff]  ;;  %v14396_v29 = vld [vmem:[#allocation60_spill] sm:$0xff]  ;;  %v5777_v36 = vpack.c.bf16 %v13499_v44, %v13481_v30 }
 0x63d   :  { %8560 = vmatprep.subr.bf16.mxu1 %v14389_v6  ;;  %v14391_v23 = vld [vmem:[#allocation66_spill] sm:$0xff]  ;;  %v14394_v10 = vld [vmem:[#allocation51_spill] sm:$0xff]  ;;  %v14397_v27 = vld [vmem:[#allocation76_spill] sm:$0xff] }
 0x63e   :  { %v14395_v19 = vld [vmem:[#allocation67_spill] sm:$0xff]  ;;  %v14398_v13 = vld [vmem:[#allocation52_spill] sm:$0xff]  ;;  %v14400_v22 = vld [vmem:[#allocation61_spill] sm:$0xff] }
 0x63f   :  { %8533 = vmatpush3.bf16.msra.mxu0 %v14390_v11  ;;  %v14399_v54 = vld [vmem:[#allocation68_spill] sm:$0xff]  ;;  %v14401_v0 = vld [vmem:[#allocation77_spill] sm:$0xff]  ;;  %v14404_v62 = vld [vmem:[#allocation62_spill] sm:$0xff] }
 0x640   :  { %8561 = vmatpush3.bf16.msra.mxu1 %v14391_v23  ;;  %8534 = vmatprep.subr.bf16.mxu0 %v14392_v7  ;;  %v14402_v34 = vld [vmem:[#allocation53_spill] sm:$0xff]  ;;  %v14405_v24 = vld [vmem:[#allocation78_spill] sm:$0xff]  ;;  %v14408_v56 = vld [vmem:[#allocation63_spill] sm:$0xff] }
 0x641   :  { %8562 = vmatprep.subr.bf16.mxu1 %v14393_v51  ;;  %v14403_v45 = vld [vmem:[#allocation69_spill] sm:$0xff]  ;;  %v14406_v2 = vld [vmem:[#allocation54_spill] sm:$0xff]  ;;  %v14409_v42 = vld [vmem:[#allocation79_spill] sm:$0xff] }
 0x642   :  { %v14407_v8 = vld [vmem:[#allocation70_spill] sm:$0xff]  ;;  %v14410_v4 = vld [vmem:[#allocation55_spill] sm:$0xff]  ;;  %v14412_v46 = vld [vmem:[#allocation64_spill] sm:$0xff] }
 0x643   :  { %8535 = vmatpush3.bf16.msra.mxu0 %v14394_v10  ;;  %v14411_v17 = vld [vmem:[#allocation71_spill] sm:$0xff]  ;;  %v14413_v41 = vld [vmem:[#allocation80_spill] sm:$0xff]  ;;  %v14416_v52 = vld [vmem:[#allocation89_spill] sm:$0xff] }
 0x644   :  { %8563 = vmatpush3.bf16.msra.mxu1 %v14395_v19  ;;  %8536 = vmatprep.subr.bf16.mxu0 %v14396_v29  ;;  %v14414_v21 = vld [vmem:[#allocation56_spill] sm:$0xff]  ;;  %v14417_v58 = vld [vmem:[#allocation105_spill] sm:$0xff]  ;;  %v14420_v35 = vld [vmem:[#allocation90_spill] sm:$0xff] }
 0x645   :  { %8564 = vmatprep.subr.bf16.mxu1 %v14397_v27  ;;  %v14415_v48 = vld [vmem:[#allocation72_spill] sm:$0xff]  ;;  %v14418_v33 = vld [vmem:[#allocation81_spill] sm:$0xff]  ;;  %v14421_v61 = vld [vmem:[#allocation106_spill] sm:$0xff] }
 0x646   :  { %v14419_v59 = vld [vmem:[#allocation97_spill] sm:$0xff]  ;;  %v14422_v1 = vld [vmem:[#allocation82_spill] sm:$0xff]  ;;  %v14424_v47 = vld [vmem:[#allocation91_spill] sm:$0xff] }
 0x647   :  { %8537 = vmatpush3.bf16.msra.mxu0 %v14398_v13  ;;  %v14423_v20 = vld [vmem:[#allocation98_spill] sm:$0xff]  ;;  %v14425_v37 = vld [vmem:[#allocation107_spill] sm:$0xff]  ;;  %v14428_v12 = vld [vmem:[#allocation92_spill] sm:$0xff]  ;;  %v5774_v13 = vpack.c.bf16 %v13487_v49, %v13425_v18  ;;  %v5782_v18 = vpack.c.bf16 %v13501_v38, %v13501_v38 }
 0x648   :  { %8565 = vmatpush3.bf16.msra.mxu1 %v14399_v54  ;;  %8538 = vmatprep.subr.bf16.mxu0 %v14400_v22  ;;  %v14426_v60 = vld [vmem:[#allocation83_spill] sm:$0xff]  ;;  %v14429_v55 = vld [vmem:[#allocation108_spill] sm:$0xff]  ;;  %v14432_v5 = vld [vmem:[#allocation93_spill] sm:$0xff]  ;;  %v5776_v54 = vpack.c.bf16 %v13490_v50, %v13430_v26  ;;  %v5784_v26 = vpack.c.bf16 %v13503_v16, %v13503_v16 }
 0x649   :  { %8566 = vmatprep.subr.bf16.mxu1 %v14401_v0  ;;  %v14427_v14 = vld [vmem:[#allocation99_spill] sm:$0xff]  ;;  %v14430_v43 = vld [vmem:[#allocation84_spill] sm:$0xff]  ;;  %v14433_v57 = vld [vmem:[#allocation109_spill] sm:$0xff] }
 0x64a   :  { %v14431_v53 = vld [vmem:[#allocation100_spill] sm:$0xff]  ;;  %v14434_v30 = vld [vmem:[#allocation85_spill] sm:$0xff]  ;;  %v14436_v25 = vld [vmem:[#allocation94_spill] sm:$0xff] }
 0x64b   :  { %8539 = vmatpush3.bf16.msra.mxu0 %v14402_v34  ;;  %v14435_v44 = vld [vmem:[#allocation101_spill] sm:$0xff]  ;;  %v14437_v6 = vld [vmem:[#allocation110_spill] sm:$0xff]  ;;  %v14440_v7 = vld [vmem:[#allocation95_spill] sm:$0xff]  ;;  %v5783_v34 = vpack.c.bf16 %v13505_v15, %v13505_v15 }
 0x64c   :  { %8567 = vmatpush3.bf16.msra.mxu1 %v14403_v45  ;;  %8540 = vmatprep.subr.bf16.mxu0 %v14404_v62  ;;  %v14438_v11 = vld [vmem:[#allocation86_spill] sm:$0xff]  ;;  %v14441_v51 = vld [vmem:[#allocation111_spill] sm:$0xff]  ;;  %v14444_v29 = vld [vmem:[#allocation96_spill] sm:$0xff]  ;;  %v5785_v45 = vpack.c.bf16 %v13507_v31, %v13507_v31 }
 0x64d   :  { %8568 = vmatprep.subr.bf16.mxu1 %v14405_v24  ;;  %v14439_v23 = vld [vmem:[#allocation102_spill] sm:$0xff]  ;;  %v14442_v10 = vld [vmem:[#allocation87_spill] sm:$0xff]  ;;  %v14445_v27 = vld [vmem:[#allocation112_spill] sm:$0xff] }
 0x64e   :  { %v14443_v19 = vld [vmem:[#allocation103_spill] sm:$0xff]  ;;  %v14446_v22 = vld [vmem:[#allocation88_spill] sm:$0xff]  ;;  %v9265_v50 = vld [vmem:[#allocation21 + $0x8] sm:$0xff]  }
 0x64f   :  { %8541 = vmatpush3.bf16.msra.mxu0 %v14406_v2  ;;  %v14447_v0 = vld [vmem:[#allocation104_spill] sm:$0xff]  ;;  %v6321_v38 = vld [vmem:[%s14448_s4 + $0x8] sm:$0xff] }
 0x650   :  { %8569 = vmatpush3.bf16.msra.mxu1 %v14407_v8  ;;  %8542 = vmatprep.subr.bf16.mxu0 %v14408_v56  ;;  %v9264_v49 = vld [vmem:[#allocation21] sm:$0xff]   ;;  %v8156_v62 = vld [vmem:[#allocation20] ss:$0 sm:$0xff] }
 0x651   :  { %8570 = vmatprep.subr.bf16.mxu1 %v14409_v42  ;;  %v6320_v15 = vld [vmem:[%s14448_s4] sm:$0xff] }
 0x652   :  { %6324 = vrot.lane.b32.xlu0 %v6320_v15, %s9748_s0 }
 0x653   :  { %8543 = vmatpush3.bf16.msra.mxu0 %v14410_v4 }
 0x654   :  { %8571 = vmatpush3.bf16.msra.mxu1 %v14411_v17  ;;  %8544 = vmatprep.subr.bf16.mxu0 %v14412_v46 }
 0x655   :  { %8572 = vmatprep.subr.bf16.mxu1 %v14413_v41 }
 0x656   :  { %6326 = vrot.lane.b32.xlu0 %v6321_v38, %s9748_s0 }
 0x657   :  { %8545 = vmatpush3.bf16.msra.mxu0 %v14414_v21 }
 0x658   :  { %8573 = vmatpush3.bf16.msra.mxu1 %v14415_v48  ;;  %8586 = vmatprep.subr.bf16.mxu0 %v14416_v52 }
 0x659   :  { %8614 = vmatprep.subr.bf16.mxu1 %v14417_v58 }
 0x65a   :  { %5890 = vmatmul.mubr.bf16.vlgmr.msra.gmra.mrb[80].mxu0 %v5770_v39 }
 0x65b   :  { %5938 = vmatmul.mubr.bf16.vlgmr.msra.gmra.mrb[80].mxu1 %v5772_v63  ;;  %8587 = vmatpush3.bf16.msra.mxu0 %v14418_v33 }
 0x65c   :  { %8615 = vmatpush3.bf16.msra.mxu1 %v14419_v59  ;;  %8588 = vmatprep.subr.bf16.mxu0 %v14420_v35 }
 0x65d   :  { %8616 = vmatprep.subr.bf16.mxu1 %v14421_v61  ;;  %5897 = vmatprep.mubr.bf16.mxu0 %v5779_v9 }
 0x65e   :  { %5945 = vmatprep.mubr.bf16.mxu1 %v5781_v40 }
 0x65f   :  { %8589 = vmatpush3.bf16.msra.mxu0 %v14422_v1 }
 0x660   :  { %8617 = vmatpush3.bf16.msra.mxu1 %v14423_v20  ;;  %8590 = vmatprep.subr.bf16.mxu0 %v14424_v47 }
 0x661   :  { %8618 = vmatprep.subr.bf16.mxu1 %v14425_v37 }
 0x662   :  { %5898 = vmatmul.mubr.bf16.gmra.mrb[84].mxu0 %v5778_v28 }
 0x663   :  { %5946 = vmatmul.mubr.bf16.gmra.mrb[84].mxu1 %v5780_v3  ;;  %8591 = vmatpush3.bf16.msra.mxu0 %v14426_v60 }
 0x664   :  { %8619 = vmatpush3.bf16.msra.mxu1 %v14427_v14  ;;  %8592 = vmatprep.subr.bf16.mxu0 %v14428_v12 }
 0x665   :  { %8620 = vmatprep.subr.bf16.mxu1 %v14429_v55  ;;  %5985 = vmatprep.mubr.bf16.mxu0 %v5775_v32 }
 0x666   :  { %6033 = vmatprep.mubr.bf16.mxu1 %v5777_v36 }
 0x667   :  { %8593 = vmatpush3.bf16.msra.mxu0 %v14430_v43 }
 0x668   :  { %8621 = vmatpush3.bf16.msra.mxu1 %v14431_v53  ;;  %8594 = vmatprep.subr.bf16.mxu0 %v14432_v5 }
 0x669   :  { %8622 = vmatprep.subr.bf16.mxu1 %v14433_v57 }
 0x66b   :  { %8595 = vmatpush3.bf16.msra.mxu0 %v14434_v30 }
 0x66c   :  { %8623 = vmatpush3.bf16.msra.mxu1 %v14435_v44  ;;  %8596 = vmatprep.subr.bf16.mxu0 %v14436_v25 }
 0x66d   :  { %8624 = vmatprep.subr.bf16.mxu1 %v14437_v6 }
 0x66f   :  { %8597 = vmatpush3.bf16.msra.mxu0 %v14438_v11 }
 0x670   :  { %8625 = vmatpush3.bf16.msra.mxu1 %v14439_v23  ;;  %8598 = vmatprep.subr.bf16.mxu0 %v14440_v7 }
 0x671   :  { %8626 = vmatprep.subr.bf16.mxu1 %v14441_v51 }
 0x673   :  { %8599 = vmatpush3.bf16.msra.mxu0 %v14442_v10 }
 0x674   :  { %8627 = vmatpush3.bf16.msra.mxu1 %v14443_v19  ;;  %8600 = vmatprep.subr.bf16.mxu0 %v14444_v29 }
 0x675   :  { %8628 = vmatprep.subr.bf16.mxu1 %v14445_v27 }
 0x677   :  { %8601 = vmatpush3.bf16.msra.mxu0 %v14446_v22 }
 0x678   :  { %8629 = vmatpush3.bf16.msra.mxu1 %v14447_v0  ;;  %8822 = vmatprep.subr.bf16.mxu0 %v9264_v49 }
 0x67a   :  { %5986 = vmatmul.mubr.bf16.vlgmr.msra.gmra.mrb[88].mxu0 %v5774_v13 }
 0x67b   :  { %6034 = vmatmul.mubr.bf16.vlgmr.msra.gmra.mrb[88].mxu1 %v5776_v54  ;;  %5993 = vmatprep.mubr.bf16.mxu0 %v5783_v34 }
 0x67c   :  { %6041 = vmatprep.mubr.bf16.mxu1 %v5785_v45  ;;  %8823 = vmatpush3.bf16.msra.mxu0 %v9264_v49 }
 0x67d   :  { %8824 = vmatprep.subr.bf16.mxu0 %v9265_v50 }
 0x680   :  { %8825 = vmatpush3.bf16.msra.mxu0 %v9265_v50 }
 0x682   :  { %5994 = vmatmul.mubr.bf16.gmra.mrb[92].mxu0 %v5782_v18 }
 0x683   :  { %6042 = vmatmul.mubr.bf16.gmra.mrb[92].mxu1 %v5784_v26 }
 0x72d   :  { %v8546_v31 = vpop.f32.mrb[80].mxu0 }
 0x72e   :  { %v8574_v16 = vpop.f32.mrb[80].mxu1  ;;  %v8547_v24 = vpop.f32.mrb[81].mxu0 }
 0x72f   :  { %v8575_v2 = vpop.f32.mrb[81].mxu1  ;;  %v8548_v8 = vadd.f32 %v8547_v24, %v8546_v31  ;;  %v8549_v42 = vpop.f32.mrb[82].mxu0 }
 0x730   :  { %v8576_v56 = vadd.f32 %v8575_v2, %v8574_v16  ;;  %v8577_v4 = vpop.f32.mrb[82].mxu1  ;;  %v8550_v17 = vpop.f32.mrb[83].mxu0 }
 0x731   :  { %v8578_v46 = vpop.f32.mrb[83].mxu1  ;;  %v5892_v41 = vadd.f32 %v8548_v8, %v8156_v62  ;;  %v8551_v39 = vadd.f32 %v8550_v17, %v8549_v42 }
 0x732   :  { %v8579_v63 = vadd.f32 %v8578_v46, %v8577_v4 }
 0x733   :  { %v5940_v21 = vadd.f32 %v8576_v56, %v5892_v41  ;;  %v5895_v48 = vadd.f32 %v8551_v39, %v8156_v62 }
 0x735   :  { %v5943_v52 = vadd.f32 %v8579_v63, %v5895_v48  ;;  %v8552_v58 = vpop.f32.mrb[84].mxu0 }
 0x736   :  { %v8580_v9 = vpop.f32.mrb[84].mxu1  ;;  %v8553_v40 = vpop.f32.mrb[85].mxu0 }
 0x737   :  { %v8581_v33 = vpop.f32.mrb[85].mxu1  ;;  %v8554_v59 = vadd.f32 %v8553_v40, %v8552_v58  ;;  %v8555_v35 = vpop.f32.mrb[86].mxu0 }
 0x738   :  { %v8582_v61 = vadd.f32 %v8581_v33, %v8580_v9  ;;  %v8583_v28 = vpop.f32.mrb[86].mxu1  ;;  %v8556_v3 = vpop.f32.mrb[87].mxu0 }
 0x739   :  { %v8584_v1 = vpop.f32.mrb[87].mxu1  ;;  %v5900_v20 = vadd.f32 %v8554_v59, %v8156_v62 }
 0x73b   :  { %v5948_v47 = vadd.f32 %v8582_v61, %v5900_v20 }
 0x74d   :  { %v8602_v37 = vpop.f32.mrb[88].mxu0 }
 0x74e   :  { %v8630_v32 = vpop.f32.mrb[88].mxu1  ;;  %v8603_v36 = vpop.f32.mrb[89].mxu0 }
 0x74f   :  { %v8631_v60 = vpop.f32.mrb[89].mxu1  ;;  %v8604_v14 = vadd.f32 %v8603_v36, %v8602_v37  ;;  %v8605_v55 = vpop.f32.mrb[90].mxu0 }
 0x750   :  { %v8632_v12 = vadd.f32 %v8631_v60, %v8630_v32  ;;  %v8633_v43 = vpop.f32.mrb[90].mxu1  ;;  %v8606_v53 = vpop.f32.mrb[91].mxu0 }
 0x751   :  { %v8634_v5 = vpop.f32.mrb[91].mxu1  ;;  %v5988_v57 = vadd.f32 %v8604_v14, %v5940_v21  ;;  %v8607_v30 = vadd.f32 %v8606_v53, %v8605_v55 }
 0x752   :  { %v8635_v44 = vadd.f32 %v8634_v5, %v8633_v43 }
 0x753   :  { %v6036_v25 = vadd.f32 %v8632_v12, %v5988_v57  ;;  %v5991_v6 = vadd.f32 %v8607_v30, %v5943_v52 }
 0x755   :  { %v6049_v11 = vsel %vm3533_vm3, %v6036_v25, 0.0  ;;  %v6039_v23 = vadd.f32 %v8635_v44, %v5991_v6  ;;  %v8608_v7 = vpop.f32.mrb[92].mxu0 }
 0x756   :  { %v8636_v51 = vpop.f32.mrb[92].mxu1  ;;  %v6050_v10 = vrot.slane %v6049_v11, 4  ;;  %v8609_v19 = vpop.f32.mrb[93].mxu0 }
 0x757   :  { %v8637_v29 = vpop.f32.mrb[93].mxu1  ;;  %v6070_v27 = vsel %vm3533_vm3, %v6039_v23, 0.0  ;;  %v8610_v13 = vadd.f32 %v8609_v19, %v8608_v7  ;;  %v8611_v22 = vpop.f32.mrb[94].mxu0 }
 0x758   :  { %v8638_v54 = vadd.f32 %v8637_v29, %v8636_v51  ;;  %v8639_v0 = vpop.f32.mrb[94].mxu1  ;;  %v6051_v34 = vadd.f32 %v6050_v10, %v6049_v11  ;;  %v6071_v45 = vrot.slane %v6070_v27, 4  ;;  %v8612_v18 = vpop.f32.mrb[95].mxu0 }
 0x759   :  { %v8640_v26 = vpop.f32.mrb[95].mxu1  ;;  %v5996_v49 = vadd.f32 %v8610_v13, %v5948_v47 }
 0x75a   :  { %v6052_v50 = vrot.slane %v6051_v34, 2  ;;  %v6072_v15 = vadd.f32 %v6071_v45, %v6070_v27 }
 0x75b   :  { %v6044_v38 = vadd.f32 %v8638_v54, %v5996_v49 }
 0x75c   :  { %v6053_v31 = vadd.f32 %v6052_v50, %v6051_v34  ;;  %v6073_v16 = vrot.slane %v6072_v15, 2 }
 0x75d   :  { %v6091_v62 = vsel %vm3533_vm3, %v6044_v38, 0.0 }
 0x75e   :  { %v6054_v24 = vrot.slane %v6053_v31, 1  ;;  %v6074_v2 = vadd.f32 %v6073_v16, %v6072_v15  ;;  %v6092_v8 = vrot.slane %v6091_v62, 4 }
 0x760   :  { %v6055_v56 = vadd.f32 %v6054_v24, %v6053_v31  ;;  %v6075_v42 = vrot.slane %v6074_v2, 1  ;;  %v6093_v4 = vadd.f32 %v6092_v8, %v6091_v62 }
 0x762   :  { %v6056_v17 = vmul.f32 0.125, %v6055_v56  ;;  %v6076_v46 = vadd.f32 %v6075_v42, %v6074_v2  ;;  %v6094_v41 = vrot.slane %v6093_v4, 2 }
 0x764   :  { %v6057_v39 = vsub.f32 %v6036_v25, %v6056_v17  ;;  %v6077_v63 = vmul.f32 0.125, %v6076_v46  ;;  %v6095_v21 = vadd.f32 %v6094_v41, %v6093_v4 }
 0x766   :  { %v6058_v48 = vmul.f32 %v6057_v39, %v6057_v39  ;;  %v6078_v52 = vsub.f32 %v6039_v23, %v6077_v63  ;;  %v6096_v58 = vrot.slane %v6095_v21, 1 }
 0x768   :  { %v6059_v9 = vsel %vm3533_vm3, %v6058_v48, 0.0  ;;  %v6079_v40 = vmul.f32 %v6078_v52, %v6078_v52  ;;  %v6097_v33 = vadd.f32 %v6096_v58, %v6095_v21 }
 0x769   :  { %v6060_v59 = vrot.slane %v6059_v9, 4 }
 0x76a   :  { %v6080_v35 = vsel %vm3533_vm3, %v6079_v40, 0.0  ;;  %v6098_v61 = vmul.f32 0.125, %v6097_v33 }
 0x76b   :  { %v6061_v28 = vadd.f32 %v6060_v59, %v6059_v9  ;;  %v6081_v3 = vrot.slane %v6080_v35, 4  ;;  %v8157_v59 = vld [vmem:[#allocation23] ss:$0 sm:$0xff] }
 0x76c   :  { %v6099_v1 = vsub.f32 %v6044_v38, %v6098_v61 }
 0x76d   :  { %v6062_v20 = vrot.slane %v6061_v28, 2  ;;  %v6082_v47 = vadd.f32 %v6081_v3, %v6080_v35 }
 0x76e   :  { %v6100_v37 = vmul.f32 %v6099_v1, %v6099_v1 }
 0x76f   :  { %v6063_v32 = vadd.f32 %v6062_v20, %v6061_v28  ;;  %v6083_v36 = vrot.slane %v6082_v47, 2 }
 0x770   :  { %v6101_v60 = vsel %vm3533_vm3, %v6100_v37, 0.0 }
 0x771   :  { %v6064_v14 = vrot.slane %v6063_v32, 1  ;;  %v6084_v12 = vadd.f32 %v6083_v36, %v6082_v47  ;;  %v6102_v55 = vrot.slane %v6101_v60, 4 }
 0x773   :  { %v6065_v43 = vadd.f32 %v6064_v14, %v6063_v32  ;;  %v6085_v53 = vrot.slane %v6084_v12, 1  ;;  %v6103_v5 = vadd.f32 %v6102_v55, %v6101_v60 }
 0x775   :  { %v6066_v57 = vmul.f32 0.125, %v6065_v43  ;;  %v6086_v30 = vadd.f32 %v6085_v53, %v6084_v12  ;;  %v6104_v44 = vrot.slane %v6103_v5, 2 }
 0x777   :  { %v6067_v25 = vadd.f32 1e-05, %v6066_v57  ;;  %v6087_v6 = vmul.f32 0.125, %v6086_v30  ;;  %v6105_v11 = vadd.f32 %v6104_v44, %v6103_v5 }
 0x779   :  { %9266 = vrsqrt.f32 %v6067_v25  ;;  %v6088_v23 = vadd.f32 1e-05, %v6087_v6  ;;  %v6106_v7 = vrot.slane %v6105_v11, 1 }
 0x77b   :  { %9268 = vrsqrt.f32 %v6088_v23  ;;  %v6107_v51 = vadd.f32 %v6106_v7, %v6105_v11 }
 0x77d   :  { %v6108_v10 = vmul.f32 0.125, %v6107_v51 }
 0x77f   :  { %v6109_v19 = vadd.f32 1e-05, %v6108_v10 }
 0x781   :  { %9270 = vrsqrt.f32 %v6109_v19 }
 0x783   :  { %v9267_v29 = vpop.eup %9266 }
 0x784   :  { %v6069_v27 = vmul.f32 %v9267_v29, %v6057_v39  ;;  %v6325_v29 = vpop.permute.xlu0 %6324 }
 0x785   :  { %v9269_v13 = vpop.eup %9268 }
 0x786   :  { %v6090_v54 = vmul.f32 %v9269_v13, %v6078_v52  ;;  %v6115_v22 = vmul.f32 0.044715, %v6069_v27  ;;  %v6112_v46 = vmul.f32 0.5, %v6069_v27 }
 0x788   :  { %v6116_v0 = vmul.f32 0.044715, %v6090_v54  ;;  %v6118_v34 = vmul.f32 %v6115_v22, %v6069_v27  ;;  %v6113_v41 = vmul.f32 0.5, %v6090_v54 }
 0x78a   :  { %v6119_v45 = vmul.f32 %v6116_v0, %v6090_v54  ;;  %v6121_v18 = vmul.f32 %v6118_v34, %v6069_v27 }
 0x78b   :  { %v9271_v26 = vpop.eup %9270 }
 0x78c   :  { %v6111_v49 = vmul.f32 %v9271_v26, %v6099_v1  ;;  %v6122_v50 = vmul.f32 %v6119_v45, %v6090_v54  ;;  %v6124_v15 = vadd.f32 %v6121_v18, %v6069_v27 }
 0x78e   :  { %v6117_v38 = vmul.f32 0.044715, %v6111_v49  ;;  %v6125_v31 = vadd.f32 %v6122_v50, %v6090_v54  ;;  %v6127_v16 = vmul.f32 0.7978846, %v6124_v15  ;;  %v6114_v58 = vmul.f32 0.5, %v6111_v49 }
 0x790   :  { %v6120_v62 = vmul.f32 %v6117_v38, %v6111_v49  ;;  %v6128_v24 = vmul.f32 0.7978846, %v6125_v31  ;;  %9272 = vtanh.f32 %v6127_v16 }
 0x792   :  { %v6123_v2 = vmul.f32 %v6120_v62, %v6111_v49  ;;  %9274 = vtanh.f32 %v6128_v24 }
 0x794   :  { %v6126_v8 = vadd.f32 %v6123_v2, %v6111_v49  ;;  %v6327_v49 = vpop.permute.xlu0 %6326 }
 0x796   :  { %v6129_v56 = vmul.f32 0.7978846, %v6126_v8 }
 0x798   :  { %9276 = vtanh.f32 %v6129_v56 }
 0x79a   :  { %v9273_v42 = vpop.eup %9272 }
 0x79b   :  { %v6133_v4 = vadd.f32 1.0, %v9273_v42  ;;  %v14449_v42 = vld [vmem:[#allocation133_spill] sm:$0xff] }
 0x79c   :  { %v9275_v17 = vpop.eup %9274 }
 0x79d   :  { %v6134_v39 = vadd.f32 1.0, %v9275_v17  ;;  %v6136_v63 = vmul.f32 %v6133_v4, %v6112_v46  ;;  %v6372_v4 = vmul.f32 %v14449_v42, %v14449_v42 }
 0x79f   :  { %v6137_v21 = vmul.f32 %v6134_v39, %v6113_v41  ;;  %v6374_v39 = vsel %vm3533_vm3, %v6372_v4, 0.0 }
 0x7a1   :  { %v6139_v48 = vpack.c.bf16 %v6137_v21, %v6136_v63  ;;  %v14450_v21 = vld [vmem:[#allocation135_spill] sm:$0xff] }
 0x7a2   :  { %v9277_v52 = vpop.eup %9276 }
 0x7a3   :  { %8826 = vmatprep.mubr.msk.bf16.mxu0 %vm3533_vm3, %v6139_v48  ;;  %v6135_v9 = vadd.f32 1.0, %v9277_v52  ;;  %v6373_v48 = vmul.f32 %v14450_v21, %v14450_v21 }
 0x7a5   :  { %v6138_v40 = vmul.f32 %v6135_v9, %v6114_v58  ;;  %v6377_v9 = vsel %vm3533_vm3, %v6373_v48, 0.0 }
 0x7a7   :  { %v6140_v33 = vpack.c.bf16 %v6138_v40, %v6138_v40 }
 0x7a9   :  { %8827 = vmatmul.mubr.msk.bf16.vlgmr.msra.gmra.mrb[96].mxu0 %vm3533_vm3, %v6140_v33 }
 0x87c   :  { %v8828_v35 = vpop.f32.mrb[96].mxu0 }
 0x87d   :  { %v13621_v61 = vadd.f32 %v8828_v35, %v8157_v59  ;;  %v6204_v28 = vpop.f32.mrb[97].mxu0 }
 0x87e   :  { %v13623_v3 = vadd.f32 %v8157_v59, %v6204_v28  ;;  %v8829_v1 = vpop.f32.mrb[98].mxu0 }
 0x87f   :  { %v6207_v20 = vpop.f32.mrb[99].mxu0  ;;  %v6223_v38 = vand.u32 2147483647, %v13621_v61  ;;  %v6220_v1 = vmax.f32 %v13621_v61, 0.0  ;;  %vm6247_vm10 = vcmp.gt.f32.partialorder %v13621_v61, 20.0 }
 0x880   :  { %v6221_v47 = vand.u32 2147483647, %v13623_v3  ;;  %v13626_v37 = vadd.f32 %v8157_v59, %v6207_v20  ;;  %v6218_v30 = vmax.f32 %v13623_v3, 0.0  ;;  %vm6245_vm4 = vcmp.gt.f32.partialorder %v13623_v3, 20.0 }
 0x881   :  { %v6226_v31 = vsub.f32 0.0, %v6223_v38 }
 0x882   :  { %v6224_v32 = vsub.f32 0.0, %v6221_v47  ;;  %v6222_v36 = vand.u32 2147483647, %v13626_v37  ;;  %v6219_v6 = vmax.f32 %v13626_v37, 0.0  ;;  %vm6246_vm5 = vcmp.gt.f32.partialorder %v13626_v37, 20.0 }
 0x883   :  { %v6231_v16 = vmul.f32 1.442695, %v6226_v31 }
 0x884   :  { %v6227_v60 = vmul.f32 1.442695, %v6224_v32  ;;  %v6225_v14 = vsub.f32 0.0, %v6222_v36  ;;  %v6295_v36 = vld [vmem:[%s14451_s26] sm:$0xff] }
 0x886   :  { %9278 = vpow2.f32 %v6227_v60  ;;  %v6229_v12 = vmul.f32 1.442695, %v6225_v14 }
 0x888   :  { %9280 = vpow2.f32 %v6229_v12 }
 0x890   :  { %v9279_v55 = vpop.eup %9278 }
 0x891   :  { %v6233_v43 = vadd.f32 1.0, %v9279_v55 }
 0x892   :  { %v9281_v53 = vpop.eup %9280 }
 0x893   :  { %9282 = vlog2.f32 %v6233_v43  ;;  %v6234_v5 = vadd.f32 1.0, %v9281_v53 }
 0x895   :  { %9284 = vlog2.f32 %v6234_v5 }
 0x89d   :  { %v9283_v57 = vpop.eup %9282 }
 0x89e   :  { %v6237_v44 = vmul.f32 0.6931472, %v9283_v57 }
 0x89f   :  { %v9285_v25 = vpop.eup %9284 }
 0x8a0   :  { %v6239_v11 = vmul.f32 0.6931472, %v9285_v25  ;;  %v6242_v23 = vadd.f32 %v6237_v44, %v6218_v30 }
 0x8a2   :  { %v6243_v7 = vadd.f32 %v6239_v11, %v6219_v6  ;;  %v13633_v51 = vsel %vm6245_vm4, %v13623_v3, %v6242_v23 }
 0x8a3   :  { %9286 = vrsqrt.f32 %v13633_v51  ;;  %vm6308_vm6 = vcmp.eq.f32.partialorder %v13633_v51, inf  ;;  %v6311_v54 = vand.u32 2147483648, %v13633_v51  ;;  %vm6310_vm7 = vcmp.eq.f32.partialorder %v13633_v51, 0.0 }
 0x8a4   :  { %v13638_v10 = vsel %vm6246_vm5, %v13626_v37, %v6243_v7  ;;  %v6251_v14 = vadd.f32 1e-05, %v13633_v51 }
 0x8a5   :  { %9288 = vrsqrt.f32 %v13638_v10  ;;  %vm6315_vm8 = vcmp.eq.f32.partialorder %v13638_v10, inf  ;;  %v6318_v34 = vand.u32 2147483648, %v13638_v10  ;;  %vm6317_vm9 = vcmp.eq.f32.partialorder %v13638_v10, 0.0 }
 0x8a6   :  { %9290 = vpow2.f32 %v6231_v16  ;;  %v6254_v12 = vadd.f32 1e-05, %v13638_v10 }
 0x8ad   :  { %v9287_v19 = vpop.eup %9286 }
 0x8ae   :  { %v6307_v27 = vmul.f32 %v9287_v19, %v13633_v51 }
 0x8af   :  { %v9289_v13 = vpop.eup %9288 }
 0x8b0   :  { %v6314_v22 = vmul.f32 %v9289_v13, %v13638_v10  ;;  %v6309_v0 = vsel %vm6308_vm6, %v13633_v51, %v6307_v27  ;;  %v9291_v62 = vpop.eup %9290  ;;  %vm6410_vm6 = vcmask 7168  }
 0x8b1   :  { %v6312_v45 = vsel %vm6310_vm7, %v6311_v54, %v6309_v0  ;;  %v6235_v2 = vadd.f32 1.0, %v9291_v62 }
 0x8b2   :  { %v6316_v18 = vsel %vm6315_vm8, %v13638_v10, %v6314_v22  ;;  %v6330_v26 = vmul.f32 %v6325_v29, %v6312_v45 }
 0x8b3   :  { %v6319_v50 = vsel %vm6317_vm9, %v6318_v34, %v6316_v18  ;;  %9292 = vlog2.f32 %v6235_v2 }
 0x8b4   :  { %6334 = vrot.lane.b32.xlu1 %v6330_v26, %s9762_s18  ;;  %v6331_v15 = vmul.f32 %v6327_v49, %v6319_v50 }
 0x8b8   :  { %6336 = vrot.lane.b32.xlu1 %v6331_v15, %s9762_s18 }
 0x8bd   :  { %v9293_v59 = vpop.eup %9292 }
 0x8be   :  { %v6241_v28 = vmul.f32 0.6931472, %v9293_v59 }
 0x8c0   :  { %v6244_v20 = vadd.f32 %v6241_v28, %v6220_v1 }
 0x8c2   :  { %v13671_v47 = vsel %vm6247_vm10, %v13621_v61, %v6244_v20 }
 0x8c3   :  { %v6257_v32 = vadd.f32 1e-05, %v13671_v47 }
 0x8c5   :  { %9294 = vrcp.f32 %v6257_v32 }
 0x8c6   :  { %9296 = vrcp.f32 %v6251_v14 }
 0x8c7   :  { %9298 = vrcp.f32 %v6254_v12 }
 0x8cf   :  { %v9295_v60 = vpop.eup %9294 }
 0x8d0   :  { %v13681_v55 = vpop.eup %9296 }
 0x8d1   :  { %v6260_v43 = vadd.f32 0.99999, %v13681_v55  ;;  %v13684_v53 = vpop.eup %9298 }
 0x8d3   :  { %v6261_v5 = vadd.f32 %v13684_v53, %v6260_v43 }
 0x8d5   :  { %v6262_v57 = vadd.f32 %v9295_v60, %v6261_v5 }
 0x8d7   :  { %v6263_v30 = vadd.f32 1e-05, %v6262_v57 }
 0x8d9   :  { %9300 = vrcp.f32 %v6263_v30 }
 0x8e3   :  { %v13687_v44 = vpop.eup %9300 }
 0x8e4   :  { %9302 = vrsqrt.f32 %v13687_v44  ;;  %vm6290_vm11 = vcmp.eq.f32.partialorder %v13687_v44, inf  ;;  %v6293_v0 = vand.u32 2147483648, %v13687_v44  ;;  %vm6292_vm13 = vcmp.eq.f32.partialorder %v13687_v44, 0.0 }
 0x8ee   :  { %v9303_v23 = vpop.eup %9302 }
 0x8ef   :  { %v6289_v19 = vmul.f32 %v9303_v23, %v13687_v44 }
 0x8f1   :  { %v6291_v54 = vsel %vm6290_vm11, %v13687_v44, %v6289_v19 }
 0x8f2   :  { %v6294_v50 = vsel %vm6292_vm13, %v6293_v0, %v6291_v54 }
 0x926   :  { %v6335_v24 = vpop.permute.xlu1 %6334 }
 0x927   :  { %v6340_v8 = vadd.f32 %v6335_v24, %v13623_v3 }
 0x929   :  { %v6350_v56 = vmul.f32 %v6340_v8, %v6340_v8  ;;  %v6342_v58 = vmul.f32 %v6340_v8, %v14449_v42 }
 0x92a   :  { %v6337_v17 = vpop.permute.xlu1 %6336 }
 0x92b   :  { %v6341_v46 = vadd.f32 %v6337_v17, %v13626_v37  ;;  %v6352_v41 = vsel %vm3533_vm3, %v6350_v56, 0.0  ;;  %v6344_v40 = vsel %vm3533_vm3, %v6342_v58, 0.0 }
 0x92c   :  { %6353 = vadd.xlane.f32.xlu0 %v6352_v41 }
 0x92d   :  { %v6351_v63 = vmul.f32 %v6341_v46, %v6341_v46  ;;  %v6343_v33 = vmul.f32 %v6341_v46, %v14450_v21 }
 0x92f   :  { %v6355_v52 = vsel %vm3533_vm3, %v6351_v63, 0.0  ;;  %v6347_v35 = vsel %vm3533_vm3, %v6343_v33, 0.0 }
 0x930   :  { %6375 = vadd.xlane.f32.xlu0 %v6374_v39  ;;  %6356 = vadd.xlane.f32.xlu1 %v6355_v52 }
 0x934   :  { %6378 = vadd.xlane.f32.xlu0 %v6377_v9  ;;  %6345 = vadd.xlane.f32.xlu1 %v6344_v40 }
 0x938   :  { %6348 = vadd.xlane.f32.xlu0 %v6347_v35 }
 0x94e   :  { %6297 = vrot.lane.b32.xlu0 %v6295_v36, %s9748_s0 }
 0x952   :  { %6278 = vrot.lane.b32.xlu0 %v9295_v60, %s9762_s18 }
 0x9b9   :  { %v6354_v25 = vpop.xlane.xlu0 %6353 }
 0x9ba   :  { %9304 = vrsqrt.f32 %v6354_v25  ;;  %vm6360_vm12 = vcmp.eq.f32.partialorder %v6354_v25, inf  ;;  %v6363_v45 = vand.u32 2147483648, %v6354_v25  ;;  %vm6362_vm14 = vcmp.eq.f32.partialorder %v6354_v25, 0.0 }
 0x9bd   :  { %v6376_v6 = vpop.xlane.xlu0 %6375  ;;  %v6357_v11 = vpop.xlane.xlu1 %6356 }
 0x9be   :  { %9306 = vrsqrt.f32 %v6376_v6  ;;  %vm6382_vm15 = vcmp.eq.f32.partialorder %v6376_v6, inf  ;;  %v6385_v38 = vand.u32 2147483648, %v6376_v6  ;;  %vm6384_vm0 = vcmp.eq.f32.partialorder %v6376_v6, 0.0 }
 0x9bf   :  { %9308 = vrsqrt.f32 %v6357_v11  ;;  %vm6367_vm1 = vcmp.eq.f32.partialorder %v6357_v11, inf  ;;  %v6370_v56 = vand.u32 2147483648, %v6357_v11  ;;  %vm6369_vm2 = vcmp.eq.f32.partialorder %v6357_v11, 0.0 }
 0x9c1   :  { %v6379_v7 = vpop.xlane.xlu0 %6378  ;;  %v6346_v59 = vpop.xlane.xlu1 %6345 }
 0x9c2   :  { %9310 = vrsqrt.f32 %v6379_v7  ;;  %vm6389_vm4 = vcmp.eq.f32.partialorder %v6379_v7, inf  ;;  %v6392_v39 = vand.u32 2147483648, %v6379_v7  ;;  %vm6391_vm5 = vcmp.eq.f32.partialorder %v6379_v7, 0.0 }
 0x9c4   :  { %v9305_v29 = vpop.eup %9304 }
 0x9c5   :  { %v6359_v27 = vmul.f32 %v9305_v29, %v6354_v25  ;;  %v6349_v13 = vpop.xlane.xlu0 %6348 }
 0x9c7   :  { %v6361_v22 = vsel %vm6360_vm12, %v6354_v25, %v6359_v27 }
 0x9c8   :  { %v9307_v34 = vpop.eup %9306  ;;  %v6364_v15 = vsel %vm6362_vm14, %v6363_v45, %v6361_v22 }
 0x9c9   :  { %v9309_v18 = vpop.eup %9308  ;;  %v6381_v26 = vmul.f32 %v9307_v34, %v6376_v6  ;;  %v6298_v49 = vpop.permute.xlu0 %6297  ;;  %v6394_v17 = vmax.f32 %v6364_v15, 1e-06 }
 0x9ca   :  { %v6366_v31 = vmul.f32 %v9309_v18, %v6357_v11  ;;  %v6300_v16 = vmul.f32 %v6298_v49, %v6294_v50 }
 0x9cb   :  { %v6383_v62 = vsel %vm6382_vm15, %v6376_v6, %v6381_v26 }
 0x9cc   :  { %v9311_v24 = vpop.eup %9310  ;;  %v6386_v2 = vsel %vm6384_vm0, %v6385_v38, %v6383_v62  ;;  %v6368_v8 = vsel %vm6367_vm1, %v6357_v11, %v6366_v31  ;;  %6302 = vrot.lane.b32.xlu0 %v6300_v16, %s9762_s18 }
 0x9cd   :  { %v6388_v4 = vmul.f32 %v9311_v24, %v6379_v7  ;;  %v6396_v46 = vmax.f32 %v6386_v2, 1e-06  ;;  %v6371_v41 = vsel %vm6369_vm2, %v6370_v56, %v6368_v8  ;;  %v6279_v19 = vpop.permute.xlu0 %6278 }
 0x9ce   :  { %v6395_v58 = vmax.f32 %v6371_v41, 1e-06 }
 0x9cf   :  { %v6390_v63 = vsel %vm6389_vm4, %v6379_v7, %v6388_v4  ;;  %v6398_v48 = vmul.f32 %v6396_v46, %v6394_v17 }
 0x9d0   :  { %v6393_v52 = vsel %vm6391_vm5, %v6392_v39, %v6390_v63 }
 0x9d1   :  { %9312 = vrcp.f32 %v6398_v48  ;;  %v6397_v9 = vmax.f32 %v6393_v52, 1e-06 }
 0x9d3   :  { %v6399_v40 = vmul.f32 %v6397_v9, %v6395_v58 }
 0x9d5   :  { %9314 = vrcp.f32 %v6399_v40 }
 0x9db   :  { %v9313_v33 = vpop.eup %9312 }
 0x9dc   :  { %v6401_v35 = vmul.f32 %v9313_v33, %v6346_v59 }
 0x9de   :  { %v6404_v28 = vadd.f32 1.0, %v6401_v35 }
 0x9df   :  { %v9315_v1 = vpop.eup %9314 }
 0x9e0   :  { %v6406_v20 = vmul.f32 0.5, %v6404_v28  ;;  %v6403_v32 = vmul.f32 %v9315_v1, %v6349_v13 }
 0x9e2   :  { %v6405_v36 = vadd.f32 1.0, %v6403_v32  ;;  %v6408_v60 = vsub.f32 1.0, %v6406_v20 }
 0x9e4   :  { %v6407_v14 = vmul.f32 0.5, %v6405_v36  ;;  %v6411_v43 = vsel %vm6410_vm6, %v6408_v60, 0.0 }
 0x9e6   :  { %v6409_v12 = vsub.f32 1.0, %v6407_v14 }
 0x9e8   :  { %v6412_v5 = vsel %vm6410_vm6, %v6409_v12, 0.0 }
 0x9e9   :  { %v6413_v57 = vadd.f32 %v6412_v5, %v6411_v43 }
 0x9eb   :  { %6414 = vadd.xlane.f32.xlu1 %v6413_v57 }
 0x9fc   :  { %6267 = vrot.lane.b32.xlu1 %v13681_v55, %s9762_s18  ;;  %v6281_v55 = vmul.f32 %v6279_v19, %v13621_v61 }
 0xa00   :  { %6272 = vrot.lane.b32.xlu1 %v13684_v53, %s9762_s18 }
 0xa04   :  { %6284 = vrot.lane.b32.xlu1 %v13687_v44, %s9762_s18 }
 0xa3e   :  { %v6303_v18 = vpop.permute.xlu0 %6302 }
 0xa78   :  { %v6415_v30 = vpop.xlane.xlu1 %6414 }
 0xa79   :  { %v6416_v25 = vrot.slane %v6415_v30, 4 }
 0xa7b   :  { %v6417_v6 = vadd.f32 %v6416_v25, %v6415_v30 }
 0xa7c   :  { %v6268_v11 = vpop.permute.xlu1 %6267 }
 0xa7d   :  { %v6418_v23 = vrot.slane %v6417_v6, 2  ;;  %v6270_v27 = vmul.f32 %v6268_v11, %v13623_v3 }
 0xa7f   :  { %v6419_v7 = vadd.f32 %v6418_v23, %v6417_v6 }
 0xa80   :  { %v6273_v29 = vpop.permute.xlu1 %6272 }
 0xa81   :  { %v6275_v13 = vmul.f32 %v6273_v29, %v13626_v37  ;;  %v6420_v54 = vrot.slane %v6419_v7, 1 }
 0xa83   :  { %v6276_v22 = vadd.f32 %v6275_v13, %v6270_v27  ;;  %v6421_v53 = vadd.f32 %v6420_v54, %v6419_v7 }
 0xa84   :  { %v6285_v34 = vpop.permute.xlu1 %6284 }
 0xa85   :  { %v6282_v0 = vadd.f32 %v6281_v55, %v6276_v22  ;;  %8830 = vpush %v6421_v53 }
 0xa87   :  { %v13705_v45 = vmul.f32 %v6285_v34, %v6282_v0 }
 0xa89   :  { %v6305_v26 = vadd.f32 %v6303_v18, %v13705_v45 }
 0xab6   :  { %s8831_s17 = spop %8830 }
 0xab7   :  { %v6423_v49 = vstv %s8831_s17 }
 0xab8   :  { %v13708_v50 = vmul.f32 0.0625, %v6423_v49 }
 0xab9   :  { %9728 = dma.done.wait [#allocation6 + $0x1], 2048 }
 0xaba   :  { %9729 = vsyncadd [#allocation6 + $0x1], 4294965248 }
 0xabb   :  { %9730 = dma.done.wait [#allocation6 + $0x2], 2048 }
 0xabc   :  { %9731 = vsyncadd [#allocation6 + $0x2], 4294965248 }
 0xabd   :  { %9732 = dma.done.wait [#allocation6 + $0x3], 16384 }
 0xabe   :  { %9733 = vsyncadd [#allocation6 + $0x3], 4294950912  ;;  %v14452_v15 = vmov 0   ;;  %7847 = vrot.lane.b32.xlu1 %v6305_v26, %s9739_s12  ;;  %7851 = vrot.lane.b32.xlu0 %v13626_v37, %s9748_s0  ;;  %v6441_v38 = vld [vmem:[#allocation3 + $0x8] sm:$0xff]  ;;  %v6443_v31 = vld [vmem:[#allocation3 + $0x18] sm:$0xff]  ;;  %vm7875_vm7 = vcmask 523264  }
 0xabf   :  { %6533 = vmatprep.mubr.bf16.mxu1 %v14452_v15  ;;  %6574 = vmatprep.mubr.bf16.mxu0 %v14452_v15  ;;  %v6440_v16 = vld [vmem:[#allocation3] sm:$0xff]  ;;  %v6442_v62 = vld [vmem:[#allocation3 + $0x10] sm:$0xff]  ;;  %v6449_v24 = vld [vmem:[#allocation3 + $0x48] sm:$0xff]  ;;  %vm7877_vm8 = vcmask 785408  }
 0xac0   :  { %6501 = vmatprep.subr.bf16.mxu1 %v6441_v38  ;;  %6542 = vmatprep.subr.bf16.mxu0 %v6443_v31  ;;  %v6451_v2 = vld [vmem:[#allocation3 + $0x58] sm:$0xff]  ;;  %v6448_v8 = vld [vmem:[#allocation3 + $0x40] sm:$0xff]  ;;  %v6450_v37 = vld [vmem:[#allocation3 + $0x50] sm:$0xff] }
 0xac1   :  { %6502 = vmatpush1.bf16.msra.mxu1 %v6440_v16  ;;  %6543 = vmatpush1.bf16.msra.mxu0 %v6442_v62  ;;  %v6445_v56 = vld [vmem:[#allocation3 + $0x28] sm:$0xff]  ;;  %v6447_v4 = vld [vmem:[#allocation3 + $0x38] sm:$0xff]  ;;  %v6446_v17 = vld [vmem:[#allocation3 + $0x30] sm:$0xff] }
 0xac2   :  { %7855 = vrot.lane.b32.xlu1 %v13621_v61, %s9739_s12  ;;  %7863 = vrot.lane.b32.xlu0 %v13638_v10, %s9762_s18  ;;  %v6439_v61 = vpack.c.bf16 %v6305_v26, %v6305_v26  ;;  %v6444_v10 = vld [vmem:[#allocation3 + $0x20] sm:$0xff]  ;;  %v6453_v46 = vld [vmem:[#allocation3 + $0x68] sm:$0xff]  ;;  %v6455_v41 = vld [vmem:[#allocation3 + $0x78] sm:$0xff] }
 0xac3   :  { %6503 = vmatprep.subr.bf16.mxu1 %v6449_v24  ;;  %6544 = vmatprep.subr.bf16.mxu0 %v6451_v2  ;;  %v6454_v39 = vld [vmem:[#allocation3 + $0x70] sm:$0xff]  ;;  %v6901_v63 = vld [vmem:[#allocation5 + $0x40] sm:$0xff]  ;;  %v6902_v9 = vld [vmem:[#allocation5 + $0x48] sm:$0xff] }
 0xac4   :  { %v6917_v48 = vld [vmem:[#allocation5 + $0xc0] sm:$0xff]  ;;  %v6918_v40 = vld [vmem:[#allocation5 + $0xc8] sm:$0xff]  ;;  %v6903_v35 = vld [vmem:[#allocation5 + $0x50] sm:$0xff] }
 0xac5   :  { %6504 = vmatpush1.bf16.msra.mxu1 %v6448_v8  ;;  %6545 = vmatpush1.bf16.msra.mxu0 %v6450_v37  ;;  %v6893_v52 = vld [vmem:[#allocation5] sm:$0xff]  ;;  %v6894_v33 = vld [vmem:[#allocation5 + $0x8] sm:$0xff]  ;;  %v6919_v28 = vld [vmem:[#allocation5 + $0xd0] sm:$0xff] }
 0xac6   :  { %7859 = vrot.lane.b32.xlu1 %v13633_v51, %s9739_s12  ;;  %7867 = vrot.lane.b32.xlu0 %v14449_v42, %s9739_s12  ;;  %v6452_v51 = vld [vmem:[#allocation3 + $0x60] sm:$0xff]  ;;  %v6910_v59 = vld [vmem:[#allocation5 + $0x88] sm:$0xff]  ;;  %v6895_v1 = vld [vmem:[#allocation5 + $0x10] sm:$0xff] }
 0xac7   :  { %6583 = vmatprep.subr.bf16.mxu1 %v6445_v56  ;;  %6624 = vmatprep.subr.bf16.mxu0 %v6447_v4  ;;  %v6909_v58 = vld [vmem:[#allocation5 + $0x80] sm:$0xff]  ;;  %v6911_v20 = vld [vmem:[#allocation5 + $0x90] sm:$0xff]  ;;  %v6904_v32 = vld [vmem:[#allocation5 + $0x58] sm:$0xff] }
 0xac8   :  { %8162 = vmatmul.mubr.msk.bf16.vlgmr.msra.gmra.mrb[96].mxu1 %vm3533_vm3, %v6439_v61  ;;  %8163 = vmatmul.mubr.msk.bf16.vlgmr.msra.gmra.mrb[100].mxu0 %vm3533_vm3, %v6439_v61  ;;  %v6920_v36 = vld [vmem:[#allocation5 + $0xd8] sm:$0xff]  ;;  %v6905_v12 = vld [vmem:[#allocation5 + $0x60] sm:$0xff]  ;;  %v6906_v30 = vld [vmem:[#allocation5 + $0x68] sm:$0xff] }
 0xac9   :  { %6584 = vmatpush1.bf16.msra.mxu1 %v6444_v10  ;;  %6625 = vmatpush1.bf16.msra.mxu0 %v6446_v17  ;;  %v6896_v60 = vld [vmem:[#allocation5 + $0x18] sm:$0xff]  ;;  %v6921_v43 = vld [vmem:[#allocation5 + $0xe0] sm:$0xff]  ;;  %v6922_v25 = vld [vmem:[#allocation5 + $0xe8] sm:$0xff] }
 0xaca   :  { %7871 = vrot.lane.b32.xlu0 %v14450_v21, %s9762_s18  ;;  %6585 = vmatprep.subr.bf16.mxu1 %v6453_v46  ;;  %v6912_v14 = vld [vmem:[#allocation5 + $0x98] sm:$0xff]  ;;  %v6897_v5 = vld [vmem:[#allocation5 + $0x20] sm:$0xff]  ;;  %v6898_v6 = vld [vmem:[#allocation5 + $0x28] sm:$0xff] }
 0xacb   :  { %6626 = vmatprep.subr.bf16.mxu0 %v6455_v41  ;;  %6615 = vmatprep.mubr.bf16.mxu1 %v14452_v15  ;;  %v6913_v57 = vld [vmem:[#allocation5 + $0xa0] sm:$0xff]  ;;  %v6914_v11 = vld [vmem:[#allocation5 + $0xa8] sm:$0xff]  ;;  %v6907_v23 = vld [vmem:[#allocation5 + $0x70] sm:$0xff] }
 0xacc   :  { %6656 = vmatprep.mubr.bf16.mxu0 %v14452_v15  ;;  %v6923_v7 = vld [vmem:[#allocation5 + $0xf0] sm:$0xff]  ;;  %v6908_v27 = vld [vmem:[#allocation5 + $0x78] sm:$0xff]  ;;  %v7025_v22 = vld [vmem:[#allocation5 + $0x140] sm:$0xff] }
 0xacd   :  { %6586 = vmatpush1.bf16.msra.mxu1 %v6452_v51  ;;  %6627 = vmatpush1.bf16.msra.mxu0 %v6454_v39  ;;  %v6899_v19 = vld [vmem:[#allocation5 + $0x30] sm:$0xff]  ;;  %v6924_v13 = vld [vmem:[#allocation5 + $0xf8] sm:$0xff]  ;;  %v7041_v53 = vld [vmem:[#allocation5 + $0x1c0] sm:$0xff] }
 0xace   :  { %8646 = vmatprep.subr.bf16.mxu1 %v6901_v63  ;;  %8668 = vmatprep.subr.bf16.mxu0 %v6917_v48  ;;  %v6915_v29 = vld [vmem:[#allocation5 + $0xb0] sm:$0xff]  ;;  %v6900_v54 = vld [vmem:[#allocation5 + $0x38] sm:$0xff]  ;;  %v14454_v26 = vld [vmem:[#allocation164_spill] sm:$0xff] }
 0xacf   :  { %v6916_v55 = vld [vmem:[#allocation5 + $0xb8] sm:$0xff]  ;;  %v14455_v38 = vld [vmem:[#allocation165_spill] sm:$0xff] }
 0xad0   :  { %8164 = vmatmul.mubr.msk.bf16.vlgmr.msra.gmra.mrb[100].mxu1 %vm3533_vm3, %v6439_v61  ;;  %8165 = vmatmul.mubr.msk.bf16.vlgmr.msra.gmra.mrb[104].mxu0 %vm3533_vm3, %v6439_v61  ;;  %v6456_v0 = vld [vmem:[#allocation24] sm:$0xff] }
 0xad1   :  { %8647 = vmatpush3.bf16.msra.mxu1 %v6893_v52  ;;  %8669 = vmatpush3.bf16.msra.mxu0 %v6909_v58  ;;  %v14453_v34 = vld [vmem:[#allocation163_spill] sm:$0xff]  ;;  %v6469_v49 = vrot.slane %v6456_v0, %v14454_v26  ;;  %v6465_v31 = vrot.slane %v6456_v0, %v14455_v38 }
 0xad2   :  { %8648 = vmatprep.subr.bf16.mxu1 %v6902_v9  ;;  %8670 = vmatprep.subr.bf16.mxu0 %v6918_v40  ;;  %v6461_v18 = vrot.slane %v6456_v0, %v14453_v34  ;;  %v14456_v16 = vld [vmem:[#allocation167_spill] sm:$0xff]  ;;  %v14457_v40 = vld [vmem:[#allocation172_spill] sm:$0xff] }
 0xad3   :  { %v6473_v62 = vrot.slane %v6456_v0, %v14456_v16 }
 0xad5   :  { %8649 = vmatpush3.bf16.msra.mxu1 %v6894_v33  ;;  %8671 = vmatpush3.bf16.msra.mxu0 %v6910_v59  ;;  %v6477_v33 = vrot.slane %v6456_v0, %v14457_v40  ;;  %v14458_v59 = vld [vmem:[#allocation174_spill] sm:$0xff] }
 0xad6   :  { %8650 = vmatprep.subr.bf16.mxu1 %v6903_v35  ;;  %8672 = vmatprep.subr.bf16.mxu0 %v6919_v28  ;;  %v6485_v35 = vrot.slane %v6456_v0, %v14458_v59 }
 0xad9   :  { %8651 = vmatpush3.bf16.msra.mxu1 %v6895_v1  ;;  %8673 = vmatpush3.bf16.msra.mxu0 %v6911_v20  ;;  %v14459_v20 = vld [vmem:[#allocation175_spill] sm:$0xff] }
 0xada   :  { %8652 = vmatprep.subr.bf16.mxu1 %v6904_v32  ;;  %8674 = vmatprep.subr.bf16.mxu0 %v6920_v36  ;;  %v6481_v32 = vrot.slane %v6456_v0, %v14459_v20  ;;  %v14460_v36 = vld [vmem:[#allocation176_spill] sm:$0xff] }
 0xadd   :  { %8653 = vmatpush3.bf16.msra.mxu1 %v6896_v60  ;;  %8675 = vmatpush3.bf16.msra.mxu0 %v6912_v14  ;;  %v6489_v60 = vrot.slane %v6456_v0, %v14460_v36 }
 0xade   :  { %8654 = vmatprep.subr.bf16.mxu1 %v6905_v12  ;;  %8676 = vmatprep.subr.bf16.mxu0 %v6921_v43 }
 0xae1   :  { %8655 = vmatpush3.bf16.msra.mxu1 %v6897_v5  ;;  %8677 = vmatpush3.bf16.msra.mxu0 %v6913_v57 }
 0xae2   :  { %8656 = vmatprep.subr.bf16.mxu1 %v6906_v30  ;;  %8678 = vmatprep.subr.bf16.mxu0 %v6922_v25 }
 0xae5   :  { %8657 = vmatpush3.bf16.msra.mxu1 %v6898_v6  ;;  %8679 = vmatpush3.bf16.msra.mxu0 %v6914_v11 }
 0xae6   :  { %8658 = vmatprep.subr.bf16.mxu1 %v6907_v23  ;;  %8680 = vmatprep.subr.bf16.mxu0 %v6923_v7 }
 0xae9   :  { %8659 = vmatpush3.bf16.msra.mxu1 %v6899_v19  ;;  %8681 = vmatpush3.bf16.msra.mxu0 %v6915_v29 }
 0xaea   :  { %8660 = vmatprep.subr.bf16.mxu1 %v6908_v27  ;;  %8682 = vmatprep.subr.bf16.mxu0 %v6924_v13 }
 0xaed   :  { %8661 = vmatpush3.bf16.msra.mxu1 %v6900_v54  ;;  %8683 = vmatpush3.bf16.msra.mxu0 %v6916_v55 }
 0xaee   :  { %8690 = vmatprep.subr.bf16.mxu1 %v7025_v22  ;;  %8712 = vmatprep.subr.bf16.mxu0 %v7041_v53 }
 0xb9b   :  { %v6535_v24 = vpop.f32.mrb[96].mxu1  ;;  %v6576_v2 = vpop.f32.mrb[100].mxu0 }
 0xb9c   :  { %v13735_v8 = vadd.f32 %v6535_v24, %v6461_v18  ;;  %v13737_v37 = vadd.f32 %v6576_v2, %v6469_v49  ;;  %v6537_v56 = vpop.f32.mrb[97].mxu1  ;;  %v6578_v4 = vpop.f32.mrb[101].mxu0 }
 0xb9d   :  { %v13739_v61 = vadd.f32 %v6537_v56, %v6465_v31  ;;  %v13741_v10 = vadd.f32 %v6578_v4, %v6473_v62  ;;  %v6539_v17 = vpop.f32.mrb[98].mxu1  ;;  %v6580_v46 = vpop.f32.mrb[102].mxu0 }
 0xb9e   :  { %v6665_v41 = vrot.slane %v13735_v8, 4  ;;  %v6677_v51 = vrot.slane %v13737_v37, 4  ;;  %v6540_v39 = vpop.f32.mrb[99].mxu1  ;;  %v6581_v63 = vpop.f32.mrb[103].mxu0 }
 0xb9f   :  { %v6671_v48 = vrot.slane %v13739_v61, 4  ;;  %v6683_v52 = vrot.slane %v13741_v10, 4 }
 0xba0   :  { %v6666_v58 = vadd.f32 %v6665_v41, %v13735_v8  ;;  %v6678_v9 = vadd.f32 %v6677_v51, %v13737_v37 }
 0xba1   :  { %v6672_v28 = vadd.f32 %v6671_v48, %v13739_v61  ;;  %v6684_v1 = vadd.f32 %v6683_v52, %v13741_v10 }
 0xba2   :  { %v6667_v14 = vrot.slane %v6666_v58, 2  ;;  %v6679_v12 = vrot.slane %v6678_v9, 2 }
 0xba3   :  { %v6673_v43 = vrot.slane %v6672_v28, 2  ;;  %v6685_v5 = vrot.slane %v6684_v1, 2  ;;  %v6617_v57 = vpop.f32.mrb[100].mxu1  ;;  %v6658_v30 = vpop.f32.mrb[104].mxu0 }
 0xba4   :  { %v6668_v25 = vadd.f32 %v6667_v14, %v6666_v58  ;;  %v6680_v6 = vadd.f32 %v6679_v12, %v6678_v9  ;;  %v13755_v11 = vadd.f32 %v6617_v57, %v6477_v33  ;;  %v13757_v23 = vadd.f32 %v6658_v30, %v6485_v35  ;;  %v6619_v7 = vpop.f32.mrb[101].mxu1  ;;  %v6660_v19 = vpop.f32.mrb[105].mxu0 }
 0xba5   :  { %v6674_v29 = vadd.f32 %v6673_v43, %v6672_v28  ;;  %v6686_v27 = vadd.f32 %v6685_v5, %v6684_v1  ;;  %v13759_v13 = vadd.f32 %v6619_v7, %v6481_v32  ;;  %v13761_v54 = vadd.f32 %v6660_v19, %v6489_v60  ;;  %v6621_v55 = vpop.f32.mrb[102].mxu1  ;;  %v6662_v22 = vpop.f32.mrb[106].mxu0 }
 0xba6   :  { %v6669_v53 = vrot.slane %v6668_v25, 1  ;;  %v6681_v0 = vrot.slane %v6680_v6, 1  ;;  %v6689_v18 = vrot.slane %v13755_v11, 4  ;;  %v6701_v49 = vrot.slane %v13757_v23, 4  ;;  %v6622_v31 = vpop.f32.mrb[103].mxu1  ;;  %v6663_v62 = vpop.f32.mrb[107].mxu0 }
 0xba7   :  { %v6675_v24 = vrot.slane %v6674_v29, 1  ;;  %v6687_v2 = vrot.slane %v6686_v27, 1  ;;  %v6695_v56 = vrot.slane %v13759_v13, 4  ;;  %v6707_v4 = vrot.slane %v13761_v54, 4 }
 0xba8   :  { %v6670_v17 = vadd.f32 %v6669_v53, %v6668_v25  ;;  %v6682_v46 = vadd.f32 %v6681_v0, %v6680_v6  ;;  %v6690_v41 = vadd.f32 %v6689_v18, %v13755_v11  ;;  %v6702_v51 = vadd.f32 %v6701_v49, %v13757_v23 }
 0xba9   :  { %v6676_v39 = vadd.f32 %v6675_v24, %v6674_v29  ;;  %v6688_v63 = vadd.f32 %v6687_v2, %v6686_v27  ;;  %v6696_v48 = vadd.f32 %v6695_v56, %v13759_v13  ;;  %v6708_v52 = vadd.f32 %v6707_v4, %v13761_v54 }
 0xbaa   :  { %v6713_v58 = vmul.f32 0.125, %v6670_v17  ;;  %v6715_v9 = vmul.f32 0.125, %v6682_v46  ;;  %v6691_v40 = vrot.slane %v6690_v41, 2  ;;  %v6703_v33 = vrot.slane %v6702_v51, 2 }
 0xbab   :  { %v6714_v59 = vmul.f32 0.125, %v6676_v39  ;;  %v6716_v35 = vmul.f32 0.125, %v6688_v63  ;;  %v6697_v28 = vrot.slane %v6696_v48, 2  ;;  %v6709_v1 = vrot.slane %v6708_v52, 2 }
 0xbac   :  { %v13772_v20 = vsub.f32 %v13735_v8, %v6713_v58  ;;  %v13775_v32 = vsub.f32 %v13737_v37, %v6715_v9  ;;  %v6692_v36 = vadd.f32 %v6691_v40, %v6690_v41  ;;  %v6704_v60 = vadd.f32 %v6703_v33, %v6702_v51 }
 0xbad   :  { %v13778_v14 = vsub.f32 %v13739_v61, %v6714_v59  ;;  %v13781_v12 = vsub.f32 %v13741_v10, %v6716_v35  ;;  %v6698_v43 = vadd.f32 %v6697_v28, %v6696_v48  ;;  %v6710_v5 = vadd.f32 %v6709_v1, %v6708_v52 }
 0xbae   :  { %v6729_v57 = vmul.f32 %v13772_v20, %v13772_v20  ;;  %v6731_v8 = vmul.f32 %v13775_v32, %v13775_v32  ;;  %v6693_v30 = vrot.slane %v6692_v36, 1  ;;  %v6705_v25 = vrot.slane %v6704_v60, 1 }
 0xbaf   :  { %v6730_v37 = vmul.f32 %v13778_v14, %v13778_v14  ;;  %v6732_v61 = vmul.f32 %v13781_v12, %v13781_v12  ;;  %v6699_v6 = vrot.slane %v6698_v43, 1  ;;  %v6711_v7 = vrot.slane %v6710_v5, 1 }
 0xbb0   :  { %v6737_v10 = vrot.slane %v6729_v57, 4  ;;  %v6749_v19 = vrot.slane %v6731_v8, 4  ;;  %v6694_v29 = vadd.f32 %v6693_v30, %v6692_v36  ;;  %v6706_v27 = vadd.f32 %v6705_v25, %v6704_v60 }
 0xbb1   :  { %v6743_v55 = vrot.slane %v6730_v37, 4  ;;  %v6755_v22 = vrot.slane %v6732_v61, 4  ;;  %v6700_v53 = vadd.f32 %v6699_v6, %v6698_v43  ;;  %v6712_v0 = vadd.f32 %v6711_v7, %v6710_v5 }
 0xbb2   :  { %v6738_v18 = vadd.f32 %v6737_v10, %v6729_v57  ;;  %v6750_v49 = vadd.f32 %v6749_v19, %v6731_v8  ;;  %v6717_v31 = vmul.f32 0.125, %v6694_v29  ;;  %v6719_v62 = vmul.f32 0.125, %v6706_v27 }
 0xbb3   :  { %v6744_v24 = vadd.f32 %v6743_v55, %v6730_v37  ;;  %v6756_v2 = vadd.f32 %v6755_v22, %v6732_v61  ;;  %v6718_v56 = vmul.f32 0.125, %v6700_v53  ;;  %v6720_v4 = vmul.f32 0.125, %v6712_v0 }
 0xbb4   :  { %v6739_v17 = vrot.slane %v6738_v18, 2  ;;  %v6751_v46 = vrot.slane %v6750_v49, 2  ;;  %v13792_v41 = vsub.f32 %v13755_v11, %v6717_v31  ;;  %v13795_v51 = vsub.f32 %v13757_v23, %v6719_v62 }
 0xbb5   :  { %v6745_v39 = vrot.slane %v6744_v24, 2  ;;  %v6757_v63 = vrot.slane %v6756_v2, 2  ;;  %v13798_v48 = vsub.f32 %v13759_v13, %v6718_v56  ;;  %v13801_v52 = vsub.f32 %v13761_v54, %v6720_v4 }
 0xbb6   :  { %v6740_v58 = vadd.f32 %v6739_v17, %v6738_v18  ;;  %v6752_v9 = vadd.f32 %v6751_v46, %v6750_v49  ;;  %v6733_v40 = vmul.f32 %v13792_v41, %v13792_v41  ;;  %v6735_v11 = vmul.f32 %v13795_v51, %v13795_v51 }
 0xbb7   :  { %v6746_v33 = vadd.f32 %v6745_v39, %v6744_v24  ;;  %v6758_v59 = vadd.f32 %v6757_v63, %v6756_v2  ;;  %v6734_v23 = vmul.f32 %v13798_v48, %v13798_v48  ;;  %v6736_v13 = vmul.f32 %v13801_v52, %v13801_v52 }
 0xbb8   :  { %v6741_v35 = vrot.slane %v6740_v58, 1  ;;  %v6753_v28 = vrot.slane %v6752_v9, 1  ;;  %v6761_v54 = vrot.slane %v6733_v40, 4  ;;  %v6773_v1 = vrot.slane %v6735_v11, 4 }
 0xbb9   :  { %v6747_v36 = vrot.slane %v6746_v33, 1  ;;  %v6759_v60 = vrot.slane %v6758_v59, 1  ;;  %v6767_v43 = vrot.slane %v6734_v23, 4  ;;  %v6779_v5 = vrot.slane %v6736_v13, 4 }
 0xbba   :  { %v6742_v57 = vadd.f32 %v6741_v35, %v6740_v58  ;;  %v6754_v8 = vadd.f32 %v6753_v28, %v6752_v9  ;;  %v6762_v30 = vadd.f32 %v6761_v54, %v6733_v40  ;;  %v6774_v25 = vadd.f32 %v6773_v1, %v6735_v11 }
 0xbbb   :  { %v6748_v37 = vadd.f32 %v6747_v36, %v6746_v33  ;;  %v6760_v61 = vadd.f32 %v6759_v60, %v6758_v59  ;;  %v6768_v6 = vadd.f32 %v6767_v43, %v6734_v23  ;;  %v6780_v7 = vadd.f32 %v6779_v5, %v6736_v13 }
 0xbbc   :  { %v6785_v10 = vmul.f32 0.125, %v6742_v57  ;;  %v6787_v19 = vmul.f32 0.125, %v6754_v8  ;;  %v6763_v29 = vrot.slane %v6762_v30, 2  ;;  %v6775_v27 = vrot.slane %v6774_v25, 2 }
 0xbbd   :  { %v6786_v55 = vmul.f32 0.125, %v6748_v37  ;;  %v6788_v22 = vmul.f32 0.125, %v6760_v61  ;;  %v6769_v53 = vrot.slane %v6768_v6, 2  ;;  %v6781_v0 = vrot.slane %v6780_v7, 2 }
 0xbbe   :  { %v6793_v18 = vadd.f32 1e-05, %v6785_v10  ;;  %v6795_v49 = vadd.f32 1e-05, %v6787_v19  ;;  %v6764_v31 = vadd.f32 %v6763_v29, %v6762_v30  ;;  %v6776_v62 = vadd.f32 %v6775_v27, %v6774_v25 }
 0xbbf   :  { %v6794_v24 = vadd.f32 1e-05, %v6786_v55  ;;  %v6796_v2 = vadd.f32 1e-05, %v6788_v22  ;;  %v6770_v56 = vadd.f32 %v6769_v53, %v6768_v6  ;;  %v6782_v4 = vadd.f32 %v6781_v0, %v6780_v7 }
 0xbc0   :  { %9316 = vrsqrt.f32 %v6793_v18  ;;  %v6765_v17 = vrot.slane %v6764_v31, 1  ;;  %v6777_v46 = vrot.slane %v6776_v62, 1 }
 0xbc1   :  { %9318 = vrsqrt.f32 %v6795_v49  ;;  %v6771_v39 = vrot.slane %v6770_v56, 1  ;;  %v6783_v63 = vrot.slane %v6782_v4, 1 }
 0xbc2   :  { %9320 = vrsqrt.f32 %v6794_v24  ;;  %v6766_v58 = vadd.f32 %v6765_v17, %v6764_v31  ;;  %v6778_v11 = vadd.f32 %v6777_v46, %v6776_v62 }
 0xbc3   :  { %9322 = vrsqrt.f32 %v6796_v2  ;;  %v6772_v9 = vadd.f32 %v6771_v39, %v6770_v56  ;;  %v6784_v40 = vadd.f32 %v6783_v63, %v6782_v4 }
 0xbc4   :  { %v6789_v23 = vmul.f32 0.125, %v6766_v58  ;;  %v6791_v28 = vmul.f32 0.125, %v6778_v11 }
 0xbc5   :  { %v6790_v33 = vmul.f32 0.125, %v6772_v9  ;;  %v6792_v59 = vmul.f32 0.125, %v6784_v40 }
 0xbc6   :  { %v6797_v60 = vadd.f32 1e-05, %v6789_v23  ;;  %v6799_v57 = vadd.f32 1e-05, %v6791_v28 }
 0xbc7   :  { %v6798_v13 = vadd.f32 1e-05, %v6790_v33  ;;  %v6800_v35 = vadd.f32 1e-05, %v6792_v59 }
 0xbc9   :  { %9324 = vrsqrt.f32 %v6798_v13 }
 0xbca   :  { %v9317_v54 = vpop.eup %9316  ;;  %9326 = vrsqrt.f32 %v6800_v35 }
 0xbcb   :  { %v9319_v1 = vpop.eup %9318  ;;  %v6809_v36 = vmul.f32 %v9317_v54, %v13772_v20  ;;  %9328 = vrsqrt.f32 %v6797_v60 }
 0xbcc   :  { %v9321_v43 = vpop.eup %9320  ;;  %v6811_v5 = vmul.f32 %v9319_v1, %v13775_v32  ;;  %9330 = vrsqrt.f32 %v6799_v57 }
 0xbcd   :  { %v9323_v8 = vpop.eup %9322  ;;  %v6825_v30 = vmul.f32 0.044715, %v6809_v36  ;;  %v6810_v25 = vmul.f32 %v9321_v43, %v13778_v14  ;;  %v6817_v43 = vmul.f32 0.5, %v6809_v36 }
 0xbce   :  { %v6827_v37 = vmul.f32 0.044715, %v6811_v5  ;;  %v6812_v61 = vmul.f32 %v9323_v8, %v13781_v12 }
 0xbcf   :  { %v6826_v6 = vmul.f32 0.044715, %v6810_v25  ;;  %v6833_v7 = vmul.f32 %v6825_v30, %v6809_v36  ;;  %v6818_v8 = vmul.f32 0.5, %v6810_v25 }
 0xbd0   :  { %v6828_v10 = vmul.f32 0.044715, %v6812_v61  ;;  %v6835_v19 = vmul.f32 %v6827_v37, %v6811_v5  ;;  %v6819_v37 = vmul.f32 0.5, %v6811_v5 }
 0xbd1   :  { %v6834_v20 = vmul.f32 %v6826_v6, %v6810_v25  ;;  %v6841_v29 = vmul.f32 %v6833_v7, %v6809_v36  ;;  %v6820_v7 = vmul.f32 0.5, %v6812_v61 }
 0xbd2   :  { %v6836_v27 = vmul.f32 %v6828_v10, %v6812_v61  ;;  %v6843_v55 = vmul.f32 %v6835_v19, %v6811_v5 }
 0xbd3   :  { %v6842_v22 = vmul.f32 %v6834_v20, %v6810_v25  ;;  %v6849_v32 = vadd.f32 %v6841_v29, %v6809_v36  ;;  %v9325_v53 = vpop.eup %9324 }
 0xbd4   :  { %v6844_v0 = vmul.f32 %v6836_v27, %v6812_v61  ;;  %v6851_v18 = vadd.f32 %v6843_v55, %v6811_v5  ;;  %v9327_v49 = vpop.eup %9326  ;;  %v13816_v14 = vmul.f32 %v9325_v53, %v13798_v48 }
 0xbd5   :  { %v6850_v12 = vadd.f32 %v6842_v22, %v6810_v25  ;;  %v6857_v31 = vmul.f32 0.7978846, %v6849_v32  ;;  %v13819_v62 = vmul.f32 %v9327_v49, %v13801_v52  ;;  %v9329_v39 = vpop.eup %9328  ;;  %v7026_v49 = vld [vmem:[#allocation5 + $0x148] sm:$0xff] }
 0xbd6   :  { %v6852_v24 = vadd.f32 %v6844_v0, %v6812_v61  ;;  %v6859_v2 = vmul.f32 0.7978846, %v6851_v18  ;;  %v6830_v4 = vmul.f32 0.044715, %v13816_v14  ;;  %v9331_v63 = vpop.eup %9330  ;;  %v13827_v9 = vmul.f32 %v9329_v39, %v13792_v41  ;;  %v7017_v0 = vld [vmem:[#allocation5 + $0x100] sm:$0xff] }
 0xbd7   :  { %v6858_v56 = vmul.f32 0.7978846, %v6850_v12  ;;  %9332 = vtanh.f32 %v6857_v31  ;;  %v6832_v46 = vmul.f32 0.044715, %v13819_v62  ;;  %v13831_v11 = vmul.f32 %v9331_v63, %v13795_v51  ;;  %v7033_v18 = vld [vmem:[#allocation5 + $0x180] sm:$0xff]  ;;  %v7042_v12 = vld [vmem:[#allocation5 + $0x1c8] sm:$0xff] }
 0xbd8   :  { %v6860_v17 = vmul.f32 0.7978846, %v6852_v24  ;;  %9334 = vtanh.f32 %v6859_v2  ;;  %v6838_v48 = vmul.f32 %v6830_v4, %v13816_v14  ;;  %v6829_v13 = vmul.f32 0.044715, %v13827_v9  ;;  %v7018_v4 = vld [vmem:[#allocation5 + $0x108] sm:$0xff]  ;;  %v7027_v63 = vld [vmem:[#allocation5 + $0x150] sm:$0xff] }
 0xbd9   :  { %9336 = vtanh.f32 %v6858_v56  ;;  %v6840_v58 = vmul.f32 %v6832_v46, %v13819_v62  ;;  %v6831_v54 = vmul.f32 0.044715, %v13831_v11  ;;  %v6822_v24 = vmul.f32 0.5, %v13816_v14 }
 0xbda   :  { %9338 = vtanh.f32 %v6860_v17  ;;  %v6846_v52 = vmul.f32 %v6838_v48, %v13816_v14  ;;  %v6837_v6 = vmul.f32 %v6829_v13, %v13827_v9  ;;  %v6824_v17 = vmul.f32 0.5, %v13819_v62  ;;  %v7034_v48 = vld [vmem:[#allocation5 + $0x188] sm:$0xff] }
 0xbdb   :  { %v6848_v40 = vmul.f32 %v6840_v58, %v13819_v62  ;;  %v6839_v20 = vmul.f32 %v6831_v54, %v13831_v11  ;;  %v7020_v54 = vld [vmem:[#allocation5 + $0x118] sm:$0xff] }
 0xbdc   :  { %v6854_v33 = vadd.f32 %v6846_v52, %v13816_v14  ;;  %v6845_v32 = vmul.f32 %v6837_v6, %v13827_v9  ;;  %v7043_v52 = vld [vmem:[#allocation5 + $0x1d0] sm:$0xff]  ;;  %v7038_v6 = vld [vmem:[#allocation5 + $0x1a8] sm:$0xff] }
 0xbdd   :  { %v6856_v59 = vadd.f32 %v6848_v40, %v13819_v62  ;;  %v6847_v25 = vmul.f32 %v6839_v20, %v13831_v11  ;;  %v7035_v62 = vld [vmem:[#allocation5 + $0x190] sm:$0xff] }
 0xbde   :  { %v6862_v23 = vmul.f32 0.7978846, %v6854_v33  ;;  %v6853_v56 = vadd.f32 %v6845_v32, %v13827_v9  ;;  %v7023_v20 = vld [vmem:[#allocation5 + $0x130] sm:$0xff]  ;;  %v7048_v32 = vld [vmem:[#allocation5 + $0x1f8] sm:$0xff] }
 0xbdf   :  { %v6864_v35 = vmul.f32 0.7978846, %v6856_v59  ;;  %v6855_v39 = vadd.f32 %v6847_v25, %v13831_v11 }
 0xbe0   :  { %9340 = vtanh.f32 %v6862_v23  ;;  %v6861_v14 = vmul.f32 0.7978846, %v6853_v56  ;;  %v7019_v23 = vld [vmem:[#allocation5 + $0x110] sm:$0xff]  ;;  %v7142_v56 = vld [vmem:[#allocation4 + $0x20] sm:$0xff] }
 0xbe1   :  { %v9333_v28 = vpop.eup %9332  ;;  %9342 = vtanh.f32 %v6864_v35  ;;  %v6863_v13 = vmul.f32 0.7978846, %v6855_v39  ;;  %v7028_v35 = vld [vmem:[#allocation5 + $0x158] sm:$0xff]  ;;  %v7394_v39 = vld [vmem:[#allocation5 + $0x2c0] sm:$0xff] }
 0xbe2   :  { %v9335_v1 = vpop.eup %9334  ;;  %v6873_v41 = vadd.f32 1.0, %v9333_v28  ;;  %v7044_v28 = vld [vmem:[#allocation5 + $0x1d8] sm:$0xff]  ;;  %9344 = vtanh.f32 %v6861_v14  ;;  %v7396_v14 = vld [vmem:[#allocation5 + $0x2d0] sm:$0xff] }
 0xbe3   :  { %v9337_v60 = vpop.eup %9336  ;;  %v6875_v57 = vadd.f32 1.0, %v9335_v1  ;;  %9346 = vtanh.f32 %v6863_v13  ;;  %v7036_v1 = vld [vmem:[#allocation5 + $0x198] sm:$0xff] }
 0xbe4   :  { %v9339_v51 = vpop.eup %9338  ;;  %v6874_v30 = vadd.f32 1.0, %v9337_v60  ;;  %v6881_v19 = vmul.f32 %v6873_v41, %v6817_v43  ;;  %v7029_v41 = vld [vmem:[#allocation5 + $0x160] sm:$0xff]  ;;  %v7381_v13 = vld [vmem:[#allocation5 + $0x258] sm:$0xff] }
 0xbe5   :  { %v6876_v10 = vadd.f32 1.0, %v9339_v51  ;;  %v6883_v27 = vmul.f32 %v6875_v57, %v6819_v37  ;;  %v7045_v60 = vld [vmem:[#allocation5 + $0x1e0] sm:$0xff]  ;;  %v7030_v51 = vld [vmem:[#allocation5 + $0x168] sm:$0xff] }
 0xbe6   :  { %v6882_v29 = vmul.f32 %v6874_v30, %v6818_v8  ;;  %v6889_v36 = vpack.c.bf16 %v6881_v19, %v6881_v19  ;;  %v7021_v43 = vld [vmem:[#allocation5 + $0x120] sm:$0xff]  ;;  %v7046_v8 = vld [vmem:[#allocation5 + $0x1e8] sm:$0xff]  ;;  %v7047_v19 = vld [vmem:[#allocation5 + $0x1f0] sm:$0xff] }
 0xbe7   :  { %v6884_v55 = vmul.f32 %v6876_v10, %v6820_v7  ;;  %v6891_v5 = vpack.c.bf16 %v6883_v27, %v6883_v27  ;;  %v7037_v57 = vld [vmem:[#allocation5 + $0x1a0] sm:$0xff]  ;;  %v7022_v30 = vld [vmem:[#allocation5 + $0x128] sm:$0xff]  ;;  %v7031_v7 = vld [vmem:[#allocation5 + $0x170] sm:$0xff] }
 0xbe8   :  { %v6890_v22 = vpack.c.bf16 %v6882_v29, %v6882_v29  ;;  %v7039_v27 = vld [vmem:[#allocation5 + $0x1b0] sm:$0xff] }
 0xbe9   :  { %v6892_v53 = vpack.c.bf16 %v6884_v55, %v6884_v55  ;;  %v7032_v55 = vld [vmem:[#allocation5 + $0x178] sm:$0xff] }
 0xbea   :  { %6964 = vmatprep.mubr.bf16.mxu1 %v6890_v22  ;;  %v9341_v61 = vpop.eup %9340 }
 0xbeb   :  { %7004 = vmatprep.mubr.bf16.mxu0 %v6892_v53  ;;  %6965 = vmatmul.mubr.bf16.vlgmr.msra.gmra.mrb[104].mxu1 %v6889_v36  ;;  %v9343_v31 = vpop.eup %9342  ;;  %v6878_v2 = vadd.f32 1.0, %v9341_v61  ;;  %v6821_v53 = vmul.f32 0.5, %v13827_v9  ;;  %v6823_v36 = vmul.f32 0.5, %v13831_v11  ;;  %v7141_v61 = vld [vmem:[#allocation4 + $0x18] sm:$0xff]  ;;  %v7140_v9 = vld [vmem:[#allocation4 + $0x10] sm:$0xff] }
 0xbec   :  { %7005 = vmatmul.mubr.bf16.vlgmr.msra.gmra.mrb[108].mxu0 %v6891_v5  ;;  %8691 = vmatpush3.bf16.msra.mxu1 %v7017_v0  ;;  %v6880_v46 = vadd.f32 1.0, %v9343_v31  ;;  %v9345_v37 = vpop.eup %9344  ;;  %v7024_v0 = vld [vmem:[#allocation5 + $0x138] sm:$0xff]  ;;  %v7138_v31 = vld [vmem:[#allocation4] sm:$0xff] }
 0xbed   :  { %8713 = vmatpush3.bf16.msra.mxu0 %v7033_v18  ;;  %8692 = vmatprep.subr.bf16.mxu1 %v7026_v49  ;;  %v6886_v58 = vmul.f32 %v6878_v2, %v6822_v24  ;;  %v9347_v10 = vpop.eup %9346  ;;  %v6877_v29 = vadd.f32 1.0, %v9345_v37  ;;  %v7040_v5 = vld [vmem:[#allocation5 + $0x1b8] sm:$0xff]  ;;  %v7139_v49 = vld [vmem:[#allocation4 + $0x8] sm:$0xff]  ;;  %v7400_v37 = vld [vmem:[#allocation5 + $0x2f0] sm:$0xff] }
 0xbee   :  { %8714 = vmatprep.subr.bf16.mxu0 %v7042_v12  ;;  %v6888_v40 = vmul.f32 %v6880_v46, %v6824_v17  ;;  %v6879_v22 = vadd.f32 1.0, %v9347_v10  ;;  %v7143_v2 = vld [vmem:[#allocation4 + $0x28] sm:$0xff]  ;;  %v7145_v11 = vld [vmem:[#allocation4 + $0x38] sm:$0xff]  ;;  %v7137_v17 = vpack.c.bf16 %v14449_v42, %v14449_v42  ;;  %v7378_v46 = vld [vmem:[#allocation5 + $0x240] sm:$0xff] }
 0xbef   :  { %v7013_v33 = vpack.c.bf16 %v6886_v58, %v6886_v58  ;;  %v6885_v25 = vmul.f32 %v6877_v29, %v6821_v53  ;;  %v7379_v58 = vld [vmem:[#allocation5 + $0x248] sm:$0xff]  ;;  %v7385_v10 = vld [vmem:[#allocation5 + $0x278] sm:$0xff]  ;;  %v8166_v53 = vld [vmem:[#allocation27] ss:$0 sm:$0xff] }
 0xbf0   :  { %8693 = vmatpush3.bf16.msra.mxu1 %v7018_v4  ;;  %v7015_v59 = vpack.c.bf16 %v6888_v40, %v6888_v40  ;;  %v6887_v18 = vmul.f32 %v6879_v22, %v6823_v36  ;;  %v7144_v4 = vld [vmem:[#allocation4 + $0x30] sm:$0xff]  ;;  %v7371_v40 = vld [vmem:[#allocation5 + $0x208] sm:$0xff]  ;;  %v7393_v29 = vld [vmem:[#allocation5 + $0x2b8] sm:$0xff] }
 0xbf1   :  { %8715 = vmatpush3.bf16.msra.mxu0 %v7034_v48  ;;  %8694 = vmatprep.subr.bf16.mxu1 %v7027_v63  ;;  %v7012_v12 = vpack.c.bf16 %v6885_v25, %v6885_v25  ;;  %v7370_v48 = vld [vmem:[#allocation5 + $0x200] sm:$0xff]  ;;  %v7387_v42 = vld [vmem:[#allocation5 + $0x288] sm:$0xff] }
 0xbf2   :  { %7089 = vmatprep.mubr.bf16.mxu1 %v7013_v33  ;;  %8716 = vmatprep.subr.bf16.mxu0 %v7043_v52  ;;  %v7014_v24 = vpack.c.bf16 %v6887_v18, %v6887_v18  ;;  %v7386_v63 = vld [vmem:[#allocation5 + $0x280] sm:$0xff]  ;;  %v7395_v52 = vld [vmem:[#allocation5 + $0x2c8] sm:$0xff]  ;;  %v7380_v33 = vld [vmem:[#allocation5 + $0x250] sm:$0xff] }
 0xbf3   :  { %7129 = vmatprep.mubr.bf16.mxu0 %v7015_v59  ;;  %v7372_v59 = vld [vmem:[#allocation5 + $0x210] sm:$0xff] }
 0xbf4   :  { %8695 = vmatpush3.bf16.msra.mxu1 %v7019_v23  ;;  %v7388_v23 = vld [vmem:[#allocation5 + $0x290] sm:$0xff] }
 0xbf5   :  { %8717 = vmatpush3.bf16.msra.mxu0 %v7035_v62  ;;  %8696 = vmatprep.subr.bf16.mxu1 %v7028_v35  ;;  %v7397_v62 = vld [vmem:[#allocation5 + $0x2d8] sm:$0xff] }
 0xbf6   :  { %8718 = vmatprep.subr.bf16.mxu0 %v7044_v28  ;;  %v7373_v35 = vld [vmem:[#allocation5 + $0x218] sm:$0xff] }
 0xbf7   :  { %v7389_v28 = vld [vmem:[#allocation5 + $0x298] sm:$0xff] }
 0xbf8   :  { %8697 = vmatpush3.bf16.msra.mxu1 %v7020_v54  ;;  %v7382_v54 = vld [vmem:[#allocation5 + $0x260] sm:$0xff] }
 0xbf9   :  { %8719 = vmatpush3.bf16.msra.mxu0 %v7036_v1  ;;  %8698 = vmatprep.subr.bf16.mxu1 %v7029_v41  ;;  %v7398_v1 = vld [vmem:[#allocation5 + $0x2e0] sm:$0xff] }
 0xbfa   :  { %8720 = vmatprep.subr.bf16.mxu0 %v7045_v60  ;;  %v7374_v41 = vld [vmem:[#allocation5 + $0x220] sm:$0xff] }
 0xbfb   :  { %v7390_v60 = vld [vmem:[#allocation5 + $0x2a0] sm:$0xff] }
 0xbfc   :  { %8699 = vmatpush3.bf16.msra.mxu1 %v7021_v43  ;;  %v7383_v43 = vld [vmem:[#allocation5 + $0x268] sm:$0xff] }
 0xbfd   :  { %8721 = vmatpush3.bf16.msra.mxu0 %v7037_v57  ;;  %8700 = vmatprep.subr.bf16.mxu1 %v7030_v51  ;;  %v7399_v57 = vld [vmem:[#allocation5 + $0x2e8] sm:$0xff] }
 0xbfe   :  { %8722 = vmatprep.subr.bf16.mxu0 %v7046_v8  ;;  %v7375_v51 = vld [vmem:[#allocation5 + $0x228] sm:$0xff] }
 0xbff   :  { %v7391_v8 = vld [vmem:[#allocation5 + $0x2a8] sm:$0xff] }
 0xc00   :  { %8701 = vmatpush3.bf16.msra.mxu1 %v7022_v30  ;;  %v7384_v30 = vld [vmem:[#allocation5 + $0x270] sm:$0xff] }
 0xc01   :  { %8723 = vmatpush3.bf16.msra.mxu0 %v7038_v6  ;;  %8702 = vmatprep.subr.bf16.mxu1 %v7031_v7  ;;  %v7376_v6 = vld [vmem:[#allocation5 + $0x230] sm:$0xff] }
 0xc02   :  { %8724 = vmatprep.subr.bf16.mxu0 %v7047_v19  ;;  %v7392_v7 = vld [vmem:[#allocation5 + $0x2b0] sm:$0xff]  ;;  %v7401_v19 = vld [vmem:[#allocation5 + $0x2f8] sm:$0xff] }
 0xc04   :  { %8703 = vmatpush3.bf16.msra.mxu1 %v7023_v20  ;;  %v7377_v20 = vld [vmem:[#allocation5 + $0x238] sm:$0xff] }
 0xc05   :  { %8725 = vmatpush3.bf16.msra.mxu0 %v7039_v27  ;;  %8704 = vmatprep.subr.bf16.mxu1 %v7032_v55  ;;  %v7493_v27 = vld [vmem:[#allocation4 + $0x48] sm:$0xff]  ;;  %v7495_v55 = vld [vmem:[#allocation4 + $0x58] sm:$0xff] }
 0xc06   :  { %8726 = vmatprep.subr.bf16.mxu0 %v7048_v32 }
 0xc08   :  { %8705 = vmatpush3.bf16.msra.mxu1 %v7024_v0 }
 0xc09   :  { %8727 = vmatpush3.bf16.msra.mxu0 %v7040_v5  ;;  %7171 = vmatprep.subr.bf16.mxu1 %v7139_v49 }
 0xc0a   :  { %7212 = vmatprep.subr.bf16.mxu0 %v7141_v61 }
 0xc0b   :  { %7090 = vmatmul.mubr.bf16.vlgmr.msra.gmra.mrb[108].mxu1 %v7012_v12 }
 0xc0c   :  { %7130 = vmatmul.mubr.bf16.vlgmr.msra.gmra.mrb[112].mxu0 %v7014_v24  ;;  %7172 = vmatpush1.bf16.msra.mxu1 %v7138_v31 }
 0xc0d   :  { %7213 = vmatpush1.bf16.msra.mxu0 %v7140_v9  ;;  %7173 = vmatprep.subr.bf16.mxu1 %v7143_v2 }
 0xc0e   :  { %7214 = vmatprep.subr.bf16.mxu0 %v7145_v11  ;;  %7203 = vmatprep.mubr.bf16.mxu1 %v14452_v15  ;;  %v8167_v11 = vld [vmem:[#allocation27 + $0x1] ss:$0 sm:$0xff] }
 0xc0f   :  { %7244 = vmatprep.mubr.bf16.mxu0 %v14452_v15 }
 0xc10   :  { %7174 = vmatpush1.bf16.msra.mxu1 %v7142_v56 }
 0xc11   :  { %7215 = vmatpush1.bf16.msra.mxu0 %v7144_v4  ;;  %8734 = vmatprep.subr.bf16.mxu1 %v7378_v46 }
 0xc12   :  { %8756 = vmatprep.subr.bf16.mxu0 %v7394_v39  ;;  %v7146_v39 = vld [vmem:[#allocation26] sm:$0xf] }
 0xc13   :  { %8168 = vmatmul.mubr.msk.bf16.vlgmr.msra.gmra.mrb[112].mxu1 %vm3533_vm3, %v7137_v17 }
 0xc14   :  { %8169 = vmatmul.mubr.msk.bf16.vlgmr.msra.gmra.mrb[116].mxu0 %vm3533_vm3, %v7137_v17  ;;  %8735 = vmatpush3.bf16.msra.mxu1 %v7370_v48 }
 0xc15   :  { %8757 = vmatpush3.bf16.msra.mxu0 %v7386_v63  ;;  %8736 = vmatprep.subr.bf16.mxu1 %v7379_v58 }
 0xc16   :  { %8758 = vmatprep.subr.bf16.mxu0 %v7395_v52 }
 0xc18   :  { %8737 = vmatpush3.bf16.msra.mxu1 %v7371_v40 }
 0xc19   :  { %8759 = vmatpush3.bf16.msra.mxu0 %v7387_v42  ;;  %8738 = vmatprep.subr.bf16.mxu1 %v7380_v33  ;;  %v7151_v42 = vrot.slane %v7146_v39, %v14453_v34 }
 0xc1a   :  { %8760 = vmatprep.subr.bf16.mxu0 %v7396_v14  ;;  %v7159_v14 = vrot.slane %v7146_v39, %v14454_v26 }
 0xc1c   :  { %8739 = vmatpush3.bf16.msra.mxu1 %v7372_v59  ;;  %v7155_v59 = vrot.slane %v7146_v39, %v14455_v38 }
 0xc1d   :  { %8761 = vmatpush3.bf16.msra.mxu0 %v7388_v23  ;;  %8740 = vmatprep.subr.bf16.mxu1 %v7381_v13  ;;  %v7163_v23 = vrot.slane %v7146_v39, %v14456_v16 }
 0xc1e   :  { %8762 = vmatprep.subr.bf16.mxu0 %v7397_v62 }
 0xc20   :  { %8741 = vmatpush3.bf16.msra.mxu1 %v7373_v35 }
 0xc21   :  { %8763 = vmatpush3.bf16.msra.mxu0 %v7389_v28  ;;  %8742 = vmatprep.subr.bf16.mxu1 %v7382_v54 }
 0xc22   :  { %8764 = vmatprep.subr.bf16.mxu0 %v7398_v1 }
 0xc24   :  { %8743 = vmatpush3.bf16.msra.mxu1 %v7374_v41 }
 0xc25   :  { %8765 = vmatpush3.bf16.msra.mxu0 %v7390_v60  ;;  %8744 = vmatprep.subr.bf16.mxu1 %v7383_v43 }
 0xc26   :  { %8766 = vmatprep.subr.bf16.mxu0 %v7399_v57 }
 0xc28   :  { %8745 = vmatpush3.bf16.msra.mxu1 %v7375_v51 }
 0xc29   :  { %8767 = vmatpush3.bf16.msra.mxu0 %v7391_v8  ;;  %8746 = vmatprep.subr.bf16.mxu1 %v7384_v30 }
 0xc2a   :  { %8768 = vmatprep.subr.bf16.mxu0 %v7400_v37 }
 0xc2c   :  { %8747 = vmatpush3.bf16.msra.mxu1 %v7376_v6 }
 0xc2d   :  { %8769 = vmatpush3.bf16.msra.mxu0 %v7392_v7  ;;  %8748 = vmatprep.subr.bf16.mxu1 %v7385_v10 }
 0xc2e   :  { %8770 = vmatprep.subr.bf16.mxu0 %v7401_v19 }
 0xc30   :  { %8749 = vmatpush3.bf16.msra.mxu1 %v7377_v20 }
 0xc31   :  { %8771 = vmatpush3.bf16.msra.mxu0 %v7393_v29  ;;  %7526 = vmatprep.subr.bf16.mxu1 %v7493_v27 }
 0xc32   :  { %7567 = vmatprep.subr.bf16.mxu0 %v7495_v55 }
 0xcbe   :  { %v8662_v22 = vpop.f32.mrb[104].mxu1 }
 0xcbf   :  { %v8684_v32 = vpop.f32.mrb[108].mxu0  ;;  %v8663_v36 = vpop.f32.mrb[105].mxu1 }
 0xcc0   :  { %v8664_v0 = vadd.f32 %v8663_v36, %v8662_v22  ;;  %v8685_v25 = vpop.f32.mrb[109].mxu0  ;;  %v8665_v5 = vpop.f32.mrb[106].mxu1 }
 0xcc1   :  { %v8686_v18 = vadd.f32 %v8685_v25, %v8684_v32  ;;  %v8687_v49 = vpop.f32.mrb[110].mxu0  ;;  %v8666_v61 = vpop.f32.mrb[107].mxu1 }
 0xcc2   :  { %v6967_v12 = vadd.f32 %v8664_v0, %v8166_v53  ;;  %v8688_v31 = vpop.f32.mrb[111].mxu0 }
 0xcc4   :  { %v7007_v24 = vadd.f32 %v8686_v18, %v6967_v12 }
 0xcc6   :  { %7888 = vst [vmem:[%s13925_s23 + $0x18] sm:$0xff] %v7007_v24 }
 0xcde   :  { %v8706_v9 = vpop.f32.mrb[108].mxu1 }
 0xcdf   :  { %v8728_v2 = vpop.f32.mrb[112].mxu0  ;;  %v8707_v56 = vpop.f32.mrb[109].mxu1 }
 0xce0   :  { %v8708_v4 = vadd.f32 %v8707_v56, %v8706_v9  ;;  %v8729_v17 = vpop.f32.mrb[113].mxu0  ;;  %v8709_v46 = vpop.f32.mrb[110].mxu1 }
 0xce1   :  { %v8730_v48 = vadd.f32 %v8729_v17, %v8728_v2  ;;  %v8731_v63 = vpop.f32.mrb[114].mxu0  ;;  %v8710_v58 = vpop.f32.mrb[111].mxu1 }
 0xce2   :  { %v7092_v52 = vadd.f32 %v8708_v4, %v8167_v11  ;;  %v8732_v40 = vpop.f32.mrb[115].mxu0 }
 0xce4   :  { %v7132_v33 = vadd.f32 %v8730_v48, %v7092_v52 }
 0xce6   :  { %7889 = vst [vmem:[%s13925_s23 + $0x20] sm:$0xff] %v7132_v33  ;;  %v7205_v13 = vpop.f32.mrb[112].mxu1 }
 0xce7   :  { %v7206_v62 = vadd.f32 %v7205_v13, %v7151_v42  ;;  %v7246_v35 = vpop.f32.mrb[116].mxu0  ;;  %v7207_v28 = vpop.f32.mrb[113].mxu1 }
 0xce8   :  { %v7247_v54 = vadd.f32 %v7246_v35, %v7159_v14  ;;  %v7208_v1 = vadd.f32 %v7207_v28, %v7155_v59  ;;  %v7248_v41 = vpop.f32.mrb[117].mxu0  ;;  %v7209_v60 = vpop.f32.mrb[114].mxu1 }
 0xce9   :  { %v7253_v43 = vrot.slane %v7206_v62, 4  ;;  %v7249_v57 = vadd.f32 %v7248_v41, %v7163_v23  ;;  %v7250_v51 = vpop.f32.mrb[118].mxu0  ;;  %v7210_v8 = vpop.f32.mrb[115].mxu1 }
 0xcea   :  { %v7265_v30 = vrot.slane %v7247_v54, 4  ;;  %v7259_v37 = vrot.slane %v7208_v1, 4  ;;  %v7251_v6 = vpop.f32.mrb[119].mxu0 }
 0xceb   :  { %v7254_v7 = vadd.f32 %v7253_v43, %v7206_v62  ;;  %v7271_v10 = vrot.slane %v7249_v57, 4 }
 0xcec   :  { %v7266_v19 = vadd.f32 %v7265_v30, %v7247_v54  ;;  %v7260_v20 = vadd.f32 %v7259_v37, %v7208_v1 }
 0xced   :  { %v7255_v29 = vrot.slane %v7254_v7, 2  ;;  %v7272_v27 = vadd.f32 %v7271_v10, %v7249_v57 }
 0xcee   :  { %v7267_v55 = vrot.slane %v7266_v19, 2  ;;  %v7261_v22 = vrot.slane %v7260_v20, 2 }
 0xcef   :  { %v7256_v32 = vadd.f32 %v7255_v29, %v7254_v7  ;;  %v7273_v53 = vrot.slane %v7272_v27, 2 }
 0xcf0   :  { %v7268_v36 = vadd.f32 %v7267_v55, %v7266_v19  ;;  %v7262_v0 = vadd.f32 %v7261_v22, %v7260_v20 }
 0xcf1   :  { %v7257_v25 = vrot.slane %v7256_v32, 1  ;;  %v7274_v5 = vadd.f32 %v7273_v53, %v7272_v27 }
 0xcf2   :  { %v7269_v18 = vrot.slane %v7268_v36, 1  ;;  %v7263_v49 = vrot.slane %v7262_v0, 1 }
 0xcf3   :  { %v7258_v61 = vadd.f32 %v7257_v25, %v7256_v32  ;;  %v7275_v12 = vrot.slane %v7274_v5, 1 }
 0xcf4   :  { %v7270_v31 = vadd.f32 %v7269_v18, %v7268_v36  ;;  %v7264_v24 = vadd.f32 %v7263_v49, %v7262_v0 }
 0xcf5   :  { %v7277_v9 = vmul.f32 0.125, %v7258_v61  ;;  %v7276_v2 = vadd.f32 %v7275_v12, %v7274_v5 }
 0xcf6   :  { %v7279_v11 = vmul.f32 0.125, %v7270_v31  ;;  %v7278_v56 = vmul.f32 0.125, %v7264_v24 }
 0xcf7   :  { %v7281_v4 = vsub.f32 %v7206_v62, %v7277_v9  ;;  %v7280_v17 = vmul.f32 0.125, %v7276_v2 }
 0xcf8   :  { %v7283_v46 = vsub.f32 %v7247_v54, %v7279_v11  ;;  %v7282_v39 = vsub.f32 %v7208_v1, %v7278_v56 }
 0xcf9   :  { %v7285_v48 = vmul.f32 %v7281_v4, %v7281_v4  ;;  %v7284_v63 = vsub.f32 %v7249_v57, %v7280_v17 }
 0xcfa   :  { %v7287_v58 = vmul.f32 %v7283_v46, %v7283_v46  ;;  %v7286_v52 = vmul.f32 %v7282_v39, %v7282_v39 }
 0xcfb   :  { %v7289_v40 = vrot.slane %v7285_v48, 4  ;;  %v7288_v42 = vmul.f32 %v7284_v63, %v7284_v63 }
 0xcfc   :  { %v7301_v33 = vrot.slane %v7287_v58, 4  ;;  %v7295_v14 = vrot.slane %v7286_v52, 4 }
 0xcfd   :  { %v7290_v59 = vadd.f32 %v7289_v40, %v7285_v48  ;;  %v7307_v23 = vrot.slane %v7288_v42, 4 }
 0xcfe   :  { %v7302_v13 = vadd.f32 %v7301_v33, %v7287_v58  ;;  %v7296_v35 = vadd.f32 %v7295_v14, %v7286_v52 }
 0xcff   :  { %v7291_v28 = vrot.slane %v7290_v59, 2  ;;  %v7308_v41 = vadd.f32 %v7307_v23, %v7288_v42 }
 0xd00   :  { %v7303_v60 = vrot.slane %v7302_v13, 2  ;;  %v7297_v43 = vrot.slane %v7296_v35, 2 }
 0xd01   :  { %v7292_v62 = vadd.f32 %v7291_v28, %v7290_v59  ;;  %v7309_v51 = vrot.slane %v7308_v41, 2 }
 0xd02   :  { %v7304_v54 = vadd.f32 %v7303_v60, %v7302_v13  ;;  %v7298_v1 = vadd.f32 %v7297_v43, %v7296_v35 }
 0xd03   :  { %v7293_v8 = vrot.slane %v7292_v62, 1  ;;  %v7310_v57 = vadd.f32 %v7309_v51, %v7308_v41 }
 0xd04   :  { %v7305_v30 = vrot.slane %v7304_v54, 1  ;;  %v7299_v37 = vrot.slane %v7298_v1, 1 }
 0xd05   :  { %v7294_v6 = vadd.f32 %v7293_v8, %v7292_v62  ;;  %v7311_v7 = vrot.slane %v7310_v57, 1 }
 0xd06   :  { %v7306_v10 = vadd.f32 %v7305_v30, %v7304_v54  ;;  %v7300_v19 = vadd.f32 %v7299_v37, %v7298_v1 }
 0xd07   :  { %v7313_v20 = vmul.f32 0.125, %v7294_v6  ;;  %v7312_v29 = vadd.f32 %v7311_v7, %v7310_v57 }
 0xd08   :  { %v7315_v27 = vmul.f32 0.125, %v7306_v10  ;;  %v7314_v55 = vmul.f32 0.125, %v7300_v19 }
 0xd09   :  { %v7317_v22 = vadd.f32 1e-05, %v7313_v20  ;;  %v7316_v32 = vmul.f32 0.125, %v7312_v29 }
 0xd0a   :  { %v7319_v53 = vadd.f32 1e-05, %v7315_v27  ;;  %v7318_v36 = vadd.f32 1e-05, %v7314_v55  ;;  %v7492_v55 = vld [vmem:[#allocation4 + $0x40] sm:$0xff] }
 0xd0b   :  { %9348 = vrsqrt.f32 %v7317_v22  ;;  %v7320_v0 = vadd.f32 1e-05, %v7316_v32  ;;  %v7494_v32 = vld [vmem:[#allocation4 + $0x50] sm:$0xff] }
 0xd0c   :  { %9350 = vrsqrt.f32 %v7319_v53  ;;  %v7497_v53 = vld [vmem:[#allocation4 + $0x68] sm:$0xff] }
 0xd0d   :  { %9352 = vrsqrt.f32 %v7318_v36  ;;  %v7499_v36 = vld [vmem:[#allocation4 + $0x78] sm:$0xff] }
 0xd0e   :  { %9354 = vrsqrt.f32 %v7320_v0  ;;  %v7496_v0 = vld [vmem:[#allocation4 + $0x60] sm:$0xff] }
 0xd15   :  { %v9349_v25 = vpop.eup %9348 }
 0xd16   :  { %v9351_v5 = vpop.eup %9350  ;;  %v7325_v18 = vmul.f32 %v9349_v25, %v7281_v4  ;;  %v7498_v25 = vld [vmem:[#allocation4 + $0x70] sm:$0xff] }
 0xd17   :  { %v9353_v49 = vpop.eup %9352  ;;  %v7327_v61 = vmul.f32 %v9351_v5, %v7283_v46  ;;  %v7490_v5 = vpack.c.bf16 %v14450_v21, %v14450_v21  ;;  %v7742_v21 = vld [vmem:[#allocation5 + $0x388] sm:$0xff] }
 0xd18   :  { %v9355_v12 = vpop.eup %9354  ;;  %v7333_v31 = vmul.f32 0.044715, %v7325_v18  ;;  %v7326_v24 = vmul.f32 %v9353_v49, %v7282_v39  ;;  %v7329_v62 = vmul.f32 0.5, %v7325_v18  ;;  %v7749_v49 = vld [vmem:[#allocation5 + $0x3c0] sm:$0xff] }
 0xd19   :  { %v7335_v9 = vmul.f32 0.044715, %v7327_v61  ;;  %v7328_v2 = vmul.f32 %v9355_v12, %v7284_v63  ;;  %v7331_v57 = vmul.f32 0.5, %v7327_v61  ;;  %v7741_v12 = vld [vmem:[#allocation5 + $0x380] sm:$0xff] }
 0xd1a   :  { %v7334_v11 = vmul.f32 0.044715, %v7326_v24  ;;  %v7337_v56 = vmul.f32 %v7333_v31, %v7325_v18  ;;  %v7330_v1 = vmul.f32 0.5, %v7326_v24  ;;  %v7734_v31 = vld [vmem:[#allocation5 + $0x348] sm:$0xff] }
 0xd1b   :  { %v7336_v17 = vmul.f32 0.044715, %v7328_v2  ;;  %v7339_v48 = vmul.f32 %v7335_v9, %v7327_v61  ;;  %v7332_v30 = vmul.f32 0.5, %v7328_v2  ;;  %v7735_v9 = vld [vmem:[#allocation5 + $0x350] sm:$0xff] }
 0xd1c   :  { %v7338_v58 = vmul.f32 %v7334_v11, %v7326_v24  ;;  %v7341_v52 = vmul.f32 %v7337_v56, %v7325_v18  ;;  %v7727_v11 = vld [vmem:[#allocation5 + $0x310] sm:$0xff] }
 0xd1d   :  { %v7340_v40 = vmul.f32 %v7336_v17, %v7328_v2  ;;  %v7343_v42 = vmul.f32 %v7339_v48, %v7327_v61  ;;  %v7743_v56 = vld [vmem:[#allocation5 + $0x390] sm:$0xff]  ;;  %v7736_v17 = vld [vmem:[#allocation5 + $0x358] sm:$0xff] }
 0xd1e   :  { %v7342_v33 = vmul.f32 %v7338_v58, %v7326_v24  ;;  %v7345_v14 = vadd.f32 %v7341_v52, %v7325_v18  ;;  %v7733_v18 = vld [vmem:[#allocation5 + $0x340] sm:$0xff]  ;;  %v7752_v48 = vld [vmem:[#allocation5 + $0x3d8] sm:$0xff] }
 0xd1f   :  { %v7344_v59 = vmul.f32 %v7340_v40, %v7328_v2  ;;  %v7347_v23 = vadd.f32 %v7343_v42, %v7327_v61  ;;  %v7725_v61 = vld [vmem:[#allocation5 + $0x300] sm:$0xff]  ;;  %v7728_v58 = vld [vmem:[#allocation5 + $0x318] sm:$0xff] }
 0xd20   :  { %v7346_v4 = vadd.f32 %v7342_v33, %v7326_v24  ;;  %v7349_v13 = vmul.f32 0.7978846, %v7345_v14  ;;  %v7750_v24 = vld [vmem:[#allocation5 + $0x3c8] sm:$0xff]  ;;  %v7744_v52 = vld [vmem:[#allocation5 + $0x398] sm:$0xff]  ;;  %v7737_v40 = vld [vmem:[#allocation5 + $0x360] sm:$0xff] }
 0xd21   :  { %v7348_v46 = vadd.f32 %v7344_v59, %v7328_v2  ;;  %v7351_v35 = vmul.f32 0.7978846, %v7347_v23  ;;  %v7751_v2 = vld [vmem:[#allocation5 + $0x3d0] sm:$0xff]  ;;  %v7753_v42 = vld [vmem:[#allocation5 + $0x3e0] sm:$0xff]  ;;  %v7738_v59 = vld [vmem:[#allocation5 + $0x368] sm:$0xff] }
 0xd22   :  { %v7350_v28 = vmul.f32 0.7978846, %v7346_v4  ;;  %9356 = vtanh.f32 %v7349_v13  ;;  %v7729_v33 = vld [vmem:[#allocation5 + $0x320] sm:$0xff]  ;;  %v7754_v23 = vld [vmem:[#allocation5 + $0x3e8] sm:$0xff] }
 0xd23   :  { %v7352_v39 = vmul.f32 0.7978846, %v7348_v46  ;;  %9358 = vtanh.f32 %v7351_v35  ;;  %v7745_v14 = vld [vmem:[#allocation5 + $0x3a0] sm:$0xff]  ;;  %v7730_v4 = vld [vmem:[#allocation5 + $0x328] sm:$0xff]  ;;  %v7739_v46 = vld [vmem:[#allocation5 + $0x370] sm:$0xff] }
 0xd24   :  { %9360 = vtanh.f32 %v7350_v28  ;;  %v7746_v13 = vld [vmem:[#allocation5 + $0x3a8] sm:$0xff]  ;;  %v7755_v35 = vld [vmem:[#allocation5 + $0x3f0] sm:$0xff] }
 0xd25   :  { %9362 = vtanh.f32 %v7352_v39  ;;  %v7731_v28 = vld [vmem:[#allocation5 + $0x330] sm:$0xff] }
 0xd26   :  { %v7747_v39 = vld [vmem:[#allocation5 + $0x3b0] sm:$0xff] }
 0xd2c   :  { %v9357_v63 = vpop.eup %9356 }
 0xd2d   :  { %v9359_v41 = vpop.eup %9358  ;;  %v7357_v60 = vadd.f32 1.0, %v9357_v63  ;;  %v7740_v63 = vld [vmem:[#allocation5 + $0x378] sm:$0xff] }
 0xd2e   :  { %v9361_v43 = vpop.eup %9360  ;;  %v7359_v51 = vadd.f32 1.0, %v9359_v41  ;;  %v7756_v41 = vld [vmem:[#allocation5 + $0x3f8] sm:$0xff] }
 0xd2f   :  { %v9363_v54 = vpop.eup %9362  ;;  %v7358_v8 = vadd.f32 1.0, %v9361_v43  ;;  %v7361_v6 = vmul.f32 %v7357_v60, %v7329_v62  ;;  %v7732_v60 = vld [vmem:[#allocation5 + $0x338] sm:$0xff]  ;;  %v7848_v62 = vpop.permute.xlu1 %7847 }
 0xd30   :  { %v7360_v37 = vadd.f32 1.0, %v9363_v54  ;;  %v7363_v10 = vmul.f32 %v7359_v51, %v7331_v57  ;;  %v7748_v43 = vld [vmem:[#allocation5 + $0x3b8] sm:$0xff]  ;;  %v7874_v51 = vsel %vm3533_vm3, %v13705_v45, %v13687_v44 }
 0xd31   :  { %v7362_v7 = vmul.f32 %v7358_v8, %v7330_v1  ;;  %v7365_v27 = vpack.c.bf16 %v7361_v6, %v7361_v6  ;;  %v7876_v54 = vsel %vm7875_vm7, %v7874_v51, %v7848_v62  ;;  %v7852_v8 = vpop.permute.xlu0 %7851 }
 0xd32   :  { %v7364_v19 = vmul.f32 %v7360_v37, %v7332_v30  ;;  %v7367_v22 = vpack.c.bf16 %v7363_v10, %v7363_v10  ;;  %v7878_v1 = vsel %vm7877_vm8, %v7876_v54, %v13708_v50  ;;  %v7879_v57 = vsel %vm3533_vm3, %v13623_v3, %v7852_v8 }
 0xd33   :  { %v7366_v20 = vpack.c.bf16 %v7362_v7, %v7362_v7  ;;  %7885 = vst [vmem:[%s13925_s23] sm:$0xff] %v7878_v1  ;;  %v7856_v30 = vpop.permute.xlu1 %7855  ;;  %v8170_v7 = vld [vmem:[#allocation27 + $0x2] ss:$0 sm:$0xff] }
 0xd34   :  { %v7368_v29 = vpack.c.bf16 %v7364_v19, %v7364_v19  ;;  %v7880_v37 = vsel %vm7875_vm7, %v7879_v57, %v7856_v30 }
 0xd35   :  { %7442 = vmatprep.mubr.bf16.mxu1 %v7366_v20 }
 0xd36   :  { %7482 = vmatprep.mubr.bf16.mxu0 %v7368_v29  ;;  %7443 = vmatmul.mubr.bf16.vlgmr.msra.gmra.mrb[116].mxu1 %v7365_v27  ;;  %v7501_v27 = vld [vmem:[#allocation26 + $0x4] sm:$0xf] }
 0xd37   :  { %7483 = vmatmul.mubr.bf16.vlgmr.msra.gmra.mrb[120].mxu0 %v7367_v22  ;;  %7527 = vmatpush1.bf16.msra.mxu1 %v7492_v55  ;;  %v7860_v6 = vpop.permute.xlu1 %7859 }
 0xd38   :  { %7568 = vmatpush1.bf16.msra.mxu0 %v7494_v32  ;;  %7528 = vmatprep.subr.bf16.mxu1 %v7497_v53  ;;  %v7881_v44 = vsel %vm7877_vm8, %v7880_v37, %v7860_v6 }
 0xd39   :  { %7569 = vmatprep.subr.bf16.mxu0 %v7499_v36  ;;  %7558 = vmatprep.mubr.bf16.mxu1 %v14452_v15  ;;  %7886 = vst [vmem:[%s13925_s23 + $0x8] sm:$0xff] %v7881_v44  ;;  %v7506_v36 = vrot.slane %v7501_v27, %v14453_v34 }
 0xd3a   :  { %7599 = vmatprep.mubr.bf16.mxu0 %v14452_v15  ;;  %v7726_v15 = vld [vmem:[#allocation5 + $0x308] sm:$0xff] }
 0xd3b   :  { %7529 = vmatpush1.bf16.msra.mxu1 %v7496_v0 }
 0xd3c   :  { %7570 = vmatpush1.bf16.msra.mxu0 %v7498_v25  ;;  %8778 = vmatprep.subr.bf16.mxu1 %v7733_v18  ;;  %v7514_v25 = vrot.slane %v7501_v27, %v14454_v26  ;;  %v7518_v18 = vrot.slane %v7501_v27, %v14456_v16 }
 0xd3d   :  { %8800 = vmatprep.subr.bf16.mxu0 %v7749_v49 }
 0xd3e   :  { %8171 = vmatmul.mubr.msk.bf16.vlgmr.msra.gmra.mrb[120].mxu1 %vm3533_vm3, %v7490_v5 }
 0xd3f   :  { %8172 = vmatmul.mubr.msk.bf16.vlgmr.msra.gmra.mrb[124].mxu0 %vm3533_vm3, %v7490_v5  ;;  %8779 = vmatpush3.bf16.msra.mxu1 %v7725_v61  ;;  %v7510_v5 = vrot.slane %v7501_v27, %v14455_v38 }
 0xd40   :  { %8801 = vmatpush3.bf16.msra.mxu0 %v7741_v12  ;;  %8780 = vmatprep.subr.bf16.mxu1 %v7734_v31 }
 0xd41   :  { %8802 = vmatprep.subr.bf16.mxu0 %v7750_v24 }
 0xd43   :  { %8781 = vmatpush3.bf16.msra.mxu1 %v7726_v15 }
 0xd44   :  { %8803 = vmatpush3.bf16.msra.mxu0 %v7742_v21  ;;  %8782 = vmatprep.subr.bf16.mxu1 %v7735_v9 }
 0xd45   :  { %8804 = vmatprep.subr.bf16.mxu0 %v7751_v2 }
 0xd47   :  { %8783 = vmatpush3.bf16.msra.mxu1 %v7727_v11 }
 0xd48   :  { %8805 = vmatpush3.bf16.msra.mxu0 %v7743_v56  ;;  %8784 = vmatprep.subr.bf16.mxu1 %v7736_v17 }
 0xd49   :  { %8806 = vmatprep.subr.bf16.mxu0 %v7752_v48 }
 0xd4b   :  { %8785 = vmatpush3.bf16.msra.mxu1 %v7728_v58 }
 0xd4c   :  { %8807 = vmatpush3.bf16.msra.mxu0 %v7744_v52  ;;  %8786 = vmatprep.subr.bf16.mxu1 %v7737_v40 }
 0xd4d   :  { %8808 = vmatprep.subr.bf16.mxu0 %v7753_v42 }
 0xd4f   :  { %8787 = vmatpush3.bf16.msra.mxu1 %v7729_v33 }
 0xd50   :  { %8809 = vmatpush3.bf16.msra.mxu0 %v7745_v14  ;;  %8788 = vmatprep.subr.bf16.mxu1 %v7738_v59 }
 0xd51   :  { %8810 = vmatprep.subr.bf16.mxu0 %v7754_v23 }
 0xd53   :  { %8789 = vmatpush3.bf16.msra.mxu1 %v7730_v4 }
 0xd54   :  { %8811 = vmatpush3.bf16.msra.mxu0 %v7746_v13  ;;  %8790 = vmatprep.subr.bf16.mxu1 %v7739_v46 }
 0xd55   :  { %8812 = vmatprep.subr.bf16.mxu0 %v7755_v35 }
 0xd57   :  { %8791 = vmatpush3.bf16.msra.mxu1 %v7731_v28 }
 0xd58   :  { %8813 = vmatpush3.bf16.msra.mxu0 %v7747_v39  ;;  %8792 = vmatprep.subr.bf16.mxu1 %v7740_v63 }
 0xd59   :  { %8814 = vmatprep.subr.bf16.mxu0 %v7756_v41 }
 0xd5b   :  { %8793 = vmatpush3.bf16.msra.mxu1 %v7732_v60 }
 0xd5c   :  { %8815 = vmatpush3.bf16.msra.mxu0 %v7748_v43 }
 0xe09   :  { %v8750_v45 = vpop.f32.mrb[116].mxu1 }
 0xe0a   :  { %v8772_v50 = vpop.f32.mrb[120].mxu0  ;;  %v8751_v10 = vpop.f32.mrb[117].mxu1 }
 0xe0b   :  { %v8752_v19 = vadd.f32 %v8751_v10, %v8750_v45  ;;  %v8773_v20 = vpop.f32.mrb[121].mxu0  ;;  %v8753_v29 = vpop.f32.mrb[118].mxu1 }
 0xe0c   :  { %v8774_v55 = vadd.f32 %v8773_v20, %v8772_v50  ;;  %v8775_v3 = vpop.f32.mrb[122].mxu0  ;;  %v8754_v22 = vpop.f32.mrb[119].mxu1 }
 0xe0d   :  { %v7445_v32 = vadd.f32 %v8752_v19, %v8170_v7  ;;  %v8776_v53 = vpop.f32.mrb[123].mxu0 }
 0xe0f   :  { %v7485_v0 = vadd.f32 %v8774_v55, %v7445_v32 }
 0xe11   :  { %7890 = vst [vmem:[%s13925_s23 + $0x28] sm:$0xff] %v7485_v0  ;;  %v7560_v49 = vpop.f32.mrb[120].mxu1 }
 0xe12   :  { %v7561_v61 = vadd.f32 %v7560_v49, %v7506_v36  ;;  %v7601_v12 = vpop.f32.mrb[124].mxu0  ;;  %v7562_v31 = vpop.f32.mrb[121].mxu1 }
 0xe13   :  { %v7602_v24 = vadd.f32 %v7601_v12, %v7514_v25  ;;  %v7563_v15 = vadd.f32 %v7562_v31, %v7510_v5  ;;  %v7603_v21 = vpop.f32.mrb[125].mxu0  ;;  %v7564_v9 = vpop.f32.mrb[122].mxu1 }
 0xe14   :  { %v7608_v34 = vrot.slane %v7561_v61, 4  ;;  %v7604_v2 = vadd.f32 %v7603_v21, %v7518_v18  ;;  %v7605_v11 = vpop.f32.mrb[126].mxu0  ;;  %v7565_v26 = vpop.f32.mrb[123].mxu1 }
 0xe15   :  { %v7620_v56 = vrot.slane %v7602_v24, 4  ;;  %v7614_v38 = vrot.slane %v7563_v15, 4  ;;  %v7606_v17 = vpop.f32.mrb[127].mxu0 }
 0xe16   :  { %v7609_v16 = vadd.f32 %v7608_v34, %v7561_v61  ;;  %v7626_v48 = vrot.slane %v7604_v2, 4 }
 0xe17   :  { %v7621_v58 = vadd.f32 %v7620_v56, %v7602_v24  ;;  %v7615_v52 = vadd.f32 %v7614_v38, %v7563_v15 }
 0xe18   :  { %v7610_v40 = vrot.slane %v7609_v16, 2  ;;  %v7627_v42 = vadd.f32 %v7626_v48, %v7604_v2 }
 0xe19   :  { %v7622_v33 = vrot.slane %v7621_v58, 2  ;;  %v7616_v14 = vrot.slane %v7615_v52, 2 }
 0xe1a   :  { %v7611_v59 = vadd.f32 %v7610_v40, %v7609_v16  ;;  %v7628_v23 = vrot.slane %v7627_v42, 2 }
 0xe1b   :  { %v7623_v4 = vadd.f32 %v7622_v33, %v7621_v58  ;;  %v7617_v13 = vadd.f32 %v7616_v14, %v7615_v52 }
 0xe1c   :  { %v7612_v46 = vrot.slane %v7611_v59, 1  ;;  %v7629_v35 = vadd.f32 %v7628_v23, %v7627_v42 }
 0xe1d   :  { %v7624_v28 = vrot.slane %v7623_v4, 1  ;;  %v7618_v39 = vrot.slane %v7617_v13, 1 }
 0xe1e   :  { %v7613_v63 = vadd.f32 %v7612_v46, %v7611_v59  ;;  %v7630_v41 = vrot.slane %v7629_v35, 1 }
 0xe1f   :  { %v7625_v60 = vadd.f32 %v7624_v28, %v7623_v4  ;;  %v7619_v43 = vadd.f32 %v7618_v39, %v7617_v13 }
 0xe20   :  { %v7632_v62 = vmul.f32 0.125, %v7613_v63  ;;  %v7631_v51 = vadd.f32 %v7630_v41, %v7629_v35 }
 0xe21   :  { %v7634_v54 = vmul.f32 0.125, %v7625_v60  ;;  %v7633_v1 = vmul.f32 0.125, %v7619_v43 }
 0xe22   :  { %v7636_v8 = vsub.f32 %v7561_v61, %v7632_v62  ;;  %v7635_v57 = vmul.f32 0.125, %v7631_v51 }
 0xe23   :  { %v7638_v30 = vsub.f32 %v7602_v24, %v7634_v54  ;;  %v7637_v37 = vsub.f32 %v7563_v15, %v7633_v1 }
 0xe24   :  { %v7640_v6 = vmul.f32 %v7636_v8, %v7636_v8  ;;  %v7639_v44 = vsub.f32 %v7604_v2, %v7635_v57 }
 0xe25   :  { %v7642_v45 = vmul.f32 %v7638_v30, %v7638_v30  ;;  %v7641_v50 = vmul.f32 %v7637_v37, %v7637_v37 }
 0xe26   :  { %v7644_v7 = vrot.slane %v7640_v6, 4  ;;  %v7643_v10 = vmul.f32 %v7639_v44, %v7639_v44 }
 0xe27   :  { %v7656_v19 = vrot.slane %v7642_v45, 4  ;;  %v7650_v20 = vrot.slane %v7641_v50, 4 }
 0xe28   :  { %v7645_v29 = vadd.f32 %v7644_v7, %v7640_v6  ;;  %v7662_v27 = vrot.slane %v7643_v10, 4 }
 0xe29   :  { %v7657_v55 = vadd.f32 %v7656_v19, %v7642_v45  ;;  %v7651_v3 = vadd.f32 %v7650_v20, %v7641_v50 }
 0xe2a   :  { %v7646_v22 = vrot.slane %v7645_v29, 2  ;;  %v7663_v32 = vadd.f32 %v7662_v27, %v7643_v10 }
 0xe2b   :  { %v7658_v53 = vrot.slane %v7657_v55, 2  ;;  %v7652_v36 = vrot.slane %v7651_v3, 2 }
 0xe2c   :  { %v7647_v0 = vadd.f32 %v7646_v22, %v7645_v29  ;;  %v7664_v25 = vrot.slane %v7663_v32, 2 }
 0xe2d   :  { %v7659_v5 = vadd.f32 %v7658_v53, %v7657_v55  ;;  %v7653_v18 = vadd.f32 %v7652_v36, %v7651_v3 }
 0xe2e   :  { %v7648_v49 = vrot.slane %v7647_v0, 1  ;;  %v7665_v61 = vadd.f32 %v7664_v25, %v7663_v32 }
 0xe2f   :  { %v7660_v12 = vrot.slane %v7659_v5, 1  ;;  %v7654_v31 = vrot.slane %v7653_v18, 1 }
 0xe30   :  { %v7649_v24 = vadd.f32 %v7648_v49, %v7647_v0  ;;  %v7666_v15 = vrot.slane %v7665_v61, 1 }
 0xe31   :  { %v7661_v21 = vadd.f32 %v7660_v12, %v7659_v5  ;;  %v7655_v9 = vadd.f32 %v7654_v31, %v7653_v18  ;;  %v7864_v12 = vpop.permute.xlu0 %7863 }
 0xe32   :  { %v7668_v34 = vmul.f32 0.125, %v7649_v24  ;;  %v7667_v2 = vadd.f32 %v7666_v15, %v7665_v61  ;;  %v7882_v24 = vsel %vm3533_vm3, %v7864_v12, %v13671_v47 }
 0xe33   :  { %v7670_v11 = vmul.f32 0.125, %v7661_v21  ;;  %v7669_v26 = vmul.f32 0.125, %v7655_v9 }
 0xe34   :  { %v7672_v56 = vadd.f32 1e-05, %v7668_v34  ;;  %v7671_v38 = vmul.f32 0.125, %v7667_v2 }
 0xe35   :  { %v7674_v17 = vadd.f32 1e-05, %v7670_v11  ;;  %v7673_v16 = vadd.f32 1e-05, %v7669_v26  ;;  %v7868_v31 = vpop.permute.xlu0 %7867  ;;  %v8173_v11 = vld [vmem:[#allocation27 + $0x3] ss:$0 sm:$0xff] }
 0xe36   :  { %9364 = vrsqrt.f32 %v7672_v56  ;;  %v7675_v48 = vadd.f32 1e-05, %v7671_v38  ;;  %v7883_v15 = vsel %vm7875_vm7, %v7882_v24, %v7868_v31 }
 0xe37   :  { %9366 = vrsqrt.f32 %v7674_v17 }
 0xe38   :  { %9368 = vrsqrt.f32 %v7673_v16 }
 0xe39   :  { %9370 = vrsqrt.f32 %v7675_v48  ;;  %v7872_v21 = vpop.permute.xlu0 %7871 }
 0xe3a   :  { %v7884_v9 = vsel %vm7877_vm8, %v7883_v15, %v7872_v21 }
 0xe3b   :  { %7887 = vst [vmem:[%s13925_s23 + $0x10] sm:$0xff] %v7884_v9 }
 0xe40   :  { %v9365_v58 = vpop.eup %9364 }
 0xe41   :  { %v9367_v52 = vpop.eup %9366  ;;  %v7680_v40 = vmul.f32 %v9365_v58, %v7636_v8 }
 0xe42   :  { %v9369_v42 = vpop.eup %9368  ;;  %v7682_v33 = vmul.f32 %v9367_v52, %v7638_v30 }
 0xe43   :  { %v9371_v14 = vpop.eup %9370  ;;  %v7688_v59 = vmul.f32 0.044715, %v7680_v40  ;;  %v7681_v23 = vmul.f32 %v9369_v42, %v7637_v37  ;;  %v7684_v19 = vmul.f32 0.5, %v7680_v40 }
 0xe44   :  { %v7690_v4 = vmul.f32 0.044715, %v7682_v33  ;;  %v7683_v13 = vmul.f32 %v9371_v14, %v7639_v44  ;;  %v7686_v3 = vmul.f32 0.5, %v7682_v33 }
 0xe45   :  { %v7689_v46 = vmul.f32 0.044715, %v7681_v23  ;;  %v7692_v35 = vmul.f32 %v7688_v59, %v7680_v40  ;;  %v7685_v27 = vmul.f32 0.5, %v7681_v23 }
 0xe46   :  { %v7691_v28 = vmul.f32 0.044715, %v7683_v13  ;;  %v7694_v39 = vmul.f32 %v7690_v4, %v7682_v33  ;;  %v7687_v22 = vmul.f32 0.5, %v7683_v13 }
 0xe47   :  { %v7693_v63 = vmul.f32 %v7689_v46, %v7681_v23  ;;  %v7696_v41 = vmul.f32 %v7692_v35, %v7680_v40 }
 0xe48   :  { %v7695_v60 = vmul.f32 %v7691_v28, %v7683_v13  ;;  %v7698_v43 = vmul.f32 %v7694_v39, %v7682_v33 }
 0xe49   :  { %v7697_v62 = vmul.f32 %v7693_v63, %v7681_v23  ;;  %v7700_v51 = vadd.f32 %v7696_v41, %v7680_v40 }
 0xe4a   :  { %v7699_v54 = vmul.f32 %v7695_v60, %v7683_v13  ;;  %v7702_v1 = vadd.f32 %v7698_v43, %v7682_v33 }
 0xe4b   :  { %v7701_v8 = vadd.f32 %v7697_v62, %v7681_v23  ;;  %v7704_v57 = vmul.f32 0.7978846, %v7700_v51 }
 0xe4c   :  { %v7703_v30 = vadd.f32 %v7699_v54, %v7683_v13  ;;  %v7706_v6 = vmul.f32 0.7978846, %v7702_v1 }
 0xe4d   :  { %v7705_v45 = vmul.f32 0.7978846, %v7701_v8  ;;  %9372 = vtanh.f32 %v7704_v57 }
 0xe4e   :  { %v7707_v37 = vmul.f32 0.7978846, %v7703_v30  ;;  %9374 = vtanh.f32 %v7706_v6 }
 0xe4f   :  { %9376 = vtanh.f32 %v7705_v45 }
 0xe50   :  { %9378 = vtanh.f32 %v7707_v37 }
 0xe57   :  { %v9373_v44 = vpop.eup %9372 }
 0xe58   :  { %v9375_v50 = vpop.eup %9374  ;;  %v7712_v7 = vadd.f32 1.0, %v9373_v44 }
 0xe59   :  { %v9377_v10 = vpop.eup %9376  ;;  %v7714_v20 = vadd.f32 1.0, %v9375_v50 }
 0xe5a   :  { %v9379_v29 = vpop.eup %9378  ;;  %v7713_v55 = vadd.f32 1.0, %v9377_v10  ;;  %v7716_v53 = vmul.f32 %v7712_v7, %v7684_v19 }
 0xe5b   :  { %v7715_v32 = vadd.f32 1.0, %v9379_v29  ;;  %v7718_v0 = vmul.f32 %v7714_v20, %v7686_v3 }
 0xe5c   :  { %v7717_v36 = vmul.f32 %v7713_v55, %v7685_v27  ;;  %v7720_v49 = vpack.c.bf16 %v7716_v53, %v7716_v53 }
 0xe5d   :  { %v7719_v25 = vmul.f32 %v7715_v32, %v7687_v22  ;;  %v7722_v61 = vpack.c.bf16 %v7718_v0, %v7718_v0 }
 0xe5e   :  { %v7721_v5 = vpack.c.bf16 %v7717_v36, %v7717_v36 }
 0xe5f   :  { %v7723_v18 = vpack.c.bf16 %v7719_v25, %v7719_v25 }
 0xe60   :  { %7797 = vmatprep.mubr.bf16.mxu1 %v7721_v5 }
 0xe61   :  { %7837 = vmatprep.mubr.bf16.mxu0 %v7723_v18  ;;  %7798 = vmatmul.mubr.bf16.vlgmr.msra.gmra.mrb[124].mxu1 %v7720_v49 }
 0xe62   :  { %7838 = vmatmul.mubr.bf16.vlgmr.msra.gmra.mrb[128].mxu0 %v7722_v61 }
 0xf34   :  { %v8794_v34 = vpop.f32.mrb[124].mxu1 }
 0xf35   :  { %v8816_v2 = vpop.f32.mrb[128].mxu0  ;;  %v8795_v26 = vpop.f32.mrb[125].mxu1 }
 0xf36   :  { %v8796_v56 = vadd.f32 %v8795_v26, %v8794_v34  ;;  %v8817_v38 = vpop.f32.mrb[129].mxu0  ;;  %v8797_v17 = vpop.f32.mrb[126].mxu1 }
 0xf37   :  { %v8818_v16 = vadd.f32 %v8817_v38, %v8816_v2  ;;  %v8819_v48 = vpop.f32.mrb[130].mxu0  ;;  %v8798_v58 = vpop.f32.mrb[127].mxu1 }
 0xf38   :  { %v7800_v47 = vadd.f32 %v8796_v56, %v8173_v11  ;;  %v8820_v52 = vpop.f32.mrb[131].mxu0 }
 0xf3a   :  { %v7840_v40 = vadd.f32 %v8818_v16, %v7800_v47 }
 0xf3c   :  { %7891 = vst [vmem:[%s13925_s23 + $0x30] sm:$0xff] %v7840_v40 }
 0xf3d   :  { %7896 = vsyncpa [#allocation8], 1 }
 0xf3e   :  { %7897 = vsyncpa [#allocation10], 1 }
 0xf3f   :  { %7898 = vsyncpa [#allocation13], 1 }
 0xf40   :  { %7899 = vsyncpa [#allocation16], 1 }
 0xf41   :  { %7900 = vsyncpa [#allocation19], 1 }
 0xf42   :  { %7901 = vsyncpa [#allocation22], 1 }
 0xf43   :  { %7902 = vsyncpa [#allocation25], 1 }
 0xf44   :  { %7903 = vsyncpa [#allocation28], 1 }
 0xf45   :  { %7904 = vsyncmov [#allocation6] }
 0xf48   :  { %s7905_s24 = vpop.sfrf %7904 }
 0xf49   :  { %p8174_p8 = scmp.ne.s32.totalorder %s7905_s24, 0 }
 0xf4b   :  { %7909 = shalt.err (%p8174_p8)  }
 0xf4c   :  { %7911 = vsyncmov [#allocation6 + $0x1] }
 0xf4f   :  { %s7912_s2 = vpop.sfrf %7911 }
 0xf50   :  { %p8175_p9 = scmp.ne.s32.totalorder %s7912_s2, 0 }
 0xf52   :  { %7916 = shalt.err (%p8175_p9)  }
 0xf53   :  { %7918 = vsyncmov [#allocation6 + $0x2] }
 0xf56   :  { %s7919_s6 = vpop.sfrf %7918 }
 0xf57   :  { %p8176_p10 = scmp.ne.s32.totalorder %s7919_s6, 0 }
 0xf59   :  { %7923 = shalt.err (%p8176_p10)  }
 0xf5a   :  { %7925 = vsyncmov [#allocation6 + $0x3] }
 0xf5d   :  { %s7926_s23 = vpop.sfrf %7925 }
 0xf5e   :  { %p8177_p11 = scmp.ne.s32.totalorder %s7926_s23, 0 }
 0xf60   :  { %7930 = shalt.err (%p8177_p11)  }

</bundles_post_ra>
